<compile_context>
chip_gen: v7x
topology: tpu7x:2x2x1
jax: 0.10.0
libtpu: 0.0.40
codegen_flags: <defaults>
</compile_context>

<pallas_src>
import jax
import jax.numpy as jnp
from jax import lax
from jax.experimental import pallas as pl
from jax.experimental.pallas import tpu as pltpu

K = 4             # kernel_size
STRIDE = 2        # stride
PAD = 1           # padding
EPS = 1e-5        # nn.InstanceNorm2d default eps
NEG_SLOPE = 0.01  # nn.LeakyReLU default negative_slope

# Sub-pixel decomposition of ConvTranspose2d(k=4, s=2, p=1).
# Output row oh = 2*i + ph receives:
#   ph=0:  x[i]   * w[kh=1]  +  x[i-1] * w[kh=3]
#   ph=1:  x[i+1] * w[kh=0]  +  x[i]   * w[kh=2]
# With the input padded by 1 (x_pad[r] = x[r-1]) the per-tap window over all i=0..H-1 is the
# contiguous slice x_pad[r0 : r0+H] with:
#   ph=0: (r0, kh) in {(1, 1), (0, 3)}      ph=1: (r0, kh) in {(2, 0), (1, 2)}
# and identically for columns / kw.
ROW_TAPS = (((1, 1), (0, 3)), ((2, 0), (1, 2)))   # [ph] -> ((r0, kh), (r0, kh))
COL_TAPS = (((1, 1), (0, 3)), ((2, 0), (1, 2)))   # [pw] -> ((c0, kw), (c0, kw))


def _phase_taps(ph, pw):
    """(r0, c0, kh, kw) for the 4 taps of output phase (oh%2, ow%2) == (ph, pw)."""
    return [(r0, c0, kh, kw)
            for (r0, kh) in ROW_TAPS[ph]
            for (c0, kw) in COL_TAPS[pw]]


def _upsampler_kernel(x_ref, w_ref, o_ref, patch_ref):
    # x_ref:     (1, H+2, W+2, Cin)     padded NHWC input (bf16 or f32)
    # w_ref:     (2, 2, Cout, 4*Cin)    per-phase fused ConvTranspose weights
    # o_ref:     (1, 2, 2, Cout, H*W)   per-phase, channel-major, lane-dense output (f32)
    # patch_ref: (H, W, 4*Cin) f32      VMEM im2col staging slab (one phase at a time)
    _, Hp, Wp, Cin = x_ref.shape
    _, _, _, Cout, S = o_ref.shape
    H, W = Hp - 2, Wp - 2
    n_spatial = 4 * H * W                      # = OH * OW, InstanceNorm reduction size

    # ---- transposed conv: one fused (Cout, 4*Cin) @ (H*W, 4*Cin)^T matmul per phase ----
    accs = []
    ch_sum = jnp.zeros((Cout, 1), jnp.float32)
    for ph in range(2):
        for pw in range(2):
            # Stage the 4 shifted input windows side-by-side along channels (im2col slab).
            for t, (r0, c0, _kh, _kw) in enumerate(_phase_taps(ph, pw)):
                win = x_ref[0, r0:r0 + H, c0:c0 + W, :]            # (H, W, Cin)
                patch_ref[:, :, t * Cin:(t + 1) * Cin] = win.astype(patch_ref.dtype)
            # (H, W, 4*Cin) -> (H*W, 4*Cin): leading-dim merge only (lane dim unchanged).
            patch = patch_ref[...].reshape(H * W, 4 * Cin).astype(w_ref.dtype)
            acc = lax.dot_general(                                 # (Cout, H*W), f32 accum
                w_ref[ph, pw], patch,
                dimension_numbers=(((1,), (1,)), ((), ())),
                preferred_element_type=jnp.float32)
            accs.append(acc)
            ch_sum = ch_sum + jnp.sum(acc, axis=1, keepdims=True)

    # ---- InstanceNorm2d (affine=False, biased variance, eps=1e-5) over all 4 phases ----
    # (ConvTranspose bias omitted: a per-channel constant cancels under mean subtraction.)
    mean = ch_sum * (1.0 / n_spatial)                              # (Cout, 1)
    centered = [acc - mean for acc in accs]
    var = jnp.zeros((Cout, 1), jnp.float32)
    for c in centered:
        var = var + jnp.sum(c * c, axis=1, keepdims=True)
    var = var * (1.0 / n_spatial)
    inv = lax.rsqrt(var + EPS)                                     # (Cout, 1)

    # ---- normalize + LeakyReLU; lane-dense (Cout, H*W) stores ----
    idx = 0
    for ph in range(2):
        for pw in range(2):
            y = centered[idx] * inv
            y = jnp.where(y >= 0, y, NEG_SLOPE * y)
            o_ref[0, ph, pw] = y.astype(o_ref.dtype)
            idx += 1


def upsampler_forward(x_nchw, w_t, b=None, *, matmul_dtype=jnp.bfloat16):
    """Forward pass of Upsampler (apply_dropout=False).

    x_nchw: (N, Cin, H, W)        float32
    w_t:    (Cin, Cout, K, K)     PyTorch ConvTranspose2d weight layout
    b:      (Cout,)               ConvTranspose2d bias; accepted for API parity but unused
                                  (exactly cancelled by InstanceNorm's mean subtraction).
    returns (N, Cout, 2H, 2W)     float32
    """
    del b
    N, Cin, H, W = x_nchw.shape
    Cout = w_t.shape[1]
    OH, OW = STRIDE * H, STRIDE * W
    S = H * W

    # ---- input: NCHW -> NHWC, pad spatially by 1 (~1.1x, vs 4x for zero-insertion) ----
    x = jnp.transpose(x_nchw, (0, 2, 3, 1)).astype(matmul_dtype)
    x_pad = jnp.pad(x, ((0, 0), (1, 1), (1, 1), (0, 0)))
    Hp, Wp = H + 2, W + 2

    # ---- weights: (Cin, Cout, K, K) -> per-phase fused (2, 2, Cout, 4*Cin) ----
    w_f = w_t.astype(jnp.float32)
    w_phases = jnp.stack([
        jnp.stack([
            jnp.concatenate(
                [jnp.transpose(w_f[:, :, kh, kw])                  # (Cout, Cin) per tap
                 for (_, _, kh, kw) in _phase_taps(ph, pw)],
                axis=1)                                            # (Cout, 4*Cin)
            for pw in range(2)], axis=0)
        for ph in range(2)], axis=0).astype(matmul_dtype)          # (2, 2, Cout, 4*Cin)

    flops = 2 * N * OH * OW * Cout * (4 * Cin)
    bytes_accessed = (x_pad.size * x_pad.dtype.itemsize
                      + w_phases.size * w_phases.dtype.itemsize
                      + N * OH * OW * Cout * 4)

    out_phased = pl.pallas_call(
        _upsampler_kernel,
        out_shape=jax.ShapeDtypeStruct((N, 2, 2, Cout, S), jnp.float32),
        grid_spec=pltpu.PrefetchScalarGridSpec(
            num_scalar_prefetch=0,
            grid=(N,),
            in_specs=[
                pl.BlockSpec((1, Hp, Wp, Cin), lambda n: (n, 0, 0, 0)),
                pl.BlockSpec((2, 2, Cout, 4 * Cin), lambda n: (0, 0, 0, 0)),
            ],
            out_specs=pl.BlockSpec((1, 2, 2, Cout, S), lambda n: (n, 0, 0, 0, 0)),
            scratch_shapes=[pltpu.VMEM((H, W, 4 * Cin), jnp.float32)],
        ),
        compiler_params=pltpu.CompilerParams(
            dimension_semantics=("parallel",),
            vmem_limit_bytes=64 * 1024 * 1024,
        ),
        cost_estimate=pl.CostEstimate(
            flops=flops, transcendentals=N * Cout, bytes_accessed=bytes_accessed),
    )(x_pad, w_phases)

    # (N, ph, pw, Cout, H*W) -> (N, Cout, OH, OW): pure phase interleave.
    out = out_phased.reshape(N, 2, 2, Cout, H, W)
    out = jnp.transpose(out, (0, 3, 4, 1, 5, 2))                   # (N, Cout, H, 2, W, 2)
    return out.reshape(N, Cout, OH, OW)


def _reference(x_nchw, w_t, b):
    """Pure-JAX f32 reference: ConvTranspose2d(4,2,1)+bias -> InstanceNorm2d -> LeakyReLU."""
    Cout = w_t.shape[1]
    w_flip = w_t[:, :, ::-1, ::-1]                                 # (Cin, Cout, K, K)
    y = lax.conv_general_dilated(
        x_nchw, jnp.transpose(w_flip, (1, 0, 2, 3)),               # -> OIHW
        window_strides=(1, 1),
        padding=((K - 1 - PAD,) * 2, (K - 1 - PAD,) * 2),
        lhs_dilation=(STRIDE, STRIDE),
        dimension_numbers=("NCHW", "OIHW", "NCHW"))
    y = y + b.reshape(1, Cout, 1, 1)
    mean = jnp.mean(y, axis=(2, 3), keepdims=True)
    var = jnp.mean((y - mean) ** 2, axis=(2, 3), keepdims=True)
    yn = (y - mean) / jnp.sqrt(var + EPS)
    return jnp.where(yn >= 0, yn, NEG_SLOPE * yn)


if __name__ == "__main__":
    key = jax.random.PRNGKey(0)
    kx, kw, kb = jax.random.split(key, 3)

    N, Cin, H, W = 2, 4, 16, 16
    filters = 8  # out_channels of the (lazy) ConvTranspose2d

    x = jax.random.normal(kx, (N, Cin, H, W), jnp.float32)
    # Deterministic parameter init (PyTorch ConvTranspose2d weight layout: (Cin, Cout, kH, kW))
    bound = 1.0 / float((Cin * K * K) ** 0.5)
    w_t = jax.random.uniform(kw, (Cin, filters, K, K), jnp.float32, -bound, bound)
    b = jax.random.uniform(kb, (filters,), jnp.float32, -bound, bound)

    fwd = jax.jit(upsampler_forward)
    out = jax.block_until_ready(fwd(x, w_t, b))
    assert out.shape == (N, filters, STRIDE * H, STRIDE * W)

    # Tight check: reference fed the same bf16-rounded operands the kernel's MXU sees
    # (f32 accumulation on both sides) -> differences are pure rounding/accumulation order.
    xq = x.astype(jnp.bfloat16).astype(jnp.float32)
    wq = w_t.astype(jnp.bfloat16).astype(jnp.float32)
    ref_q = _reference(xq, wq, b)
    assert jnp.allclose(out, ref_q, atol=1e-3, rtol=1e-3), "mismatch vs bf16-operand reference"

    # Loose check: full-f32 reference (bounds the bf16 operand-rounding error end to end).
    ref_f = _reference(x, w_t, b)
    assert jnp.allclose(out, ref_f, atol=1e-1, rtol=1e-1), "mismatch vs f32 reference"

    print("KERNEL_OK")
</pallas_src>

<mosaic_0001>
module attributes {stable_mosaic.version = 11 : i64} {
  func.func @_upsampler_kernel(%arg0: i32, %arg1: memref<1x18x18x4xbf16, #tpu.memory_space<vmem>>, %arg2: memref<2x2x8x16xbf16, #tpu.memory_space<vmem>>, %arg3: memref<1x2x2x8x256xf32, #tpu.memory_space<vmem>>, %arg4: memref<16x16x16xf32, #tpu.memory_space<vmem>>) attributes {dimension_semantics = [#tpu.dimension_semantics<parallel>], iteration_bounds = array<i64: 2>, scalar_prefetch = 0 : i64, scratch_operands = 1 : i64, tpu.core_type = #tpu.core_type<tc>, window_params = [{transform_indices = @transform_0, window_bounds = array<i64: 1, 18, 18, 4>}, {pipeline_mode = #tpu.pipeline_mode<synchronous>, transform_indices = @transform_1, window_bounds = array<i64: 2, 2, 8, 16>}, {transform_indices = @transform_2, window_bounds = array<i64: 1, 2, 2, 8, 256>}]} {
    %cst = arith.constant 0.000000e+00 : f32
    %0 = vector.broadcast %cst : f32 to vector<8x1xf32>
    %c0 = arith.constant 0 : index
    %c1 = arith.constant 1 : index
    %c1_0 = arith.constant 1 : index
    %c0_1 = arith.constant 0 : index
    %1 = vector.load %arg1[%c0, %c1, %c1_0, %c0_1] : memref<1x18x18x4xbf16, #tpu.memory_space<vmem>>, vector<1x16x16x4xbf16>
    %2 = vector.shape_cast %1 : vector<1x16x16x4xbf16> to vector<16x16x4xbf16>
    %3 = arith.extf %2 : vector<16x16x4xbf16> to vector<16x16x4xf32>
    %c0_2 = arith.constant 0 : index
    %c0_3 = arith.constant 0 : index
    %c0_4 = arith.constant 0 : index
    %4 = vector.load %arg4[%c0_2, %c0_3, %c0_4] : memref<16x16x16xf32, #tpu.memory_space<vmem>>, vector<16x16x4xf32>
    tpu.vector_store %arg4[%c0_2, %c0_3, %c0_4], %3 {strides = array<i32>} : memref<16x16x16xf32, #tpu.memory_space<vmem>>, vector<16x16x4xf32>,
    %c0_5 = arith.constant 0 : index
    %c1_6 = arith.constant 1 : index
    %c0_7 = arith.constant 0 : index
    %c0_8 = arith.constant 0 : index
    %5 = vector.load %arg1[%c0_5, %c1_6, %c0_7, %c0_8] : memref<1x18x18x4xbf16, #tpu.memory_space<vmem>>, vector<1x16x16x4xbf16>
    %6 = vector.shape_cast %5 : vector<1x16x16x4xbf16> to vector<16x16x4xbf16>
    %7 = arith.extf %6 : vector<16x16x4xbf16> to vector<16x16x4xf32>
    %c0_9 = arith.constant 0 : index
    %c0_10 = arith.constant 0 : index
    %c4 = arith.constant 4 : index
    %8 = vector.load %arg4[%c0_9, %c0_10, %c4] : memref<16x16x16xf32, #tpu.memory_space<vmem>>, vector<16x16x4xf32>
    tpu.vector_store %arg4[%c0_9, %c0_10, %c4], %7 {strides = array<i32>} : memref<16x16x16xf32, #tpu.memory_space<vmem>>, vector<16x16x4xf32>,
    %c0_11 = arith.constant 0 : index
    %c0_12 = arith.constant 0 : index
    %c1_13 = arith.constant 1 : index
    %c0_14 = arith.constant 0 : index
    %9 = vector.load %arg1[%c0_11, %c0_12, %c1_13, %c0_14] : memref<1x18x18x4xbf16, #tpu.memory_space<vmem>>, vector<1x16x16x4xbf16>
    %10 = vector.shape_cast %9 : vector<1x16x16x4xbf16> to vector<16x16x4xbf16>
    %11 = arith.extf %10 : vector<16x16x4xbf16> to vector<16x16x4xf32>
    %c0_15 = arith.constant 0 : index
    %c0_16 = arith.constant 0 : index
    %c8 = arith.constant 8 : index
    %12 = vector.load %arg4[%c0_15, %c0_16, %c8] : memref<16x16x16xf32, #tpu.memory_space<vmem>>, vector<16x16x4xf32>
    tpu.vector_store %arg4[%c0_15, %c0_16, %c8], %11 {strides = array<i32>} : memref<16x16x16xf32, #tpu.memory_space<vmem>>, vector<16x16x4xf32>,
    %c0_17 = arith.constant 0 : index
    %c0_18 = arith.constant 0 : index
    %c0_19 = arith.constant 0 : index
    %c0_20 = arith.constant 0 : index
    %13 = vector.load %arg1[%c0_17, %c0_18, %c0_19, %c0_20] : memref<1x18x18x4xbf16, #tpu.memory_space<vmem>>, vector<1x16x16x4xbf16>
    %14 = vector.shape_cast %13 : vector<1x16x16x4xbf16> to vector<16x16x4xbf16>
    %15 = arith.extf %14 : vector<16x16x4xbf16> to vector<16x16x4xf32>
    %c0_21 = arith.constant 0 : index
    %c0_22 = arith.constant 0 : index
    %c12 = arith.constant 12 : index
    %16 = vector.load %arg4[%c0_21, %c0_22, %c12] : memref<16x16x16xf32, #tpu.memory_space<vmem>>, vector<16x16x4xf32>
    tpu.vector_store %arg4[%c0_21, %c0_22, %c12], %15 {strides = array<i32>} : memref<16x16x16xf32, #tpu.memory_space<vmem>>, vector<16x16x4xf32>,
    %c0_23 = arith.constant 0 : index
    %c0_24 = arith.constant 0 : index
    %c0_25 = arith.constant 0 : index
    %17 = vector.load %arg4[%c0_23, %c0_24, %c0_25] : memref<16x16x16xf32, #tpu.memory_space<vmem>>, vector<16x16x16xf32>
    %18 = vector.shape_cast %17 : vector<16x16x16xf32> to vector<256x16xf32>
    %19 = arith.truncf %18 : vector<256x16xf32> to vector<256x16xbf16>
    %c0_26 = arith.constant 0 : index
    %c0_27 = arith.constant 0 : index
    %c0_28 = arith.constant 0 : index
    %c0_29 = arith.constant 0 : index
    %20 = vector.load %arg2[%c0_26, %c0_27, %c0_28, %c0_29] : memref<2x2x8x16xbf16, #tpu.memory_space<vmem>>, vector<1x1x8x16xbf16>
    %21 = vector.shape_cast %20 : vector<1x1x8x16xbf16> to vector<8x16xbf16>
    %cst_30 = arith.constant dense<0.000000e+00> : vector<8x256xf32>
    %22 = tpu.matmul %21, %19, %cst_30 {dimension_numbers = #tpu.dot_dimension_numbers<[1], [1], [0], [0], [0, 0, 1, 0], [], []>} : vector<8x16xbf16>, vector<256x16xbf16>, vector<8x256xf32> -> vector<8x256xf32>
    %cst_31 = arith.constant dense<0.000000e+00> : vector<8xf32>
    %23 = vector.multi_reduction <add>, %22, %cst_31 [1] : vector<8x256xf32> to vector<8xf32>
    %24 = vector.shape_cast %23 : vector<8xf32> to vector<8x1xf32>
    %25 = arith.addf %0, %24 : vector<8x1xf32>
    %c0_32 = arith.constant 0 : index
    %c1_33 = arith.constant 1 : index
    %c2 = arith.constant 2 : index
    %c0_34 = arith.constant 0 : index
    %26 = vector.load %arg1[%c0_32, %c1_33, %c2, %c0_34] : memref<1x18x18x4xbf16, #tpu.memory_space<vmem>>, vector<1x16x16x4xbf16>
    %27 = vector.shape_cast %26 : vector<1x16x16x4xbf16> to vector<16x16x4xbf16>
    %28 = arith.extf %27 : vector<16x16x4xbf16> to vector<16x16x4xf32>
    %c0_35 = arith.constant 0 : index
    %c0_36 = arith.constant 0 : index
    %c0_37 = arith.constant 0 : index
    %29 = vector.load %arg4[%c0_35, %c0_36, %c0_37] : memref<16x16x16xf32, #tpu.memory_space<vmem>>, vector<16x16x4xf32>
    tpu.vector_store %arg4[%c0_35, %c0_36, %c0_37], %28 {strides = array<i32>} : memref<16x16x16xf32, #tpu.memory_space<vmem>>, vector<16x16x4xf32>,
    %c0_38 = arith.constant 0 : index
    %c1_39 = arith.constant 1 : index
    %c1_40 = arith.constant 1 : index
    %c0_41 = arith.constant 0 : index
    %30 = vector.load %arg1[%c0_38, %c1_39, %c1_40, %c0_41] : memref<1x18x18x4xbf16, #tpu.memory_space<vmem>>, vector<1x16x16x4xbf16>
    %31 = vector.shape_cast %30 : vector<1x16x16x4xbf16> to vector<16x16x4xbf16>
    %32 = arith.extf %31 : vector<16x16x4xbf16> to vector<16x16x4xf32>
    %c0_42 = arith.constant 0 : index
    %c0_43 = arith.constant 0 : index
    %c4_44 = arith.constant 4 : index
    %33 = vector.load %arg4[%c0_42, %c0_43, %c4_44] : memref<16x16x16xf32, #tpu.memory_space<vmem>>, vector<16x16x4xf32>
    tpu.vector_store %arg4[%c0_42, %c0_43, %c4_44], %32 {strides = array<i32>} : memref<16x16x16xf32, #tpu.memory_space<vmem>>, vector<16x16x4xf32>,
    %c0_45 = arith.constant 0 : index
    %c0_46 = arith.constant 0 : index
    %c2_47 = arith.constant 2 : index
    %c0_48 = arith.constant 0 : index
    %34 = vector.load %arg1[%c0_45, %c0_46, %c2_47, %c0_48] : memref<1x18x18x4xbf16, #tpu.memory_space<vmem>>, vector<1x16x16x4xbf16>
    %35 = vector.shape_cast %34 : vector<1x16x16x4xbf16> to vector<16x16x4xbf16>
    %36 = arith.extf %35 : vector<16x16x4xbf16> to vector<16x16x4xf32>
    %c0_49 = arith.constant 0 : index
    %c0_50 = arith.constant 0 : index
    %c8_51 = arith.constant 8 : index
    %37 = vector.load %arg4[%c0_49, %c0_50, %c8_51] : memref<16x16x16xf32, #tpu.memory_space<vmem>>, vector<16x16x4xf32>
    tpu.vector_store %arg4[%c0_49, %c0_50, %c8_51], %36 {strides = array<i32>} : memref<16x16x16xf32, #tpu.memory_space<vmem>>, vector<16x16x4xf32>,
    %c0_52 = arith.constant 0 : index
    %c0_53 = arith.constant 0 : index
    %c1_54 = arith.constant 1 : index
    %c0_55 = arith.constant 0 : index
    %38 = vector.load %arg1[%c0_52, %c0_53, %c1_54, %c0_55] : memref<1x18x18x4xbf16, #tpu.memory_space<vmem>>, vector<1x16x16x4xbf16>
    %39 = vector.shape_cast %38 : vector<1x16x16x4xbf16> to vector<16x16x4xbf16>
    %40 = arith.extf %39 : vector<16x16x4xbf16> to vector<16x16x4xf32>
    %c0_56 = arith.constant 0 : index
    %c0_57 = arith.constant 0 : index
    %c12_58 = arith.constant 12 : index
    %41 = vector.load %arg4[%c0_56, %c0_57, %c12_58] : memref<16x16x16xf32, #tpu.memory_space<vmem>>, vector<16x16x4xf32>
    tpu.vector_store %arg4[%c0_56, %c0_57, %c12_58], %40 {strides = array<i32>} : memref<16x16x16xf32, #tpu.memory_space<vmem>>, vector<16x16x4xf32>,
    %c0_59 = arith.constant 0 : index
    %c0_60 = arith.constant 0 : index
    %c0_61 = arith.constant 0 : index
    %42 = vector.load %arg4[%c0_59, %c0_60, %c0_61] : memref<16x16x16xf32, #tpu.memory_space<vmem>>, vector<16x16x16xf32>
    %43 = vector.shape_cast %42 : vector<16x16x16xf32> to vector<256x16xf32>
    %44 = arith.truncf %43 : vector<256x16xf32> to vector<256x16xbf16>
    %c0_62 = arith.constant 0 : index
    %c1_63 = arith.constant 1 : index
    %c0_64 = arith.constant 0 : index
    %c0_65 = arith.constant 0 : index
    %45 = vector.load %arg2[%c0_62, %c1_63, %c0_64, %c0_65] : memref<2x2x8x16xbf16, #tpu.memory_space<vmem>>, vector<1x1x8x16xbf16>
    %46 = vector.shape_cast %45 : vector<1x1x8x16xbf16> to vector<8x16xbf16>
    %cst_66 = arith.constant dense<0.000000e+00> : vector<8x256xf32>
    %47 = tpu.matmul %46, %44, %cst_66 {dimension_numbers = #tpu.dot_dimension_numbers<[1], [1], [0], [0], [0, 0, 1, 0], [], []>} : vector<8x16xbf16>, vector<256x16xbf16>, vector<8x256xf32> -> vector<8x256xf32>
    %cst_67 = arith.constant dense<0.000000e+00> : vector<8xf32>
    %48 = vector.multi_reduction <add>, %47, %cst_67 [1] : vector<8x256xf32> to vector<8xf32>
    %49 = vector.shape_cast %48 : vector<8xf32> to vector<8x1xf32>
    %50 = arith.addf %25, %49 : vector<8x1xf32>
    %c0_68 = arith.constant 0 : index
    %c2_69 = arith.constant 2 : index
    %c1_70 = arith.constant 1 : index
    %c0_71 = arith.constant 0 : index
    %51 = vector.load %arg1[%c0_68, %c2_69, %c1_70, %c0_71] : memref<1x18x18x4xbf16, #tpu.memory_space<vmem>>, vector<1x16x16x4xbf16>
    %52 = vector.shape_cast %51 : vector<1x16x16x4xbf16> to vector<16x16x4xbf16>
    %53 = arith.extf %52 : vector<16x16x4xbf16> to vector<16x16x4xf32>
    %c0_72 = arith.constant 0 : index
    %c0_73 = arith.constant 0 : index
    %c0_74 = arith.constant 0 : index
    %54 = vector.load %arg4[%c0_72, %c0_73, %c0_74] : memref<16x16x16xf32, #tpu.memory_space<vmem>>, vector<16x16x4xf32>
    tpu.vector_store %arg4[%c0_72, %c0_73, %c0_74], %53 {strides = array<i32>} : memref<16x16x16xf32, #tpu.memory_space<vmem>>, vector<16x16x4xf32>,
    %c0_75 = arith.constant 0 : index
    %c2_76 = arith.constant 2 : index
    %c0_77 = arith.constant 0 : index
    %c0_78 = arith.constant 0 : index
    %55 = vector.load %arg1[%c0_75, %c2_76, %c0_77, %c0_78] : memref<1x18x18x4xbf16, #tpu.memory_space<vmem>>, vector<1x16x16x4xbf16>
    %56 = vector.shape_cast %55 : vector<1x16x16x4xbf16> to vector<16x16x4xbf16>
    %57 = arith.extf %56 : vector<16x16x4xbf16> to vector<16x16x4xf32>
    %c0_79 = arith.constant 0 : index
    %c0_80 = arith.constant 0 : index
    %c4_81 = arith.constant 4 : index
    %58 = vector.load %arg4[%c0_79, %c0_80, %c4_81] : memref<16x16x16xf32, #tpu.memory_space<vmem>>, vector<16x16x4xf32>
    tpu.vector_store %arg4[%c0_79, %c0_80, %c4_81], %57 {strides = array<i32>} : memref<16x16x16xf32, #tpu.memory_space<vmem>>, vector<16x16x4xf32>,
    %c0_82 = arith.constant 0 : index
    %c1_83 = arith.constant 1 : index
    %c1_84 = arith.constant 1 : index
    %c0_85 = arith.constant 0 : index
    %59 = vector.load %arg1[%c0_82, %c1_83, %c1_84, %c0_85] : memref<1x18x18x4xbf16, #tpu.memory_space<vmem>>, vector<1x16x16x4xbf16>
    %60 = vector.shape_cast %59 : vector<1x16x16x4xbf16> to vector<16x16x4xbf16>
    %61 = arith.extf %60 : vector<16x16x4xbf16> to vector<16x16x4xf32>
    %c0_86 = arith.constant 0 : index
    %c0_87 = arith.constant 0 : index
    %c8_88 = arith.constant 8 : index
    %62 = vector.load %arg4[%c0_86, %c0_87, %c8_88] : memref<16x16x16xf32, #tpu.memory_space<vmem>>, vector<16x16x4xf32>
    tpu.vector_store %arg4[%c0_86, %c0_87, %c8_88], %61 {strides = array<i32>} : memref<16x16x16xf32, #tpu.memory_space<vmem>>, vector<16x16x4xf32>,
    %c0_89 = arith.constant 0 : index
    %c1_90 = arith.constant 1 : index
    %c0_91 = arith.constant 0 : index
    %c0_92 = arith.constant 0 : index
    %63 = vector.load %arg1[%c0_89, %c1_90, %c0_91, %c0_92] : memref<1x18x18x4xbf16, #tpu.memory_space<vmem>>, vector<1x16x16x4xbf16>
    %64 = vector.shape_cast %63 : vector<1x16x16x4xbf16> to vector<16x16x4xbf16>
    %65 = arith.extf %64 : vector<16x16x4xbf16> to vector<16x16x4xf32>
    %c0_93 = arith.constant 0 : index
    %c0_94 = arith.constant 0 : index
    %c12_95 = arith.constant 12 : index
    %66 = vector.load %arg4[%c0_93, %c0_94, %c12_95] : memref<16x16x16xf32, #tpu.memory_space<vmem>>, vector<16x16x4xf32>
    tpu.vector_store %arg4[%c0_93, %c0_94, %c12_95], %65 {strides = array<i32>} : memref<16x16x16xf32, #tpu.memory_space<vmem>>, vector<16x16x4xf32>,
    %c0_96 = arith.constant 0 : index
    %c0_97 = arith.constant 0 : index
    %c0_98 = arith.constant 0 : index
    %67 = vector.load %arg4[%c0_96, %c0_97, %c0_98] : memref<16x16x16xf32, #tpu.memory_space<vmem>>, vector<16x16x16xf32>
    %68 = vector.shape_cast %67 : vector<16x16x16xf32> to vector<256x16xf32>
    %69 = arith.truncf %68 : vector<256x16xf32> to vector<256x16xbf16>
    %c1_99 = arith.constant 1 : index
    %c0_100 = arith.constant 0 : index
    %c0_101 = arith.constant 0 : index
    %c0_102 = arith.constant 0 : index
    %70 = vector.load %arg2[%c1_99, %c0_100, %c0_101, %c0_102] : memref<2x2x8x16xbf16, #tpu.memory_space<vmem>>, vector<1x1x8x16xbf16>
    %71 = vector.shape_cast %70 : vector<1x1x8x16xbf16> to vector<8x16xbf16>
    %cst_103 = arith.constant dense<0.000000e+00> : vector<8x256xf32>
    %72 = tpu.matmul %71, %69, %cst_103 {dimension_numbers = #tpu.dot_dimension_numbers<[1], [1], [0], [0], [0, 0, 1, 0], [], []>} : vector<8x16xbf16>, vector<256x16xbf16>, vector<8x256xf32> -> vector<8x256xf32>
    %cst_104 = arith.constant dense<0.000000e+00> : vector<8xf32>
    %73 = vector.multi_reduction <add>, %72, %cst_104 [1] : vector<8x256xf32> to vector<8xf32>
    %74 = vector.shape_cast %73 : vector<8xf32> to vector<8x1xf32>
    %75 = arith.addf %50, %74 : vector<8x1xf32>
    %c0_105 = arith.constant 0 : index
    %c2_106 = arith.constant 2 : index
    %c2_107 = arith.constant 2 : index
    %c0_108 = arith.constant 0 : index
    %76 = vector.load %arg1[%c0_105, %c2_106, %c2_107, %c0_108] : memref<1x18x18x4xbf16, #tpu.memory_space<vmem>>, vector<1x16x16x4xbf16>
    %77 = vector.shape_cast %76 : vector<1x16x16x4xbf16> to vector<16x16x4xbf16>
    %78 = arith.extf %77 : vector<16x16x4xbf16> to vector<16x16x4xf32>
    %c0_109 = arith.constant 0 : index
    %c0_110 = arith.constant 0 : index
    %c0_111 = arith.constant 0 : index
    %79 = vector.load %arg4[%c0_109, %c0_110, %c0_111] : memref<16x16x16xf32, #tpu.memory_space<vmem>>, vector<16x16x4xf32>
    tpu.vector_store %arg4[%c0_109, %c0_110, %c0_111], %78 {strides = array<i32>} : memref<16x16x16xf32, #tpu.memory_space<vmem>>, vector<16x16x4xf32>,
    %c0_112 = arith.constant 0 : index
    %c2_113 = arith.constant 2 : index
    %c1_114 = arith.constant 1 : index
    %c0_115 = arith.constant 0 : index
    %80 = vector.load %arg1[%c0_112, %c2_113, %c1_114, %c0_115] : memref<1x18x18x4xbf16, #tpu.memory_space<vmem>>, vector<1x16x16x4xbf16>
    %81 = vector.shape_cast %80 : vector<1x16x16x4xbf16> to vector<16x16x4xbf16>
    %82 = arith.extf %81 : vector<16x16x4xbf16> to vector<16x16x4xf32>
    %c0_116 = arith.constant 0 : index
    %c0_117 = arith.constant 0 : index
    %c4_118 = arith.constant 4 : index
    %83 = vector.load %arg4[%c0_116, %c0_117, %c4_118] : memref<16x16x16xf32, #tpu.memory_space<vmem>>, vector<16x16x4xf32>
    tpu.vector_store %arg4[%c0_116, %c0_117, %c4_118], %82 {strides = array<i32>} : memref<16x16x16xf32, #tpu.memory_space<vmem>>, vector<16x16x4xf32>,
    %c0_119 = arith.constant 0 : index
    %c1_120 = arith.constant 1 : index
    %c2_121 = arith.constant 2 : index
    %c0_122 = arith.constant 0 : index
    %84 = vector.load %arg1[%c0_119, %c1_120, %c2_121, %c0_122] : memref<1x18x18x4xbf16, #tpu.memory_space<vmem>>, vector<1x16x16x4xbf16>
    %85 = vector.shape_cast %84 : vector<1x16x16x4xbf16> to vector<16x16x4xbf16>
    %86 = arith.extf %85 : vector<16x16x4xbf16> to vector<16x16x4xf32>
    %c0_123 = arith.constant 0 : index
    %c0_124 = arith.constant 0 : index
    %c8_125 = arith.constant 8 : index
    %87 = vector.load %arg4[%c0_123, %c0_124, %c8_125] : memref<16x16x16xf32, #tpu.memory_space<vmem>>, vector<16x16x4xf32>
    tpu.vector_store %arg4[%c0_123, %c0_124, %c8_125], %86 {strides = array<i32>} : memref<16x16x16xf32, #tpu.memory_space<vmem>>, vector<16x16x4xf32>,
    %c0_126 = arith.constant 0 : index
    %c1_127 = arith.constant 1 : index
    %c1_128 = arith.constant 1 : index
    %c0_129 = arith.constant 0 : index
    %88 = vector.load %arg1[%c0_126, %c1_127, %c1_128, %c0_129] : memref<1x18x18x4xbf16, #tpu.memory_space<vmem>>, vector<1x16x16x4xbf16>
    %89 = vector.shape_cast %88 : vector<1x16x16x4xbf16> to vector<16x16x4xbf16>
    %90 = arith.extf %89 : vector<16x16x4xbf16> to vector<16x16x4xf32>
    %c0_130 = arith.constant 0 : index
    %c0_131 = arith.constant 0 : index
    %c12_132 = arith.constant 12 : index
    %91 = vector.load %arg4[%c0_130, %c0_131, %c12_132] : memref<16x16x16xf32, #tpu.memory_space<vmem>>, vector<16x16x4xf32>
    tpu.vector_store %arg4[%c0_130, %c0_131, %c12_132], %90 {strides = array<i32>} : memref<16x16x16xf32, #tpu.memory_space<vmem>>, vector<16x16x4xf32>,
    %c0_133 = arith.constant 0 : index
    %c0_134 = arith.constant 0 : index
    %c0_135 = arith.constant 0 : index
    %92 = vector.load %arg4[%c0_133, %c0_134, %c0_135] : memref<16x16x16xf32, #tpu.memory_space<vmem>>, vector<16x16x16xf32>
    %93 = vector.shape_cast %92 : vector<16x16x16xf32> to vector<256x16xf32>
    %94 = arith.truncf %93 : vector<256x16xf32> to vector<256x16xbf16>
    %c1_136 = arith.constant 1 : index
    %c1_137 = arith.constant 1 : index
    %c0_138 = arith.constant 0 : index
    %c0_139 = arith.constant 0 : index
    %95 = vector.load %arg2[%c1_136, %c1_137, %c0_138, %c0_139] : memref<2x2x8x16xbf16, #tpu.memory_space<vmem>>, vector<1x1x8x16xbf16>
    %96 = vector.shape_cast %95 : vector<1x1x8x16xbf16> to vector<8x16xbf16>
    %cst_140 = arith.constant dense<0.000000e+00> : vector<8x256xf32>
    %97 = tpu.matmul %96, %94, %cst_140 {dimension_numbers = #tpu.dot_dimension_numbers<[1], [1], [0], [0], [0, 0, 1, 0], [], []>} : vector<8x16xbf16>, vector<256x16xbf16>, vector<8x256xf32> -> vector<8x256xf32>
    %cst_141 = arith.constant dense<0.000000e+00> : vector<8xf32>
    %98 = vector.multi_reduction <add>, %97, %cst_141 [1] : vector<8x256xf32> to vector<8xf32>
    %99 = vector.shape_cast %98 : vector<8xf32> to vector<8x1xf32>
    %100 = arith.addf %75, %99 : vector<8x1xf32>
    %cst_142 = arith.constant 9.765625E-4 : f32
    %101 = vector.broadcast %cst_142 : f32 to vector<8x1xf32>
    %102 = arith.mulf %100, %101 : vector<8x1xf32>
    %103 = vector.broadcast %102 : vector<8x1xf32> to vector<8x256xf32>
    %104 = arith.subf %22, %103 : vector<8x256xf32>
    %105 = vector.broadcast %102 : vector<8x1xf32> to vector<8x256xf32>
    %106 = arith.subf %47, %105 : vector<8x256xf32>
    %107 = vector.broadcast %102 : vector<8x1xf32> to vector<8x256xf32>
    %108 = arith.subf %72, %107 : vector<8x256xf32>
    %109 = vector.broadcast %102 : vector<8x1xf32> to vector<8x256xf32>
    %110 = arith.subf %97, %109 : vector<8x256xf32>
    %cst_143 = arith.constant 0.000000e+00 : f32
    %111 = vector.broadcast %cst_143 : f32 to vector<8x1xf32>
    %112 = arith.mulf %104, %104 : vector<8x256xf32>
    %cst_144 = arith.constant dense<0.000000e+00> : vector<8xf32>
    %113 = vector.multi_reduction <add>, %112, %cst_144 [1] : vector<8x256xf32> to vector<8xf32>
    %114 = vector.shape_cast %113 : vector<8xf32> to vector<8x1xf32>
    %115 = arith.addf %111, %114 : vector<8x1xf32>
    %116 = arith.mulf %106, %106 : vector<8x256xf32>
    %cst_145 = arith.constant dense<0.000000e+00> : vector<8xf32>
    %117 = vector.multi_reduction <add>, %116, %cst_145 [1] : vector<8x256xf32> to vector<8xf32>
    %118 = vector.shape_cast %117 : vector<8xf32> to vector<8x1xf32>
    %119 = arith.addf %115, %118 : vector<8x1xf32>
    %120 = arith.mulf %108, %108 : vector<8x256xf32>
    %cst_146 = arith.constant dense<0.000000e+00> : vector<8xf32>
    %121 = vector.multi_reduction <add>, %120, %cst_146 [1] : vector<8x256xf32> to vector<8xf32>
    %122 = vector.shape_cast %121 : vector<8xf32> to vector<8x1xf32>
    %123 = arith.addf %119, %122 : vector<8x1xf32>
    %124 = arith.mulf %110, %110 : vector<8x256xf32>
    %cst_147 = arith.constant dense<0.000000e+00> : vector<8xf32>
    %125 = vector.multi_reduction <add>, %124, %cst_147 [1] : vector<8x256xf32> to vector<8xf32>
    %126 = vector.shape_cast %125 : vector<8xf32> to vector<8x1xf32>
    %127 = arith.addf %123, %126 : vector<8x1xf32>
    %cst_148 = arith.constant 9.765625E-4 : f32
    %128 = vector.broadcast %cst_148 : f32 to vector<8x1xf32>
    %129 = arith.mulf %127, %128 : vector<8x1xf32>
    %cst_149 = arith.constant 9.99999974E-6 : f32
    %130 = vector.broadcast %cst_149 : f32 to vector<8x1xf32>
    %131 = arith.addf %129, %130 : vector<8x1xf32>
    %132 = math.rsqrt %131 : vector<8x1xf32>
    %133 = vector.broadcast %132 : vector<8x1xf32> to vector<8x256xf32>
    %134 = arith.mulf %104, %133 : vector<8x256xf32>
    %cst_150 = arith.constant 0.000000e+00 : f32
    %135 = vector.broadcast %cst_150 : f32 to vector<8x256xf32>
    %136 = arith.cmpf oge, %134, %135 : vector<8x256xf32>
    %cst_151 = arith.constant 0.00999999977 : f32
    %137 = vector.broadcast %cst_151 : f32 to vector<8x256xf32>
    %138 = arith.mulf %137, %134 : vector<8x256xf32>
    %139 = arith.select %136, %134, %138 : vector<8x256xi1>, vector<8x256xf32>
    %c0_152 = arith.constant 0 : index
    %c0_153 = arith.constant 0 : index
    %c0_154 = arith.constant 0 : index
    %c0_155 = arith.constant 0 : index
    %c0_156 = arith.constant 0 : index
    %140 = vector.load %arg3[%c0_152, %c0_153, %c0_154, %c0_155, %c0_156] : memref<1x2x2x8x256xf32, #tpu.memory_space<vmem>>, vector<1x1x1x8x256xf32>
    %141 = vector.shape_cast %140 : vector<1x1x1x8x256xf32> to vector<8x256xf32>
    %142 = vector.shape_cast %139 : vector<8x256xf32> to vector<1x1x1x8x256xf32>
    tpu.vector_store %arg3[%c0_152, %c0_153, %c0_154, %c0_155, %c0_156], %142 {strides = array<i32>} : memref<1x2x2x8x256xf32, #tpu.memory_space<vmem>>, vector<1x1x1x8x256xf32>,
    %143 = vector.broadcast %132 : vector<8x1xf32> to vector<8x256xf32>
    %144 = arith.mulf %106, %143 : vector<8x256xf32>
    %cst_157 = arith.constant 0.000000e+00 : f32
    %145 = vector.broadcast %cst_157 : f32 to vector<8x256xf32>
    %146 = arith.cmpf oge, %144, %145 : vector<8x256xf32>
    %cst_158 = arith.constant 0.00999999977 : f32
    %147 = vector.broadcast %cst_158 : f32 to vector<8x256xf32>
    %148 = arith.mulf %147, %144 : vector<8x256xf32>
    %149 = arith.select %146, %144, %148 : vector<8x256xi1>, vector<8x256xf32>
    %c0_159 = arith.constant 0 : index
    %c0_160 = arith.constant 0 : index
    %c1_161 = arith.constant 1 : index
    %c0_162 = arith.constant 0 : index
    %c0_163 = arith.constant 0 : index
    %150 = vector.load %arg3[%c0_159, %c0_160, %c1_161, %c0_162, %c0_163] : memref<1x2x2x8x256xf32, #tpu.memory_space<vmem>>, vector<1x1x1x8x256xf32>
    %151 = vector.shape_cast %150 : vector<1x1x1x8x256xf32> to vector<8x256xf32>
    %152 = vector.shape_cast %149 : vector<8x256xf32> to vector<1x1x1x8x256xf32>
    tpu.vector_store %arg3[%c0_159, %c0_160, %c1_161, %c0_162, %c0_163], %152 {strides = array<i32>} : memref<1x2x2x8x256xf32, #tpu.memory_space<vmem>>, vector<1x1x1x8x256xf32>,
    %153 = vector.broadcast %132 : vector<8x1xf32> to vector<8x256xf32>
    %154 = arith.mulf %108, %153 : vector<8x256xf32>
    %cst_164 = arith.constant 0.000000e+00 : f32
    %155 = vector.broadcast %cst_164 : f32 to vector<8x256xf32>
    %156 = arith.cmpf oge, %154, %155 : vector<8x256xf32>
    %cst_165 = arith.constant 0.00999999977 : f32
    %157 = vector.broadcast %cst_165 : f32 to vector<8x256xf32>
    %158 = arith.mulf %157, %154 : vector<8x256xf32>
    %159 = arith.select %156, %154, %158 : vector<8x256xi1>, vector<8x256xf32>
    %c0_166 = arith.constant 0 : index
    %c1_167 = arith.constant 1 : index
    %c0_168 = arith.constant 0 : index
    %c0_169 = arith.constant 0 : index
    %c0_170 = arith.constant 0 : index
    %160 = vector.load %arg3[%c0_166, %c1_167, %c0_168, %c0_169, %c0_170] : memref<1x2x2x8x256xf32, #tpu.memory_space<vmem>>, vector<1x1x1x8x256xf32>
    %161 = vector.shape_cast %160 : vector<1x1x1x8x256xf32> to vector<8x256xf32>
    %162 = vector.shape_cast %159 : vector<8x256xf32> to vector<1x1x1x8x256xf32>
    tpu.vector_store %arg3[%c0_166, %c1_167, %c0_168, %c0_169, %c0_170], %162 {strides = array<i32>} : memref<1x2x2x8x256xf32, #tpu.memory_space<vmem>>, vector<1x1x1x8x256xf32>,
    %163 = vector.broadcast %132 : vector<8x1xf32> to vector<8x256xf32>
    %164 = arith.mulf %110, %163 : vector<8x256xf32>
    %cst_171 = arith.constant 0.000000e+00 : f32
    %165 = vector.broadcast %cst_171 : f32 to vector<8x256xf32>
    %166 = arith.cmpf oge, %164, %165 : vector<8x256xf32>
    %cst_172 = arith.constant 0.00999999977 : f32
    %167 = vector.broadcast %cst_172 : f32 to vector<8x256xf32>
    %168 = arith.mulf %167, %164 : vector<8x256xf32>
    %169 = arith.select %166, %164, %168 : vector<8x256xi1>, vector<8x256xf32>
    %c0_173 = arith.constant 0 : index
    %c1_174 = arith.constant 1 : index
    %c1_175 = arith.constant 1 : index
    %c0_176 = arith.constant 0 : index
    %c0_177 = arith.constant 0 : index
    %170 = vector.load %arg3[%c0_173, %c1_174, %c1_175, %c0_176, %c0_177] : memref<1x2x2x8x256xf32, #tpu.memory_space<vmem>>, vector<1x1x1x8x256xf32>
    %171 = vector.shape_cast %170 : vector<1x1x1x8x256xf32> to vector<8x256xf32>
    %172 = vector.shape_cast %169 : vector<8x256xf32> to vector<1x1x1x8x256xf32>
    tpu.vector_store %arg3[%c0_173, %c1_174, %c1_175, %c0_176, %c0_177], %172 {strides = array<i32>} : memref<1x2x2x8x256xf32, #tpu.memory_space<vmem>>, vector<1x1x1x8x256xf32>,
    return
  }
  func.func @transform_0(%arg0: i32) -> (i32, i32, i32, i32) {
    %c0_i32 = arith.constant 0 : i32
    %c0_i32_0 = arith.constant 0 : i32
    %c0_i32_1 = arith.constant 0 : i32
    %c0_i32_2 = arith.constant 0 : i32
    return %arg0, %c0_i32, %c0_i32_0, %c0_i32_1 : i32, i32, i32, i32
  }
  func.func @transform_1(%arg0: i32) -> (i32, i32, i32, i32) {
    %c0_i32 = arith.constant 0 : i32
    %c0_i32_0 = arith.constant 0 : i32
    %c0_i32_1 = arith.constant 0 : i32
    %c0_i32_2 = arith.constant 0 : i32
    %c0_i32_3 = arith.constant 0 : i32
    return %c0_i32, %c0_i32_0, %c0_i32_1, %c0_i32_2 : i32, i32, i32, i32
  }
  func.func @transform_2(%arg0: i32) -> (i32, i32, i32, i32, i32) {
    %c0_i32 = arith.constant 0 : i32
    %c0_i32_0 = arith.constant 0 : i32
    %c0_i32_1 = arith.constant 0 : i32
    %c0_i32_2 = arith.constant 0 : i32
    %c0_i32_3 = arith.constant 0 : i32
    return %arg0, %c0_i32, %c0_i32_0, %c0_i32_1, %c0_i32_2 : i32, i32, i32, i32, i32
  }
}

</mosaic_0001>

<bundles_post_ra>
// kernel: upsampler_forward.1
= control target key start
LH: loop header
LB: loop body
LE: loop exit
PB: predicated region body
PF: predicated region fallthrough
CT: control target
= control target key end

     0   :  { %7 = vsyncpa [#allocation4], 0  ;;  %s10384_s0 = inlined_call_operand.hbm [shape: bf16[2,18,18,4], index: 0, kind: input, shape index: {}]   ;;  %s10385_s1 = inlined_call_operand.hbm [shape: bf16[2,2,8,16], index: 1, kind: input, shape index: {}]   ;;  %s10386_s2 = inlined_call_operand.hbm [shape: f32[2,2,2,8,256], index: 2, kind: output, shape index: {}]  }
   0x1   :  { %9 = vsyncpa [#allocation4 + $0x1], 0 }
   0x2   :  { %10 = vsyncpa [#allocation7], 0 }
   0x3   :  { %11 = vsyncpa [#allocation5], 0 }
   0x4   :  { %13 = vsyncpa [#allocation5 + $0x1], 0  ;;  %s7755_s9 = smov 0   ;;  %s7757_s10 = smov 0  }
   0x5   :  { %s7759_s11 = smov 0   ;;  %s7761_s12 = smov 0  }
   0x6 LB: > { %s7776_s13 = sadd.s32 4294967295, %s7728_s12   ;;  %s5116_s14 = sadd.s32 4294967294, %s7728_s12   ;;  %s7728_s12 = sphi %s7761_s12, %s10419_s12   ;;  %s7724_s11 = sphi %s7759_s11, %s10418_s11   ;;  %s7720_s10 = sphi %s7757_s10, %s10417_s10   ;;  %s7716_s9 = sphi %s7755_s9, %s10416_s9  }
   0x7   : > { %p39_p0 = scmp.ne.s32.totalorder %s7720_s10, %s7716_s9  ;;  %p10387_p1 = scmp.eq.s32.totalorder %s7776_s13, 0 }
   0x8   : > { %p90_p3 = scmp.eq.s32.totalorder %s5116_s14, 1  ;;  %p5117_p5 = scmp.ge.s32.totalorder %s7728_s12, 1 }
   0x9   : > { %p7785_p4 = por %p10387_p1, %p39_p0  ;;  %p97_p7 = scmp.lt.s32.totalorder %s7728_s12, 3 }
   0xa   : > { %p7790_p6 = por %p90_p3, %p39_p0  ;;  %s7730_s18 = smov [#allocation6]  }
   0xb   : > { %s10392_s15 = scalar_select %p7785_p4, 1, 0 }
   0xc   : > { %s10393_s16 = scalar_select %p7790_p6, 1, 0 }
   0xd   : > { %p7795_p8 = pnand %p5117_p5, %p97_p7  ;;  %s109_s19 = sshll.u32 %s7730_s18, 4  ;;  %s7799_s19 = int_to_ptr.vmem [resolvable:$true] %s109_s19 }
   0xe   : > { %s7811_s21 = sadd.s32 1, %s7728_s12   ;;  %s26_s22 = sadd.s32 1, %s7724_s11 }
   0xf   : > { %s10394_s17 = scalar_select %p7795_p8, 1, 0 }
  0x10   : > { %p6260_p9 = pneg %p7795_p8  ;;  %s23_s23 = ssub.s32 %s7728_s12, %s7811_s21 }
  0x11   : > { %s7600_s26 = scalar_lea.hbm %s10385_s1, 256 }
  0x12   : > { %p7806_p11 = pnand %p6260_p9, %p10387_p1  ;;  %p7601_p12 = scmp.ne.s32.totalorder %s10385_s1, %s7600_s26 }
  0x13   : > { %p7607_p5 = scmp.lt.u32.totalorder %s7600_s26, %s10385_s1 }
  0x14   : > { %p7602_p13 = pneg %p7806_p11 }
  0x16   : > { %p7603_p0 = pnand %p7602_p13, %p7601_p12 }
  0x18   : > { %p7604_p3 = pneg %p7603_p0 }
  0x1a   : > { %p7609_p7 = pnand %p7607_p5, %p7604_p3 }
  0x1c   : > { %7612 = shalt.err (!%p7609_p7)
}
  0x1d   : > { %s7613_s3 = scalar_lea.vmem %s7799_s19, 256  ;;  %p7621_p2 = scmp.lt.s32.totalorder %s7799_s19, %s7799_s19 }
  0x1e   : > { %p7614_p9 = scmp.ne.s32.totalorder %s7799_s19, %s7613_s3  ;;  %p7622_p6 = scmp.lt.s32.totalorder %s7613_s3, %s7613_s3 }
  0x20   : > { %p7616_p10 = pnand %p7614_p9, %p7602_p13  ;;  %p7623_p4 = por %p7622_p6, %p7621_p2 }
  0x22   : > { %p7617_p1 = pneg %p7616_p10 }
  0x24   : > { %p7624_p8 = pnand %p7623_p4, %p7617_p1 }
  0x26   : > { %7627 = shalt.err (!%p7624_p8)
}
  0x27   : > { %s7731_s4 = smov 64   ;;  %s7732_s5 = smov 4  }
  0x28   : > { %6263 = dma.hbm_to_vmem [thread:$0]  (!%p7806_p11), %s10385_s1, 256, %s7799_s19, [#allocation7], %s7731_s4, %s7731_s4, %s7732_s5  }
  0x29   : > { %p24_p1 = scmp.eq.s32.totalorder %s23_s23, 0  ;;  %p33_p2 = scmp.ne.s32.totalorder %s7724_s11, %s7720_s10 }
  0x2a   : > { %p34_p4 = scmp.eq.s32.totalorder %s7728_s12, 0  ;;  %p6273_p6 = scmp.lt.s32.totalorder %s7728_s12, 2 }
  0x2b   : > { %s7845_s8 = scalar_select %p24_p1, %s7724_s11, %s26_s22  }
  0x2c   : > { %p35_p8 = por %p34_p4, %p33_p2  ;;  %p10396_p10 = scmp.eq.s32.totalorder %s7776_s13, 1 }
  0x2d   : > { %s123_s18 = sand.u32 1, %s7724_s11   ;;  %s6250_s20 = smul.u32 3456, %s7728_s12 }
  0x2e   : > { %p7849_p12 = por %p10396_p10, %p33_p2  ;;  %s6249_s24 = smul.u32 216, %s123_s18 }
  0x2f   : > { %p7855_p13 = pnand %p6273_p6, %p35_p8  ;;  %s7862_s22 = scalar_lea.hbm %s10384_s0, %s6250_s20 }
  0x30   : > { %s127_s26 = scalar_lea.vmem [#allocation3], %s6249_s24  ;;  %s7866_s28 = scalar_lea.sflag [#allocation4], %s123_s18 }
  0x31   : > { %s134_s27 = sshll.u32 %s127_s26, 4  ;;  %s7628_s29 = scalar_lea.hbm %s7862_s22, 3456  ;;  %s7864_s27 = int_to_ptr.vmem [resolvable:$true] %s134_s27 }
  0x32   : > { %p7629_p11 = scmp.ne.s32.totalorder %s7862_s22, %s7628_s29  ;;  %p7630_p0 = pneg %p7855_p13 }
  0x33   : > { %s7633_s6 = scalar_lea.hbm %s10384_s0, 6912  ;;  %p7634_p7 = scmp.lt.u32.totalorder %s7862_s22, %s10384_s0 }
  0x34   : > { %p7631_p3 = pnand %p7630_p0, %p7629_p11  ;;  %p7635_p9 = scmp.lt.u32.totalorder %s7633_s6, %s7628_s29 }
  0x35   : > { %p7637_p2 = scmp.lt.u32.totalorder %s7628_s29, %s7862_s22 }
  0x36   : > { %p7632_p5 = pneg %p7631_p3  ;;  %p7636_p1 = por %p7635_p9, %p7634_p7 }
  0x38   : > { %p7638_p4 = por %p7637_p2, %p7636_p1 }
  0x3a   : > { %p7639_p6 = pnand %p7638_p4, %p7632_p5 }
  0x3c   : > { %7642 = shalt.err (!%p7639_p6)
}
  0x3d   : > { %s7643_s18 = scalar_lea.vmem %s7864_s27, 3456  ;;  %s7733_s24 = smov [#allocation3]  }
  0x3e   : > { %p7644_p8 = scmp.ne.s32.totalorder %s7864_s27, %s7643_s18  ;;  %s7648_s19 = sshll.u32 %s7733_s24, 4  ;;  %s7649_s19 = int_to_ptr.vmem [resolvable:$false] %s7648_s19 }
  0x3f   : > { %s7650_s23 = scalar_lea.vmem %s7649_s19, 6912  ;;  %p7651_p3 = scmp.lt.s32.totalorder %s7864_s27, %s7649_s19 }
  0x40   : > { %p7646_p10 = pnand %p7644_p8, %p7630_p0  ;;  %p7652_p7 = scmp.lt.s32.totalorder %s7650_s23, %s7643_s18 }
  0x42   : > { %p7647_p11 = pneg %p7646_p10  ;;  %p7653_p9 = por %p7652_p7, %p7651_p3 }
  0x44   : > { %p7654_p1 = pnand %p7653_p9, %p7647_p11 }
  0x46   : > { %7657 = shalt.err (!%p7654_p1)
}
  0x47   : > { %6267 = dma.hbm_to_vmem [thread:$0]  (!%p7855_p13), %s7862_s22, 3456, %s7864_s27, %s7866_s28, %s7731_s4, %s7731_s4, %s7732_s5  }
  0x48   : > { %p10399_p0 = scmp.ne.s32.totalorder %s10394_s17, 0 }
  0x49   : > { %s7900_s26 = sand.u32 (!%p10399_p0), 1, %s7720_s10   ;;  %p10400_p5 = scmp.ne.s32.totalorder (!%p10399_p0), %s10392_s15, 0 }
  0x4a   : > { %146 = sbr.rel (%p10399_p0) target bundleno = 1618 (0x652), region = 28  ;;  %s149_s30 = scalar_lea.sflag (!%p10399_p0), [#allocation4], %s7900_s26 }
  0x4b   : > { %s6251_s29 = smul.u32 (!%p10399_p0), 216, %s7900_s26 }
  0x4d   : > { %s7904_s3 = scalar_lea.vmem (!%p10399_p0), [#allocation3], %s6251_s29 }
  0x51   : > { %7703 = dma.done.wait (%p10400_p5), %s149_s30, 3456  }
  0x52   : > { %7705 = vsyncadd (%p10400_p5), %s149_s30, 4294963840  ;;  %p10401_p13 = scmp.eq.s32.totalorder %s7776_s13, 0 }
  0x54   : > { %7707 = dma.done.wait (%p10401_p13), [#allocation7], 256   ;;  %p10402_p2 = pmov %p10401_p13 }
  0x55   : > { %v5176_v0 = vld [vmem:[%s7904_s3 + $0x24] sm:$0xff]   ;;  %v5172_v1 = vld [vmem:[%s7904_s3 + $0xc] sm:$0xff]   ;;  %vm275_vm0 = vcmask 31745   ;;  %vm277_vm1 = vcmask 31744   ;;  %v6060_v7 = vld [vmem:[%s7904_s3 + $0x18] sm:$0xff]   ;;  %s7734_s15 = smov 4  }
  0x56   : > { %7709 = vsyncadd (%p10402_p2), [#allocation7], 4294967040  ;;  %v6061_v2 = vld [vmem:[%s7904_s3 + $0x30] sm:$0xff]   ;;  %v362_v3 = vunpack.c.l.bf16 %v5176_v0  ;;  %v363_v4 = vunpack.c.h.bf16 %v5176_v0  ;;  %v358_v5 = vunpack.c.l.bf16 %v5172_v1  ;;  %v359_v6 = vunpack.c.h.bf16 %v5172_v1  ;;  %v6062_v8 = vld [vmem:[%s7904_s3 + $0x48] sm:$0xff]   ;;  %s7735_s17 = smov 8   ;;  %s7736_s4 = smov 12  }
  0x57   : > { %v7919_v9 = vunpack.c.l.bf16 %v6061_v2  ;;  %v7921_v10 = vunpack.c.h.bf16 %v6061_v2  ;;  %v7923_v11 = vunpack.c.l.bf16 %v6060_v7  ;;  %v7925_v12 = vunpack.c.h.bf16 %v6060_v7  ;;  %v5180_v13 = vld [vmem:[%s7904_s3 + $0x3c] sm:$0xff]   ;;  %v5184_v23 = vld [vmem:[%s7904_s3 + $0x54] sm:$0xff]   ;;  %v5188_v31 = vld [vmem:[%s7904_s3 + $0x6c] sm:$0xff]   ;;  %s5123_s5 = sshll.u32 %s7900_s26, 6  ;;  %s5667_s25 = sshll.u32 %s7776_s13, 10 }
  0x58   : > { %v6326_v14 = vpack.i.bf16 %v363_v4, %v362_v3  ;;  %v6316_v15 = vpack.i.bf16 %v359_v6, %v358_v5  ;;  %v7928_v16 = vunpack.c.l.bf16 %v6062_v8  ;;  %v7930_v17 = vunpack.c.h.bf16 %v6062_v8  ;;  %v7951_v22 = vld [vmem:[%s7904_s3 + $0x60] sm:$0xff]   ;;  %v7969_v30 = vld [vmem:[%s7904_s3 + $0x78] sm:$0xff]   ;;  %v6065_v38 = vld [vmem:[%s7904_s3 + $0x90] sm:$0xff]   ;;  %s10322_s22 = scalar_lea.vmem [#allocation8], %s5123_s5  ;;  %s10332_s6 = scalar_lea.hbm %s10386_s2, %s5667_s25 }
  0x59   : > { %281 = vst.msk [vmem:[#allocation2 + $0xf] sm:$0xfe] %vm275_vm0, %v7923_v11  ;;  %287 = vst.msk [vmem:[#allocation2 + $0x2f] sm:$0xfe] %vm275_vm0, %v7919_v9  ;;  %v7944_v18 = vpack.i.bf16 %v7921_v10, %v7919_v9  ;;  %v7948_v19 = vpack.i.bf16 %v7925_v12, %v7923_v11  ;;  %v366_v20 = vunpack.c.l.bf16 %v5180_v13  ;;  %v367_v21 = vunpack.c.h.bf16 %v5180_v13  ;;  %v5192_v39 = vld [vmem:[%s7904_s3 + $0x84] sm:$0xff]   ;;  %v5196_v47 = vld [vmem:[%s7904_s3 + $0x9c] sm:$0xff]  }
  0x5a   : > { %282 = vst.msk [vmem:[#allocation2 + $0x17] sm:$0xff] %vm277_vm1, %v7925_v12  ;;  %288 = vst.msk [vmem:[#allocation2 + $0x37] sm:$0xff] %vm277_vm1, %v7921_v10  ;;  %6327 = vrot.lane.b32.xlu1 %v6326_v14, %s7734_s15  ;;  %6317 = vrot.lane.b32.xlu0 %v6316_v15, %s7734_s15  ;;  %v7960_v24 = vpack.i.bf16 %v7930_v17, %v7928_v16  ;;  %v5714_v25 = vunpack.c.l.bf16 %v7951_v22  ;;  %v5715_v27 = vunpack.c.h.bf16 %v7951_v22  ;;  %v370_v28 = vunpack.c.l.bf16 %v5184_v23  ;;  %v6066_v46 = vld [vmem:[%s7904_s3 + $0xa8] sm:$0xff]   ;;  %v6067_v54 = vld [vmem:[%s7904_s3 + $0xc0] sm:$0xff]   ;;  %s5033_s27 = sshll.u32 %s10322_s22, 4  ;;  %s5020_s7 = scalar_lea.sflag [#allocation5], %s7900_s26  ;;  %s10334_s27 = int_to_ptr.vmem [resolvable:$true] %s5033_s27 }
  0x5b   : > { %293 = vst.msk [vmem:[#allocation2 + $0x4f] sm:$0xfe] %vm275_vm0, %v7928_v16  ;;  %v6336_v26 = vpack.i.bf16 %v367_v21, %v366_v20  ;;  %v371_v29 = vunpack.c.h.bf16 %v5184_v23  ;;  %v5718_v32 = vunpack.c.l.bf16 %v7969_v30  ;;  %v5719_v33 = vunpack.c.h.bf16 %v7969_v30  ;;  %v5200_v55 = vld [vmem:[%s7904_s3 + $0xb4] sm:$0xff]   ;;  %v553_v62 = vld [vmem:[%s7904_s3 + $0x8] sm:$0x1]  ;;  %v554_v63 = vld [vmem:[%s7904_s3 + $0xc] sm:$0xff]  }
  0x5c   : > { %294 = vst.msk [vmem:[#allocation2 + $0x57] sm:$0xff] %vm277_vm1, %v7930_v17  ;;  %v7981_v34 = vpack.i.bf16 %v5715_v27, %v5714_v25  ;;  %v374_v36 = vunpack.c.l.bf16 %v5188_v31  ;;  %v375_v37 = vunpack.c.h.bf16 %v5188_v31  ;;  %v5722_v41 = vunpack.c.l.bf16 %v6065_v38  ;;  %v5733_v0 = vld [vmem:[%s7904_s3] sm:$0xff]   ;;  %v556_v7 = vld [vmem:[%s7904_s3 + $0x14] sm:$0x1]  ;;  %v562_v21 = vld [vmem:[%s7904_s3 + $0x2c] sm:$0x1] }
  0x5d   : > { %v6346_v35 = vpack.i.bf16 %v371_v29, %v370_v28  ;;  %v7987_v40 = vpack.i.bf16 %v5719_v33, %v5718_v32  ;;  %v5723_v43 = vunpack.c.h.bf16 %v6065_v38  ;;  %v378_v44 = vunpack.c.l.bf16 %v5192_v39  ;;  %v561_v8 = vld [vmem:[%s7904_s3 + $0x24] sm:$0xff]   ;;  %v559_v23 = vld [vmem:[%s7904_s3 + $0x20] sm:$0x1]  ;;  %v5126_v28 = vld [vmem:[%s7904_s3 + $0x14] sm:$0x1]  ;;  %s7658_s20 = scalar_lea.vmem %s10334_s27, 1024 }
  0x5e   : > { %6332 = vrot.lane.b32.xlu1 %v7944_v18, %s7734_s15  ;;  %6322 = vrot.lane.b32.xlu0 %v7948_v19, %s7734_s15  ;;  %v6356_v42 = vpack.i.bf16 %v375_v37, %v374_v36  ;;  %v379_v45 = vunpack.c.h.bf16 %v5192_v39  ;;  %v5726_v48 = vunpack.c.l.bf16 %v6066_v46  ;;  %v5727_v49 = vunpack.c.h.bf16 %v6066_v46  ;;  %v565_v29 = vld [vmem:[%s7904_s3 + $0x38] sm:$0x1]  ;;  %v8024_v36 = vld [vmem:[%s7904_s3 + $0x3c] sm:$0xff]   ;;  %p7659_p4 = scmp.ne.s32.totalorder %s10334_s27, %s7658_s20  ;;  %s7737_s18 = smov [#allocation8]  }
  0x5f   : > { %v7997_v50 = vpack.i.bf16 %v5723_v43, %v5722_v41  ;;  %v382_v52 = vunpack.c.l.bf16 %v5196_v47  ;;  %v383_v53 = vunpack.c.h.bf16 %v5196_v47  ;;  %v5730_v57 = vunpack.c.l.bf16 %v6067_v54  ;;  %v5130_v37 = vld [vmem:[%s7904_s3 + $0x24] sm:$0xff]   ;;  %v5129_v38 = vld [vmem:[%s7904_s3 + $0x20] sm:$0x1]  ;;  %v1780_v30 = vld [vmem:[%s7904_s3 + $0x8c] sm:$0x1]  ;;  %s7662_s24 = sshll.u32 %s7737_s18, 4  ;;  %s7663_s24 = int_to_ptr.vmem [resolvable:$false] %s7662_s24 }
  0x60   : > { %v6366_v51 = vpack.i.bf16 %v379_v45, %v378_v44  ;;  %v8001_v56 = vpack.i.bf16 %v5727_v49, %v5726_v48  ;;  %v5731_v59 = vunpack.c.h.bf16 %v6067_v54  ;;  %v386_v60 = vunpack.c.l.bf16 %v5200_v55  ;;  %v5135_v44 = vld [vmem:[%s7904_s3 + $0x38] sm:$0x1]  ;;  %v5132_v45 = vld [vmem:[%s7904_s3 + $0x2c] sm:$0x1]  ;;  %v5137_v47 = vld [vmem:[%s7904_s3 + $0x3c] sm:$0xff]   ;;  %p7660_p6 = pnand %p7659_p4, %p7849_p12  ;;  %s7664_s19 = scalar_lea.vmem %s7663_s24, 2048 }
  0x61   : > { %v6376_v58 = vpack.i.bf16 %v383_v53, %v382_v52  ;;  %v387_v61 = vunpack.c.h.bf16 %v5200_v55  ;;  %v601_v1 = vunpack.c.l.bf16 %v553_v62  ;;  %v602_v2 = vunpack.c.l.bf16 %v554_v63  ;;  %v5138_v48 = vld [vmem:[%s7904_s3 + $0x44] sm:$0x1]  ;;  %v1771_v22 = vld [vmem:[%s7904_s3 + $0x68] sm:$0x1]  ;;  %p7665_p10 = scmp.lt.s32.totalorder %s10334_s27, %s7663_s24  ;;  %p7666_p11 = scmp.lt.s32.totalorder %s7664_s19, %s7658_s20 }
  0x62   : > { %6342 = vrot.lane.b32.xlu1 %v7960_v24, %s7734_s15  ;;  %6337 = vrot.lane.b32.xlu0 %v6336_v26, %s7734_s15  ;;  %v6391_v3 = vpack.i.bf16 %v5731_v59, %v5730_v57  ;;  %v5734_v5 = vunpack.c.l.bf16 %v5733_v0  ;;  %v5735_v6 = vunpack.c.h.bf16 %v5733_v0  ;;  %v603_v15 = vunpack.c.h.bf16 %v554_v63  ;;  %v5125_v26 = vld [vmem:[%s7904_s3 + $0xc] sm:$0xff]   ;;  %v568_v0 = vld [vmem:[%s7904_s3 + $0x44] sm:$0x1]  ;;  %p7661_p8 = pneg %p7660_p6 }
  0x63   : > { %v6386_v4 = vpack.i.bf16 %v387_v61, %v386_v60  ;;  %v6401_v13 = vpack.i.bf16 %v602_v2, %v601_v1  ;;  %v604_v20 = vunpack.c.l.bf16 %v556_v7  ;;  %v609_v31 = vunpack.c.h.bf16 %v561_v8  ;;  %v5141_v59 = vld [vmem:[%s7904_s3 + $0x50] sm:$0x1]  ;;  %v6055_v2 = vld [vmem:[%s7904_s3 + $0x60] sm:$0xff]   ;;  %v5144_v7 = vld [vmem:[%s7904_s3 + $0x5c] sm:$0x1]  ;;  %p7667_p3 = por %p7666_p11, %p7665_p10 }
  0x64   : > { %v8016_v14 = vpack.i.bf16 %v5735_v6, %v5734_v5  ;;  %v610_v33 = vunpack.c.l.bf16 %v562_v21  ;;  %v608_v41 = vunpack.c.l.bf16 %v561_v8  ;;  %v229_v43 = vunpack.c.l.bf16 %v5126_v28  ;;  %v8056_v8 = vld [vmem:[%s7904_s3 + $0x90] sm:$0xff]   ;;  %v6056_v21 = vld [vmem:[%s7904_s3 + $0x78] sm:$0xff]  }
  0x65   : > { %v6406_v39 = vpack.i.bf16 %v604_v20, %v603_v15  ;;  %vm279_vm2 = vcmask 24576   ;;  %v227_v46 = vunpack.c.l.bf16 %v5125_v26  ;;  %v233_v49 = vunpack.c.l.bf16 %v5130_v37  ;;  %v8060_v15 = vld [vmem:[%s7904_s3 + $0x54] sm:$0xff]   ;;  %v574_v20 = vld [vmem:[%s7904_s3 + $0x5c] sm:$0x1]  ;;  %p7668_p7 = pnand %p7667_p3, %p7661_p8 }
  0x66   : > { %6352 = vrot.lane.b32.xlu1 %v7981_v34, %s7734_s15  ;;  %6347 = vrot.lane.b32.xlu0 %v6346_v35, %s7734_s15  ;;  %v607_v35 = vunpack.c.l.bf16 %v559_v23  ;;  %280 = vst.msk [vmem:[#allocation2 + $0xf] sm:$0x1] %vm279_vm2, %v229_v43  ;;  %v232_v52 = vunpack.c.l.bf16 %v5129_v38  ;;  %v613_v53 = vunpack.c.l.bf16 %v565_v29  ;;  %v614_v54 = vunpack.c.l.bf16 %v8024_v36  ;;  %v8079_v43 = vld [vmem:[%s7904_s3 + $0xa8] sm:$0xff]  }
  0x67   : > { %276 = vst.msk [vmem:[#allocation2 - $0x1] sm:$0xfe] %vm275_vm0, %v227_v46  ;;  %v238_v55 = vunpack.c.l.bf16 %v5135_v44  ;;  %v235_v57 = vunpack.c.l.bf16 %v5132_v45  ;;  %v6421_v60 = vpack.i.bf16 %v610_v33, %v609_v31  ;;  %284 = vst.msk [vmem:[#allocation2 + $0x1f] sm:$0xfe] %vm275_vm0, %v233_v49  ;;  %v240_v62 = vunpack.c.h.bf16 %v5137_v47  ;;  %v5149_v31 = vld [vmem:[%s7904_s3 + $0x6c] sm:$0xff]  }
  0x68   : > { %v6416_v61 = vpack.i.bf16 %v608_v41, %v607_v35  ;;  %283 = vst.msk [vmem:[#allocation2 + $0x1f] sm:$0x1] %vm279_vm2, %v232_v52  ;;  %v241_v63 = vunpack.c.l.bf16 %v5138_v48  ;;  %v239_v1 = vunpack.c.l.bf16 %v5137_v47  ;;  %v244_v6 = vunpack.c.l.bf16 %v5141_v59  ;;  %v5150_v33 = vld [vmem:[%s7904_s3 + $0x74] sm:$0x1]  ;;  %v571_v35 = vld [vmem:[%s7904_s3 + $0x50] sm:$0x1] }
  0x69   : > { %289 = vst.msk [vmem:[#allocation2 + $0x3f] sm:$0x1] %vm279_vm2, %v238_v55  ;;  %286 = vst.msk [vmem:[#allocation2 + $0x2f] sm:$0x1] %vm279_vm2, %v235_v57  ;;  %v6431_v23 = vpack.i.bf16 %v614_v54, %v613_v53  ;;  %v5683_v28 = vunpack.c.h.bf16 %v6055_v2  ;;  %v5818_v38 = vunpack.c.l.bf16 %v8056_v8  ;;  %v622_v41 = vunpack.c.l.bf16 %v574_v20  ;;  %v577_v44 = vld [vmem:[%s7904_s3 + $0x68] sm:$0x1] }
  0x6a   : > { %6362 = vrot.lane.b32.xlu1 %v7987_v40, %s7734_s15  ;;  %6357 = vrot.lane.b32.xlu0 %v6356_v42, %s7734_s15  ;;  %v228_v42 = vunpack.c.h.bf16 %v5125_v26  ;;  %291 = vst.msk [vmem:[#allocation2 + $0x47] sm:$0xff] %vm277_vm1, %v240_v62  ;;  %v616_v26 = vunpack.c.l.bf16 %v568_v0  ;;  %v5686_v45 = vunpack.c.l.bf16 %v6056_v21  ;;  %v5687_v46 = vunpack.c.h.bf16 %v6056_v21  ;;  %v5153_v49 = vld [vmem:[%s7904_s3 + $0x80] sm:$0x1]  ;;  %v578_v54 = vld [vmem:[%s7904_s3 + $0x6c] sm:$0xff]  }
  0x6b   : > { %292 = vst.msk [vmem:[#allocation2 + $0x4f] sm:$0x1] %vm279_vm2, %v241_v63  ;;  %295 = vst.msk [vmem:[#allocation2 + $0x5f] sm:$0x1] %vm279_vm2, %v244_v6  ;;  %v252_v47 = vunpack.c.h.bf16 %v5149_v31  ;;  %v253_v48 = vunpack.c.l.bf16 %v5150_v33  ;;  %v619_v52 = vunpack.c.l.bf16 %v571_v35  ;;  %v620_v53 = vunpack.c.l.bf16 %v8060_v15  ;;  %v5154_v55 = vld [vmem:[%s7904_s3 + $0x84] sm:$0xff]  }
  0x6c   : > { %278 = vst.msk [vmem:[#allocation2 + $0x7] sm:$0xff] %vm277_vm1, %v228_v42  ;;  %300 = vst.msk [vmem:[#allocation2 + $0x77] sm:$0xff] %vm277_vm1, %v5683_v28  ;;  %v5819_v42 = vunpack.c.h.bf16 %v8056_v8  ;;  %v251_v57 = vunpack.c.l.bf16 %v5149_v31  ;;  %v257_v59 = vunpack.c.l.bf16 %v5154_v55  ;;  %v8105_v62 = vld [vmem:[%s7904_s3 + $0xc0] sm:$0xff]   ;;  %v258_v63 = vunpack.c.h.bf16 %v5154_v55  ;;  %v5171_v6 = vld [vmem:[%s7904_s3 + $0xc8] sm:$0x1] }
  0x6d   : > { %290 = vst.msk [vmem:[#allocation2 + $0x3f] sm:$0xfe] %vm275_vm0, %v239_v1  ;;  %311 = vst.msk [vmem:[#allocation2 + $0xaf] sm:$0xfe] %vm275_vm0, %v5818_v38  ;;  %v256_v0 = vunpack.c.l.bf16 %v5153_v49  ;;  %v5823_v1 = vunpack.c.h.bf16 %v8079_v43  ;;  %v5826_v20 = vunpack.c.l.bf16 %v8105_v62  ;;  %v580_v21 = vld [vmem:[%s7904_s3 + $0x74] sm:$0x1]  ;;  %v274_v28 = vunpack.c.l.bf16 %v5171_v6 }
  0x6e   : > { %6372 = vrot.lane.b32.xlu1 %v7997_v50, %s7734_s15  ;;  %6367 = vrot.lane.b32.xlu0 %v6366_v51, %s7734_s15  ;;  %v234_v51 = vunpack.c.h.bf16 %v5130_v37  ;;  %v247_v37 = vunpack.c.l.bf16 %v5144_v7  ;;  %312 = vst.msk [vmem:[#allocation2 + $0xb7] sm:$0xff] %vm277_vm1, %v5819_v42  ;;  %303 = vst.msk [vmem:[#allocation2 + $0x87] sm:$0xff] %vm277_vm1, %v252_v47  ;;  %v6446_v7 = vpack.i.bf16 %v620_v53, %v619_v52  ;;  %v627_v33 = vunpack.c.h.bf16 %v578_v54  ;;  %v5166_v52 = vld [vmem:[%s7904_s3 + $0xb4] sm:$0xff]   ;;  %v5168_v53 = vld [vmem:[%s7904_s3 + $0xbc] sm:$0x1] }
  0x6f   : > { %304 = vst.msk [vmem:[#allocation2 + $0x8f] sm:$0x1] %vm279_vm2, %v253_v48  ;;  %307 = vst.msk [vmem:[#allocation2 + $0x9f] sm:$0x1] %vm279_vm2, %v256_v0  ;;  %v628_v35 = vunpack.c.l.bf16 %v580_v21  ;;  %v590_v55 = vld [vmem:[%s7904_s3 + $0x9c] sm:$0xff]   ;;  %vm518_vm3 = vcmask 64544  }
  0x70   : > { %285 = vst.msk [vmem:[#allocation2 + $0x27] sm:$0xff] %vm277_vm1, %v234_v51  ;;  %306 = vst.msk [vmem:[#allocation2 + $0x97] sm:$0xff] %vm277_vm1, %v5687_v46  ;;  %v639_v6 = vunpack.c.h.bf16 %v590_v55  ;;  %v595_v21 = vld [vmem:[%s7904_s3 + $0xb0] sm:$0x1]  ;;  %vm839_vm4 = vcmask 97345   ;;  %vm843_vm5 = vcmask 90176  }
  0x71   : > { %298 = vst.msk [vmem:[#allocation2 + $0x6f] sm:$0x1] %vm279_vm2, %v247_v37  ;;  %v5162_v37 = vld [vmem:[%s7904_s3 + $0xa4] sm:$0x1]  ;;  %325 = vst.msk [vmem:[#allocation2 + $0xff] sm:$0x1] %vm279_vm2, %v274_v28  ;;  %v6466_v47 = vpack.i.bf16 %v628_v35, %v627_v33 }
  0x72   : > { %6382 = vrot.lane.b32.xlu1 %v8001_v56, %s7734_s15  ;;  %6377 = vrot.lane.b32.xlu0 %v6376_v58, %s7734_s15  ;;  %v5142_v58 = vld [vmem:[%s7904_s3 + $0x54] sm:$0xff]   ;;  %305 = vst.msk [vmem:[#allocation2 + $0x8f] sm:$0xfe] %vm275_vm0, %v5686_v45  ;;  %302 = vst.msk [vmem:[#allocation2 + $0x7f] sm:$0xfe] %vm275_vm0, %v251_v57  ;;  %v265_v45 = vunpack.c.l.bf16 %v5162_v37  ;;  %v892_v35 = vld [vmem:[%s7904_s3 + $0xc] sm:$0xff]  }
  0x73   : > { %v246_v5 = vunpack.c.h.bf16 %v5142_v58  ;;  %308 = vst.msk [vmem:[#allocation2 + $0x9f] sm:$0xfe] %vm275_vm0, %v257_v59  ;;  %323 = vst.msk [vmem:[#allocation2 + $0xef] sm:$0xfe] %vm275_vm0, %v5826_v20  ;;  %v269_v59 = vunpack.c.l.bf16 %v5166_v52  ;;  %vm841_vm6 = vcmask 97344   ;;  %vm1082_vm7 = vcmask 130144  }
  0x74   : > { %309 = vst.msk [vmem:[#allocation2 + $0xa7] sm:$0xff] %vm277_vm1, %v258_v63  ;;  %318 = vst.msk [vmem:[#allocation2 + $0xd7] sm:$0xff] %vm277_vm1, %v5823_v1  ;;  %vm1357_vm8 = vcmask 31746   ;;  %vm1360_vm9 = vcmask 25600   ;;  %vm1164_vm10 = vcmask 130048   ;;  %vm1695_vm11 = vcmask 64545  }
  0x75   : > { %297 = vst.msk [vmem:[#allocation2 + $0x67] sm:$0xff] %vm277_vm1, %v246_v5  ;;  %v5165_v5 = vld [vmem:[%s7904_s3 + $0xb0] sm:$0x1]  ;;  %vm10391_vm12 = vcmask 57376   ;;  %vm2033_vm13 = vcmask 97346   ;;  %vm2036_vm14 = vcmask 91200  }
  0x76   : > { %6392 = vrot.lane.b32.xlu1 %v6391_v3, %s7734_s15  ;;  %6387 = vrot.lane.b32.xlu0 %v6386_v4, %s7734_s15  ;;  %v5147_v3 = vld [vmem:[%s7904_s3 + $0x68] sm:$0x1]  ;;  %v245_v4 = vunpack.c.l.bf16 %v5142_v58  ;;  %v5822_v58 = vunpack.c.l.bf16 %v8079_v43  ;;  %316 = vst.msk [vmem:[#allocation2 + $0xcf] sm:$0x1] %vm279_vm2, %v265_v45  ;;  %vm2374_vm15 = vcmask 122976  }
  0x77   : > { %v250_v29 = vunpack.c.l.bf16 %v5147_v3  ;;  %v625_v3 = vunpack.c.l.bf16 %v577_v44  ;;  %320 = vst.msk [vmem:[#allocation2 + $0xdf] sm:$0xfe] %vm275_vm0, %v269_v59  ;;  %v908_v59 = vld [vmem:[%s7904_s3 + $0x6c] sm:$0xff]  }
  0x78   : > { %296 = vst.msk [vmem:[#allocation2 + $0x5f] sm:$0xfe] %vm275_vm0, %v245_v4  ;;  %v626_v4 = vunpack.c.l.bf16 %v578_v54  ;;  %317 = vst.msk [vmem:[#allocation2 + $0xcf] sm:$0xfe] %vm275_vm0, %v5822_v58  ;;  %v589_v54 = vld [vmem:[%s7904_s3 + $0x98] sm:$0x1] }
  0x79   : > { %301 = vst.msk [vmem:[#allocation2 + $0x7f] sm:$0x1] %vm279_vm2, %v250_v29  ;;  %v585_v29 = vld [vmem:[%s7904_s3 + $0x84] sm:$0xff]  }
  0x7a   : > { %6402 = vrot.lane.b32.xlu1 %v6401_v13, %s7735_s17  ;;  %6397 = vrot.lane.b32.xlu0 %v8016_v14, %s7735_s17  ;;  %v615_v13 = vunpack.c.h.bf16 %v8024_v36  ;;  %v5682_v36 = vunpack.c.l.bf16 %v6055_v2  ;;  %v6461_v31 = vpack.i.bf16 %v626_v4, %v625_v3  ;;  %v633_v46 = vunpack.c.h.bf16 %v585_v29  ;;  %v592_v4 = vld [vmem:[%s7904_s3 + $0xa4] sm:$0x1] }
  0x7b   : > { %v638_v3 = vunpack.c.l.bf16 %v590_v55 }
  0x7c   : > { %299 = vst.msk [vmem:[#allocation2 + $0x6f] sm:$0xfe] %vm275_vm0, %v5682_v36  ;;  %v6436_v51 = vpack.i.bf16 %v616_v26, %v615_v13  ;;  %v268_v26 = vunpack.c.l.bf16 %v5165_v5  ;;  %v5161_v36 = vld [vmem:[%s7904_s3 + $0x9c] sm:$0xff]  }
  0x7d   : > { %v264_v44 = vunpack.c.h.bf16 %v5161_v36  ;;  %v263_v57 = vunpack.c.l.bf16 %v5161_v36 }
  0x7e   : > { %6412 = vrot.lane.b32.xlu1 %v7948_v19, %s7735_s17  ;;  %6407 = vrot.lane.b32.xlu0 %v6406_v39, %s7735_s17  ;;  %v621_v39 = vunpack.c.h.bf16 %v8060_v15  ;;  %319 = vst.msk [vmem:[#allocation2 + $0xdf] sm:$0x1] %vm279_vm2, %v268_v26 }
  0x7f   : > { %315 = vst.msk [vmem:[#allocation2 + $0xc7] sm:$0xff] %vm277_vm1, %v264_v44  ;;  %v896_v44 = vld [vmem:[%s7904_s3 + $0x24] sm:$0xff]  }
  0x80   : > { %v6451_v2 = vpack.i.bf16 %v622_v41, %v621_v39  ;;  %v586_v39 = vld [vmem:[%s7904_s3 + $0x8c] sm:$0x1]  ;;  %v583_v41 = vld [vmem:[%s7904_s3 + $0x80] sm:$0x1]  ;;  %314 = vst.msk [vmem:[#allocation2 + $0xbf] sm:$0xfe] %vm275_vm0, %v263_v57 }
  0x81   : > { %v634_v48 = vunpack.c.l.bf16 %v586_v39  ;;  %v631_v49 = vunpack.c.l.bf16 %v583_v41  ;;  %v924_v39 = vunpack.c.l.bf16 %v892_v35  ;;  %v925_v41 = vunpack.c.h.bf16 %v892_v35 }
  0x82   : > { %6422 = vrot.lane.b32.xlu1 %v6421_v60, %s7735_s17  ;;  %6417 = vrot.lane.b32.xlu0 %v6416_v61, %s7735_s17  ;;  %v5159_v60 = vld [vmem:[%s7904_s3 + $0x98] sm:$0x1]  ;;  %v5156_v61 = vld [vmem:[%s7904_s3 + $0x8c] sm:$0x1] }
  0x83   : > { %v262_v13 = vunpack.c.l.bf16 %v5159_v60  ;;  %v259_v15 = vunpack.c.l.bf16 %v5156_v61  ;;  %v270_v60 = vunpack.c.h.bf16 %v5166_v52  ;;  %v271_v61 = vunpack.c.l.bf16 %v5168_v53  ;;  %v904_v53 = vld [vmem:[%s7904_s3 + $0x54] sm:$0xff]  }
  0x84   : > { %v6481_v63 = vpack.i.bf16 %v634_v48, %v633_v46  ;;  %v6521_v45 = vpack.i.bf16 %v925_v41, %v924_v39  ;;  %v928_v46 = vunpack.c.l.bf16 %v896_v44  ;;  %v900_v48 = vld [vmem:[%s7904_s3 + $0x3c] sm:$0xff]   ;;  %v936_v55 = vunpack.c.l.bf16 %v904_v53 }
  0x85   : > { %313 = vst.msk [vmem:[#allocation2 + $0xbf] sm:$0x1] %vm279_vm2, %v262_v13  ;;  %310 = vst.msk [vmem:[#allocation2 + $0xaf] sm:$0x1] %vm279_vm2, %v259_v15  ;;  %v597_v13 = vld [vmem:[%s7904_s3 + $0xb4] sm:$0xff]   ;;  %v933_v52 = vunpack.c.h.bf16 %v900_v48  ;;  %v937_v57 = vunpack.c.h.bf16 %v904_v53 }
  0x86   : > { %6432 = vrot.lane.b32.xlu1 %v6431_v23, %s7735_s17  ;;  %6427 = vrot.lane.b32.xlu0 %v7944_v18, %s7735_s17  ;;  %v5827_v23 = vunpack.c.h.bf16 %v8105_v62  ;;  %321 = vst.msk [vmem:[#allocation2 + $0xe7] sm:$0xff] %vm277_vm1, %v270_v60  ;;  %v598_v15 = vld [vmem:[%s7904_s3 + $0xbc] sm:$0x1]  ;;  %v645_v26 = vunpack.c.h.bf16 %v597_v13  ;;  %v644_v33 = vunpack.c.l.bf16 %v597_v13  ;;  %v940_v60 = vunpack.c.l.bf16 %v908_v59  ;;  %v5258_v41 = vld [vmem:[%s7904_s3 + $0x20] sm:$0x1] }
  0x87   : > { %322 = vst.msk [vmem:[#allocation2 + $0xef] sm:$0x1] %vm279_vm2, %v271_v61  ;;  %v941_v61 = vunpack.c.h.bf16 %v908_v59  ;;  %v6090_v62 = vld [vmem:[%s7904_s3 + $0x18] sm:$0xff]  }
  0x88   : > { %324 = vst.msk [vmem:[#allocation2 + $0xf7] sm:$0xff] %vm277_vm1, %v5827_v23 }
  0x8a   : > { %6442 = vrot.lane.b32.xlu1 %v7960_v24, %s7735_s17  ;;  %6437 = vrot.lane.b32.xlu0 %v6436_v51, %s7735_s17  ;;  %v632_v51 = vunpack.c.l.bf16 %v585_v29  ;;  %v646_v29 = vunpack.c.l.bf16 %v598_v15  ;;  %v5253_v15 = vld [vmem:[%s7904_s3 + $0xc] sm:$0xff]  }
  0x8c   : > { %v6476_v0 = vpack.i.bf16 %v632_v51, %v631_v49  ;;  %v6511_v36 = vpack.i.bf16 %v646_v29, %v645_v26  ;;  %v932_v51 = vunpack.c.l.bf16 %v900_v48  ;;  %v1455_v26 = vunpack.c.l.bf16 %v5253_v15  ;;  %v5255_v29 = vld [vmem:[%s7904_s3 + $0x14] sm:$0x1] }
  0x8d   : > { %v1457_v35 = vunpack.c.l.bf16 %v5255_v29 }
  0x8e   : > { %6452 = vrot.lane.b32.xlu1 %v6451_v2, %s7735_s17  ;;  %6447 = vrot.lane.b32.xlu0 %v6446_v7, %s7735_s17  ;;  %v637_v2 = vunpack.c.l.bf16 %v589_v54  ;;  %v640_v7 = vunpack.c.l.bf16 %v592_v4  ;;  %v6541_v54 = vpack.i.bf16 %v933_v52, %v932_v51 }
  0x90   : > { %v6491_v5 = vpack.i.bf16 %v638_v3, %v637_v2  ;;  %v6496_v28 = vpack.i.bf16 %v640_v7, %v639_v6  ;;  %v916_v3 = vld [vmem:[%s7904_s3 + $0x9c] sm:$0xff]   ;;  %v920_v6 = vld [vmem:[%s7904_s3 + $0xb4] sm:$0xff]  }
  0x91   : > { %v948_v4 = vunpack.c.l.bf16 %v916_v3  ;;  %v953_v13 = vunpack.c.h.bf16 %v920_v6 }
  0x92   : > { %6462 = vrot.lane.b32.xlu1 %v6461_v31, %s7735_s17  ;;  %6457 = vrot.lane.b32.xlu0 %v7981_v34, %s7735_s17  ;;  %v643_v31 = vunpack.c.l.bf16 %v595_v21  ;;  %v5270_v21 = vld [vmem:[%s7904_s3 + $0x50] sm:$0x1] }
  0x94   : > { %v6506_v37 = vpack.i.bf16 %v644_v33, %v643_v31  ;;  %v1472_v31 = vunpack.c.l.bf16 %v5270_v21  ;;  %v5283_v33 = vld [vmem:[%s7904_s3 + $0x84] sm:$0xff]  }
  0x95   : > { %v1486_v39 = vunpack.c.h.bf16 %v5283_v33 }
  0x96   : > { %6472 = vrot.lane.b32.xlu1 %v7987_v40, %s7735_s17  ;;  %6467 = vrot.lane.b32.xlu0 %v6466_v47, %s7735_s17  ;;  %v929_v47 = vunpack.c.h.bf16 %v896_v44  ;;  %v5288_v44 = vld [vmem:[%s7904_s3 + $0x98] sm:$0x1] }
  0x97   : > { %v1490_v48 = vunpack.c.l.bf16 %v5288_v44 }
  0x98   : > { %v6531_v49 = vpack.i.bf16 %v929_v47, %v928_v46  ;;  %v1460_v46 = vunpack.c.l.bf16 %v5258_v41 }
  0x9a   : > { %6482 = vrot.lane.b32.xlu1 %v6481_v63, %s7735_s17  ;;  %6477 = vrot.lane.b32.xlu0 %v6476_v0, %s7735_s17  ;;  %v912_v63 = vld [vmem:[%s7904_s3 + $0x84] sm:$0xff]  }
  0x9b   : > { %v944_v0 = vunpack.c.l.bf16 %v912_v63  ;;  %v945_v2 = vunpack.c.h.bf16 %v912_v63 }
  0x9e   : > { %6492 = vrot.lane.b32.xlu1 %v6491_v5, %s7735_s17  ;;  %6487 = vrot.lane.b32.xlu0 %v7997_v50, %s7735_s17  ;;  %v949_v5 = vunpack.c.h.bf16 %v916_v3 }
  0xa0   : > { %v6581_v7 = vpack.i.bf16 %v949_v5, %v948_v4 }
  0xa2   : > { %6502 = vrot.lane.b32.xlu1 %v8001_v56, %s7735_s17  ;;  %6497 = vrot.lane.b32.xlu0 %v6496_v28, %s7735_s17  ;;  %v1456_v28 = vunpack.c.h.bf16 %v5253_v15 }
  0xa6   : > { %6512 = vrot.lane.b32.xlu1 %v6511_v36, %s7735_s17  ;;  %6507 = vrot.lane.b32.xlu0 %v6506_v37, %s7735_s17  ;;  %v6636_v36 = vpack.i.bf16 %v1472_v31, %v7930_v17  ;;  %v1485_v37 = vunpack.c.l.bf16 %v5283_v33 }
  0xa8   : > { %v6671_v47 = vpack.i.bf16 %v1486_v39, %v1485_v37 }
  0xaa   : > { %6522 = vrot.lane.b32.xlu1 %v6521_v45, %s7736_s4  ;;  %6517 = vrot.lane.b32.xlu0 %v8016_v14, %s7736_s4  ;;  %v6551_v14 = vpack.i.bf16 %v937_v57, %v936_v55  ;;  %v5259_v45 = vld [vmem:[%s7904_s3 + $0x24] sm:$0xff]   ;;  %v5261_v57 = vld [vmem:[%s7904_s3 + $0x2c] sm:$0x1] }
  0xab   : > { %v1461_v52 = vunpack.c.l.bf16 %v5259_v45  ;;  %v1462_v59 = vunpack.c.h.bf16 %v5259_v45 }
  0xae   : > { %6532 = vrot.lane.b32.xlu1 %v6531_v49, %s7736_s4  ;;  %6527 = vrot.lane.b32.xlu0 %v7948_v19, %s7736_s4  ;;  %v6561_v19 = vpack.i.bf16 %v941_v61, %v940_v60  ;;  %v5291_v49 = vld [vmem:[%s7904_s3 + $0xa4] sm:$0x1]  ;;  %v5295_v61 = vld [vmem:[%s7904_s3 + $0xb4] sm:$0xff]  }
  0xaf   : > { %v1493_v60 = vunpack.c.l.bf16 %v5291_v49  ;;  %v1497_v5 = vunpack.c.l.bf16 %v5295_v61 }
  0xb1   : > { %v6691_v4 = vpack.i.bf16 %v5822_v58, %v1493_v60 }
  0xb2   : > { %6542 = vrot.lane.b32.xlu1 %v6541_v54, %s7736_s4  ;;  %6537 = vrot.lane.b32.xlu0 %v7944_v18, %s7736_s4  ;;  %v6571_v18 = vpack.i.bf16 %v945_v2, %v944_v0 }
  0xb6   : > { %6552 = vrot.lane.b32.xlu1 %v6551_v14, %s7736_s4  ;;  %6547 = vrot.lane.b32.xlu0 %v7960_v24, %s7736_s4  ;;  %v952_v24 = vunpack.c.l.bf16 %v920_v6  ;;  %v6681_v14 = vpack.i.bf16 %v1490_v48, %v5819_v42  ;;  %v6611_v42 = vpack.i.bf16 %v1462_v59, %v1461_v52  ;;  %v1498_v6 = vunpack.c.h.bf16 %v5295_v61  ;;  %v1751_v52 = vld [vmem:[%s7904_s3 + $0x18] sm:$0xe] }
  0xb7   : > { %v5271_v59 = vld [vmem:[%s7904_s3 + $0x54] sm:$0xff]   ;;  %v1799_v61 = vunpack.c.l.bf16 %v1751_v52 }
  0xb8   : > { %v6701_v33 = vpack.i.bf16 %v1498_v6, %v1497_v5 }
  0xba   : > { %6562 = vrot.lane.b32.xlu1 %v6561_v19, %s7736_s4  ;;  %6557 = vrot.lane.b32.xlu0 %v7981_v34, %s7736_s4  ;;  %v6591_v34 = vpack.i.bf16 %v953_v13, %v952_v24  ;;  %v5300_v24 = vld [vmem:[%s7904_s3 + $0xc8] sm:$0x1] }
  0xbe   : > { %6572 = vrot.lane.b32.xlu1 %v6571_v18, %s7736_s4  ;;  %6567 = vrot.lane.b32.xlu0 %v7987_v40, %s7736_s4  ;;  %v6596_v40 = vpack.i.bf16 %v1456_v28, %v1455_v26  ;;  %v5265_v28 = vld [vmem:[%s7904_s3 + $0x3c] sm:$0xff]  }
  0xbf   : > { %v1467_v41 = vunpack.c.l.bf16 %v5265_v28 }
  0xc2   : > { %6582 = vrot.lane.b32.xlu1 %v6581_v7, %s7736_s4  ;;  %6577 = vrot.lane.b32.xlu0 %v7997_v50, %s7736_s4  ;;  %v6601_v50 = vpack.i.bf16 %v7923_v11, %v1457_v35  ;;  %v6606_v11 = vpack.i.bf16 %v1460_v46, %v7925_v12  ;;  %v1463_v12 = vunpack.c.l.bf16 %v5261_v57  ;;  %v5264_v7 = vld [vmem:[%s7904_s3 + $0x38] sm:$0x1]  ;;  %v1502_v35 = vunpack.c.l.bf16 %v5300_v24 }
  0xc3   : > { %v1466_v31 = vunpack.c.l.bf16 %v5264_v7 }
  0xc4   : > { %v6616_v29 = vpack.i.bf16 %v7919_v9, %v1463_v12  ;;  %v1468_v9 = vunpack.c.h.bf16 %v5265_v28  ;;  %v6711_v49 = vpack.i.bf16 %v1502_v35, %v5827_v23  ;;  %v5276_v35 = vld [vmem:[%s7904_s3 + $0x68] sm:$0x1] }
  0xc5   : > { %v6621_v48 = vpack.i.bf16 %v1466_v31, %v7921_v10 }
  0xc6   : > { %6592 = vrot.lane.b32.xlu1 %v6591_v34, %s7736_s4  ;;  %6587 = vrot.lane.b32.xlu0 %v8001_v56, %s7736_s4 }
  0xca   : > { %6597 = vrot.lane.b32.xlu1 %v6596_v40, %s7734_s15  ;;  %6637 = vrot.lane.b32.xlu0 %v6636_v36, %s7734_s15  ;;  %v1747_v40 = vld [vmem:[%s7904_s3 + $0x8] sm:$0x1]  ;;  %v1748_v36 = vld [vmem:[%s7904_s3 + $0xc] sm:$0xe] }
  0xcc   : > { %v6328_v51 = vpop.permute.xlu1 %6327  ;;  %v6318_v56 = vpop.permute.xlu0 %6317 }
  0xcd   : > { %v6330_v17 = vunpack.i.h.bf16 %v6328_v51  ;;  %v6329_v53 = vunpack.i.l.bf16 %v6328_v51  ;;  %v6320_v54 = vunpack.i.h.bf16 %v6318_v56  ;;  %v6319_v55 = vunpack.i.l.bf16 %v6318_v56 }
  0xce   : > { %6602 = vrot.lane.b32.xlu1 %v6601_v50, %s7734_s15  ;;  %6672 = vrot.lane.b32.xlu0 %v6671_v47, %s7734_s15  ;;  %v5267_v47 = vld [vmem:[%s7904_s3 + $0x44] sm:$0x1]  ;;  %v1795_v51 = vunpack.c.l.bf16 %v1747_v40  ;;  %v1796_v56 = vunpack.c.l.bf16 %v1748_v36 }
  0xcf   : > { %520 = vst.msk [vmem:[#allocation2 + $0x8] sm:$0xff] %vm518_vm3, %v6320_v54  ;;  %519 = vst.msk [vmem:[#allocation2] sm:$0xff] %vm518_vm3, %v6319_v55  ;;  %v1469_v54 = vunpack.c.l.bf16 %v5267_v47 }
  0xd0   : > { %523 = vst.msk [vmem:[#allocation2 + $0x20] sm:$0xff] %vm518_vm3, %v6329_v53  ;;  %524 = vst.msk [vmem:[#allocation2 + $0x28] sm:$0xff] %vm518_vm3, %v6330_v17  ;;  %v6333_v63 = vpop.permute.xlu1 %6332  ;;  %v6323_v19 = vpop.permute.xlu0 %6322  ;;  %v1752_v17 = vld [vmem:[%s7904_s3 + $0x1c] ss:$12 sps:$4 sm:$0xff]   ;;  %v6721_v60 = vpack.i.bf16 %v1796_v56, %v1795_v51  ;;  %v5277_v51 = vld [vmem:[%s7904_s3 + $0x6c] sm:$0xff]  }
  0xd1   : > { %v6335_v0 = vunpack.i.h.bf16 %v6333_v63  ;;  %v6334_v2 = vunpack.i.l.bf16 %v6333_v63  ;;  %v6325_v3 = vunpack.i.h.bf16 %v6323_v19  ;;  %v6324_v18 = vunpack.i.l.bf16 %v6323_v19  ;;  %v1756_v19 = vld [vmem:[%s7904_s3 + $0x2c] sm:$0x1] }
  0xd2   : > { %6607 = vrot.lane.b32.xlu1 %v6606_v11, %s7734_s15  ;;  %6682 = vrot.lane.b32.xlu0 %v6681_v14, %s7734_s15  ;;  %v6626_v14 = vpack.i.bf16 %v1468_v9, %v1467_v41  ;;  %v1800_v63 = vunpack.c.l.bf16 %v1752_v17  ;;  %v6631_v6 = vpack.i.bf16 %v7928_v16, %v1469_v54  ;;  %v1803_v24 = vunpack.c.h.bf16 %v1752_v17  ;;  %v1763_v41 = vld [vmem:[%s7904_s3 + $0x48] sm:$0xe]  ;;  %v8287_v9 = vld [vmem:[%s7904_s3 + $0x40] ss:$12 sps:$4 sm:$0xff]  }
  0xd3   : > { %521 = vst.msk [vmem:[#allocation2 + $0x10] sm:$0xff] %vm518_vm3, %v6324_v18  ;;  %522 = vst.msk [vmem:[#allocation2 + $0x18] sm:$0xff] %vm518_vm3, %v6325_v3  ;;  %v1474_v3 = vunpack.c.h.bf16 %v5271_v59  ;;  %v1811_v17 = vunpack.c.l.bf16 %v1763_v41  ;;  %v1768_v54 = vld [vmem:[%s7904_s3 + $0x5c] sm:$0x1] }
  0xd4   : > { %526 = vst.msk [vmem:[#allocation2 + $0x38] sm:$0xff] %vm518_vm3, %v6335_v0  ;;  %525 = vst.msk [vmem:[#allocation2 + $0x30] sm:$0xff] %vm518_vm3, %v6334_v2  ;;  %v6343_v13 = vpop.permute.xlu1 %6342  ;;  %v6338_v15 = vpop.permute.xlu0 %6337  ;;  %v1473_v2 = vunpack.c.l.bf16 %v5271_v59  ;;  %v6731_v7 = vpack.i.bf16 %v1800_v63, %v1799_v61  ;;  %v5279_v61 = vld [vmem:[%s7904_s3 + $0x74] sm:$0x1]  ;;  %v1480_v63 = vunpack.c.h.bf16 %v5277_v51 }
  0xd5   : > { %v6345_v21 = vunpack.i.h.bf16 %v6343_v13  ;;  %v6344_v26 = vunpack.i.l.bf16 %v6343_v13  ;;  %v6340_v34 = vunpack.i.h.bf16 %v6338_v15  ;;  %v6339_v58 = vunpack.i.l.bf16 %v6338_v15  ;;  %v5273_v15 = vld [vmem:[%s7904_s3 + $0x5c] sm:$0x1] }
  0xd6   : > { %6612 = vrot.lane.b32.xlu1 %v6611_v42, %s7734_s15  ;;  %6692 = vrot.lane.b32.xlu0 %v6691_v4, %s7734_s15  ;;  %v1804_v13 = vunpack.c.l.bf16 %v1756_v19  ;;  %v6641_v16 = vpack.i.bf16 %v1474_v3, %v1473_v2  ;;  %v1475_v40 = vunpack.c.l.bf16 %v5273_v15  ;;  %v1819_v15 = vunpack.c.l.bf16 %v1771_v22 }
  0xd7   : > { %528 = vst.msk [vmem:[#allocation2 + $0x48] sm:$0xff] %vm518_vm3, %v6340_v34  ;;  %529 = vst.msk [vmem:[#allocation2 + $0x50] sm:$0xff] %vm518_vm3, %v6344_v26  ;;  %v1760_v26 = vld [vmem:[%s7904_s3 + $0x3c] sm:$0xe] }
  0xd8   : > { %527 = vst.msk [vmem:[#allocation2 + $0x40] sm:$0xff] %vm518_vm3, %v6339_v58  ;;  %530 = vst.msk [vmem:[#allocation2 + $0x58] sm:$0xff] %vm518_vm3, %v6345_v21  ;;  %v6353_v37 = vpop.permute.xlu1 %6352  ;;  %v6348_v39 = vpop.permute.xlu0 %6347  ;;  %v1759_v21 = vld [vmem:[%s7904_s3 + $0x38] sm:$0x1]  ;;  %v6741_v36 = vpack.i.bf16 %v1804_v13, %v1803_v24  ;;  %v6646_v56 = vpack.i.bf16 %v5714_v25, %v1475_v40 }
  0xd9   : > { %v6355_v44 = vunpack.i.h.bf16 %v6353_v37  ;;  %v6354_v45 = vunpack.i.l.bf16 %v6353_v37  ;;  %v6350_v50 = vunpack.i.h.bf16 %v6348_v39  ;;  %v6349_v46 = vunpack.i.l.bf16 %v6348_v39 }
  0xda   : > { %6617 = vrot.lane.b32.xlu1 %v6616_v29, %s7734_s15  ;;  %6702 = vrot.lane.b32.xlu0 %v6701_v33, %s7734_s15  ;;  %v1807_v37 = vunpack.c.l.bf16 %v1759_v21  ;;  %v1808_v39 = vunpack.c.l.bf16 %v1760_v26  ;;  %v8323_v26 = vld [vmem:[%s7904_s3 + $0x70] ss:$12 sps:$4 sm:$0xff]  }
  0xdb   : > { %531 = vst.msk [vmem:[#allocation2 + $0x60] sm:$0xff] %vm518_vm3, %v6349_v46  ;;  %534 = vst.msk [vmem:[#allocation2 + $0x78] sm:$0xff] %vm518_vm3, %v6355_v44 }
  0xdc   : > { %532 = vst.msk [vmem:[#allocation2 + $0x68] sm:$0xff] %vm518_vm3, %v6350_v50  ;;  %533 = vst.msk [vmem:[#allocation2 + $0x70] sm:$0xff] %vm518_vm3, %v6354_v45  ;;  %v6363_v53 = vpop.permute.xlu1 %6362  ;;  %v6358_v10 = vpop.permute.xlu0 %6357  ;;  %v1478_v50 = vunpack.c.l.bf16 %v5276_v35  ;;  %v6751_v52 = vpack.i.bf16 %v1808_v39, %v1807_v37 }
  0xdd   : > { %v6365_v55 = vunpack.i.h.bf16 %v6363_v53  ;;  %v6364_v57 = vunpack.i.l.bf16 %v6363_v53  ;;  %v6360_v23 = vunpack.i.h.bf16 %v6358_v10  ;;  %v6359_v11 = vunpack.i.l.bf16 %v6358_v10  ;;  %v8300_v10 = vld [vmem:[%s7904_s3 + $0x4c] ss:$12 sps:$4 sm:$0xff]  }
  0xde   : > { %6622 = vrot.lane.b32.xlu1 %v6621_v48, %s7734_s15  ;;  %6712 = vrot.lane.b32.xlu0 %v6711_v49, %s7734_s15  ;;  %v1812_v53 = vunpack.c.h.bf16 %v8287_v9 }
  0xdf   : > { %536 = vst.msk [vmem:[#allocation2 + $0x88] sm:$0xff] %vm518_vm3, %v6360_v23  ;;  %537 = vst.msk [vmem:[#allocation2 + $0x90] sm:$0xff] %vm518_vm3, %v6364_v57  ;;  %v6651_v57 = vpack.i.bf16 %v1478_v50, %v5715_v27  ;;  %v1479_v23 = vunpack.c.l.bf16 %v5277_v51  ;;  %v1772_v27 = vld [vmem:[%s7904_s3 + $0x6c] sm:$0xe] }
  0xe0   : > { %535 = vst.msk [vmem:[#allocation2 + $0x80] sm:$0xff] %vm518_vm3, %v6359_v11  ;;  %538 = vst.msk [vmem:[#allocation2 + $0x98] sm:$0xff] %vm518_vm3, %v6365_v55  ;;  %v6373_v12 = vpop.permute.xlu1 %6372  ;;  %v6368_v0 = vpop.permute.xlu0 %6367  ;;  %v6761_v19 = vpack.i.bf16 %v1812_v53, %v1811_v17  ;;  %v1820_v21 = vunpack.c.l.bf16 %v1772_v27  ;;  %v8338_v50 = vld [vmem:[%s7904_s3 + $0x88] ss:$36 sps:$4 sm:$0xff]  }
  0xe1   : > { %v6375_v18 = vunpack.i.h.bf16 %v6373_v12  ;;  %v6374_v42 = vunpack.i.l.bf16 %v6373_v12  ;;  %v6370_v4 = vunpack.i.h.bf16 %v6368_v0  ;;  %v6369_v5 = vunpack.i.l.bf16 %v6368_v0 }
  0xe2   : > { %6627 = vrot.lane.b32.xlu1 %v6626_v14, %s7734_s15  ;;  %6722 = vrot.lane.b32.xlu0 %v6721_v60, %s7735_s17  ;;  %v1815_v12 = vunpack.c.h.bf16 %v8300_v10  ;;  %v1816_v0 = vunpack.c.l.bf16 %v1768_v54  ;;  %v6656_v24 = vpack.i.bf16 %v1480_v63, %v1479_v23  ;;  %v6781_v39 = vpack.i.bf16 %v1820_v21, %v1819_v15 }
  0xe3   : > { %539 = vst.msk [vmem:[#allocation2 + $0xa0] sm:$0xff] %vm518_vm3, %v6369_v5  ;;  %542 = vst.msk [vmem:[#allocation2 + $0xb8] sm:$0xff] %vm518_vm3, %v6375_v18  ;;  %v1481_v18 = vunpack.c.l.bf16 %v5279_v61  ;;  %v1827_v54 = vunpack.c.l.bf16 %v8338_v50 }
  0xe4   : > { %540 = vst.msk [vmem:[#allocation2 + $0xa8] sm:$0xff] %vm518_vm3, %v6370_v4  ;;  %541 = vst.msk [vmem:[#allocation2 + $0xb0] sm:$0xff] %vm518_vm3, %v6374_v42  ;;  %v6383_v34 = vpop.permute.xlu1 %6382  ;;  %v6378_v58 = vpop.permute.xlu0 %6377  ;;  %v6771_v13 = vpack.i.bf16 %v1816_v0, %v1815_v12 }
  0xe5   : > { %v6385_v28 = vunpack.i.h.bf16 %v6383_v34  ;;  %v6384_v29 = vunpack.i.l.bf16 %v6383_v34  ;;  %v6380_v31 = vunpack.i.h.bf16 %v6378_v58  ;;  %v6379_v33 = vunpack.i.l.bf16 %v6378_v58  ;;  %v1775_v34 = vld [vmem:[%s7904_s3 + $0x78] sm:$0xe] }
  0xe6   : > { %6632 = vrot.lane.b32.xlu1 %v6631_v6, %s7734_s15  ;;  %6732 = vrot.lane.b32.xlu0 %v6731_v7, %s7735_s17  ;;  %v5282_v7 = vld [vmem:[%s7904_s3 + $0x80] sm:$0x1]  ;;  %v6661_v37 = vpack.i.bf16 %v5718_v32, %v1481_v18  ;;  %v1823_v41 = vunpack.c.l.bf16 %v1775_v34  ;;  %v1787_v18 = vld [vmem:[%s7904_s3 + $0xa8] sm:$0xe] }
  0xe7   : > { %544 = vst.msk [vmem:[#allocation2 + $0xc8] sm:$0xff] %vm518_vm3, %v6380_v31  ;;  %545 = vst.msk [vmem:[#allocation2 + $0xd0] sm:$0xff] %vm518_vm3, %v6384_v29  ;;  %v1484_v31 = vunpack.c.l.bf16 %v5282_v7  ;;  %v1835_v21 = vunpack.c.l.bf16 %v1787_v18  ;;  %v2094_v18 = vld [vmem:[%s7904_s3 + $0x2c] sm:$0x1] }
  0xe8   : > { %543 = vst.msk [vmem:[#allocation2 + $0xc0] sm:$0xff] %vm518_vm3, %v6379_v33  ;;  %546 = vst.msk [vmem:[#allocation2 + $0xd8] sm:$0xff] %vm518_vm3, %v6385_v28  ;;  %v6393_v44 = vpop.permute.xlu1 %6392  ;;  %v6388_v45 = vpop.permute.xlu0 %6387  ;;  %v7598_v28 = vld [vmem:[%s7904_s3 + $0x78] sm:$0xff]  }
  0xe9   : > { %v6395_v46 = vunpack.i.h.bf16 %v6393_v44  ;;  %v6394_v47 = vunpack.i.l.bf16 %v6393_v44  ;;  %v6390_v48 = vunpack.i.h.bf16 %v6388_v45  ;;  %v6389_v49 = vunpack.i.l.bf16 %v6388_v45  ;;  %v5285_v45 = vld [vmem:[%s7904_s3 + $0x8c] sm:$0x1] }
  0xea   : > { %6642 = vrot.lane.b32.xlu1 %v6641_v16, %s7734_s15  ;;  %6742 = vrot.lane.b32.xlu0 %v6741_v36, %s7735_s17  ;;  %v5815_v29 = vunpack.c.h.bf16 %v7598_v28  ;;  %v1824_v44 = vunpack.c.h.bf16 %v8323_v26  ;;  %v1487_v17 = vunpack.c.l.bf16 %v5285_v45 }
  0xeb   : > { %547 = vst.msk [vmem:[#allocation2 + $0xe0] sm:$0xff] %vm518_vm3, %v6389_v49  ;;  %550 = vst.msk [vmem:[#allocation2 + $0xf8] sm:$0xff] %vm518_vm3, %v6395_v46 }
  0xec   : > { %548 = vst.msk [vmem:[#allocation2 + $0xe8] sm:$0xff] %vm518_vm3, %v6390_v48  ;;  %549 = vst.msk [vmem:[#allocation2 + $0xf0] sm:$0xff] %vm518_vm3, %v6394_v47  ;;  %v6403_v25 = vpop.permute.xlu1 %6402  ;;  %v6398_v55 = vpop.permute.xlu0 %6397  ;;  %v6666_v47 = vpack.i.bf16 %v1484_v31, %v5815_v29  ;;  %v6791_v53 = vpack.i.bf16 %v1824_v44, %v1823_v41  ;;  %v6676_v12 = vpack.i.bf16 %v5818_v38, %v1487_v17  ;;  %v1750_v17 = vld [vmem:[%s7904_s3 + $0x14] sm:$0x1] }
  0xed   : > { %v6405_v11 = vunpack.i.h.bf16 %v6403_v25  ;;  %v6404_v59 = vunpack.i.l.bf16 %v6403_v25  ;;  %v6400_v14 = vunpack.i.h.bf16 %v6398_v55  ;;  %v6399_v60 = vunpack.i.l.bf16 %v6398_v55  ;;  %v1783_v55 = vld [vmem:[%s7904_s3 + $0x98] sm:$0x1] }
  0xee   : > { %6647 = vrot.lane.b32.xlu1 %v6646_v56, %s7734_s15  ;;  %6752 = vrot.lane.b32.xlu0 %v6751_v52, %s7735_s17  ;;  %v5289_v52 = vld [vmem:[%s7904_s3 + $0x9c] sm:$0xff]   ;;  %v1828_v25 = vunpack.c.l.bf16 %v1780_v30  ;;  %v1831_v22 = vunpack.c.l.bf16 %v1783_v55  ;;  %v1746_v30 = vld [vmem:[%s7904_s3 + $0x4] ss:$12 sps:$4 sm:$0xff]  }
  0xef   : > { %844 = vst.msk [vmem:[#allocation2 + $0xf] sm:$0x1] %vm843_vm5, %v6404_v59  ;;  %v1491_v59 = vunpack.c.l.bf16 %v5289_v52 }
  0xf0   : > { %845 = vst.msk [vmem:[#allocation2 + $0xf] sm:$0xfe] %vm839_vm4, %v6405_v11  ;;  %840 = vst.msk [vmem:[#allocation2 - $0x1] sm:$0xfe] %vm839_vm4, %v6399_v60  ;;  %v6413_v2 = vpop.permute.xlu1 %6412  ;;  %v6408_v3 = vpop.permute.xlu0 %6407  ;;  %v6801_v0 = vpack.i.bf16 %v1828_v25, %v1827_v54 }
  0xf1   : > { %842 = vst.msk [vmem:[#allocation2 + $0x7] sm:$0xff] %vm841_vm6, %v6400_v14  ;;  %v6415_v42 = vunpack.i.h.bf16 %v6413_v2  ;;  %v6414_v4 = vunpack.i.l.bf16 %v6413_v2  ;;  %v6410_v5 = vunpack.i.h.bf16 %v6408_v3  ;;  %v6409_v6 = vunpack.i.l.bf16 %v6408_v3  ;;  %v5294_v2 = vld [vmem:[%s7904_s3 + $0xb0] sm:$0x1]  ;;  %v8361_v3 = vld [vmem:[%s7904_s3 + $0xa0] ss:$12 sps:$4 sm:$0xff]  }
  0xf2   : > { %6652 = vrot.lane.b32.xlu1 %v6651_v57, %s7734_s15  ;;  %6762 = vrot.lane.b32.xlu0 %v6761_v19, %s7735_s17  ;;  %v1784_v57 = vld [vmem:[%s7904_s3 + $0x9c] sm:$0xe]  ;;  %v1492_v14 = vunpack.c.h.bf16 %v5289_v52  ;;  %v1836_v34 = vunpack.c.h.bf16 %v8361_v3 }
  0xf3   : > { %848 = vst.msk [vmem:[#allocation2 + $0x1f] sm:$0xfe] %vm839_vm4, %v6414_v4  ;;  %v1832_v27 = vunpack.c.l.bf16 %v1784_v57 }
  0xf4   : > { %846 = vst.msk [vmem:[#allocation2 + $0x17] sm:$0xff] %vm841_vm6, %v6409_v6  ;;  %849 = vst.msk [vmem:[#allocation2 + $0x27] sm:$0xff] %vm841_vm6, %v6415_v42  ;;  %v6423_v58 = vpop.permute.xlu1 %6422  ;;  %v6418_v16 = vpop.permute.xlu0 %6417  ;;  %v6686_v42 = vpack.i.bf16 %v1492_v14, %v1491_v59  ;;  %v6821_v41 = vpack.i.bf16 %v1836_v34, %v1835_v21 }
  0xf5   : > { %847 = vst.msk [vmem:[#allocation2 + $0x1f] sm:$0x1] %vm843_vm5, %v6410_v5  ;;  %v6425_v33 = vunpack.i.h.bf16 %v6423_v58  ;;  %v6424_v35 = vunpack.i.l.bf16 %v6423_v58  ;;  %v6420_v40 = vunpack.i.h.bf16 %v6418_v16  ;;  %v6419_v36 = vunpack.i.l.bf16 %v6418_v16  ;;  %v8373_v58 = vld [vmem:[%s7904_s3 + $0x88] ss:$48 sps:$4 sm:$0xff]   ;;  %v1792_v16 = vld [vmem:[%s7904_s3 + $0xbc] sm:$0x1] }
  0xf6   : > { %6657 = vrot.lane.b32.xlu1 %v6656_v24, %s7734_s15  ;;  %6772 = vrot.lane.b32.xlu0 %v6771_v13, %s7735_s17  ;;  %v5297_v24 = vld [vmem:[%s7904_s3 + $0xbc] sm:$0x1]  ;;  %v1496_v13 = vunpack.c.l.bf16 %v5294_v2  ;;  %v6811_v15 = vpack.i.bf16 %v1832_v27, %v1831_v22  ;;  %v1839_v44 = vunpack.c.h.bf16 %v8373_v58  ;;  %v1840_v45 = vunpack.c.l.bf16 %v1792_v16  ;;  %v1754_v27 = vld [vmem:[%s7904_s3 + $0x24] sm:$0xe] }
  0xf7   : > { %853 = vst.msk [vmem:[#allocation2 + $0x3f] sm:$0x1] %vm843_vm5, %v6425_v33  ;;  %850 = vst.msk [vmem:[#allocation2 + $0x2f] sm:$0x1] %vm843_vm5, %v6419_v36  ;;  %v1499_v31 = vunpack.c.l.bf16 %v5297_v24  ;;  %v5835_v22 = vunpack.c.h.bf16 %v6090_v62  ;;  %v8411_v2 = vld [vmem:[%s7904_s3 + $0x24] sm:$0xff]   ;;  %v1802_v21 = vunpack.c.l.bf16 %v1754_v27 }
  0xf8   : > { %851 = vst.msk [vmem:[#allocation2 + $0x2f] sm:$0xfe] %vm839_vm4, %v6420_v40  ;;  %v6433_v32 = vpop.permute.xlu1 %6432  ;;  %v6428_v46 = vpop.permute.xlu0 %6427  ;;  %v6831_v54 = vpack.i.bf16 %v1840_v45, %v1839_v44  ;;  %v2141_v16 = vunpack.c.h.bf16 %v8411_v2  ;;  %v8431_v45 = vld [vmem:[%s7904_s3 + $0x34] ss:$12 sps:$4 sm:$0xff]   ;;  %v8463_v27 = vld [vmem:[%s7904_s3 + $0x10] ss:$12 sps:$4 sm:$0xff]  }
  0xf9   : > { %852 = vst.msk [vmem:[#allocation2 + $0x37] sm:$0xff] %vm841_vm6, %v6424_v35  ;;  %v6435_v48 = vunpack.i.h.bf16 %v6433_v32  ;;  %v6434_v49 = vunpack.i.l.bf16 %v6433_v32  ;;  %v6430_v51 = vunpack.i.h.bf16 %v6428_v46  ;;  %v6429_v56 = vunpack.i.l.bf16 %v6428_v46  ;;  %v2085_v32 = vld [vmem:[%s7904_s3 + $0x8] sm:$0x1]  ;;  %v8389_v46 = vld [vmem:[%s7904_s3 + $0xc] sm:$0xff]  }
  0xfa   : > { %6662 = vrot.lane.b32.xlu1 %v6661_v37, %s7734_s15  ;;  %6782 = vrot.lane.b32.xlu0 %v6781_v39, %s7735_s17  ;;  %v1745_v37 = vld [vmem:[%s7904_s3] sm:$0xe]  ;;  %v6696_v39 = vpack.i.bf16 %v1496_v13, %v5823_v1  ;;  %v2133_v25 = vunpack.c.l.bf16 %v2085_v32  ;;  %v2134_v55 = vunpack.c.l.bf16 %v8389_v46  ;;  %v1757_v13 = vld [vmem:[%s7904_s3 + $0x30] sm:$0xe] }
  0xfb   : > { %856 = vst.msk [vmem:[#allocation2 + $0x4f] sm:$0x1] %vm843_vm5, %v6434_v49 }
  0xfc   : > { %857 = vst.msk [vmem:[#allocation2 + $0x4f] sm:$0xfe] %vm839_vm4, %v6435_v48  ;;  %854 = vst.msk [vmem:[#allocation2 + $0x3f] sm:$0xfe] %vm839_vm4, %v6429_v56  ;;  %v6443_v23 = vpop.permute.xlu1 %6442  ;;  %v6438_v11 = vpop.permute.xlu0 %6437  ;;  %v1793_v48 = vunpack.c.l.bf16 %v1745_v37 }
  0xfd   : > { %855 = vst.msk [vmem:[#allocation2 + $0x47] sm:$0xff] %vm841_vm6, %v6430_v51  ;;  %v6445_v60 = vunpack.i.h.bf16 %v6443_v23  ;;  %v6444_v61 = vunpack.i.l.bf16 %v6443_v23  ;;  %v6440_v63 = vunpack.i.h.bf16 %v6438_v11  ;;  %v6439_v19 = vunpack.i.l.bf16 %v6438_v11 }
  0xfe   : > { %6667 = vrot.lane.b32.xlu1 %v6666_v47, %s7734_s15  ;;  %6792 = vrot.lane.b32.xlu0 %v6791_v53, %s7735_s17  ;;  %v6706_v47 = vpack.i.bf16 %v5826_v20, %v1499_v31  ;;  %v1794_v53 = vunpack.c.l.bf16 %v1746_v30  ;;  %v1797_v23 = vunpack.c.h.bf16 %v1746_v30  ;;  %v1798_v11 = vunpack.c.l.bf16 %v1750_v17  ;;  %v8427_v31 = vld [vmem:[%s7904_s3 + $0x3c] sm:$0xff]  }
  0xff   : > { %860 = vst.msk [vmem:[#allocation2 + $0x5f] sm:$0xfe] %vm839_vm4, %v6444_v61 }
 0x100   : > { %858 = vst.msk [vmem:[#allocation2 + $0x57] sm:$0xff] %vm841_vm6, %v6439_v19  ;;  %861 = vst.msk [vmem:[#allocation2 + $0x67] sm:$0xff] %vm841_vm6, %v6445_v60  ;;  %v6453_v8 = vpop.permute.xlu1 %6452  ;;  %v6448_v38 = vpop.permute.xlu0 %6447  ;;  %v6716_v19 = vpack.i.bf16 %v1794_v53, %v1793_v48  ;;  %v6092_v48 = vld [vmem:[%s7904_s3 + $0x48] sm:$0xff]  }
 0x101   : > { %859 = vst.msk [vmem:[#allocation2 + $0x5f] sm:$0x1] %vm843_vm5, %v6440_v63  ;;  %v6455_v4 = vunpack.i.h.bf16 %v6453_v8  ;;  %v6454_v5 = vunpack.i.l.bf16 %v6453_v8  ;;  %v6450_v6 = vunpack.i.h.bf16 %v6448_v38  ;;  %v6449_v7 = vunpack.i.l.bf16 %v6448_v38  ;;  %v1753_v63 = vld [vmem:[%s7904_s3 + $0x20] sm:$0x1] }
 0x102   : > { %6677 = vrot.lane.b32.xlu1 %v6676_v12, %s7734_s15  ;;  %6802 = vrot.lane.b32.xlu0 %v6801_v0, %s7735_s17  ;;  %v6841_v12 = vpack.i.bf16 %v2134_v55, %v2133_v25  ;;  %v5834_v0 = vunpack.c.l.bf16 %v6090_v62  ;;  %v1765_v55 = vld [vmem:[%s7904_s3 + $0x50] sm:$0x1]  ;;  %v1766_v62 = vld [vmem:[%s7904_s3 + $0x54] sm:$0xe] }
 0x103   : > { %865 = vst.msk [vmem:[#allocation2 + $0x7f] sm:$0x1] %vm843_vm5, %v6455_v4  ;;  %862 = vst.msk [vmem:[#allocation2 + $0x6f] sm:$0x1] %vm843_vm5, %v6449_v7  ;;  %v1801_v4 = vunpack.c.l.bf16 %v1753_v63  ;;  %v1813_v63 = vunpack.c.l.bf16 %v1765_v55  ;;  %v8512_v55 = vld [vmem:[%s7904_s3 + $0x78] sm:$0xff]  }
 0x104   : > { %863 = vst.msk [vmem:[#allocation2 + $0x6f] sm:$0xfe] %vm839_vm4, %v6450_v6  ;;  %v6463_v28 = vpop.permute.xlu1 %6462  ;;  %v6458_v29 = vpop.permute.xlu0 %6457  ;;  %v6851_v34 = vpack.i.bf16 %v5835_v22, %v5834_v0  ;;  %v8457_v0 = vld [vmem:[%s7904_s3 + $0x64] ss:$24 sps:$4 sm:$0xff]   ;;  %v8460_v22 = vld [vmem:[%s7904_s3 + $0x18] sm:$0xe] }
 0x105   : > { %864 = vst.msk [vmem:[#allocation2 + $0x77] sm:$0xff] %vm841_vm6, %v6454_v5  ;;  %v6465_v33 = vunpack.i.h.bf16 %v6463_v28  ;;  %v6464_v35 = vunpack.i.l.bf16 %v6463_v28  ;;  %v6460_v40 = vunpack.i.h.bf16 %v6458_v29  ;;  %v6459_v36 = vunpack.i.l.bf16 %v6458_v29  ;;  %v2097_v29 = vld [vmem:[%s7904_s3 + $0x38] sm:$0x1] }
 0x106   : > { %6687 = vrot.lane.b32.xlu1 %v6686_v42, %s7734_s15  ;;  %6812 = vrot.lane.b32.xlu0 %v6811_v15, %s7735_s17  ;;  %v6726_v42 = vpack.i.bf16 %v1798_v11, %v1797_v23  ;;  %v8416_v15 = vld [vmem:[%s7904_s3 + $0x28] ss:$12 sps:$4 sm:$0xff]   ;;  %v2142_v28 = vunpack.c.l.bf16 %v2094_v18  ;;  %v6736_v30 = vpack.i.bf16 %v1802_v21, %v1801_v4  ;;  %v5842_v23 = vunpack.c.l.bf16 %v6092_v48 }
 0x107   : > { %868 = vst.msk [vmem:[#allocation2 + $0x8f] sm:$0x1] %vm843_vm5, %v6464_v35  ;;  %v5843_v11 = vunpack.c.h.bf16 %v6092_v48  ;;  %v1818_v21 = vunpack.c.l.bf16 %v8457_v0 }
 0x108   : > { %869 = vst.msk [vmem:[#allocation2 + $0x8f] sm:$0xfe] %vm839_vm4, %v6465_v33  ;;  %866 = vst.msk [vmem:[#allocation2 + $0x7f] sm:$0xfe] %vm839_vm4, %v6459_v36  ;;  %v6473_v43 = vpop.permute.xlu1 %6472  ;;  %v6468_v1 = vpop.permute.xlu0 %6467  ;;  %v1806_v36 = vunpack.c.h.bf16 %v8416_v15  ;;  %v6861_v32 = vpack.i.bf16 %v2142_v28, %v2141_v16  ;;  %v8478_v16 = vld [vmem:[%s7904_s3 + $0x6c] sm:$0xff]   ;;  %v1312_v28 = vunpack.c.l.bf16 %v8460_v22 }
 0x109   : > { %867 = vst.msk [vmem:[#allocation2 + $0x87] sm:$0xff] %vm841_vm6, %v6460_v40  ;;  %v6475_v49 = vunpack.i.h.bf16 %v6473_v43  ;;  %v6474_v51 = vunpack.i.l.bf16 %v6473_v43  ;;  %v6470_v56 = vunpack.i.h.bf16 %v6468_v1  ;;  %v6469_v52 = vunpack.i.l.bf16 %v6468_v1  ;;  %v8524_v22 = vld [vmem:[%s7904_s3 + $0x80] sm:$0x1] }
 0x10a   : > { %6697 = vrot.lane.b32.xlu1 %v6696_v39, %s7734_s15  ;;  %6822 = vrot.lane.b32.xlu0 %v6821_v41, %s7735_s17  ;;  %v1805_v40 = vunpack.c.l.bf16 %v1757_v13  ;;  %v2145_v43 = vunpack.c.l.bf16 %v2097_v29  ;;  %v2146_v1 = vunpack.c.l.bf16 %v8427_v31  ;;  %v1313_v29 = vunpack.c.h.bf16 %v8463_v27 }
 0x10b   : > { %872 = vst.msk [vmem:[#allocation2 + $0x9f] sm:$0xfe] %vm839_vm4, %v6474_v51 }
 0x10c   : > { %870 = vst.msk [vmem:[#allocation2 + $0x97] sm:$0xff] %vm841_vm6, %v6469_v52  ;;  %873 = vst.msk [vmem:[#allocation2 + $0xa7] sm:$0xff] %vm841_vm6, %v6475_v49  ;;  %v6483_v20 = vpop.permute.xlu1 %6482  ;;  %v6478_v57 = vpop.permute.xlu0 %6477  ;;  %v1809_v52 = vunpack.c.h.bf16 %v8431_v45 }
 0x10d   : > { %871 = vst.msk [vmem:[#allocation2 + $0x9f] sm:$0x1] %vm843_vm5, %v6470_v56  ;;  %v6485_v59 = vunpack.i.h.bf16 %v6483_v20  ;;  %v6484_v14 = vunpack.i.l.bf16 %v6483_v20  ;;  %v6480_v60 = vunpack.i.h.bf16 %v6478_v57  ;;  %v6479_v61 = vunpack.i.l.bf16 %v6478_v57 }
 0x10e   : > { %6707 = vrot.lane.b32.xlu1 %v6706_v47, %s7734_s15  ;;  %6832 = vrot.lane.b32.xlu0 %v6831_v54, %s7735_s17  ;;  %v1762_v47 = vld [vmem:[%s7904_s3 + $0x44] sm:$0x1]  ;;  %v6746_v56 = vpack.i.bf16 %v1806_v36, %v1805_v40  ;;  %v6871_v57 = vpack.i.bf16 %v2146_v1, %v2145_v43  ;;  %v8488_v43 = vld [vmem:[%s7904_s3 + $0x70] ss:$36 sps:$4 sm:$0xff]  }
 0x10f   : > { %877 = vst.msk [vmem:[#allocation2 + $0xbf] sm:$0x1] %vm843_vm5, %v6485_v59  ;;  %874 = vst.msk [vmem:[#allocation2 + $0xaf] sm:$0x1] %vm843_vm5, %v6479_v61  ;;  %v1810_v20 = vunpack.c.l.bf16 %v1762_v47  ;;  %v8452_v59 = vld [vmem:[%s7904_s3 + $0x54] sm:$0xff]  }
 0x110   : > { %875 = vst.msk [vmem:[#allocation2 + $0xaf] sm:$0xfe] %vm839_vm4, %v6480_v60  ;;  %v6493_v8 = vpop.permute.xlu1 %6492  ;;  %v6488_v38 = vpop.permute.xlu0 %6487  ;;  %v8491_v1 = vld [vmem:[%s7904_s3 + $0x74] sm:$0x1] }
 0x111   : > { %876 = vst.msk [vmem:[#allocation2 + $0xb7] sm:$0xff] %vm841_vm6, %v6484_v14  ;;  %v6495_v5 = vunpack.i.h.bf16 %v6493_v8  ;;  %v6494_v6 = vunpack.i.l.bf16 %v6493_v8  ;;  %v6490_v7 = vunpack.i.h.bf16 %v6488_v38  ;;  %v6489_v24 = vunpack.i.l.bf16 %v6488_v38  ;;  %v2106_v14 = vld [vmem:[%s7904_s3 + $0x5c] sm:$0x1]  ;;  %v8494_v47 = vld [vmem:[%s7904_s3 + $0x14] sm:$0x1] }
 0x112   : > { %6717 = vrot.lane.b32.xlu1 %v6716_v19, %s7735_s17  ;;  %6842 = vrot.lane.b32.xlu0 %v6841_v12, %s7736_s4  ;;  %v1814_v19 = vunpack.c.l.bf16 %v1766_v62  ;;  %v1769_v12 = vld [vmem:[%s7904_s3 + $0x60] sm:$0xe]  ;;  %v6756_v4 = vpack.i.bf16 %v1810_v20, %v1809_v52  ;;  %v8515_v62 = vld [vmem:[%s7904_s3 + $0x48] sm:$0xe] }
 0x113   : > { %880 = vst.msk [vmem:[#allocation2 + $0xcf] sm:$0x1] %vm843_vm5, %v6494_v6  ;;  %v2153_v6 = vunpack.c.h.bf16 %v8452_v59  ;;  %v1817_v13 = vunpack.c.l.bf16 %v1769_v12 }
 0x114   : > { %881 = vst.msk [vmem:[#allocation2 + $0xcf] sm:$0xfe] %vm839_vm4, %v6495_v5  ;;  %878 = vst.msk [vmem:[#allocation2 + $0xbf] sm:$0xfe] %vm839_vm4, %v6489_v24  ;;  %v6503_v33 = vpop.permute.xlu1 %6502  ;;  %v6498_v35 = vpop.permute.xlu0 %6497  ;;  %v6881_v5 = vpack.i.bf16 %v5843_v11, %v5842_v23  ;;  %v8471_v24 = vld [vmem:[%s7904_s3 + $0xc] sm:$0xe]  ;;  %v1821_v23 = vunpack.c.l.bf16 %v8488_v43  ;;  %v1822_v11 = vunpack.c.l.bf16 %v8491_v1 }
 0x115   : > { %879 = vst.msk [vmem:[#allocation2 + $0xc7] sm:$0xff] %vm841_vm6, %v6490_v7  ;;  %v6505_v37 = vunpack.i.h.bf16 %v6503_v33  ;;  %v6504_v39 = vunpack.i.l.bf16 %v6503_v33  ;;  %v6500_v41 = vunpack.i.h.bf16 %v6498_v35  ;;  %v6499_v44 = vunpack.i.l.bf16 %v6498_v35  ;;  %v8484_v35 = vld [vmem:[%s7904_s3 + $0x30] sm:$0xe] }
 0x116   : > { %6727 = vrot.lane.b32.xlu1 %v6726_v42, %s7735_s17  ;;  %6852 = vrot.lane.b32.xlu0 %v6851_v34, %s7736_s4  ;;  %v2154_v7 = vunpack.c.l.bf16 %v2106_v14  ;;  %v2109_v34 = vld [vmem:[%s7904_s3 + $0x68] sm:$0x1]  ;;  %v1310_v33 = vunpack.c.l.bf16 %v8463_v27  ;;  %v1309_v48 = vunpack.c.l.bf16 %v8471_v24  ;;  %v1318_v52 = vunpack.c.l.bf16 %v8484_v35 }
 0x117   : > { %884 = vst.msk [vmem:[#allocation2 + $0xdf] sm:$0xfe] %vm839_vm4, %v6504_v39  ;;  %v5210_v39 = vld [vmem:[%s7904_s3 + $0x20] sm:$0x1]  ;;  %v1311_v14 = vunpack.c.l.bf16 %v8494_v47  ;;  %v5851_v24 = vunpack.c.h.bf16 %v8512_v55  ;;  %v8577_v47 = vld [vmem:[%s7904_s3 + $0x50] sm:$0x1] }
 0x118   : > { %882 = vst.msk [vmem:[#allocation2 + $0xd7] sm:$0xff] %vm841_vm6, %v6499_v44  ;;  %885 = vst.msk [vmem:[#allocation2 + $0xe7] sm:$0xff] %vm841_vm6, %v6505_v37  ;;  %v6513_v49 = vpop.permute.xlu1 %6512  ;;  %v6508_v51 = vpop.permute.xlu0 %6507  ;;  %v6766_v37 = vpack.i.bf16 %v1814_v19, %v1813_v63  ;;  %v1326_v35 = vunpack.c.l.bf16 %v8577_v47 }
 0x119   : > { %883 = vst.msk [vmem:[#allocation2 + $0xdf] sm:$0x1] %vm843_vm5, %v6500_v41  ;;  %v6515_v17 = vunpack.i.h.bf16 %v6513_v49  ;;  %v6514_v53 = vunpack.i.l.bf16 %v6513_v49  ;;  %v6510_v54 = vunpack.i.h.bf16 %v6508_v51  ;;  %v6509_v25 = vunpack.i.l.bf16 %v6508_v51 }
 0x11a   : > { %6737 = vrot.lane.b32.xlu1 %v6736_v30, %s7735_s17  ;;  %6862 = vrot.lane.b32.xlu0 %v6861_v32, %s7736_s4  ;;  %v6891_v49 = vpack.i.bf16 %v2154_v7, %v2153_v6  ;;  %v2157_v51 = vunpack.c.l.bf16 %v2109_v34  ;;  %v5850_v7 = vunpack.c.l.bf16 %v8512_v55  ;;  %v1324_v34 = vunpack.c.l.bf16 %v8515_v62  ;;  %v8676_v62 = vld [vmem:[%s7904_s3 + $0x6c] sm:$0xe] }
 0x11b   : > { %889 = vst.msk [vmem:[#allocation2 + $0xff] sm:$0x1] %vm843_vm5, %v6515_v17  ;;  %886 = vst.msk [vmem:[#allocation2 + $0xef] sm:$0x1] %vm843_vm5, %v6509_v25  ;;  %v1319_v17 = vunpack.c.l.bf16 %v8431_v45  ;;  %v1314_v25 = vunpack.c.l.bf16 %v5210_v39  ;;  %v8570_v39 = vld [vmem:[%s7904_s3 + $0x58] ss:$12 sps:$4 sm:$0xff]  }
 0x11c   : > { %887 = vst.msk [vmem:[#allocation2 + $0xef] sm:$0xfe] %vm839_vm4, %v6510_v54  ;;  %v6523_v60 = vpop.permute.xlu1 %6522  ;;  %v6518_v61 = vpop.permute.xlu0 %6517  ;;  %v8509_v54 = vpack.i.bf16 %v1818_v21, %v1817_v13  ;;  %v8621_v45 = vld [vmem:[%s7904_s3 + $0x9c] sm:$0xff]  }
 0x11d   : > { %888 = vst.msk [vmem:[#allocation2 + $0xf7] sm:$0xff] %vm841_vm6, %v6514_v53  ;;  %v6525_v18 = vunpack.i.h.bf16 %v6523_v60  ;;  %v6524_v8 = vunpack.i.l.bf16 %v6523_v60  ;;  %v6520_v38 = vunpack.i.h.bf16 %v6518_v61  ;;  %v6519_v42 = vunpack.i.l.bf16 %v6518_v61  ;;  %v8505_v53 = vld [vmem:[%s7904_s3 + $0x24] sm:$0xe]  ;;  %v8521_v60 = vld [vmem:[%s7904_s3 + $0x38] sm:$0x1] }
 0x11e   : > { %6747 = vrot.lane.b32.xlu1 %v6746_v56, %s7735_s17  ;;  %6872 = vrot.lane.b32.xlu0 %v6871_v57, %s7736_s4  ;;  %v2158_v56 = vunpack.c.l.bf16 %v8478_v16  ;;  %v1315_v21 = vunpack.c.l.bf16 %v8505_v53  ;;  %v8583_v53 = vld [vmem:[%s7904_s3 + $0x94] ss:$48 sps:$4 sm:$0xff]  }
 0x11f   : > { %1085 = vst.msk [vmem:[#allocation2 + $0x10] sm:$0xff] %vm1082_vm7, %v6524_v8  ;;  %1086 = vst.msk [vmem:[#allocation2 + $0x18] sm:$0xff] %vm1082_vm7, %v6525_v18  ;;  %v8527_v18 = vld [vmem:[%s7904_s3 + $0x84] sm:$0xe]  ;;  %v8530_v8 = vld [vmem:[%s7904_s3 + $0x2c] sm:$0x1] }
 0x120   : > { %1083 = vst.msk [vmem:[#allocation2] sm:$0xff] %vm1082_vm7, %v6519_v42  ;;  %1084 = vst.msk [vmem:[#allocation2 + $0x8] sm:$0xff] %vm1082_vm7, %v6520_v38  ;;  %v6533_v40 = vpop.permute.xlu1 %6532  ;;  %v6528_v36 = vpop.permute.xlu0 %6527  ;;  %v6901_v6 = vpack.i.bf16 %v2158_v56, %v2157_v51  ;;  %v1826_v1 = vunpack.c.l.bf16 %v8527_v18  ;;  %v1317_v27 = vunpack.c.l.bf16 %v8530_v8  ;;  %v8580_v56 = vld [vmem:[%s7904_s3 + $0x90] sm:$0xe] }
 0x121   : > { %v6535_v41 = vunpack.i.h.bf16 %v6533_v40  ;;  %v6534_v44 = vunpack.i.l.bf16 %v6533_v40  ;;  %v6530_v30 = vunpack.i.h.bf16 %v6528_v36  ;;  %v6529_v32 = vunpack.i.l.bf16 %v6528_v36  ;;  %v8554_v36 = vld [vmem:[%s7904_s3 + $0x3c] sm:$0xe] }
 0x122   : > { %6757 = vrot.lane.b32.xlu1 %v6756_v4, %s7735_s17  ;;  %6882 = vrot.lane.b32.xlu0 %v6881_v5, %s7736_s4  ;;  %v1316_v5 = vunpack.c.l.bf16 %v8416_v15  ;;  %v1325_v40 = vunpack.c.l.bf16 %v8300_v10  ;;  %v1829_v8 = vunpack.c.l.bf16 %v8580_v56  ;;  %v8642_v15 = vld [vmem:[%s7904_s3 + $0x68] sm:$0x1] }
 0x123   : > { %1089 = vst.msk [vmem:[#allocation2 + $0x30] sm:$0xff] %vm1082_vm7, %v6534_v44  ;;  %1090 = vst.msk [vmem:[#allocation2 + $0x38] sm:$0xff] %vm1082_vm7, %v6535_v41  ;;  %v1332_v10 = vunpack.c.l.bf16 %v8642_v15 }
 0x124   : > { %1087 = vst.msk [vmem:[#allocation2 + $0x20] sm:$0xff] %vm1082_vm7, %v6529_v32  ;;  %1088 = vst.msk [vmem:[#allocation2 + $0x28] sm:$0xff] %vm1082_vm7, %v6530_v30  ;;  %v6543_v20 = vpop.permute.xlu1 %6542  ;;  %v6538_v57 = vpop.permute.xlu0 %6537  ;;  %v6786_v30 = vpack.i.bf16 %v1822_v11, %v1821_v23  ;;  %v1825_v32 = vunpack.c.l.bf16 %v8524_v22  ;;  %v1322_v11 = vunpack.c.l.bf16 %v8287_v9 }
 0x125   : > { %v6545_v61 = vunpack.i.h.bf16 %v6543_v20  ;;  %v6544_v63 = vunpack.i.l.bf16 %v6543_v20  ;;  %v6540_v19 = vunpack.i.h.bf16 %v6538_v57  ;;  %v6539_v12 = vunpack.i.l.bf16 %v6538_v57 }
 0x126   : > { %v8532_v38 = vld [vmem:[#allocation2 + $0x10] sm:$0xff]  ;;  %v8534_v42 = vld [vmem:[#allocation2 + $0x18] sm:$0xff]  ;;  %6767 = vrot.lane.b32.xlu1 %v6766_v37, %s7735_s17  ;;  %6892 = vrot.lane.b32.xlu0 %v6891_v49, %s7736_s4  ;;  %v6796_v18 = vpack.i.bf16 %v1826_v1, %v1825_v32 }
 0x127   : > { %v8536_v4 = vld [vmem:[#allocation2] sm:$0xff]  ;;  %1362 = vst.msk [vmem:[#allocation2 + $0xe] sm:$0xfc] %vm1357_vm8, %v1312_v28  ;;  %v8545_v13 = vld [vmem:[#allocation2 + $0x8] sm:$0xff]  ;;  %v1320_v28 = vunpack.c.l.bf16 %v8521_v60  ;;  %v2165_v60 = vunpack.c.l.bf16 %v8373_v58 }
 0x128   : > { %1363 = vst.msk [vmem:[#allocation2 + $0x16] sm:$0xff] %vm277_vm1, %v1313_v29  ;;  %v8561_v29 = vld [vmem:[%s7904_s3 + $0x8c] sm:$0x1]  ;;  %1359 = vst.msk [vmem:[#allocation2 + $0x6] sm:$0xff] %vm277_vm1, %v1310_v33  ;;  %v8567_v37 = vld [vmem:[%s7904_s3 + $0x60] sm:$0xe]  ;;  %v6553_v41 = vpop.permute.xlu1 %6552  ;;  %v6548_v44 = vpop.permute.xlu0 %6547 }
 0x129   : > { %1358 = vst.msk [vmem:[#allocation2 - $0x2] sm:$0xfc] %vm1357_vm8, %v1309_v48  ;;  %v6555_v33 = vunpack.i.h.bf16 %v6553_v41  ;;  %v6554_v48 = vunpack.i.l.bf16 %v6553_v41  ;;  %v6550_v49 = vunpack.i.h.bf16 %v6548_v44  ;;  %v6549_v51 = vunpack.i.l.bf16 %v6548_v44  ;;  %v8645_v41 = vld [vmem:[%s7904_s3 + $0xa4] sm:$0x1]  ;;  %v8648_v44 = vld [vmem:[%s7904_s3 + $0x5c] sm:$0x1] }
 0x12a   : > { %1093 = vst.msk [vmem:[#allocation2 + $0x50] sm:$0xff] %vm1082_vm7, %v6544_v63  ;;  %1094 = vst.msk [vmem:[#allocation2 + $0x58] sm:$0xff] %vm1082_vm7, %v6545_v61  ;;  %v8588_v20 = vld [vmem:[#allocation2 + $0x30] sm:$0xff]  ;;  %v8590_v57 = vld [vmem:[#allocation2 + $0x38] sm:$0xff]  ;;  %6777 = vrot.lane.b32.xlu1 %v8509_v54, %s7735_s17  ;;  %6902 = vrot.lane.b32.xlu0 %v6901_v6, %s7736_s4  ;;  %v2166_v61 = vunpack.c.l.bf16 %v8561_v29  ;;  %v1321_v54 = vunpack.c.l.bf16 %v8554_v36  ;;  %v1330_v58 = vunpack.c.l.bf16 %v8567_v37  ;;  %v1331_v63 = vunpack.c.h.bf16 %v8570_v39 }
 0x12b   : > { %1091 = vst.msk [vmem:[#allocation2 + $0x40] sm:$0xff] %vm1082_vm7, %v6539_v12  ;;  %1092 = vst.msk [vmem:[#allocation2 + $0x48] sm:$0xff] %vm1082_vm7, %v6540_v19  ;;  %v8592_v23 = vld [vmem:[#allocation2 + $0x20] sm:$0xff]  ;;  %v8610_v9 = vld [vmem:[#allocation2 + $0x28] sm:$0xff]  ;;  %v1830_v6 = vunpack.c.l.bf16 %v8583_v53 }
 0x12c   : > { %1364 = vst.msk [vmem:[#allocation2 + $0x1e] sm:$0x3] %vm1360_vm9, %v1314_v25  ;;  %1361 = vst.msk [vmem:[#allocation2 + $0xe] sm:$0x3] %vm1360_vm9, %v1311_v14  ;;  %v8586_v25 = vld [vmem:[%s7904_s3 + $0x44] sm:$0x1]  ;;  %v6911_v14 = vpack.i.bf16 %v5851_v24, %v5850_v7  ;;  %v6563_v12 = vpop.permute.xlu1 %6562  ;;  %v6558_v22 = vpop.permute.xlu0 %6557 }
 0x12d   : > { %1368 = vst.msk [vmem:[#allocation2 + $0x2e] sm:$0xfc] %vm1357_vm8, %v1318_v52  ;;  %1365 = vst.msk [vmem:[#allocation2 + $0x1e] sm:$0xfc] %vm1357_vm8, %v1315_v21  ;;  %v8626_v52 = vld [vmem:[%s7904_s3 + $0x98] sm:$0x1]  ;;  %v1323_v21 = vunpack.c.l.bf16 %v8586_v25  ;;  %v6565_v36 = vunpack.i.h.bf16 %v6563_v12  ;;  %v6559_v29 = vunpack.i.l.bf16 %v6558_v22  ;;  %v1337_v25 = vunpack.c.h.bf16 %v8457_v0 }
 0x12e   : > { %1369 = vst.msk [vmem:[#allocation2 + $0x36] sm:$0xff] %vm277_vm1, %v1319_v17  ;;  %1366 = vst.msk [vmem:[#allocation2 + $0x26] sm:$0xff] %vm277_vm1, %v1316_v5  ;;  %v8632_v17 = vld [vmem:[%s7904_s3 + $0x54] sm:$0xe]  ;;  %v8635_v19 = vld [vmem:[%s7904_s3 + $0x78] sm:$0xe]  ;;  %v6564_v5 = vunpack.i.l.bf16 %v6563_v12  ;;  %6787 = vrot.lane.b32.xlu1 %v6786_v30, %s7735_s17  ;;  %6912 = vrot.lane.b32.xlu0 %v6911_v14, %s7736_s4  ;;  %v6806_v14 = vpack.i.bf16 %v1830_v6, %v1829_v8 }
 0x12f   : > { %1097 = vst.msk [vmem:[#allocation2 + $0x70] sm:$0xff] %vm1082_vm7, %v6554_v48  ;;  %1098 = vst.msk [vmem:[#allocation2 + $0x78] sm:$0xff] %vm1082_vm7, %v6555_v33  ;;  %v6921_v33 = vpack.i.bf16 %v2166_v61, %v2165_v60  ;;  %v2169_v48 = vunpack.c.l.bf16 %v8626_v52  ;;  %v1327_v30 = vunpack.c.l.bf16 %v8632_v17  ;;  %v1336_v56 = vunpack.c.l.bf16 %v8635_v19  ;;  %v8691_v17 = vld [vmem:[%s7904_s3 + $0x80] sm:$0x1]  ;;  %v8700_v8 = vld [vmem:[%s7904_s3 + $0xb4] sm:$0xe] }
 0x130   : > { %1095 = vst.msk [vmem:[#allocation2 + $0x60] sm:$0xff] %vm1082_vm7, %v6549_v51  ;;  %1096 = vst.msk [vmem:[#allocation2 + $0x68] sm:$0xff] %vm1082_vm7, %v6550_v49  ;;  %v2170_v49 = vunpack.c.l.bf16 %v8621_v45  ;;  %v1833_v60 = vunpack.c.l.bf16 %v8361_v3  ;;  %v1834_v61 = vunpack.c.l.bf16 %v8645_v41  ;;  %v1329_v52 = vunpack.c.l.bf16 %v8648_v44  ;;  %v8703_v3 = vld [vmem:[%s7904_s3 + $0x74] sm:$0x1]  ;;  %v8734_v37 = vld [vmem:[%s7904_s3] sm:$0xff]  }
 0x131   : > { %1370 = vst.msk [vmem:[#allocation2 + $0x3e] sm:$0x3] %vm1360_vm9, %v1320_v28  ;;  %1367 = vst.msk [vmem:[#allocation2 + $0x2e] sm:$0x3] %vm1360_vm9, %v1317_v27  ;;  %v6560_v28 = vunpack.i.h.bf16 %v6558_v22  ;;  %v8650_v47 = vld [vmem:[#allocation2 + $0x50] sm:$0xff]  ;;  %v8652_v32 = vld [vmem:[#allocation2 + $0x58] sm:$0xff]  ;;  %v1328_v27 = vunpack.c.l.bf16 %v8570_v39  ;;  %v1343_v41 = vunpack.c.h.bf16 %v8488_v43 }
 0x132   : > { %v8654_v1 = vld [vmem:[#allocation2 + $0x40] sm:$0xff]  ;;  %1374 = vst.msk [vmem:[#allocation2 + $0x4e] sm:$0xfc] %vm1357_vm8, %v1324_v34  ;;  %v8667_v51 = vld [vmem:[#allocation2 + $0x48] sm:$0xff]  ;;  %6797 = vrot.lane.b32.xlu1 %v6796_v18, %s7735_s17  ;;  %6922 = vrot.lane.b32.xlu0 %v6921_v33, %s7736_s4  ;;  %v6931_v44 = vpack.i.bf16 %v2170_v49, %v2169_v48  ;;  %v6816_v49 = vpack.i.bf16 %v1834_v61, %v1833_v60 }
 0x133   : > { %1375 = vst.msk [vmem:[#allocation2 + $0x56] sm:$0xff] %vm277_vm1, %v1325_v40  ;;  %1372 = vst.msk [vmem:[#allocation2 + $0x46] sm:$0xff] %vm277_vm1, %v1322_v11  ;;  %v8684_v34 = vld [vmem:[%s7904_s3 + $0x90] sm:$0xe]  ;;  %v6573_v40 = vpop.permute.xlu1 %6572  ;;  %v8729_v18 = vld [vmem:[%s7904_s3 + $0x84] sm:$0xe] }
 0x134   : > { %1371 = vst.msk [vmem:[#allocation2 + $0x3e] sm:$0xfc] %vm1357_vm8, %v1321_v54  ;;  %v6568_v54 = vpop.permute.xlu0 %6567  ;;  %v6575_v11 = vunpack.i.h.bf16 %v6573_v40  ;;  %v6574_v12 = vunpack.i.l.bf16 %v6573_v40  ;;  %v8755_v60 = vld [vmem:[%s7904_s3 + $0x8c] sm:$0x1]  ;;  %v8758_v61 = vld [vmem:[%s7904_s3 + $0xa0] ss:$24 sps:$4 sm:$0xff]  }
 0x135   : > { %1101 = vst.msk [vmem:[#allocation2 + $0x90] sm:$0xff] %vm1082_vm7, %v6564_v5  ;;  %1102 = vst.msk [vmem:[#allocation2 + $0x98] sm:$0xff] %vm1082_vm7, %v6565_v36  ;;  %v6570_v22 = vunpack.i.h.bf16 %v6568_v54  ;;  %v6569_v15 = vunpack.i.l.bf16 %v6568_v54  ;;  %v8697_v36 = vld [vmem:[%s7904_s3 + $0xb0] sm:$0x1]  ;;  %v1335_v54 = vunpack.c.l.bf16 %v8703_v3  ;;  %v5830_v3 = vunpack.c.l.bf16 %v8734_v37 }
 0x136   : > { %1099 = vst.msk [vmem:[#allocation2 + $0x80] sm:$0xff] %vm1082_vm7, %v6559_v29  ;;  %1100 = vst.msk [vmem:[#allocation2 + $0x88] sm:$0xff] %vm1082_vm7, %v6560_v28  ;;  %v8705_v6 = vld [vmem:[#allocation2 + $0x70] sm:$0xff]  ;;  %v1333_v28 = vunpack.c.l.bf16 %v8676_v62  ;;  %v1334_v29 = vunpack.c.l.bf16 %v8323_v26  ;;  %v1342_v26 = vunpack.c.l.bf16 %v8684_v34  ;;  %v1837_v62 = vunpack.c.l.bf16 %v8697_v36  ;;  %6807 = vrot.lane.b32.xlu1 %v6806_v14, %s7735_s17  ;;  %6932 = vrot.lane.b32.xlu0 %v6931_v44, %s7736_s4  ;;  %v8778_v14 = vld [vmem:[%s7904_s3 + $0xa8] sm:$0xe] }
 0x137   : > { %1376 = vst.msk [vmem:[#allocation2 + $0x5e] sm:$0x3] %vm1360_vm9, %v1326_v35  ;;  %1373 = vst.msk [vmem:[#allocation2 + $0x4e] sm:$0x3] %vm1360_vm9, %v1323_v21  ;;  %v8694_v35 = vld [vmem:[%s7904_s3 + $0xa8] sm:$0xff]   ;;  %v8707_v21 = vld [vmem:[#allocation2 + $0x78] sm:$0xff]  ;;  %v6583_v48 = vpop.permute.xlu1 %6582  ;;  %v1838_v36 = vunpack.c.l.bf16 %v8700_v8 }
 0x138   : > { %v8709_v5 = vld [vmem:[#allocation2 + $0x60] sm:$0xff]  ;;  %1380 = vst.msk [vmem:[#allocation2 + $0x6e] sm:$0xfc] %vm1357_vm8, %v1330_v58  ;;  %v8722_v40 = vld [vmem:[#allocation2 + $0x68] sm:$0xff]  ;;  %v1338_v58 = vunpack.c.l.bf16 %v8691_v17  ;;  %v10390_v33 = vunpack.c.h.bf16 %v8694_v35  ;;  %v8749_v17 = vld [vmem:[%s7904_s3 + $0x98] sm:$0x1]  ;;  %v6585_v39 = vunpack.i.h.bf16 %v6583_v48 }
 0x139   : > { %1381 = vst.msk [vmem:[#allocation2 + $0x76] sm:$0xff] %vm277_vm1, %v1331_v63  ;;  %v5858_v63 = vunpack.c.l.bf16 %v8694_v35  ;;  %1378 = vst.msk [vmem:[#allocation2 + $0x66] sm:$0xff] %vm277_vm1, %v1328_v27  ;;  %v8783_v8 = vld [vmem:[%s7904_s3 + $0x84] sm:$0xff]   ;;  %v1344_v0 = vunpack.c.l.bf16 %v8749_v17  ;;  %v8836_v34 = vld [vmem:[%s7904_s3 + $0x14] sm:$0x1] }
 0x13a   : > { %1377 = vst.msk [vmem:[#allocation2 + $0x5e] sm:$0xfc] %vm1357_vm8, %v1327_v30  ;;  %v1147_v30 = vpack.c.bf16 %v8545_v13, %v8536_v4  ;;  %6817 = vrot.lane.b32.xlu1 %v6816_v49, %s7735_s17 }
 0x13b   : > { %1105 = vst.msk [vmem:[#allocation2 + $0xb0] sm:$0xff] %vm1082_vm7, %v6574_v12  ;;  %1106 = vst.msk [vmem:[#allocation2 + $0xb8] sm:$0xff] %vm1082_vm7, %v6575_v11  ;;  %v8752_v11 = vld [vmem:[%s7904_s3 + $0xbc] sm:$0x1]  ;;  %v6584_v12 = vunpack.i.l.bf16 %v6583_v48  ;;  %v5831_v48 = vunpack.c.h.bf16 %v8734_v37  ;;  %v6941_v19 = vpack.i.bf16 %v10390_v33, %v5858_v63  ;;  %v1340_v37 = vunpack.c.h.bf16 %v8783_v8  ;;  %v8807_v33 = vld [vmem:[%s7904_s3 + $0xa4] sm:$0x1] }
 0x13c   : > { %1103 = vst.msk [vmem:[#allocation2 + $0xa0] sm:$0xff] %vm1082_vm7, %v6569_v15  ;;  %1104 = vst.msk [vmem:[#allocation2 + $0xa8] sm:$0xff] %vm1082_vm7, %v6570_v22  ;;  %v8760_v4 = vld [vmem:[#allocation2 + $0x90] sm:$0xff]  ;;  %v8762_v13 = vld [vmem:[#allocation2 + $0x98] sm:$0xff]  ;;  %v1339_v15 = vunpack.c.l.bf16 %v8729_v18  ;;  %v1169_v18 = vsel %vm1164_vm10, %v1147_v30, 0 }
 0x13d   : > { %1382 = vst.msk [vmem:[#allocation2 + $0x7e] sm:$0x3] %vm1360_vm9, %v1332_v10  ;;  %v6578_v10 = vpop.permute.xlu0 %6577  ;;  %1379 = vst.msk [vmem:[#allocation2 + $0x6e] sm:$0x3] %vm1360_vm9, %v1329_v52  ;;  %v1131_v52 = vld [vmem:[#allocation2 + $0x80] sm:$0xff]  ;;  %6942 = vrot.lane.b32.xlu0 %v6941_v19, %s7736_s4 }
 0x13e   : > { %v6580_v22 = vunpack.i.h.bf16 %v6578_v10  ;;  %v6579_v27 = vunpack.i.l.bf16 %v6578_v10  ;;  %1386 = vst.msk [vmem:[#allocation2 + $0x8e] sm:$0xfc] %vm1357_vm8, %v1336_v56  ;;  %v1132_v10 = vld [vmem:[#allocation2 + $0x88] sm:$0xff]  ;;  %1383 = vst.msk [vmem:[#allocation2 + $0x7e] sm:$0xfc] %vm1357_vm8, %v1333_v28  ;;  %v2177_v56 = vunpack.c.h.bf16 %v8758_v61  ;;  %v6593_v28 = vpop.permute.xlu1 %6592 }
 0x13f   : > { %1387 = vst.msk [vmem:[#allocation2 + $0x96] sm:$0xff] %vm277_vm1, %v1337_v25  ;;  %v2178_v25 = vunpack.c.l.bf16 %v8752_v11  ;;  %1384 = vst.msk [vmem:[#allocation2 + $0x86] sm:$0xff] %vm277_vm1, %v1334_v29  ;;  %v1155_v44 = vpack.c.bf16 %v1132_v10, %v1131_v52  ;;  %v6594_v11 = vunpack.i.l.bf16 %v6593_v28  ;;  %v1349_v10 = vunpack.c.h.bf16 %v8338_v50 }
 0x140   : > { %1109 = vst.msk [vmem:[#allocation2 + $0xd0] sm:$0xff] %vm1082_vm7, %v6584_v12  ;;  %1110 = vst.msk [vmem:[#allocation2 + $0xd8] sm:$0xff] %vm1082_vm7, %v6585_v39  ;;  %v1341_v39 = vunpack.c.l.bf16 %v8755_v60  ;;  %v8804_v12 = vld [vmem:[%s7904_s3 + $0xb0] sm:$0x1]  ;;  %v1348_v50 = vunpack.c.l.bf16 %v8778_v14  ;;  %v1347_v14 = vunpack.c.l.bf16 %v8807_v33  ;;  %v2135_v33 = vunpack.c.h.bf16 %v8389_v46 }
 0x141   : > { %1107 = vst.msk [vmem:[#allocation2 + $0xc0] sm:$0xff] %vm1082_vm7, %v6579_v27  ;;  %1108 = vst.msk [vmem:[#allocation2 + $0xc8] sm:$0xff] %vm1082_vm7, %v6580_v22  ;;  %v6588_v17 = vpop.permute.xlu0 %6587  ;;  %v6595_v22 = vunpack.i.h.bf16 %v6593_v28  ;;  %6217 = vmatprep.subr.msk.bf16.mxu0 %vm1164_vm10, %v1155_v44  ;;  %v6826_v28 = vpack.i.bf16 %v1838_v36, %v1837_v62 }
 0x142   : > { %1388 = vst.msk [vmem:[#allocation2 + $0x9e] sm:$0x3] %vm1360_vm9, %v1338_v58  ;;  %v8799_v58 = vld [vmem:[%s7904_s3 + $0x9c] sm:$0xe]  ;;  %1385 = vst.msk [vmem:[#allocation2 + $0x8e] sm:$0x3] %vm1360_vm9, %v1335_v54  ;;  %v6590_v27 = vunpack.i.h.bf16 %v6588_v17  ;;  %v6589_v29 = vunpack.i.l.bf16 %v6588_v17  ;;  %v1156_v54 = vpack.c.bf16 %v8762_v13, %v8760_v4  ;;  %6146 = vmatpush3.bf16.xpose.msra.mxu0 %v1169_v18  ;;  %v6598_v62 = vpop.permute.xlu1 %6597  ;;  %v6836_v4 = vpack.i.bf16 %v5831_v48, %v5830_v3 }
 0x143   : > { %v8809_v52 = vld [vmem:[#allocation2 + $0xb0] sm:$0xff]  ;;  %v8811_v30 = vld [vmem:[#allocation2 + $0xb8] sm:$0xff]  ;;  %v8818_v60 = vld [vmem:[#allocation2 + $0xa0] sm:$0xff]  ;;  %1113 = vst.msk [vmem:[#allocation2 + $0xf0] sm:$0xff] %vm1082_vm7, %v6594_v11  ;;  %v1345_v43 = vunpack.c.l.bf16 %v8799_v58  ;;  %v1346_v13 = vunpack.c.h.bf16 %v8621_v45  ;;  %v6600_v44 = vunpack.i.h.bf16 %v6598_v62  ;;  %v6599_v19 = vunpack.i.l.bf16 %v6598_v62  ;;  %6827 = vrot.lane.b32.xlu1 %v6826_v28, %s7735_s17 }
 0x144   : > { %1392 = vst.msk [vmem:[#allocation2 + $0xae] sm:$0xfc] %vm1357_vm8, %v1342_v26  ;;  %v8828_v17 = vld [vmem:[%s7904_s3 + $0xc0] sm:$0xe]  ;;  %v8832_v49 = vld [vmem:[#allocation2 + $0xa8] sm:$0xff]  ;;  %v6951_v26 = vpack.i.bf16 %v2178_v25, %v2177_v56  ;;  %6218 = vmatprep.subr.msk.bf16.mxu0 %vm1164_vm10, %v1156_v54  ;;  %v1148_v45 = vpack.c.bf16 %v8534_v42, %v8532_v38  ;;  %v2136_v48 = vunpack.c.l.bf16 %v8836_v34  ;;  %v2140_v62 = vunpack.c.l.bf16 %v8411_v2 }
 0x145   : > { %1393 = vst.msk [vmem:[#allocation2 + $0xb6] sm:$0xff] %vm277_vm1, %v1343_v41  ;;  %v1350_v41 = vunpack.c.l.bf16 %v8804_v12  ;;  %1390 = vst.msk [vmem:[#allocation2 + $0xa6] sm:$0xff] %vm277_vm1, %v1340_v37  ;;  %v6638_v36 = vpop.permute.xlu0 %6637  ;;  %v8852_v56 = vld [vmem:[%s7904_s3 + $0xb4] sm:$0xff]   ;;  %v5249_v58 = vld [vmem:[%s7904_s3 + $0xbc] sm:$0x1] }
 0x146   : > { %1114 = vst.msk [vmem:[#allocation2 + $0xf8] sm:$0xff] %vm1082_vm7, %v6595_v22  ;;  %1111 = vst.msk [vmem:[#allocation2 + $0xe0] sm:$0xff] %vm1082_vm7, %v6589_v29  ;;  %v6640_v25 = vunpack.i.h.bf16 %v6638_v36  ;;  %v6639_v18 = vunpack.i.l.bf16 %v6638_v36  ;;  %v1355_v22 = vunpack.c.h.bf16 %v8583_v53  ;;  %v2091_v11 = vld [vmem:[%s7904_s3 + $0x20] sm:$0x1]  ;;  %6952 = vrot.lane.b32.xlu0 %v6951_v26, %s7736_s4  ;;  %v6603_v53 = vpop.permute.xlu1 %6602  ;;  %v1352_v29 = vunpack.c.h.bf16 %v8852_v56 }
 0x147   : > { %1389 = vst.msk [vmem:[#allocation2 + $0x9e] sm:$0xfc] %vm1357_vm8, %v1339_v15  ;;  %v5247_v15 = vld [vmem:[%s7904_s3 + $0xb4] sm:$0xe]  ;;  %v8857_v3 = vld [vmem:[#allocation2 + $0xd8] sm:$0xff]  ;;  %v1353_v54 = vunpack.c.l.bf16 %v5249_v58  ;;  %v6605_v28 = vunpack.i.h.bf16 %v6603_v53  ;;  %6837 = vrot.lane.b32.xlu1 %v6836_v4, %s7736_s4  ;;  %v2139_v26 = vunpack.c.l.bf16 %v2091_v11  ;;  %v1149_v4 = vpack.c.bf16 %v8610_v9, %v8592_v23 }
 0x148   : > { %1112 = vst.msk [vmem:[#allocation2 + $0xe8] sm:$0xff] %vm1082_vm7, %v6590_v27  ;;  %v8855_v12 = vld [vmem:[#allocation2 + $0xd0] sm:$0xff]  ;;  %v8864_v37 = vld [vmem:[#allocation2 + $0xc0] sm:$0xff]  ;;  %v8873_v38 = vld [vmem:[#allocation2 + $0xc8] sm:$0xff]  ;;  %v1351_v46 = vunpack.c.l.bf16 %v5247_v15  ;;  %v1157_v27 = vpack.c.bf16 %v8832_v49, %v8818_v60  ;;  %v1172_v60 = vsel %vm1164_vm10, %v1148_v45, 0  ;;  %v6846_v49 = vpack.i.bf16 %v2136_v48, %v2135_v33 }
 0x149   : > { %1394 = vst.msk [vmem:[#allocation2 + $0xbe] sm:$0x3] %vm1360_vm9, %v1344_v0  ;;  %1391 = vst.msk [vmem:[#allocation2 + $0xae] sm:$0x3] %vm1360_vm9, %v1341_v39  ;;  %v5252_v0 = vld [vmem:[%s7904_s3 + $0xc8] sm:$0x1]  ;;  %v1354_v39 = vunpack.c.l.bf16 %v8828_v17 }
 0x14a   : > { %1398 = vst.msk [vmem:[#allocation2 + $0xce] sm:$0xfc] %vm1357_vm8, %v1348_v50  ;;  %1395 = vst.msk [vmem:[#allocation2 + $0xbe] sm:$0xfc] %vm1357_vm8, %v1345_v43  ;;  %v1356_v42 = vunpack.c.l.bf16 %v5252_v0  ;;  %v6604_v50 = vunpack.i.l.bf16 %v6603_v53  ;;  %v8885_v43 = vld [vmem:[#allocation2 + $0xf0] sm:$0xff]  ;;  %6148 = vmatpush3.bf16.xpose.msra.mxu0 %v1172_v60  ;;  %v6608_v2 = vpop.permute.xlu1 %6607  ;;  %v1175_v9 = vsel %vm1164_vm10, %v1149_v4, 0 }
 0x14b   : > { %1399 = vst.msk [vmem:[#allocation2 + $0xd6] sm:$0xff] %vm277_vm1, %v1349_v10  ;;  %1396 = vst.msk [vmem:[#allocation2 + $0xc6] sm:$0xff] %vm277_vm1, %v1346_v13  ;;  %v6673_v10 = vpop.permute.xlu0 %6672  ;;  %v6091_v15 = vld [vmem:[%s7904_s3 + $0x30] sm:$0xff]   ;;  %6219 = vmatprep.subr.msk.bf16.mxu0 %vm1164_vm10, %v1157_v27  ;;  %v6610_v0 = vunpack.i.h.bf16 %v6608_v2  ;;  %6847 = vrot.lane.b32.xlu1 %v6846_v49, %s7736_s4  ;;  %v2100_v33 = vld [vmem:[%s7904_s3 + $0x44] sm:$0x1]  ;;  %v2147_v27 = vunpack.c.h.bf16 %v8427_v31  ;;  %v2152_v49 = vunpack.c.l.bf16 %v8452_v59 }
 0x14c   : > { %1696 = vst.msk [vmem:[#allocation2 - $0x1] sm:$0xfe] %vm1695_vm11, %v6599_v19  ;;  %v6675_v17 = vunpack.i.h.bf16 %v6673_v10  ;;  %v6674_v34 = vunpack.i.l.bf16 %v6673_v10  ;;  %1700 = vst.msk [vmem:[#allocation2 + $0xf] sm:$0xfe] %vm1695_vm11, %v6605_v28  ;;  %v5838_v58 = vunpack.c.l.bf16 %v6091_v15  ;;  %v5839_v45 = vunpack.c.h.bf16 %v6091_v15  ;;  %v2103_v10 = vld [vmem:[%s7904_s3 + $0x50] sm:$0x1] }
 0x14d   : > { %1697 = vst.msk [vmem:[#allocation2 + $0x7] sm:$0xff] %vm518_vm3, %v6600_v44  ;;  %1713 = vst.msk [vmem:[#allocation2 + $0x57] sm:$0xff] %vm518_vm3, %v6639_v18  ;;  %v8892_v13 = vld [vmem:[#allocation2 + $0xe0] sm:$0xff]  ;;  %v6609_v44 = vunpack.i.l.bf16 %v6608_v2  ;;  %v6856_v18 = vpack.i.bf16 %v2140_v62, %v2139_v26  ;;  %v2151_v60 = vunpack.c.l.bf16 %v2103_v10  ;;  %v8936_v62 = vld [vmem:[#allocation6] sm:$0xf]  ;;  %v1159_v2 = vpack.c.bf16 %v8873_v38, %v8864_v37 }
 0x14e   : > { %1714 = vst.msk [vmem:[#allocation2 + $0x5f] sm:$0x1] %vm10391_vm12, %v6640_v25  ;;  %1699 = vst.msk [vmem:[#allocation2 + $0xf] sm:$0x1] %vm10391_vm12, %v6604_v50  ;;  %v6613_v23 = vpop.permute.xlu1 %6612  ;;  %v6866_v53 = vpack.i.bf16 %v5839_v45, %v5838_v58  ;;  %v6093_v26 = vld [vmem:[%s7904_s3 + $0x60] sm:$0xff]   ;;  %6161 = vmatprep.mubr.msk.bf16.mxu0 %vm1164_vm10, %v8936_v62 }
 0x14f   : > { %1400 = vst.msk [vmem:[#allocation2 + $0xde] sm:$0x3] %vm1360_vm9, %v1350_v41  ;;  %1397 = vst.msk [vmem:[#allocation2 + $0xce] sm:$0x3] %vm1360_vm9, %v1347_v14  ;;  %v8887_v41 = vld [vmem:[#allocation2 + $0xf8] sm:$0xff]  ;;  %v8899_v36 = vld [vmem:[#allocation2 + $0xe8] sm:$0xff]  ;;  %v6683_v14 = vpop.permute.xlu0 %6682  ;;  %6857 = vrot.lane.b32.xlu1 %v6856_v18, %s7736_s4  ;;  %v1151_v18 = vpack.c.bf16 %v8667_v51, %v8654_v1 }
 0x150   : > { %1404 = vst.msk [vmem:[#allocation2 + $0xee] sm:$0xfc] %vm1357_vm8, %v1354_v39  ;;  %1401 = vst.msk [vmem:[#allocation2 + $0xde] sm:$0xfc] %vm1357_vm8, %v1351_v46  ;;  %v6685_v19 = vunpack.i.h.bf16 %v6683_v14  ;;  %v6684_v25 = vunpack.i.l.bf16 %v6683_v14  ;;  %v6615_v39 = vunpack.i.h.bf16 %v6613_v23  ;;  %v2112_v37 = vld [vmem:[%s7904_s3 + $0x74] sm:$0x1] }
 0x151   : > { %1405 = vst.msk [vmem:[#allocation2 + $0xf6] sm:$0xff] %vm277_vm1, %v1355_v22  ;;  %1402 = vst.msk [vmem:[#allocation2 + $0xe6] sm:$0xff] %vm277_vm1, %v1352_v29  ;;  %v6614_v22 = vunpack.i.l.bf16 %v6613_v23  ;;  %v2148_v29 = vunpack.c.l.bf16 %v2100_v33  ;;  %v1181_v51 = vsel %vm1164_vm10, %v1151_v18, 0 }
 0x152   : > { %1727 = vst.msk [vmem:[#allocation2 + $0x9f] sm:$0xfe] %vm1695_vm11, %v6674_v34  ;;  %6150 = vmatpush3.bf16.xpose.msra.mxu0 %v1175_v9  ;;  %v1150_v34 = vpack.c.bf16 %v8590_v57, %v8588_v20 }
 0x153   : > { %1728 = vst.msk [vmem:[#allocation2 + $0xa7] sm:$0xff] %vm518_vm3, %v6675_v17  ;;  %1701 = vst.msk [vmem:[#allocation2 + $0x17] sm:$0xff] %vm518_vm3, %v6609_v44  ;;  %v6693_v48 = vpop.permute.xlu0 %6692  ;;  %6867 = vrot.lane.b32.xlu1 %v6866_v53, %s7736_s4  ;;  %v6876_v17 = vpack.i.bf16 %v2148_v29, %v2147_v27  ;;  %v6886_v44 = vpack.i.bf16 %v2152_v49, %v2151_v60 }
 0x154   : > { %1406 = vst.msk [vmem:[#allocation2 + $0xfe] sm:$0x3] %vm1360_vm9, %v1356_v42  ;;  %1403 = vst.msk [vmem:[#allocation2 + $0xee] sm:$0x3] %vm1360_vm9, %v1353_v54  ;;  %v6695_v11 = vunpack.i.h.bf16 %v6693_v48  ;;  %v6694_v46 = vunpack.i.l.bf16 %v6693_v48  ;;  %v1158_v42 = vpack.c.bf16 %v8811_v30, %v8809_v52  ;;  %v6618_v54 = vpop.permute.xlu1 %6617 }
 0x155   : > { %1702 = vst.msk [vmem:[#allocation2 + $0x1f] sm:$0x1] %vm10391_vm12, %v6610_v0  ;;  %1732 = vst.msk [vmem:[#allocation2 + $0xbf] sm:$0x1] %vm10391_vm12, %v6685_v19  ;;  %v6620_v52 = vunpack.i.h.bf16 %v6618_v54  ;;  %v6619_v30 = vunpack.i.l.bf16 %v6618_v54  ;;  %v1178_v0 = vsel %vm1164_vm10, %v1150_v34, 0  ;;  %v5846_v19 = vunpack.c.l.bf16 %v6093_v26 }
 0x156   : > { %1731 = vst.msk [vmem:[#allocation2 + $0xb7] sm:$0xff] %vm518_vm3, %v6684_v25  ;;  %1704 = vst.msk [vmem:[#allocation2 + $0x27] sm:$0xff] %vm518_vm3, %v6615_v39  ;;  %6220 = vmatprep.subr.msk.bf16.mxu0 %vm1164_vm10, %v1158_v42  ;;  %v5847_v25 = vunpack.c.h.bf16 %v6093_v26  ;;  %v2159_v39 = vunpack.c.h.bf16 %v8478_v16  ;;  %v1160_v16 = vpack.c.bf16 %v8857_v3, %v8855_v12  ;;  %v2124_v26 = vld [vmem:[%s7904_s3 + $0xa4] sm:$0x1] }
 0x157   : > { %1703 = vst.msk [vmem:[#allocation2 + $0x1f] sm:$0xfe] %vm1695_vm11, %v6614_v22  ;;  %1736 = vst.msk [vmem:[#allocation2 + $0xcf] sm:$0xfe] %vm1695_vm11, %v6695_v11  ;;  %v6703_v28 = vpop.permute.xlu0 %6702  ;;  %6877 = vrot.lane.b32.xlu1 %v6876_v17, %s7736_s4  ;;  %v2160_v22 = vunpack.c.l.bf16 %v2112_v37  ;;  %v2115_v11 = vld [vmem:[%s7904_s3 + $0x80] sm:$0x1]  ;;  %v1152_v17 = vpack.c.bf16 %v8652_v32, %v8650_v47 }
 0x158   : > { %1735 = vst.msk [vmem:[#allocation2 + $0xcf] sm:$0x1] %vm10391_vm12, %v6694_v46  ;;  %v6705_v50 = vunpack.i.h.bf16 %v6703_v28  ;;  %v6704_v31 = vunpack.i.l.bf16 %v6703_v28  ;;  %1705 = vst.msk [vmem:[#allocation2 + $0x2f] sm:$0x1] %vm10391_vm12, %v6619_v30  ;;  %v6623_v15 = vpop.permute.xlu1 %6622  ;;  %v6896_v48 = vpack.i.bf16 %v5847_v25, %v5846_v19  ;;  %v2163_v54 = vunpack.c.l.bf16 %v2115_v11 }
 0x159   : > { %1706 = vst.msk [vmem:[#allocation2 + $0x2f] sm:$0xfe] %vm1695_vm11, %v6620_v52  ;;  %v6625_v59 = vunpack.i.h.bf16 %v6623_v15  ;;  %v6624_v57 = vunpack.i.l.bf16 %v6623_v15  ;;  %v6906_v10 = vpack.i.bf16 %v2160_v22, %v2159_v39  ;;  %v2164_v28 = vunpack.c.l.bf16 %v8783_v8  ;;  %v8967_v52 = vld [vmem:[%s7904_s3 + $0x90] sm:$0xff]  }
 0x15a   : > { %1739 = vst.msk [vmem:[#allocation2 + $0xdf] sm:$0xfe] %vm1695_vm11, %v6704_v31  ;;  %6152 = vmatpush3.bf16.xpose.msra.mxu0 %v1178_v0  ;;  %v5854_v60 = vunpack.c.l.bf16 %v8967_v52  ;;  %v5855_v49 = vunpack.c.h.bf16 %v8967_v52  ;;  %v2171_v0 = vunpack.c.l.bf16 %v8758_v61  ;;  %v1153_v61 = vpack.c.bf16 %v8722_v40, %v8709_v5 }
 0x15b   : > { %1740 = vst.msk [vmem:[#allocation2 + $0xe7] sm:$0xff] %vm518_vm3, %v6705_v50  ;;  %v6713_v20 = vpop.permute.xlu0 %6712  ;;  %1707 = vst.msk [vmem:[#allocation2 + $0x37] sm:$0xff] %vm518_vm3, %v6624_v57  ;;  %6221 = vmatprep.subr.msk.bf16.mxu0 %vm1164_vm10, %v1159_v2  ;;  %6887 = vrot.lane.b32.xlu1 %v6886_v44, %s7736_s4  ;;  %v6916_v34 = vpack.i.bf16 %v2164_v28, %v2163_v54  ;;  %v1161_v2 = vpack.c.bf16 %v8899_v36, %v8892_v13  ;;  %v2172_v44 = vunpack.c.l.bf16 %v2124_v26  ;;  %v2127_v13 = vld [vmem:[%s7904_s3 + $0xb0] sm:$0x1] }
 0x15c   : > { %v6715_v4 = vunpack.i.h.bf16 %v6713_v20  ;;  %v6714_v14 = vunpack.i.l.bf16 %v6713_v20  ;;  %1708 = vst.msk [vmem:[#allocation2 + $0x3f] sm:$0x1] %vm10391_vm12, %v6625_v59  ;;  %v6628_v38 = vpop.permute.xlu1 %6627  ;;  %v1187_v40 = vsel %vm1164_vm10, %v1153_v61, 0  ;;  %v1162_v11 = vpack.c.bf16 %v8887_v41, %v8885_v43 }
 0x15d   : > { %v6630_v45 = vunpack.i.h.bf16 %v6628_v38  ;;  %v6629_v33 = vunpack.i.l.bf16 %v6628_v38  ;;  %v1154_v41 = vpack.c.bf16 %v8707_v21, %v8705_v6 }
 0x15e   : > { %1743 = vst.msk [vmem:[#allocation2 + $0xf7] sm:$0xff] %vm518_vm3, %v6714_v14  ;;  %v6926_v14 = vpack.i.bf16 %v5855_v49, %v5854_v60 }
 0x15f   : > { %1744 = vst.msk [vmem:[#allocation2 + $0xff] sm:$0x1] %vm10391_vm12, %v6715_v4  ;;  %v6723_v58 = vpop.permute.xlu0 %6722  ;;  %6897 = vrot.lane.b32.xlu1 %v6896_v48, %s7736_s4  ;;  %v1184_v4 = vsel %vm1164_vm10, %v1152_v17, 0 }
 0x160   : > { %v6725_v23 = vunpack.i.h.bf16 %v6723_v58  ;;  %v6724_v9 = vunpack.i.l.bf16 %v6723_v58  ;;  %1709 = vst.msk [vmem:[#allocation2 + $0x3f] sm:$0xfe] %vm1695_vm11, %v6629_v33  ;;  %v6633_v1 = vpop.permute.xlu1 %6632  ;;  %v6936_v58 = vpack.i.bf16 %v2172_v44, %v2171_v0  ;;  %v2176_v33 = vunpack.c.l.bf16 %v8852_v56 }
 0x161   : > { %1710 = vst.msk [vmem:[#allocation2 + $0x47] sm:$0xff] %vm518_vm3, %v6630_v45  ;;  %v6635_v42 = vunpack.i.h.bf16 %v6633_v1  ;;  %v6634_v53 = vunpack.i.l.bf16 %v6633_v1  ;;  %v2175_v45 = vunpack.c.l.bf16 %v2127_v13 }
 0x162   : > { %2037 = vst.msk [vmem:[#allocation2 + $0xe] sm:$0x3] %vm2036_vm14, %v6724_v9  ;;  %6154 = vmatpush3.bf16.xpose.msra.mxu0 %v1181_v51 }
 0x163   : > { %2038 = vst.msk [vmem:[#allocation2 + $0xe] sm:$0xfc] %vm2033_vm13, %v6725_v23  ;;  %v6733_v46 = vpop.permute.xlu0 %6732  ;;  %6222 = vmatprep.subr.msk.bf16.mxu0 %vm1164_vm10, %v1160_v16  ;;  %6907 = vrot.lane.b32.xlu1 %v6906_v10, %s7736_s4  ;;  %v6946_v56 = vpack.i.bf16 %v2176_v33, %v2175_v45  ;;  %v9057_v33 = vld [vmem:[%s7904_s3 + $0x30] sm:$0xff]  }
 0x164   : > { %v6735_v27 = vunpack.i.h.bf16 %v6733_v46  ;;  %v6734_v29 = vunpack.i.l.bf16 %v6733_v46  ;;  %1711 = vst.msk [vmem:[#allocation2 + $0x4f] sm:$0x1] %vm10391_vm12, %v6634_v53  ;;  %v6643_v30 = vpop.permute.xlu1 %6642 }
 0x165   : > { %1712 = vst.msk [vmem:[#allocation2 + $0x4f] sm:$0xfe] %vm1695_vm11, %v6635_v42  ;;  %v6645_v3 = vunpack.i.h.bf16 %v6643_v30  ;;  %v6644_v50 = vunpack.i.l.bf16 %v6643_v30  ;;  %v1190_v30 = vsel %vm1164_vm10, %v1154_v41, 0  ;;  %v5356_v41 = vld [vmem:[%s7904_s3 + $0x3c] sm:$0xff]  }
 0x166   : > { %2041 = vst.msk [vmem:[#allocation2 + $0x1e] sm:$0xfc] %vm2033_vm13, %v6734_v29 }
 0x167   : > { %2042 = vst.msk [vmem:[#allocation2 + $0x26] sm:$0xff] %vm841_vm6, %v6735_v27  ;;  %v6743_v12 = vpop.permute.xlu0 %6742  ;;  %6917 = vrot.lane.b32.xlu1 %v6916_v34, %s7736_s4 }
 0x168   : > { %v6745_v31 = vunpack.i.h.bf16 %v6743_v12  ;;  %v6744_v8 = vunpack.i.l.bf16 %v6743_v12  ;;  %1715 = vst.msk [vmem:[#allocation2 + $0x5f] sm:$0xfe] %vm1695_vm11, %v6644_v50  ;;  %v6648_v15 = vpop.permute.xlu1 %6647 }
 0x169   : > { %1716 = vst.msk [vmem:[#allocation2 + $0x67] sm:$0xff] %vm518_vm3, %v6645_v3  ;;  %v6650_v32 = vunpack.i.h.bf16 %v6648_v15  ;;  %v6649_v20 = vunpack.i.l.bf16 %v6648_v15 }
 0x16a   : > { %2045 = vst.msk [vmem:[#allocation2 + $0x36] sm:$0xff] %vm841_vm6, %v6744_v8  ;;  %6156 = vmatpush3.bf16.xpose.msra.mxu0 %v1184_v4 }
 0x16b   : > { %2046 = vst.msk [vmem:[#allocation2 + $0x3e] sm:$0x3] %vm2036_vm14, %v6745_v31  ;;  %v6753_v47 = vpop.permute.xlu0 %6752  ;;  %6223 = vmatprep.subr.msk.bf16.mxu0 %vm1164_vm10, %v1161_v2  ;;  %6927 = vrot.lane.b32.xlu1 %v6926_v14, %s7736_s4 }
 0x16c   : > { %v6755_v59 = vunpack.i.h.bf16 %v6753_v47  ;;  %v6754_v57 = vunpack.i.l.bf16 %v6753_v47  ;;  %1717 = vst.msk [vmem:[#allocation2 + $0x6f] sm:$0x1] %vm10391_vm12, %v6649_v20  ;;  %v6653_v36 = vpop.permute.xlu1 %6652  ;;  %v9036_v47 = vld [vmem:[%s7904_s3 + $0x18] sm:$0xff]  }
 0x16d   : > { %1718 = vst.msk [vmem:[#allocation2 + $0x6f] sm:$0xfe] %vm1695_vm11, %v6650_v32  ;;  %v6655_v25 = vunpack.i.h.bf16 %v6653_v36  ;;  %v6654_v37 = vunpack.i.l.bf16 %v6653_v36  ;;  %v5862_v0 = vunpack.c.l.bf16 %v9036_v47 }
 0x16e   : > { %2049 = vst.msk [vmem:[#allocation2 + $0x4e] sm:$0x3] %vm2036_vm14, %v6754_v57 }
 0x16f   : > { %2050 = vst.msk [vmem:[#allocation2 + $0x4e] sm:$0xfc] %vm2033_vm13, %v6755_v59  ;;  %v6763_v19 = vpop.permute.xlu0 %6762  ;;  %6937 = vrot.lane.b32.xlu1 %v6936_v58, %s7736_s4 }
 0x170   : > { %v6765_v38 = vunpack.i.h.bf16 %v6763_v19  ;;  %v6764_v18 = vunpack.i.l.bf16 %v6763_v19  ;;  %1719 = vst.msk [vmem:[#allocation2 + $0x77] sm:$0xff] %vm518_vm3, %v6654_v37  ;;  %v6658_v23 = vpop.permute.xlu1 %6657 }
 0x171   : > { %1720 = vst.msk [vmem:[#allocation2 + $0x7f] sm:$0x1] %vm10391_vm12, %v6655_v25  ;;  %v6660_v48 = vunpack.i.h.bf16 %v6658_v23  ;;  %v6659_v39 = vunpack.i.l.bf16 %v6658_v23 }
 0x172   : > { %2053 = vst.msk [vmem:[#allocation2 + $0x5e] sm:$0xfc] %vm2033_vm13, %v6764_v18  ;;  %6158 = vmatpush3.bf16.xpose.msra.mxu0 %v1187_v40  ;;  %v5352_v18 = vld [vmem:[%s7904_s3 + $0x24] sm:$0xff]   ;;  %v5867_v40 = vunpack.c.h.bf16 %v9057_v33 }
 0x173   : > { %2054 = vst.msk [vmem:[#allocation2 + $0x66] sm:$0xff] %vm841_vm6, %v6765_v38  ;;  %v6773_v9 = vpop.permute.xlu0 %6772  ;;  %6224 = vmatprep.subr.msk.bf16.mxu0 %vm1164_vm10, %v1162_v11  ;;  %6947 = vrot.lane.b32.xlu1 %v6946_v56, %s7736_s4  ;;  %v2746_v61 = vunpack.c.l.bf16 %v5352_v18  ;;  %v2747_v23 = vunpack.c.h.bf16 %v5352_v18 }
 0x174   : > { %v6775_v22 = vunpack.i.h.bf16 %v6773_v9  ;;  %v6774_v5 = vunpack.i.l.bf16 %v6773_v9  ;;  %1721 = vst.msk [vmem:[#allocation2 + $0x7f] sm:$0xfe] %vm1695_vm11, %v6659_v39  ;;  %v6663_v1 = vpop.permute.xlu1 %6662 }
 0x175   : > { %1722 = vst.msk [vmem:[#allocation2 + $0x87] sm:$0xff] %vm518_vm3, %v6660_v48  ;;  %v6665_v46 = vunpack.i.h.bf16 %v6663_v1  ;;  %v6664_v42 = vunpack.i.l.bf16 %v6663_v1 }
 0x176   : > { %2057 = vst.msk [vmem:[#allocation2 + $0x76] sm:$0xff] %vm841_vm6, %v6774_v5  ;;  %v5866_v5 = vunpack.c.l.bf16 %v9057_v33 }
 0x177   : > { %2058 = vst.msk [vmem:[#allocation2 + $0x7e] sm:$0x3] %vm2036_vm14, %v6775_v22  ;;  %v6783_v51 = vpop.permute.xlu0 %6782  ;;  %v6961_v22 = vpack.i.bf16 %v2747_v23, %v2746_v61 }
 0x178   : > { %v6785_v53 = vunpack.i.h.bf16 %v6783_v51  ;;  %v6784_v43 = vunpack.i.l.bf16 %v6783_v51  ;;  %1723 = vst.msk [vmem:[#allocation2 + $0x8f] sm:$0x1] %vm10391_vm12, %v6664_v42  ;;  %v6668_v27 = vpop.permute.xlu1 %6667 }
 0x179   : > { %1724 = vst.msk [vmem:[#allocation2 + $0x8f] sm:$0xfe] %vm1695_vm11, %v6665_v46  ;;  %v6670_v16 = vunpack.i.h.bf16 %v6668_v27  ;;  %v6669_v10 = vunpack.i.l.bf16 %v6668_v27 }
 0x17a   : > { %2061 = vst.msk [vmem:[#allocation2 + $0x8e] sm:$0x3] %vm2036_vm14, %v6784_v43  ;;  %6160 = vmatpush3.bf16.xpose.msra.mxu0 %v1190_v30  ;;  %v9077_v43 = vpack.i.bf16 %v5867_v40, %v5866_v5 }
 0x17b   : > { %2062 = vst.msk [vmem:[#allocation2 + $0x8e] sm:$0xfc] %vm2033_vm13, %v6785_v53  ;;  %v6793_v29 = vpop.permute.xlu0 %6792  ;;  %v9071_v53 = vld [vmem:[%s7904_s3 + $0x48] sm:$0xff]  }
 0x17c   : > { %v6795_v54 = vunpack.i.h.bf16 %v6793_v29  ;;  %v6794_v28 = vunpack.i.l.bf16 %v6793_v29  ;;  %1725 = vst.msk [vmem:[#allocation2 + $0x97] sm:$0xff] %vm518_vm3, %v6669_v10  ;;  %v6678_v6 = vpop.permute.xlu1 %6677  ;;  %v2750_v10 = vunpack.c.l.bf16 %v5356_v41 }
 0x17d   : > { %1726 = vst.msk [vmem:[#allocation2 + $0x9f] sm:$0x1] %vm10391_vm12, %v6670_v16  ;;  %v6680_v12 = vunpack.i.h.bf16 %v6678_v6  ;;  %v6679_v3 = vunpack.i.l.bf16 %v6678_v6 }
 0x17e   : > { %2065 = vst.msk [vmem:[#allocation2 + $0x9e] sm:$0xfc] %vm2033_vm13, %v6794_v28 }
 0x17f   : > { %2066 = vst.msk [vmem:[#allocation2 + $0xa6] sm:$0xff] %vm841_vm6, %v6795_v54  ;;  %v6803_v21 = vpop.permute.xlu0 %6802  ;;  %v2751_v54 = vunpack.c.h.bf16 %v5356_v41 }
 0x180   : > { %v6805_v50 = vunpack.i.h.bf16 %v6803_v21  ;;  %v6804_v31 = vunpack.i.l.bf16 %v6803_v21  ;;  %1729 = vst.msk [vmem:[#allocation2 + $0xaf] sm:$0x1] %vm10391_vm12, %v6679_v3  ;;  %v6688_v8 = vpop.permute.xlu1 %6687  ;;  %v5871_v3 = vunpack.c.h.bf16 %v9071_v53 }
 0x181   : > { %1730 = vst.msk [vmem:[#allocation2 + $0xaf] sm:$0xfe] %vm1695_vm11, %v6680_v12  ;;  %v6690_v34 = vunpack.i.h.bf16 %v6688_v8  ;;  %v6689_v26 = vunpack.i.l.bf16 %v6688_v8  ;;  %6162 = vmatmul.mubr.msk.bf16.vlgmr.msra.gmra.mrb[0].mxu0 %vm1164_vm10, %v8936_v62  ;;  %v5863_v62 = vunpack.c.h.bf16 %v9036_v47  ;;  %v5870_v12 = vunpack.c.l.bf16 %v9071_v53 }
 0x182   : > { %2070 = vst.msk [vmem:[#allocation2 + $0xbe] sm:$0x3] %vm2036_vm14, %v6805_v50  ;;  %v6971_v50 = vpack.i.bf16 %v2751_v54, %v2750_v10 }
 0x183   : > { %2069 = vst.msk [vmem:[#allocation2 + $0xb6] sm:$0xff] %vm841_vm6, %v6804_v31  ;;  %v6813_v17 = vpop.permute.xlu0 %6812  ;;  %v9049_v38 = vpack.i.bf16 %v5863_v62, %v5862_v0 }
 0x184   : > { %v6815_v15 = vunpack.i.h.bf16 %v6813_v17  ;;  %v6814_v2 = vunpack.i.l.bf16 %v6813_v17  ;;  %1733 = vst.msk [vmem:[#allocation2 + $0xbf] sm:$0xfe] %vm1695_vm11, %v6689_v26  ;;  %v6698_v32 = vpop.permute.xlu1 %6697  ;;  %v5313_v17 = vld [vmem:[%s7904_s3 + $0x44] sm:$0x1] }
 0x185   : > { %1734 = vst.msk [vmem:[#allocation2 + $0xc7] sm:$0xff] %vm518_vm3, %v6690_v34  ;;  %v6700_v59 = vunpack.i.h.bf16 %v6698_v32  ;;  %v6699_v57 = vunpack.i.l.bf16 %v6698_v32  ;;  %6957 = vrot.lane.b32.xlu0 %v9049_v38, %s7734_s15  ;;  %v2470_v32 = vld [vmem:[#allocation6 + $0x4] sm:$0xf] }
 0x186   : > { %2074 = vst.msk [vmem:[#allocation2 + $0xce] sm:$0xfc] %vm2033_vm13, %v6815_v15  ;;  %6179 = vmatprep.mubr.msk.bf16.mxu1 %vm1164_vm10, %v2470_v32 }
 0x187   : > { %2073 = vst.msk [vmem:[#allocation2 + $0xce] sm:$0x3] %vm2036_vm14, %v6814_v2  ;;  %v6823_v20 = vpop.permute.xlu0 %6822  ;;  %v6976_v2 = vpack.i.bf16 %v5871_v3, %v5870_v12 }
 0x188   : > { %v6825_v4 = vunpack.i.h.bf16 %v6823_v20  ;;  %v6824_v14 = vunpack.i.l.bf16 %v6823_v20  ;;  %1737 = vst.msk [vmem:[#allocation2 + $0xd7] sm:$0xff] %vm518_vm3, %v6699_v57  ;;  %v6708_v44 = vpop.permute.xlu1 %6707  ;;  %v2627_v20 = vunpack.c.l.bf16 %v5313_v17  ;;  %v5446_v17 = vld [vmem:[%s7904_s3 + $0x6c] sm:$0xff]  }
 0x189   : > { %1738 = vst.msk [vmem:[#allocation2 + $0xdf] sm:$0x1] %vm10391_vm12, %v6700_v59  ;;  %v6710_v36 = vunpack.i.h.bf16 %v6708_v44  ;;  %v6709_v19 = vunpack.i.l.bf16 %v6708_v44  ;;  %6962 = vrot.lane.b32.xlu0 %v6961_v22, %s7734_s15  ;;  %v6109_v59 = vld [vmem:[%s7904_s3 + $0x78] sm:$0xff]  }
 0x18a   : > { %2077 = vst.msk [vmem:[#allocation2 + $0xde] sm:$0xfc] %vm2033_vm13, %v6824_v14  ;;  %v9101_v44 = vunpack.c.l.bf16 %v6109_v59 }
 0x18b   : > { %2078 = vst.msk [vmem:[#allocation2 + $0xe6] sm:$0xff] %vm841_vm6, %v6825_v4  ;;  %v6833_v13 = vpop.permute.xlu0 %6832 }
 0x18c   : > { %v6835_v25 = vunpack.i.h.bf16 %v6833_v13  ;;  %v6834_v37 = vunpack.i.l.bf16 %v6833_v13  ;;  %1741 = vst.msk [vmem:[#allocation2 + $0xef] sm:$0x1] %vm10391_vm12, %v6709_v19  ;;  %v6718_v58 = vpop.permute.xlu1 %6717  ;;  %vm2371_vm12 = vcmask 130145   ;;  %v9103_v13 = vunpack.c.h.bf16 %v6109_v59 }
 0x18d   : > { %1742 = vst.msk [vmem:[#allocation2 + $0xef] sm:$0xfe] %vm1695_vm11, %v6710_v36  ;;  %v6720_v9 = vunpack.i.h.bf16 %v6718_v58  ;;  %v6719_v48 = vunpack.i.l.bf16 %v6718_v58  ;;  %6967 = vrot.lane.b32.xlu0 %v9077_v43, %s7734_s15 }
 0x18e   : > { %2082 = vst.msk [vmem:[#allocation2 + $0xfe] sm:$0x3] %vm2036_vm14, %v6835_v25  ;;  %v9110_v18 = vpack.i.bf16 %v9103_v13, %v9101_v44 }
 0x18f   : > { %2081 = vst.msk [vmem:[#allocation2 + $0xf6] sm:$0xff] %vm841_vm6, %v6834_v37  ;;  %v6843_v45 = vpop.permute.xlu0 %6842  ;;  %2035 = vst.msk [vmem:[#allocation2 + $0x6] sm:$0xff] %vm841_vm6, %v6720_v9 }
 0x190   : > { %v6844_v39 = vunpack.i.l.bf16 %v6843_v45  ;;  %2034 = vst.msk [vmem:[#allocation2 - $0x2] sm:$0xfc] %vm2033_vm13, %v6719_v48  ;;  %v6728_v11 = vpop.permute.xlu1 %6727  ;;  %v6845_v56 = vunpack.i.h.bf16 %v6843_v45 }
 0x191   : > { %v6730_v51 = vunpack.i.h.bf16 %v6728_v11  ;;  %v6729_v46 = vunpack.i.l.bf16 %v6728_v11  ;;  %6972 = vrot.lane.b32.xlu0 %v6971_v50, %s7734_s15  ;;  %v5382_v11 = vld [vmem:[%s7904_s3 + $0xc] sm:$0xff]  }
 0x192   : > { %2375 = vst.msk [vmem:[#allocation2 + $0xf] sm:$0x1] %vm2374_vm15, %v6844_v39 }
 0x193   : > { %v6853_v1 = vpop.permute.xlu0 %6852  ;;  %2039 = vst.msk [vmem:[#allocation2 + $0x16] sm:$0xff] %vm841_vm6, %v6729_v46  ;;  %v2985_v46 = vunpack.c.h.bf16 %v5382_v11 }
 0x194   : > { %v6854_v42 = vunpack.i.l.bf16 %v6853_v1  ;;  %2040 = vst.msk [vmem:[#allocation2 + $0x1e] sm:$0x3] %vm2036_vm14, %v6730_v51  ;;  %v6738_v27 = vpop.permute.xlu1 %6737  ;;  %v6855_v29 = vunpack.i.h.bf16 %v6853_v1  ;;  %v5406_v1 = vld [vmem:[%s7904_s3 + $0x6c] sm:$0xff]   ;;  %v2984_v51 = vunpack.c.l.bf16 %v5382_v11 }
 0x195   : > { %2376 = vst.msk [vmem:[#allocation2 + $0xf] sm:$0xfe] %vm2371_vm12, %v6845_v56  ;;  %v6740_v28 = vunpack.i.h.bf16 %v6738_v27  ;;  %v6739_v30 = vunpack.i.l.bf16 %v6738_v27  ;;  %6977 = vrot.lane.b32.xlu0 %v6976_v2, %s7734_s15  ;;  %v5384_v56 = vld [vmem:[%s7904_s3 + $0x14] sm:$0x1]  ;;  %v3008_v41 = vunpack.c.l.bf16 %v5406_v1  ;;  %v3009_v50 = vunpack.c.h.bf16 %v5406_v1  ;;  %v9156_v11 = vld [vmem:[%s7904_s3 + $0xc] sm:$0xff]  }
 0x196   : > { %2379 = vst.msk [vmem:[#allocation2 + $0x1f] sm:$0xfe] %vm2371_vm12, %v6854_v42  ;;  %v2986_v42 = vunpack.c.l.bf16 %v5384_v56  ;;  %v6986_v10 = vpack.i.bf16 %v2985_v46, %v2984_v51  ;;  %v9164_v46 = vld [vmem:[%s7904_s3 + $0xc] sm:$0xff]  }
 0x197   : > { %v6863_v16 = vpop.permute.xlu0 %6862  ;;  %2043 = vst.msk [vmem:[#allocation2 + $0x2e] sm:$0x3] %vm2036_vm14, %v6739_v30 }
 0x198   : > { %v6865_v6 = vunpack.i.h.bf16 %v6863_v16  ;;  %v6864_v21 = vunpack.i.l.bf16 %v6863_v16  ;;  %2044 = vst.msk [vmem:[#allocation2 + $0x2e] sm:$0xfc] %vm2033_vm13, %v6740_v28  ;;  %v6748_v31 = vpop.permute.xlu1 %6747  ;;  %v5325_v16 = vld [vmem:[%s7904_s3 + $0x74] sm:$0x1] }
 0x199   : > { %2380 = vst.msk [vmem:[#allocation2 + $0x27] sm:$0xff] %vm1082_vm7, %v6855_v29  ;;  %v6750_v34 = vunpack.i.h.bf16 %v6748_v31  ;;  %v6749_v26 = vunpack.i.l.bf16 %v6748_v31  ;;  %6982 = vrot.lane.b32.xlu0 %v9110_v18, %s7734_s15 }
 0x19a   : > { %2383 = vst.msk [vmem:[#allocation2 + $0x37] sm:$0xff] %vm1082_vm7, %v6864_v21  ;;  %v6991_v21 = vpack.i.bf16 %v3008_v41, %v2986_v42  ;;  %v5337_v41 = vld [vmem:[%s7904_s3 + $0xa4] sm:$0x1] }
 0x19b   : > { %2384 = vst.msk [vmem:[#allocation2 + $0x3f] sm:$0x1] %vm2374_vm15, %v6865_v6  ;;  %v6873_v8 = vpop.permute.xlu0 %6872  ;;  %v9135_v6 = vld [vmem:[%s7904_s3 + $0x60] sm:$0xff]  }
 0x19c   : > { %v6874_v15 = vunpack.i.l.bf16 %v6873_v8  ;;  %2047 = vst.msk [vmem:[#allocation2 + $0x3e] sm:$0xfc] %vm2033_vm13, %v6749_v26  ;;  %v6758_v57 = vpop.permute.xlu1 %6757  ;;  %v6875_v4 = vunpack.i.h.bf16 %v6873_v8  ;;  %v2639_v8 = vunpack.c.l.bf16 %v5325_v16  ;;  %v5874_v2 = vunpack.c.l.bf16 %v9135_v6 }
 0x19d   : > { %2048 = vst.msk [vmem:[#allocation2 + $0x46] sm:$0xff] %vm841_vm6, %v6750_v34  ;;  %v6760_v36 = vunpack.i.h.bf16 %v6758_v57  ;;  %v6759_v19 = vunpack.i.l.bf16 %v6758_v57  ;;  %6987 = vrot.lane.b32.xlu0 %v6986_v10, %s7735_s17 }
 0x19e   : > { %2387 = vst.msk [vmem:[#allocation2 + $0x4f] sm:$0x1] %vm2374_vm15, %v6874_v15 }
 0x19f   : > { %v6883_v14 = vpop.permute.xlu0 %6882  ;;  %2051 = vst.msk [vmem:[#allocation2 + $0x56] sm:$0xff] %vm841_vm6, %v6759_v19 }
 0x1a0   : > { %v6884_v25 = vunpack.i.l.bf16 %v6883_v14  ;;  %2052 = vst.msk [vmem:[#allocation2 + $0x5e] sm:$0x3] %vm2036_vm14, %v6760_v36  ;;  %v9115_v61 = vld [vmem:[#allocation2 + $0x20] sm:$0xff]  ;;  %v6768_v58 = vpop.permute.xlu1 %6767  ;;  %v6885_v45 = vunpack.i.h.bf16 %v6883_v14  ;;  %v3320_v14 = vunpack.c.l.bf16 %v5446_v17  ;;  %v3321_v36 = vunpack.c.h.bf16 %v5446_v17 }
 0x1a1   : > { %2388 = vst.msk [vmem:[#allocation2 + $0x4f] sm:$0xfe] %vm2371_vm12, %v6875_v4  ;;  %v6770_v9 = vunpack.i.h.bf16 %v6768_v58  ;;  %v6769_v48 = vunpack.i.l.bf16 %v6768_v58  ;;  %6992 = vrot.lane.b32.xlu0 %v6991_v21, %s7735_s17  ;;  %v2651_v21 = vunpack.c.l.bf16 %v5337_v41 }
 0x1a2   : > { %v9106_v37 = vld [vmem:[#allocation2 + $0x38] sm:$0xff]  ;;  %2391 = vst.msk [vmem:[#allocation2 + $0x5f] sm:$0xfe] %vm2371_vm12, %v6884_v25  ;;  %v7006_v56 = vpack.i.bf16 %v3321_v36, %v3320_v14 }
 0x1a3   : > { %2675 = vst.msk [vmem:[#allocation2 + $0x3f] sm:$0x1] %vm279_vm2, %v2627_v20  ;;  %v6893_v23 = vpop.permute.xlu0 %6892  ;;  %v5368_v25 = vld [vmem:[%s7904_s3 + $0x84] sm:$0xff]  }
 0x1a4   : > { %2670 = vst.msk [vmem:[#allocation2 + $0x1f] sm:$0xfe] %vm275_vm0, %v5866_v5  ;;  %v6895_v39 = vunpack.i.h.bf16 %v6893_v23  ;;  %v6894_v22 = vunpack.i.l.bf16 %v6893_v23  ;;  %v5408_v5 = vld [vmem:[%s7904_s3 + $0x74] sm:$0x1]  ;;  %v6778_v27 = vpop.permute.xlu1 %6777  ;;  %v2762_v1 = vunpack.c.l.bf16 %v5368_v25  ;;  %v2763_v51 = vunpack.c.h.bf16 %v5368_v25 }
 0x1a5   : > { %2055 = vst.msk [vmem:[#allocation2 + $0x6e] sm:$0x3] %vm2036_vm14, %v6769_v48  ;;  %v6780_v54 = vunpack.i.h.bf16 %v6778_v27  ;;  %v6779_v28 = vunpack.i.l.bf16 %v6778_v27  ;;  %v3010_v31 = vunpack.c.l.bf16 %v5408_v5  ;;  %v3304_v27 = vunpack.c.l.bf16 %v9164_v46 }
 0x1a6   : > { %2056 = vst.msk [vmem:[#allocation2 + $0x6e] sm:$0xfc] %vm2033_vm13, %v6770_v9 }
 0x1a7   : > { %2395 = vst.msk [vmem:[#allocation2 + $0x77] sm:$0xff] %vm1082_vm7, %v6894_v22  ;;  %2392 = vst.msk [vmem:[#allocation2 + $0x67] sm:$0xff] %vm1082_vm7, %v6885_v45  ;;  %v6903_v29 = vpop.permute.xlu0 %6902  ;;  %v6996_v4 = vpack.i.bf16 %v3010_v31, %v3009_v50  ;;  %v5387_v50 = vld [vmem:[%s7904_s3 + $0x20] sm:$0x1] }
 0x1a8   : > { %2396 = vst.msk [vmem:[#allocation2 + $0x7f] sm:$0x1] %vm2374_vm15, %v6895_v39  ;;  %v6904_v30 = vunpack.i.l.bf16 %v6903_v29  ;;  %v6788_v34 = vpop.permute.xlu1 %6787  ;;  %v6905_v26 = vunpack.i.h.bf16 %v6903_v29  ;;  %v3305_v29 = vunpack.c.h.bf16 %v9156_v11 }
 0x1a9   : > { %2059 = vst.msk [vmem:[#allocation2 + $0x7e] sm:$0xfc] %vm2033_vm13, %v6779_v28  ;;  %v6790_v32 = vunpack.i.h.bf16 %v6788_v34  ;;  %v6789_v20 = vunpack.i.l.bf16 %v6788_v34  ;;  %6997 = vrot.lane.b32.xlu0 %v6996_v4, %s7735_s17  ;;  %v7011_v28 = vpack.i.bf16 %v2763_v51, %v2762_v1  ;;  %v5411_v4 = vld [vmem:[%s7904_s3 + $0x80] sm:$0x1] }
 0x1aa   : > { %2060 = vst.msk [vmem:[#allocation2 + $0x86] sm:$0xff] %vm841_vm6, %v6780_v54  ;;  %v9204_v51 = vld [vmem:[%s7904_s3 + $0xc0] sm:$0xff]  }
 0x1ab   : > { %2399 = vst.msk [vmem:[#allocation2 + $0x8f] sm:$0x1] %vm2374_vm15, %v6904_v30  ;;  %v6913_v15 = vpop.permute.xlu0 %6912  ;;  %v7001_v30 = vpack.i.bf16 %v3305_v29, %v3304_v27 }
 0x1ac   : > { %v6914_v59 = vunpack.i.l.bf16 %v6913_v15  ;;  %2063 = vst.msk [vmem:[#allocation2 + $0x96] sm:$0xff] %vm841_vm6, %v6789_v20  ;;  %v6798_v58 = vpop.permute.xlu1 %6797  ;;  %v6915_v45 = vunpack.i.h.bf16 %v6913_v15  ;;  %v5537_v15 = vld [vmem:[%s7904_s3 + $0x80] sm:$0x1]  ;;  %v2989_v20 = vunpack.c.l.bf16 %v5387_v50 }
 0x1ad   : > { %2064 = vst.msk [vmem:[#allocation2 + $0x9e] sm:$0x3] %vm2036_vm14, %v6790_v32  ;;  %v6800_v9 = vunpack.i.h.bf16 %v6798_v58  ;;  %v6799_v48 = vunpack.i.l.bf16 %v6798_v58  ;;  %7007 = vrot.lane.b32.xlu0 %v7006_v56, %s7736_s4  ;;  %7002 = vrot.lane.b32.xlu1 %v7001_v30, %s7736_s4  ;;  %v3860_v25 = vunpack.c.l.bf16 %v5537_v15  ;;  %v3013_v56 = vunpack.c.l.bf16 %v5411_v4  ;;  %v5513_v30 = vld [vmem:[%s7904_s3 + $0x20] sm:$0x1] }
 0x1ae   : > { %2403 = vst.msk [vmem:[#allocation2 + $0x9f] sm:$0xfe] %vm2371_vm12, %v6914_v59  ;;  %v9149_v19 = vld [vmem:[#allocation2 + $0x60] sm:$0xff]  ;;  %2400 = vst.msk [vmem:[#allocation2 + $0x8f] sm:$0xfe] %vm2371_vm12, %v6905_v26  ;;  %v3836_v4 = vunpack.c.l.bf16 %v5513_v30 }
 0x1af   : > { %v9143_v57 = vld [vmem:[#allocation2 + $0x78] sm:$0xff]  ;;  %v6923_v23 = vpop.permute.xlu0 %6922  ;;  %2682 = vst.msk [vmem:[#allocation2 + $0x5f] sm:$0xfe] %vm275_vm0, %v5874_v2 }
 0x1b0   : > { %2687 = vst.msk [vmem:[#allocation2 + $0x7f] sm:$0x1] %vm279_vm2, %v2639_v8  ;;  %v6925_v39 = vunpack.i.h.bf16 %v6923_v23  ;;  %v6924_v22 = vunpack.i.l.bf16 %v6923_v23  ;;  %v6808_v42 = vpop.permute.xlu1 %6807  ;;  %v5304_v50 = vld [vmem:[%s7904_s3 + $0x20] sm:$0x1] }
 0x1b1   : > { %2067 = vst.msk [vmem:[#allocation2 + $0xae] sm:$0x3] %vm2036_vm14, %v6799_v48  ;;  %v6810_v16 = vunpack.i.h.bf16 %v6808_v42  ;;  %v6809_v10 = vunpack.i.l.bf16 %v6808_v42  ;;  %7012 = vrot.lane.b32.xlu0 %v7011_v28, %s7734_s15  ;;  %7032 = vrot.lane.b32.xlu1 %v9049_v38, %s7736_s4  ;;  %v5583_v48 = vld [vmem:[%s7904_s3 + $0x6c] sm:$0xe]  ;;  %v7051_v42 = vpack.i.bf16 %v3860_v25, %v9103_v13  ;;  %v5890_v28 = vunpack.c.l.bf16 %v9204_v51 }
 0x1b2   : > { %2068 = vst.msk [vmem:[#allocation2 + $0xae] sm:$0xfc] %vm2033_vm13, %v6800_v9  ;;  %v5561_v9 = vld [vmem:[%s7904_s3 + $0x14] sm:$0x1]  ;;  %v5559_v25 = vld [vmem:[%s7904_s3 + $0xc] sm:$0xe] }
 0x1b3   : > { %2407 = vst.msk [vmem:[#allocation2 + $0xb7] sm:$0xff] %vm1082_vm7, %v6924_v22  ;;  %2404 = vst.msk [vmem:[#allocation2 + $0xa7] sm:$0xff] %vm1082_vm7, %v6915_v45  ;;  %v6933_v5 = vpop.permute.xlu0 %6932  ;;  %v4172_v41 = vunpack.c.l.bf16 %v5561_v9 }
 0x1b4   : > { %2408 = vst.msk [vmem:[#allocation2 + $0xbf] sm:$0x1] %vm2374_vm15, %v6925_v39  ;;  %v6934_v54 = vunpack.i.l.bf16 %v6933_v5  ;;  %v6818_v31 = vpop.permute.xlu1 %6817  ;;  %v6935_v8 = vunpack.i.h.bf16 %v6933_v5  ;;  %v4194_v5 = vunpack.c.l.bf16 %v5583_v48 }
 0x1b5   : > { %2071 = vst.msk [vmem:[#allocation2 + $0xbe] sm:$0xfc] %vm2033_vm13, %v6809_v10  ;;  %v6820_v17 = vunpack.i.h.bf16 %v6818_v31  ;;  %v6819_v34 = vunpack.i.l.bf16 %v6818_v31  ;;  %7017 = vrot.lane.b32.xlu0 %v9049_v38, %s7735_s17  ;;  %7042 = vrot.lane.b32.xlu1 %v9049_v38, %s7734_s15  ;;  %v5349_v10 = vld [vmem:[%s7904_s3 + $0xd4] sm:$0x1] }
 0x1b6   : > { %2072 = vst.msk [vmem:[#allocation2 + $0xc6] sm:$0xff] %vm841_vm6, %v6810_v16  ;;  %v9210_v16 = vld [vmem:[%s7904_s3 + $0x10] ss:$188 sps:$4 sm:$0xff]   ;;  %v2663_v31 = vunpack.c.l.bf16 %v5349_v10 }
 0x1b7   : > { %2411 = vst.msk [vmem:[#allocation2 + $0xcf] sm:$0x1] %vm2374_vm15, %v6934_v54  ;;  %v6943_v26 = vpop.permute.xlu0 %6942  ;;  %v7026_v54 = vpack.i.bf16 %v3013_v56, %v9103_v13  ;;  %v9242_v56 = vld [vmem:[%s7904_s3 + $0x24] sm:$0xff]  }
 0x1b8   : > { %v6944_v32 = vunpack.i.l.bf16 %v6943_v26  ;;  %2075 = vst.msk [vmem:[#allocation2 + $0xd6] sm:$0xff] %vm841_vm6, %v6819_v34  ;;  %v6828_v14 = vpop.permute.xlu1 %6827  ;;  %v6945_v36 = vunpack.i.h.bf16 %v6943_v26  ;;  %v4507_v34 = vunpack.c.l.bf16 %v9210_v16 }
 0x1b9   : > { %2076 = vst.msk [vmem:[#allocation2 + $0xde] sm:$0x3] %vm2036_vm14, %v6820_v17  ;;  %v6830_v58 = vunpack.i.h.bf16 %v6828_v14  ;;  %v6829_v45 = vunpack.i.l.bf16 %v6828_v14  ;;  %7052 = vrot.lane.b32.xlu1 %v7051_v42, %s7734_s15  ;;  %v4506_v17 = vunpack.c.l.bf16 %v9156_v11  ;;  %v2618_v14 = vunpack.c.l.bf16 %v5304_v50  ;;  %v5311_v50 = vld [vmem:[%s7904_s3 + $0x3c] sm:$0xff]  }
 0x1ba   : > { %v9182_v59 = vld [vmem:[#allocation2 + $0xa0] sm:$0xff]  ;;  %2412 = vst.msk [vmem:[#allocation2 + $0xcf] sm:$0xfe] %vm2371_vm12, %v6935_v8  ;;  %2415 = vst.msk [vmem:[#allocation2 + $0xdf] sm:$0xfe] %vm2371_vm12, %v6944_v32  ;;  %v7061_v8 = vpack.i.bf16 %v4194_v5, %v4172_v41  ;;  %v7046_v41 = vpack.i.bf16 %v9101_v44, %v3836_v4  ;;  %v4170_v5 = vunpack.c.l.bf16 %v5559_v25 }
 0x1bb   : > { %v9177_v2 = vld [vmem:[#allocation2 + $0xb8] sm:$0xff]  ;;  %2694 = vst.msk [vmem:[#allocation2 + $0x9f] sm:$0xfe] %vm275_vm0, %v5854_v60  ;;  %v6953_v23 = vpop.permute.xlu0 %6952  ;;  %v7021_v60 = vpack.i.bf16 %v9101_v44, %v2989_v20  ;;  %v5633_v20 = vld [vmem:[%s7904_s3 + $0x74] sm:$0x1]  ;;  %v7071_v9 = vpack.i.bf16 %v4507_v34, %v4506_v17 }
 0x1bc   : > { %2699 = vst.msk [vmem:[#allocation2 + $0xbf] sm:$0x1] %vm279_vm2, %v2651_v21  ;;  %v6955_v39 = vunpack.i.h.bf16 %v6953_v23  ;;  %v6954_v22 = vunpack.i.l.bf16 %v6953_v23  ;;  %v6838_v1 = vpop.permute.xlu1 %6837  ;;  %v9224_v32 = vld [vmem:[%s7904_s3 + $0x1c] ss:$84 sps:$4 sm:$0xff]   ;;  %v5307_v23 = vld [vmem:[%s7904_s3 + $0x2c] sm:$0x1] }
 0x1bd   : > { %2079 = vst.msk [vmem:[#allocation2 + $0xee] sm:$0x3] %vm2036_vm14, %v6829_v45  ;;  %v6840_v27 = vunpack.i.h.bf16 %v6838_v1  ;;  %v6839_v29 = vunpack.i.l.bf16 %v6838_v1  ;;  %7022 = vrot.lane.b32.xlu0 %v7021_v60, %s7735_s17  ;;  %v5305_v45 = vld [vmem:[%s7904_s3 + $0x24] sm:$0xff]   ;;  %7062 = vrot.lane.b32.xlu1 %v7061_v8, %s7735_s17  ;;  %v4531_v48 = vunpack.c.h.bf16 %v9224_v32  ;;  %v2621_v10 = vunpack.c.l.bf16 %v5307_v23  ;;  %v5414_v34 = vld [vmem:[%s7904_s3 + $0x8c] sm:$0x1] }
 0x1be   : > { %2080 = vst.msk [vmem:[#allocation2 + $0xee] sm:$0xfc] %vm2033_vm13, %v6830_v58  ;;  %v9274_v17 = vld [vmem:[%s7904_s3 + $0x84] sm:$0xff]   ;;  %v5609_v23 = vld [vmem:[%s7904_s3 + $0x14] sm:$0x1] }
 0x1bf   : > { %2416 = vst.msk [vmem:[#allocation2 + $0xe7] sm:$0xff] %vm1082_vm7, %v6945_v36  ;;  %2419 = vst.msk [vmem:[#allocation2 + $0xf7] sm:$0xff] %vm1082_vm7, %v6954_v22 }
 0x1c0   : > { %2420 = vst.msk [vmem:[#allocation2 + $0xff] sm:$0x1] %vm2374_vm15, %v6955_v39  ;;  %v6848_v21 = vpop.permute.xlu1 %6847  ;;  %v4532_v39 = vunpack.c.l.bf16 %v5633_v20 }
 0x1c1   : > { %2372 = vst.msk [vmem:[#allocation2 - $0x1] sm:$0xfe] %vm2371_vm12, %v6839_v29  ;;  %v6850_v26 = vunpack.i.h.bf16 %v6848_v21  ;;  %v6849_v15 = vunpack.i.l.bf16 %v6848_v21  ;;  %7027 = vrot.lane.b32.xlu0 %v7026_v54, %s7735_s17  ;;  %v2620_v29 = vunpack.c.h.bf16 %v5305_v45  ;;  %v5585_v54 = vld [vmem:[%s7904_s3 + $0x74] sm:$0x1]  ;;  %v5310_v21 = vld [vmem:[%s7904_s3 + $0x38] sm:$0x1]  ;;  %7072 = vrot.lane.b32.xlu1 %v7071_v9, %s7736_s4 }
 0x1c2   : > { %2373 = vst.msk [vmem:[#allocation2 + $0x7] sm:$0xff] %vm1082_vm7, %v6840_v27  ;;  %v4171_v27 = vunpack.c.h.bf16 %v9164_v46  ;;  %v9262_v46 = vld [vmem:[%s7904_s3 + $0x6c] sm:$0xff]   ;;  %v7081_v47 = vpack.i.bf16 %v4532_v39, %v4531_v48  ;;  %v2624_v25 = vunpack.c.l.bf16 %v5310_v21 }
 0x1c3   : > { %2377 = vst.msk [vmem:[#allocation2 + $0x17] sm:$0xff] %vm1082_vm7, %v6849_v15  ;;  %v4195_v4 = vunpack.c.h.bf16 %v9262_v46  ;;  %v5316_v48 = vld [vmem:[%s7904_s3 + $0x50] sm:$0x1] }
 0x1c4   : > { %2378 = vst.msk [vmem:[#allocation2 + $0x1f] sm:$0x1] %vm2374_vm15, %v6850_v26  ;;  %v6858_v58 = vpop.permute.xlu1 %6857  ;;  %v7056_v20 = vpack.i.bf16 %v4171_v27, %v4170_v5  ;;  %v9293_v27 = vld [vmem:[%s7904_s3 + $0x84] sm:$0xff]   ;;  %v2630_v21 = vunpack.c.l.bf16 %v5316_v48 }
 0x1c5   : > { %v6860_v22 = vunpack.i.h.bf16 %v6858_v58  ;;  %v6859_v60 = vunpack.i.l.bf16 %v6858_v58  ;;  %7037 = vrot.lane.b32.xlu0 %v9110_v18, %s7736_s4  ;;  %v2619_v18 = vunpack.c.l.bf16 %v5305_v45  ;;  %v2625_v58 = vunpack.c.l.bf16 %v5311_v50  ;;  %7082 = vrot.lane.b32.xlu1 %v7081_v47, %s7736_s4  ;;  %v9336_v48 = vld [vmem:[%s7904_s3 + $0x84] sm:$0xff]  }
 0x1c6   : > { %v9230_v36 = vld [vmem:[#allocation2 + $0xe0] sm:$0xff]  ;;  %v2626_v45 = vunpack.c.h.bf16 %v5311_v50  ;;  %v6110_v50 = vld [vmem:[%s7904_s3 + $0x90] sm:$0xff]   ;;  %v3325_v33 = vunpack.c.h.bf16 %v9293_v27  ;;  %v3861_v53 = vunpack.c.l.bf16 %v9293_v27  ;;  %v5875_v27 = vunpack.c.h.bf16 %v9135_v6 }
 0x1c7   : > { %v9232_v11 = vld [vmem:[#allocation2 + $0xf8] sm:$0xff]  ;;  %2706 = vst.msk [vmem:[#allocation2 + $0xdf] sm:$0xfe] %vm275_vm0, %v5890_v28 }
 0x1c8   : > { %2711 = vst.msk [vmem:[#allocation2 + $0xff] sm:$0x1] %vm279_vm2, %v2663_v31  ;;  %v9266_v28 = vld [vmem:[%s7904_s3 + $0x24] sm:$0xff]   ;;  %v6868_v30 = vpop.permute.xlu1 %6867 }
 0x1c9   : > { %v9244_v1 = vld [vmem:[#allocation2] sm:$0xff]  ;;  %v9246_v42 = vld [vmem:[#allocation2 + $0x8] sm:$0xff]  ;;  %2381 = vst.msk [vmem:[#allocation2 + $0x2f] sm:$0x1] %vm2374_vm15, %v6859_v60  ;;  %v6870_v31 = vunpack.i.h.bf16 %v6868_v30  ;;  %v6869_v8 = vunpack.i.l.bf16 %v6868_v30  ;;  %7047 = vrot.lane.b32.xlu0 %v7046_v41, %s7734_s15  ;;  %v3016_v60 = vunpack.c.l.bf16 %v5414_v34  ;;  %v4530_v30 = vunpack.c.l.bf16 %v9262_v46  ;;  %v5319_v46 = vld [vmem:[%s7904_s3 + $0x5c] sm:$0x1] }
 0x1ca   : > { %2382 = vst.msk [vmem:[#allocation2 + $0x2f] sm:$0xfe] %vm2371_vm12, %v6860_v22  ;;  %v9277_v26 = vld [vmem:[#allocation2 + $0x10] sm:$0xff]  ;;  %v3015_v22 = vunpack.c.h.bf16 %v9274_v17  ;;  %v5516_v34 = vld [vmem:[%s7904_s3 + $0x2c] sm:$0x1] }
 0x1cb   : > { %2664 = vst.msk [vmem:[#allocation2 - $0x1] sm:$0xfe] %vm275_vm0, %v5862_v0  ;;  %v2990_v0 = vunpack.c.l.bf16 %v9266_v28  ;;  %v9279_v15 = vld [vmem:[#allocation2 + $0x18] sm:$0xff]  ;;  %2667 = vst.msk [vmem:[#allocation2 + $0xf] sm:$0xfe] %vm275_vm0, %v2619_v18 }
 0x1cc   : > { %2665 = vst.msk [vmem:[#allocation2 + $0x7] sm:$0xff] %vm277_vm1, %v5863_v62  ;;  %v2991_v62 = vunpack.c.h.bf16 %v9242_v56  ;;  %2668 = vst.msk [vmem:[#allocation2 + $0x17] sm:$0xff] %vm277_vm1, %v2620_v29  ;;  %v6878_v9 = vpop.permute.xlu1 %6877 }
 0x1cd   : > { %2666 = vst.msk [vmem:[#allocation2 + $0xf] sm:$0x1] %vm279_vm2, %v2618_v14  ;;  %v4196_v14 = vunpack.c.l.bf16 %v5585_v54  ;;  %2669 = vst.msk [vmem:[#allocation2 + $0x1f] sm:$0x1] %vm279_vm2, %v2621_v10  ;;  %v6880_v41 = vunpack.i.h.bf16 %v6878_v9  ;;  %v6879_v5 = vunpack.i.l.bf16 %v6878_v9  ;;  %7057 = vrot.lane.b32.xlu0 %v7056_v20, %s7735_s17  ;;  %v4508_v54 = vunpack.c.l.bf16 %v5609_v23  ;;  %v5390_v9 = vld [vmem:[%s7904_s3 + $0x2c] sm:$0x1] }
 0x1ce   : > { %2385 = vst.msk [vmem:[#allocation2 + $0x3f] sm:$0xfe] %vm2371_vm12, %v6869_v8  ;;  %v7091_v39 = vpack.i.bf16 %v2991_v62, %v2990_v0  ;;  %v5317_v0 = vld [vmem:[%s7904_s3 + $0x54] sm:$0xff]   ;;  %v7101_v62 = vpack.i.bf16 %v3016_v60, %v3015_v22  ;;  %v2633_v23 = vunpack.c.l.bf16 %v5319_v46  ;;  %v5322_v22 = vld [vmem:[%s7904_s3 + $0x68] sm:$0x1]  ;;  %v5323_v60 = vld [vmem:[%s7904_s3 + $0x6c] sm:$0xff]  }
 0x1cf   : > { %2386 = vst.msk [vmem:[#allocation2 + $0x47] sm:$0xff] %vm1082_vm7, %v6870_v31  ;;  %v7066_v10 = vpack.i.bf16 %v4196_v14, %v4195_v4  ;;  %2389 = vst.msk [vmem:[#allocation2 + $0x57] sm:$0xff] %vm1082_vm7, %v6879_v5  ;;  %v3324_v31 = vunpack.c.l.bf16 %v9274_v17  ;;  %v7076_v14 = vpack.i.bf16 %v4530_v30, %v4508_v54  ;;  %v2631_v17 = vunpack.c.l.bf16 %v5317_v0 }
 0x1d0   : > { %v9295_v18 = vld [vmem:[#allocation2 + $0x28] sm:$0xff]  ;;  %2390 = vst.msk [vmem:[#allocation2 + $0x5f] sm:$0x1] %vm2374_vm15, %v6880_v41  ;;  %v6888_v47 = vpop.permute.xlu1 %6887  ;;  %7092 = vrot.lane.b32.xlu1 %v7091_v39, %s7735_s17  ;;  %v2637_v46 = vunpack.c.l.bf16 %v5323_v60 }
 0x1d1   : > { %v9297_v29 = vld [vmem:[#allocation2 + $0x30] sm:$0xff]  ;;  %2671 = vst.msk [vmem:[#allocation2 + $0x27] sm:$0xff] %vm277_vm1, %v5867_v40  ;;  %v6890_v8 = vunpack.i.h.bf16 %v6888_v47  ;;  %v6889_v40 = vunpack.i.l.bf16 %v6888_v47  ;;  %7067 = vrot.lane.b32.xlu0 %v7066_v10, %s7735_s17  ;;  %v7111_v41 = vpack.i.bf16 %v3325_v33, %v3324_v31  ;;  %v3014_v47 = vunpack.c.l.bf16 %v9336_v48  ;;  %v5434_v31 = vld [vmem:[%s7904_s3 + $0x24] sm:$0xff]  }
 0x1d2   : > { %2672 = vst.msk [vmem:[#allocation2 + $0x2f] sm:$0x1] %vm279_vm2, %v2624_v25  ;;  %v9321_v25 = vunpack.c.l.bf16 %v6110_v50  ;;  %v5562_v10 = vld [vmem:[%s7904_s3 + $0x18] sm:$0xe] }
 0x1d3   : > { %2673 = vst.msk [vmem:[#allocation2 + $0x2f] sm:$0xfe] %vm275_vm0, %v2625_v58  ;;  %v9323_v58 = vunpack.c.h.bf16 %v6110_v50  ;;  %v2992_v50 = vunpack.c.l.bf16 %v5390_v9 }
 0x1d4   : > { %2674 = vst.msk [vmem:[#allocation2 + $0x37] sm:$0xff] %vm277_vm1, %v2626_v45  ;;  %v2632_v45 = vunpack.c.h.bf16 %v5317_v0  ;;  %v6898_v39 = vpop.permute.xlu1 %6897  ;;  %7102 = vrot.lane.b32.xlu1 %v7101_v62, %s7735_s17  ;;  %v2636_v0 = vunpack.c.l.bf16 %v5322_v22  ;;  %v2638_v62 = vunpack.c.h.bf16 %v5323_v60  ;;  %v3308_v60 = vunpack.c.l.bf16 %v5434_v31 }
 0x1d5   : > { %2393 = vst.msk [vmem:[#allocation2 + $0x6f] sm:$0x1] %vm2374_vm15, %v6889_v40  ;;  %v6900_v5 = vunpack.i.h.bf16 %v6898_v39  ;;  %7077 = vrot.lane.b32.xlu0 %v7076_v14, %s7736_s4  ;;  %v4174_v14 = vunpack.c.l.bf16 %v9224_v32  ;;  %v7096_v22 = vpack.i.bf16 %v3014_v47, %v2992_v50 }
 0x1d6   : > { %v9316_v20 = vld [vmem:[#allocation2 + $0x40] sm:$0xff]  ;;  %v9318_v4 = vld [vmem:[#allocation2 + $0x48] sm:$0xff]  ;;  %2394 = vst.msk [vmem:[#allocation2 + $0x6f] sm:$0xfe] %vm2371_vm12, %v6890_v8  ;;  %v9343_v54 = vld [vmem:[#allocation2 + $0x50] sm:$0xff] }
 0x1d7   : > { %2676 = vst.msk [vmem:[#allocation2 + $0x3f] sm:$0xfe] %vm275_vm0, %v5870_v12  ;;  %v3839_v12 = vunpack.c.l.bf16 %v5516_v34  ;;  %v9345_v30 = vld [vmem:[#allocation2 + $0x58] sm:$0xff]  ;;  %2679 = vst.msk [vmem:[#allocation2 + $0x4f] sm:$0xfe] %vm275_vm0, %v2631_v17  ;;  %v4173_v34 = vunpack.c.l.bf16 %v5562_v10 }
 0x1d8   : > { %2677 = vst.msk [vmem:[#allocation2 + $0x47] sm:$0xff] %vm277_vm1, %v5871_v3  ;;  %v6899_v3 = vunpack.i.l.bf16 %v6898_v39  ;;  %2680 = vst.msk [vmem:[#allocation2 + $0x57] sm:$0xff] %vm277_vm1, %v2632_v45  ;;  %v6908_v33 = vpop.permute.xlu1 %6907  ;;  %v5328_v8 = vld [vmem:[%s7904_s3 + $0x80] sm:$0x1]  ;;  %7112 = vrot.lane.b32.xlu1 %v7111_v41, %s7736_s4  ;;  %v9364_v45 = vld [vmem:[%s7904_s3 + $0x28] ss:$84 sps:$4 sm:$0xff]   ;;  %v3309_v41 = vunpack.c.h.bf16 %v5434_v31  ;;  %v2453_v31 = vpack.c.bf16 %v9246_v42, %v9244_v1 }
 0x1d9   : > { %2678 = vst.msk [vmem:[#allocation2 + $0x4f] sm:$0x1] %vm279_vm2, %v2630_v21  ;;  %v9350_v21 = vpack.i.bf16 %v9323_v58, %v9321_v25  ;;  %2681 = vst.msk [vmem:[#allocation2 + $0x5f] sm:$0x1] %vm279_vm2, %v2633_v23  ;;  %v7121_v40 = vpack.i.bf16 %v3861_v53, %v3839_v12  ;;  %v6910_v17 = vunpack.i.h.bf16 %v6908_v33  ;;  %v6909_v9 = vunpack.i.l.bf16 %v6908_v33  ;;  %v5588_v23 = vld [vmem:[%s7904_s3 + $0x80] sm:$0x1] }
 0x1da   : > { %2397 = vst.msk [vmem:[#allocation2 + $0x7f] sm:$0xfe] %vm2371_vm12, %v6899_v3  ;;  %v2642_v32 = vunpack.c.l.bf16 %v5328_v8  ;;  %v5514_v12 = vld [vmem:[%s7904_s3 + $0x24] sm:$0xff]   ;;  %v5331_v3 = vld [vmem:[%s7904_s3 + $0x8c] sm:$0x1]  ;;  %v7131_v10 = vpack.i.bf16 %v4174_v14, %v4173_v34  ;;  %v4198_v50 = vunpack.c.h.bf16 %v9364_v45  ;;  %v4199_v47 = vunpack.c.l.bf16 %v5588_v23 }
 0x1db   : > { %2398 = vst.msk [vmem:[#allocation2 + $0x87] sm:$0xff] %vm1082_vm7, %v6900_v5  ;;  %7087 = vrot.lane.b32.xlu0 %v9350_v21, %s7734_s15  ;;  %2401 = vst.msk [vmem:[#allocation2 + $0x97] sm:$0xff] %vm1082_vm7, %v6909_v9  ;;  %v5329_v5 = vld [vmem:[%s7904_s3 + $0x84] sm:$0xff]   ;;  %v2645_v14 = vunpack.c.l.bf16 %v5331_v3  ;;  %v5540_v9 = vld [vmem:[%s7904_s3 + $0x8c] sm:$0x1] }
 0x1dc   : > { %v9367_v6 = vld [vmem:[#allocation2 + $0x68] sm:$0xff]  ;;  %2402 = vst.msk [vmem:[#allocation2 + $0x9f] sm:$0x1] %vm2374_vm15, %v6910_v17  ;;  %v6918_v53 = vpop.permute.xlu1 %6917  ;;  %7122 = vrot.lane.b32.xlu1 %v7121_v40, %s7734_s15  ;;  %v3837_v17 = vunpack.c.l.bf16 %v5514_v12  ;;  %v3838_v40 = vunpack.c.h.bf16 %v5514_v12  ;;  %v2643_v1 = vunpack.c.l.bf16 %v5329_v5  ;;  %v2644_v42 = vunpack.c.h.bf16 %v5329_v5  ;;  %v5372_v12 = vld [vmem:[%s7904_s3 + $0x9c] sm:$0xff]  }
 0x1dd   : > { %v9369_v39 = vld [vmem:[#allocation2 + $0x70] sm:$0xff]  ;;  %2683 = vst.msk [vmem:[#allocation2 + $0x67] sm:$0xff] %vm277_vm1, %v5875_v27  ;;  %v6920_v27 = vunpack.i.h.bf16 %v6918_v53  ;;  %v6919_v33 = vunpack.i.l.bf16 %v6918_v53  ;;  %v7141_v55 = vpack.i.bf16 %v4199_v47, %v4198_v50  ;;  %v3863_v50 = vunpack.c.l.bf16 %v5540_v9 }
 0x1de   : > { %2684 = vst.msk [vmem:[#allocation2 + $0x6f] sm:$0x1] %vm279_vm2, %v2636_v0  ;;  %v5612_v0 = vld [vmem:[%s7904_s3 + $0x20] sm:$0x1]  ;;  %v7116_v3 = vpack.i.bf16 %v3838_v40, %v3837_v17  ;;  %v2767_v17 = vunpack.c.h.bf16 %v5372_v12  ;;  %v2454_v40 = vpack.c.bf16 %v9279_v15, %v9277_v26  ;;  %v5343_v15 = vld [vmem:[%s7904_s3 + $0xbc] sm:$0x1] }
 0x1df   : > { %2685 = vst.msk [vmem:[#allocation2 + $0x6f] sm:$0xfe] %vm275_vm0, %v2637_v46  ;;  %7097 = vrot.lane.b32.xlu0 %v7096_v22, %s7735_s17  ;;  %v5334_v22 = vld [vmem:[%s7904_s3 + $0x98] sm:$0x1] }
 0x1e0   : > { %2686 = vst.msk [vmem:[#allocation2 + $0x77] sm:$0xff] %vm277_vm1, %v2638_v62  ;;  %v7106_v62 = vpack.i.bf16 %v3309_v41, %v3308_v60  ;;  %v6928_v23 = vpop.permute.xlu1 %6927  ;;  %v9400_v60 = vld [vmem:[%s7904_s3 + $0x9c] ss:$24 sps:$4 sm:$0xff]   ;;  %7132 = vrot.lane.b32.xlu1 %v7131_v10, %s7735_s17  ;;  %v3862_v10 = vunpack.c.h.bf16 %v9336_v48  ;;  %v5340_v48 = vld [vmem:[%s7904_s3 + $0xb0] sm:$0x1] }
 0x1e1   : > { %2405 = vst.msk [vmem:[#allocation2 + $0xaf] sm:$0x1] %vm2374_vm15, %v6919_v33  ;;  %v6930_v41 = vunpack.i.h.bf16 %v6928_v23  ;;  %v5564_v33 = vld [vmem:[%s7904_s3 + $0x20] sm:$0x1]  ;;  %v2654_v26 = vunpack.c.l.bf16 %v5340_v48  ;;  %v5543_v48 = vld [vmem:[%s7904_s3 + $0x98] sm:$0x1] }
 0x1e2   : > { %v2437_v46 = vld [vmem:[#allocation2 + $0x80] sm:$0xff]  ;;  %v2438_v8 = vld [vmem:[#allocation2 + $0x88] sm:$0xff]  ;;  %2406 = vst.msk [vmem:[#allocation2 + $0xaf] sm:$0xfe] %vm2371_vm12, %v6920_v27  ;;  %v2439_v53 = vld [vmem:[#allocation2 + $0x90] sm:$0xff]  ;;  %v2649_v27 = vunpack.c.l.bf16 %v9400_v60 }
 0x1e3   : > { %v2461_v34 = vpack.c.bf16 %v2438_v8, %v2437_v46  ;;  %2688 = vst.msk [vmem:[#allocation2 + $0x7f] sm:$0xfe] %vm275_vm0, %v5850_v7  ;;  %v4511_v7 = vunpack.c.l.bf16 %v5612_v0  ;;  %v2440_v5 = vld [vmem:[#allocation2 + $0x98] sm:$0xff]  ;;  %7107 = vrot.lane.b32.xlu0 %v7106_v62, %s7736_s4  ;;  %2691 = vst.msk [vmem:[#allocation2 + $0x8f] sm:$0xfe] %vm275_vm0, %v2643_v1  ;;  %v2766_v62 = vunpack.c.l.bf16 %v5372_v12 }
 0x1e4   : > { %2689 = vst.msk [vmem:[#allocation2 + $0x87] sm:$0xff] %vm277_vm1, %v5851_v24  ;;  %v2475_v24 = vsel %vm1164_vm10, %v2453_v31, 0  ;;  %v2462_v47 = vpack.c.bf16 %v2440_v5, %v2439_v53  ;;  %2692 = vst.msk [vmem:[#allocation2 + $0x97] sm:$0xff] %vm277_vm1, %v2644_v42  ;;  %v2648_v31 = vunpack.c.l.bf16 %v5334_v22  ;;  %v5586_v0 = vld [vmem:[%s7904_s3 + $0x78] sm:$0xe]  ;;  %v6938_v46 = vpop.permute.xlu1 %6937  ;;  %7142 = vrot.lane.b32.xlu1 %v7141_v55, %s7735_s17  ;;  %v4175_v22 = vunpack.c.l.bf16 %v5564_v33 }
 0x1e5   : > { %2690 = vst.msk [vmem:[#allocation2 + $0x8f] sm:$0x1] %vm279_vm2, %v2642_v32  ;;  %6225 = vmatprep.subr.msk.bf16.mxu1 %vm1164_vm10, %v2461_v34  ;;  %v6929_v32 = vunpack.i.l.bf16 %v6928_v23  ;;  %2693 = vst.msk [vmem:[#allocation2 + $0x9f] sm:$0x1] %vm279_vm2, %v2645_v14  ;;  %v7151_v8 = vpack.i.bf16 %v9101_v44, %v4511_v7  ;;  %v6940_v34 = vunpack.i.h.bf16 %v6938_v46  ;;  %v6939_v1 = vunpack.i.l.bf16 %v6938_v46  ;;  %v5393_v42 = vld [vmem:[%s7904_s3 + $0x38] sm:$0x1] }
 0x1e6   : > { %6164 = vmatpush3.bf16.xpose.msra.mxu1 %v2475_v24  ;;  %2410 = vst.msk [vmem:[#allocation2 + $0xc7] sm:$0xff] %vm1082_vm7, %v6930_v41  ;;  %v7126_v23 = vpack.i.bf16 %v3863_v50, %v3862_v10  ;;  %v4197_v55 = vunpack.c.l.bf16 %v5586_v0  ;;  %v7161_v24 = vpack.i.bf16 %v2767_v17, %v2766_v62  ;;  %v2995_v41 = vunpack.c.l.bf16 %v5393_v42  ;;  %v5636_v50 = vld [vmem:[%s7904_s3 + $0x80] sm:$0x1] }
 0x1e7   : > { %2409 = vst.msk [vmem:[#allocation2 + $0xbf] sm:$0xfe] %vm2371_vm12, %v6929_v32  ;;  %6226 = vmatprep.subr.msk.bf16.mxu1 %vm1164_vm10, %v2462_v47  ;;  %7117 = vrot.lane.b32.xlu0 %v7116_v3, %s7734_s15  ;;  %v10403_v5 = vunpack.c.h.bf16 %v8694_v35  ;;  %v2655_v3 = vunpack.c.h.bf16 %v9400_v60  ;;  %v2657_v10 = vunpack.c.l.bf16 %v5343_v15  ;;  %v5346_v47 = vld [vmem:[%s7904_s3 + $0xc8] sm:$0x1]  ;;  %v4535_v60 = vunpack.c.l.bf16 %v5636_v50  ;;  %v5639_v15 = vld [vmem:[%s7904_s3 + $0x8c] sm:$0x1] }
 0x1e8   : > { %v2442_v14 = vld [vmem:[#allocation2 + $0xa8] sm:$0xff]  ;;  %2413 = vst.msk [vmem:[#allocation2 + $0xd7] sm:$0xff] %vm1082_vm7, %v6939_v1  ;;  %v6948_v7 = vpop.permute.xlu1 %6947  ;;  %7152 = vrot.lane.b32.xlu1 %v7151_v8, %s7736_s4  ;;  %v7136_v53 = vpack.i.bf16 %v4197_v55, %v4175_v22  ;;  %v5891_v33 = vunpack.c.h.bf16 %v9204_v51  ;;  %v2660_v0 = vunpack.c.l.bf16 %v5346_v47  ;;  %v2661_v46 = vunpack.c.h.bf16 %v9210_v16 }
 0x1e9   : > { %v2443_v9 = vld [vmem:[#allocation2 + $0xb0] sm:$0xff]  ;;  %v2463_v44 = vpack.c.bf16 %v2442_v14, %v9182_v59  ;;  %2695 = vst.msk [vmem:[#allocation2 + $0xa7] sm:$0xff] %vm277_vm1, %v5855_v49  ;;  %v2478_v59 = vsel %vm1164_vm10, %v2454_v40, 0  ;;  %v6950_v52 = vunpack.i.h.bf16 %v6948_v7  ;;  %v6949_v49 = vunpack.i.l.bf16 %v6948_v7  ;;  %v5589_v40 = vld [vmem:[%s7904_s3 + $0x84] sm:$0xe] }
 0x1ea   : > { %2696 = vst.msk [vmem:[#allocation2 + $0xaf] sm:$0x1] %vm279_vm2, %v2648_v31  ;;  %v2455_v31 = vpack.c.bf16 %v9295_v18, %v9115_v61  ;;  %v2464_v18 = vpack.c.bf16 %v9177_v2, %v2443_v9  ;;  %v7156_v51 = vpack.i.bf16 %v4535_v60, %v9103_v13  ;;  %v5417_v2 = vld [vmem:[%s7904_s3 + $0x98] sm:$0x1]  ;;  %v3866_v16 = vunpack.c.l.bf16 %v5543_v48  ;;  %v5565_v7 = vld [vmem:[%s7904_s3 + $0x24] sm:$0xe] }
 0x1eb   : > { %2697 = vst.msk [vmem:[#allocation2 + $0xaf] sm:$0xfe] %vm275_vm0, %v2649_v27  ;;  %7127 = vrot.lane.b32.xlu0 %v7126_v23, %s7734_s15  ;;  %v2456_v17 = vpack.c.bf16 %v9106_v37, %v9297_v29  ;;  %v3019_v13 = vunpack.c.l.bf16 %v5417_v2  ;;  %v4200_v14 = vunpack.c.l.bf16 %v5589_v40  ;;  %v5519_v29 = vld [vmem:[%s7904_s3 + $0x38] sm:$0x1]  ;;  %v4512_v22 = vunpack.c.l.bf16 %v9242_v56  ;;  %v5454_v2 = vld [vmem:[%s7904_s3 + $0x9c] sm:$0xff]  }
 0x1ec   : > { %2414 = vst.msk [vmem:[#allocation2 + $0xdf] sm:$0x1] %vm2374_vm15, %v6940_v34  ;;  %2417 = vst.msk [vmem:[#allocation2 + $0xef] sm:$0x1] %vm2374_vm15, %v6949_v49  ;;  %7162 = vrot.lane.b32.xlu1 %v7161_v24, %s7734_s15  ;;  %v2481_v61 = vsel %vm1164_vm10, %v2455_v31, 0  ;;  %v7201_v1 = vpack.i.bf16 %v3866_v16, %v9323_v58  ;;  %v4513_v55 = vunpack.c.l.bf16 %v9364_v45 }
 0x1ed   : > { %v2446_v12 = vld [vmem:[#allocation2 + $0xc8] sm:$0xff]  ;;  %2418 = vst.msk [vmem:[#allocation2 + $0xef] sm:$0xfe] %vm2371_vm12, %v6950_v52  ;;  %v2484_v9 = vsel %vm1164_vm10, %v2456_v17, 0  ;;  %v7176_v37 = vpack.i.bf16 %v3019_v13, %v9323_v58  ;;  %v5394_v52 = vld [vmem:[%s7904_s3 + $0x3c] sm:$0xff]  }
 0x1ee   : > { %6166 = vmatpush3.bf16.xpose.msra.mxu1 %v2478_v59  ;;  %v2445_v32 = vld [vmem:[#allocation2 + $0xc0] sm:$0xff]  ;;  %2702 = vst.msk [vmem:[#allocation2 + $0xcf] sm:$0x1] %vm279_vm2, %v2654_v26  ;;  %v7221_v56 = vpack.i.bf16 %v4513_v55, %v4512_v22  ;;  %v4538_v59 = vunpack.c.l.bf16 %v5639_v15  ;;  %v2997_v31 = vunpack.c.h.bf16 %v5394_v52  ;;  %v2460_v15 = vpack.c.bf16 %v9143_v57, %v9369_v39  ;;  %v7599_v39 = vld [vmem:[#allocation6 + $0x4] sm:$0xf] }
 0x1ef   : > { %6227 = vmatprep.subr.msk.bf16.mxu1 %vm1164_vm10, %v2463_v44  ;;  %2700 = vst.msk [vmem:[#allocation2 + $0xbf] sm:$0xfe] %vm275_vm0, %v5858_v63  ;;  %v7171_v63 = vpack.i.bf16 %v9321_v25, %v2995_v41  ;;  %v9453_v35 = vld [vmem:[#allocation2 + $0xd0] sm:$0xff]  ;;  %7137 = vrot.lane.b32.xlu0 %v7136_v53, %s7735_s17  ;;  %v2465_v34 = vpack.c.bf16 %v2446_v12, %v2445_v32  ;;  %v4176_v32 = vunpack.c.l.bf16 %v5565_v7  ;;  %v4177_v12 = vunpack.c.h.bf16 %v9266_v28 }
 0x1f0   : > { %2701 = vst.msk [vmem:[#allocation2 + $0xc7] sm:$0xff] %vm277_vm1, %v10403_v5  ;;  %v2457_v44 = vpack.c.bf16 %v9318_v4, %v9316_v20  ;;  %v9500_v26 = vld [vmem:[%s7904_s3 + $0x1c] ss:$108 sps:$4 sm:$0xff]  }
 0x1f1   : > { %2703 = vst.msk [vmem:[#allocation2 + $0xcf] sm:$0xfe] %vm275_vm0, %v2655_v3  ;;  %7172 = vrot.lane.b32.xlu1 %v7171_v63, %s7735_s17  ;;  %v4537_v45 = vunpack.c.h.bf16 %v9500_v26  ;;  %v5590_v5 = vld [vmem:[%s7904_s3 + $0x84] sm:$0xff]   ;;  %v5591_v3 = vld [vmem:[%s7904_s3 + $0x8c] sm:$0x1]  ;;  %v2996_v63 = vunpack.c.l.bf16 %v5394_v52  ;;  %v7206_v28 = vpack.i.bf16 %v4177_v12, %v4176_v32 }
 0x1f2   : > { %v2487_v20 = vsel %vm1164_vm10, %v2457_v44, 0  ;;  %v4202_v60 = vunpack.c.l.bf16 %v5591_v3  ;;  %v5487_v12 = vld [vmem:[%s7904_s3 + $0x78] sm:$0xe]  ;;  %v5489_v3 = vld [vmem:[%s7904_s3 + $0x80] sm:$0x1] }
 0x1f3   : > { %v9455_v27 = vld [vmem:[#allocation2 + $0xd8] sm:$0xff]  ;;  %v9466_v8 = vld [vmem:[#allocation2 + $0xe8] sm:$0xff]  ;;  %7147 = vrot.lane.b32.xlu0 %v9049_v38, %s7736_s4  ;;  %v7231_v47 = vpack.i.bf16 %v4538_v59, %v4537_v45 }
 0x1f4   : > { %2705 = vst.msk [vmem:[#allocation2 + $0xdf] sm:$0x1] %vm279_vm2, %v2657_v10  ;;  %v9468_v62 = vld [vmem:[#allocation2 + $0xf0] sm:$0xff]  ;;  %2708 = vst.msk [vmem:[#allocation2 + $0xef] sm:$0x1] %vm279_vm2, %v2660_v0  ;;  %v2466_v4 = vpack.c.bf16 %v9455_v27, %v9453_v35  ;;  %v4201_v27 = vunpack.c.h.bf16 %v5590_v5 }
 0x1f5   : > { %2707 = vst.msk [vmem:[#allocation2 + $0xe7] sm:$0xff] %vm277_vm1, %v5891_v33  ;;  %7182 = vrot.lane.b32.xlu1 %v9077_v43, %s7736_s4  ;;  %v5567_v38 = vld [vmem:[%s7904_s3 + $0x2c] sm:$0x1]  ;;  %v9522_v35 = vld [vmem:[%s7904_s3 + $0x9c] sm:$0xff]   ;;  %v2467_v33 = vpack.c.bf16 %v9466_v8, %v9230_v36  ;;  %v2468_v55 = vpack.c.bf16 %v9232_v11, %v9468_v62  ;;  %v2496_v62 = vsel %vm1164_vm10, %v2460_v15, 0 }
 0x1f6   : > { %6168 = vmatpush3.bf16.xpose.msra.mxu1 %v2481_v61  ;;  %2709 = vst.msk [vmem:[#allocation2 + $0xef] sm:$0xfe] %vm275_vm0, %v2661_v46  ;;  %v4178_v42 = vunpack.c.l.bf16 %v5567_v38  ;;  %v5615_v0 = vld [vmem:[%s7904_s3 + $0x2c] sm:$0x1]  ;;  %v3021_v61 = vunpack.c.h.bf16 %v9522_v35  ;;  %v7216_v16 = vpack.i.bf16 %v4202_v60, %v4201_v27  ;;  %v4536_v38 = vunpack.c.l.bf16 %v5590_v5  ;;  %v9572_v5 = vld [vmem:[%s7904_s3 + $0x7c] ss:$12 sps:$4 sm:$0xff]  }
 0x1f7   : > { %6228 = vmatprep.subr.msk.bf16.mxu1 %vm1164_vm10, %v2464_v18  ;;  %7157 = vrot.lane.b32.xlu0 %v7156_v51, %s7736_s4  ;;  %v6958_v58 = vpop.permute.xlu0 %6957  ;;  %v4514_v17 = vunpack.c.l.bf16 %v5615_v0  ;;  %v3691_v60 = vunpack.c.l.bf16 %v9500_v26  ;;  %vm10404_vm0 = vcmask 57376  }
 0x1f8   : > { %v7211_v23 = vpack.i.bf16 %v4200_v14, %v4178_v42  ;;  %v6960_v24 = vunpack.i.h.bf16 %v6958_v58  ;;  %v6959_v41 = vunpack.i.l.bf16 %v6958_v58  ;;  %v2459_v42 = vpack.c.bf16 %v9367_v6, %v9149_v19  ;;  %vm10405_vm2 = vmmov %vm10404_vm0 }
 0x1f9   : > { %7192 = vrot.lane.b32.xlu1 %v9077_v43, %s7734_s15  ;;  %v7226_v14 = vpack.i.bf16 %v4536_v38, %v4514_v17 }
 0x1fa   : > { %2904 = vst.msk [vmem:[#allocation2] sm:$0xff] %vm518_vm3, %v6959_v41  ;;  %2905 = vst.msk [vmem:[#allocation2 + $0x8] sm:$0xff] %vm518_vm3, %v6960_v24  ;;  %v2493_v22 = vsel %vm1164_vm10, %v2459_v42, 0 }
 0x1fb   : > { %7167 = vrot.lane.b32.xlu0 %v9077_v43, %s7735_s17  ;;  %v3842_v43 = vunpack.c.l.bf16 %v5519_v29  ;;  %v6963_v53 = vpop.permute.xlu0 %6962 }
 0x1fc   : > { %v6965_v10 = vunpack.i.h.bf16 %v6963_v53  ;;  %v6964_v50 = vunpack.i.l.bf16 %v6963_v53 }
 0x1fd   : > { %7202 = vrot.lane.b32.xlu1 %v7201_v1, %s7734_s15  ;;  %v7196_v49 = vpack.i.bf16 %v9321_v25, %v3842_v43  ;;  %v2458_v25 = vpack.c.bf16 %v9345_v30, %v9343_v54  ;;  %v7241_v30 = vpack.i.bf16 %v2997_v31, %v2996_v63  ;;  %v3329_v1 = vunpack.c.h.bf16 %v5454_v2  ;;  %v5465_v31 = vld [vmem:[%s7904_s3 + $0x20] sm:$0x1] }
 0x1fe   : > { %6170 = vmatpush3.bf16.xpose.msra.mxu1 %v2484_v9  ;;  %2906 = vst.msk [vmem:[#allocation2 + $0x10] sm:$0xff] %vm518_vm3, %v6964_v50  ;;  %2907 = vst.msk [vmem:[#allocation2 + $0x18] sm:$0xff] %vm518_vm3, %v6965_v10 }
 0x1ff   : > { %6229 = vmatprep.subr.msk.bf16.mxu1 %vm1164_vm10, %v2465_v34  ;;  %7177 = vrot.lane.b32.xlu0 %v7176_v37, %s7735_s17  ;;  %v6968_v46 = vpop.permute.xlu0 %6967  ;;  %v2490_v51 = vsel %vm1164_vm10, %v2458_v25, 0  ;;  %v3328_v34 = vunpack.c.l.bf16 %v5454_v2  ;;  %v3715_v25 = vunpack.c.l.bf16 %v9572_v5 }
 0x200   : > { %v6970_v48 = vunpack.i.h.bf16 %v6968_v46  ;;  %v6969_v54 = vunpack.i.l.bf16 %v6968_v46 }
 0x201   : > { %7212 = vrot.lane.b32.xlu1 %v7211_v23, %s7735_s17  ;;  %v7261_v23 = vpack.i.bf16 %v3329_v1, %v3328_v34 }
 0x202   : > { %2908 = vst.msk [vmem:[#allocation2 + $0x20] sm:$0xff] %vm518_vm3, %v6969_v54  ;;  %2909 = vst.msk [vmem:[#allocation2 + $0x28] sm:$0xff] %vm518_vm3, %v6970_v48 }
 0x203   : > { %7187 = vrot.lane.b32.xlu0 %v9350_v21, %s7736_s4  ;;  %v5420_v21 = vld [vmem:[%s7904_s3 + $0xa4] sm:$0x1]  ;;  %v6973_v36 = vpop.permute.xlu0 %6972 }
 0x204   : > { %v3022_v18 = vunpack.c.l.bf16 %v5420_v21  ;;  %v6975_v40 = vunpack.i.h.bf16 %v6973_v36  ;;  %v6974_v13 = vunpack.i.l.bf16 %v6973_v36  ;;  %v3714_v21 = vunpack.c.l.bf16 %v5487_v12 }
 0x205   : > { %7222 = vrot.lane.b32.xlu1 %v7221_v56, %s7736_s4 }
 0x206   : > { %6172 = vmatpush3.bf16.xpose.msra.mxu1 %v2487_v20  ;;  %v7251_v8 = vpack.i.bf16 %v3022_v18, %v3021_v61  ;;  %2910 = vst.msk [vmem:[#allocation2 + $0x30] sm:$0xff] %vm518_vm3, %v6974_v13  ;;  %2911 = vst.msk [vmem:[#allocation2 + $0x38] sm:$0xff] %vm518_vm3, %v6975_v40  ;;  %v3692_v18 = vunpack.c.l.bf16 %v5465_v31  ;;  %v5466_v13 = vld [vmem:[%s7904_s3 + $0x24] sm:$0xe] }
 0x207   : > { %6230 = vmatprep.subr.msk.bf16.mxu1 %vm1164_vm10, %v2466_v4  ;;  %7197 = vrot.lane.b32.xlu0 %v7196_v49, %s7734_s15  ;;  %v6978_v9 = vpop.permute.xlu0 %6977 }
 0x208   : > { %v6980_v37 = vunpack.i.h.bf16 %v6978_v9  ;;  %v6979_v29 = vunpack.i.l.bf16 %v6978_v9 }
 0x209   : > { %7232 = vrot.lane.b32.xlu1 %v7231_v47, %s7736_s4  ;;  %v5463_v47 = vld [vmem:[%s7904_s3 + $0x18] sm:$0xe] }
 0x20a   : > { %2912 = vst.msk [vmem:[#allocation2 + $0x40] sm:$0xff] %vm518_vm3, %v6979_v29  ;;  %2913 = vst.msk [vmem:[#allocation2 + $0x48] sm:$0xff] %vm518_vm3, %v6980_v37  ;;  %v3690_v61 = vunpack.c.l.bf16 %v5463_v47  ;;  %v3693_v37 = vunpack.c.l.bf16 %v5466_v13  ;;  %v3020_v47 = vunpack.c.l.bf16 %v9522_v35 }
 0x20b   : > { %7207 = vrot.lane.b32.xlu0 %v7206_v28, %s7735_s17  ;;  %v6983_v19 = vpop.permute.xlu0 %6982  ;;  %v3716_v28 = vunpack.c.l.bf16 %v5489_v3  ;;  %v5396_v3 = vld [vmem:[%s7904_s3 + $0x44] sm:$0x1] }
 0x20c   : > { %v6985_v6 = vunpack.i.h.bf16 %v6983_v19  ;;  %v6984_v44 = vunpack.i.l.bf16 %v6983_v19 }
 0x20d   : > { %7242 = vrot.lane.b32.xlu1 %v7241_v30, %s7735_s17 }
 0x20e   : > { %6174 = vmatpush3.bf16.xpose.msra.mxu1 %v2490_v51  ;;  %2920 = vst.msk [vmem:[#allocation2 + $0x80] sm:$0xff] %vm518_vm3, %v6984_v44  ;;  %2921 = vst.msk [vmem:[#allocation2 + $0x88] sm:$0xff] %vm518_vm3, %v6985_v6 }
 0x20f   : > { %6231 = vmatprep.subr.msk.bf16.mxu1 %vm1164_vm10, %v2467_v33  ;;  %7217 = vrot.lane.b32.xlu0 %v7216_v16, %s7735_s17  ;;  %v6988_v11 = vpop.permute.xlu0 %6987 }
 0x210   : > { %v6990_v43 = vunpack.i.h.bf16 %v6988_v11  ;;  %v6989_v58 = vunpack.i.l.bf16 %v6988_v11  ;;  %v5490_v11 = vld [vmem:[%s7904_s3 + $0x84] sm:$0xe] }
 0x211   : > { %7252 = vrot.lane.b32.xlu1 %v7251_v8, %s7735_s17 }
 0x212   : > { %3224 = vst.msk [vmem:[#allocation2 - $0x1] sm:$0xfe] %vm839_vm4, %v6989_v58 }
 0x213   : > { %7227 = vrot.lane.b32.xlu0 %v7226_v14, %s7736_s4  ;;  %3225 = vst.msk [vmem:[#allocation2 + $0x7] sm:$0xff] %vm841_vm6, %v6990_v43  ;;  %v6993_v7 = vpop.permute.xlu0 %6992 }
 0x214   : > { %v6995_v24 = vunpack.i.h.bf16 %v6993_v7  ;;  %v6994_v41 = vunpack.i.l.bf16 %v6993_v7 }
 0x215   : > { %7262 = vrot.lane.b32.xlu1 %v7261_v23, %s7736_s4 }
 0x216   : > { %6176 = vmatpush3.bf16.xpose.msra.mxu1 %v2493_v22  ;;  %3226 = vst.msk [vmem:[#allocation2 + $0xf] sm:$0x1] %vm843_vm5, %v6994_v41  ;;  %v3717_v41 = vunpack.c.l.bf16 %v5490_v11 }
 0x217   : > { %6232 = vmatprep.subr.msk.bf16.mxu1 %vm1164_vm10, %v2468_v55  ;;  %3248 = vst.msk [vmem:[#allocation2 + $0x7f] sm:$0xfe] %vm839_vm4, %v6995_v24 }
 0x21b   : > { %v6998_v57 = vpop.permute.xlu0 %6997 }
 0x21c   : > { %v7000_v56 = vunpack.i.h.bf16 %v6998_v57  ;;  %v6999_v45 = vunpack.i.l.bf16 %v6998_v57 }
 0x21e   : > { %6178 = vmatpush3.bf16.xpose.msra.mxu1 %v2496_v62  ;;  %3249 = vst.msk [vmem:[#allocation2 + $0x87] sm:$0xff] %vm841_vm6, %v6999_v45 }
 0x21f   : > { %3250 = vst.msk [vmem:[#allocation2 + $0x8f] sm:$0x1] %vm843_vm5, %v7000_v56  ;;  %v7008_v59 = vpop.permute.xlu0 %7007  ;;  %v7003_v52 = vpop.permute.xlu1 %7002 }
 0x220   : > { %v7010_v20 = vunpack.i.h.bf16 %v7008_v59  ;;  %v7009_v4 = vunpack.i.l.bf16 %v7008_v59  ;;  %v7005_v49 = vunpack.i.h.bf16 %v7003_v52  ;;  %v7004_v32 = vunpack.i.l.bf16 %v7003_v52 }
 0x222   : > { %3480 = vst.msk [vmem:[#allocation2 + $0x80] sm:$0xff] %vm1082_vm7, %v7009_v4  ;;  %3481 = vst.msk [vmem:[#allocation2 + $0x88] sm:$0xff] %vm1082_vm7, %v7010_v20 }
 0x223   : > { %v7013_v53 = vpop.permute.xlu0 %7012  ;;  %3464 = vst.msk [vmem:[#allocation2] sm:$0xff] %vm1082_vm7, %v7004_v32  ;;  %3465 = vst.msk [vmem:[#allocation2 + $0x8] sm:$0xff] %vm1082_vm7, %v7005_v49  ;;  %v7033_v63 = vpop.permute.xlu1 %7032  ;;  %v6111_v32 = vld [vmem:[%s7904_s3 + $0xa8] sm:$0xff]  }
 0x224   : > { %v7015_v10 = vunpack.i.h.bf16 %v7013_v53  ;;  %v7014_v50 = vunpack.i.l.bf16 %v7013_v53  ;;  %v7034_v33 = vunpack.i.l.bf16 %v7033_v63  ;;  %v7035_v36 = vunpack.i.h.bf16 %v7033_v63 }
 0x225   : > { %6180 = vmatmul.mubr.msk.bf16.vlgmr.msra.gmra.mrb[0].mxu1 %vm1164_vm10, %v7599_v39  ;;  %v9622_v12 = vunpack.c.l.bf16 %v6111_v32  ;;  %v9624_v53 = vunpack.c.h.bf16 %v6111_v32 }
 0x226   : > { %2922 = vst.msk [vmem:[#allocation2 + $0x90] sm:$0xff] %vm518_vm3, %v7014_v50  ;;  %2923 = vst.msk [vmem:[#allocation2 + $0x98] sm:$0xff] %vm518_vm3, %v7015_v10  ;;  %v2998_v50 = vunpack.c.l.bf16 %v5396_v3 }
 0x227   : > { %v7018_v27 = vpop.permute.xlu0 %7017  ;;  %v7043_v54 = vpop.permute.xlu1 %7042  ;;  %v9629_v10 = vpack.i.bf16 %v9624_v53, %v9622_v12 }
 0x228   : > { %v7020_v0 = vunpack.i.h.bf16 %v7018_v27  ;;  %v7019_v46 = vunpack.i.l.bf16 %v7018_v27  ;;  %v7045_v51 = vunpack.i.h.bf16 %v7043_v54  ;;  %v7044_v2 = vunpack.i.l.bf16 %v7043_v54  ;;  %v5468_v54 = vld [vmem:[%s7904_s3 + $0x2c] sm:$0x1] }
 0x229   : > { %v3512_v48 = vld [vmem:[#allocation2 + $0x80] sm:$0xff]  ;;  %v3513_v30 = vld [vmem:[#allocation2 + $0x88] sm:$0xff]  ;;  %v7246_v63 = vpack.i.bf16 %v3020_v47, %v2998_v50 }
 0x22a   : > { %3762 = vst.msk [vmem:[#allocation2 + $0x7e] sm:$0xfc] %vm1357_vm8, %v3714_v21  ;;  %v3536_v16 = vpack.c.bf16 %v3513_v30, %v3512_v48  ;;  %v3496_v26 = vld [vmem:[#allocation2] sm:$0xff]  ;;  %v3497_v17 = vld [vmem:[#allocation2 + $0x8] sm:$0xff] }
 0x22b   : > { %3227 = vst.msk [vmem:[#allocation2 + $0xf] sm:$0xfe] %vm839_vm4, %v7019_v46  ;;  %v3528_v34 = vpack.c.bf16 %v3497_v17, %v3496_v26  ;;  %v7053_v1 = vpop.permute.xlu1 %7052  ;;  %v5438_v48 = vld [vmem:[%s7904_s3 + $0x3c] sm:$0xff]   ;;  %v9645_v30 = vld [vmem:[%s7904_s3 + $0x28] ss:$12 sps:$4 sm:$0xff]  }
 0x22c   : > { %3228 = vst.msk [vmem:[#allocation2 + $0x17] sm:$0xff] %vm841_vm6, %v7020_v0  ;;  %6233 = vmatprep.subr.msk.bf16.mxu0 %vm1164_vm10, %v3536_v16  ;;  %v7055_v42 = vunpack.i.h.bf16 %v7053_v1  ;;  %v7054_v14 = vunpack.i.l.bf16 %v7053_v1  ;;  %v3313_v16 = vunpack.c.h.bf16 %v5438_v48 }
 0x22d   : > { %3763 = vst.msk [vmem:[#allocation2 + $0x86] sm:$0xff] %vm277_vm1, %v3715_v25  ;;  %3739 = vst.msk [vmem:[#allocation2 + $0x6] sm:$0xff] %vm277_vm1, %v3691_v60  ;;  %v3550_v9 = vsel %vm1164_vm10, %v3528_v34, 0 }
 0x22e   : > { %3764 = vst.msk [vmem:[#allocation2 + $0x8e] sm:$0x3] %vm1360_vm9, %v3716_v28  ;;  %3740 = vst.msk [vmem:[#allocation2 + $0xe] sm:$0x3] %vm1360_vm9, %v3692_v18  ;;  %6182 = vmatpush3.bf16.xpose.msra.mxu0 %v3550_v9  ;;  %v3718_v18 = vunpack.c.h.bf16 %v9572_v5  ;;  %v3695_v5 = vunpack.c.l.bf16 %v5468_v54  ;;  %v5570_v54 = vld [vmem:[%s7904_s3 + $0x38] sm:$0x1] }
 0x22f   : > { %v7023_v38 = vpop.permute.xlu0 %7022  ;;  %3466 = vst.msk [vmem:[#allocation2 + $0x10] sm:$0xff] %vm1082_vm7, %v7034_v33  ;;  %v7063_v15 = vpop.permute.xlu1 %7062 }
 0x230   : > { %3738 = vst.msk [vmem:[#allocation2 - $0x2] sm:$0xfc] %vm1357_vm8, %v3690_v61  ;;  %v7025_v8 = vunpack.i.h.bf16 %v7023_v38  ;;  %v7024_v40 = vunpack.i.l.bf16 %v7023_v38  ;;  %v7065_v43 = vunpack.i.h.bf16 %v7063_v15  ;;  %v7064_v58 = vunpack.i.l.bf16 %v7063_v15 }
 0x231   : > { %4074 = vst.msk [vmem:[#allocation2 - $0x1] sm:$0xfe] %vm1695_vm11, %v7044_v2  ;;  %v3312_v2 = vunpack.c.l.bf16 %v5438_v48  ;;  %v3694_v38 = vunpack.c.l.bf16 %v9645_v30 }
 0x232   : > { %4075 = vst.msk [vmem:[#allocation2 + $0x7] sm:$0xff] %vm518_vm3, %v7045_v51  ;;  %4099 = vst.msk [vmem:[#allocation2 + $0x87] sm:$0xff] %vm518_vm3, %v7054_v14  ;;  %v5492_v51 = vld [vmem:[%s7904_s3 + $0x8c] sm:$0x1] }
 0x233   : > { %3229 = vst.msk [vmem:[#allocation2 + $0x1f] sm:$0x1] %vm843_vm5, %v7024_v40  ;;  %v7028_v29 = vpop.permute.xlu0 %7027  ;;  %v7073_v25 = vpop.permute.xlu1 %7072 }
 0x234   : > { %3251 = vst.msk [vmem:[#allocation2 + $0x8f] sm:$0xfe] %vm839_vm4, %v7025_v8  ;;  %v7030_v23 = vunpack.i.h.bf16 %v7028_v29  ;;  %v7029_v22 = vunpack.i.l.bf16 %v7028_v29  ;;  %v7075_v33 = vunpack.i.h.bf16 %v7073_v25  ;;  %v7074_v0 = vunpack.i.l.bf16 %v7073_v25  ;;  %v5520_v8 = vld [vmem:[%s7904_s3 + $0x3c] sm:$0xff]   ;;  %v5469_v25 = vld [vmem:[%s7904_s3 + $0x30] sm:$0xe] }
 0x235   : > { %3467 = vst.msk [vmem:[#allocation2 + $0x18] sm:$0xff] %vm1082_vm7, %v7035_v36  ;;  %v3719_v36 = vunpack.c.l.bf16 %v5492_v51  ;;  %v3843_v14 = vunpack.c.l.bf16 %v5520_v8  ;;  %v3844_v9 = vunpack.c.h.bf16 %v5520_v8  ;;  %v3696_v48 = vunpack.c.l.bf16 %v5469_v25  ;;  %v5592_v51 = vld [vmem:[%s7904_s3 + $0x90] sm:$0xe] }
 0x236   : > { %4100 = vst.msk [vmem:[#allocation2 + $0x8f] sm:$0x1] %vm10404_vm0, %v7055_v42  ;;  %v3498_v55 = vld [vmem:[#allocation2 + $0x10] sm:$0xff]  ;;  %v7256_v42 = vpack.i.bf16 %v3313_v16, %v3312_v2 }
 0x237   : > { %3252 = vst.msk [vmem:[#allocation2 + $0x97] sm:$0xff] %vm841_vm6, %v7029_v22  ;;  %v7038_v19 = vpop.permute.xlu0 %7037  ;;  %v7083_v26 = vpop.permute.xlu1 %7082  ;;  %v9688_v2 = vld [vmem:[%s7904_s3 + $0x9c] sm:$0xff]  }
 0x238   : > { %3253 = vst.msk [vmem:[#allocation2 + $0x9f] sm:$0x1] %vm843_vm5, %v7030_v23  ;;  %v7040_v6 = vunpack.i.h.bf16 %v7038_v19  ;;  %v7039_v44 = vunpack.i.l.bf16 %v7038_v19  ;;  %v7085_v40 = vunpack.i.h.bf16 %v7083_v26  ;;  %v7084_v13 = vunpack.i.l.bf16 %v7083_v26 }
 0x239   : > { %3741 = vst.msk [vmem:[#allocation2 + $0xe] sm:$0xfc] %vm1357_vm8, %v3693_v37  ;;  %v7266_v23 = vpack.i.bf16 %v3844_v9, %v3843_v14 }
 0x23a   : > { %3482 = vst.msk [vmem:[#allocation2 + $0x90] sm:$0xff] %vm1082_vm7, %v7039_v44  ;;  %3483 = vst.msk [vmem:[#allocation2 + $0x98] sm:$0xff] %vm1082_vm7, %v7040_v6 }
 0x23b   : > { %v7048_v62 = vpop.permute.xlu0 %7047 }
 0x23c   : > { %v7050_v7 = vunpack.i.h.bf16 %v7048_v62  ;;  %v7049_v24 = vunpack.i.l.bf16 %v7048_v62  ;;  %v3499_v21 = vld [vmem:[#allocation2 + $0x18] sm:$0xff] }
 0x23d   : > { %v3529_v60 = vpack.c.bf16 %v3499_v21, %v3498_v55  ;;  %3743 = vst.msk [vmem:[#allocation2 + $0x1e] sm:$0x3] %vm1360_vm9, %v3695_v5  ;;  %v5493_v21 = vld [vmem:[%s7904_s3 + $0x90] sm:$0xe]  ;;  %v4203_v5 = vunpack.c.l.bf16 %v5592_v51 }
 0x23e   : > { %4076 = vst.msk [vmem:[#allocation2 + $0xf] sm:$0x1] %vm10405_vm2, %v7049_v24  ;;  %vm10406_vm2 = vmmov %vm10404_vm0 }
 0x23f   : > { %4098 = vst.msk [vmem:[#allocation2 + $0x7f] sm:$0xfe] %vm1695_vm11, %v7050_v7  ;;  %v7058_v57 = vpop.permute.xlu0 %7057  ;;  %v3553_v61 = vsel %vm1164_vm10, %v3529_v60, 0 }
 0x240   : > { %4412 = vst.msk [vmem:[#allocation2 + $0xe] sm:$0x3] %vm2036_vm14, %v7064_v58  ;;  %v7060_v39 = vunpack.i.h.bf16 %v7058_v57  ;;  %v7059_v56 = vunpack.i.l.bf16 %v7058_v57 }
 0x241   : > { %4434 = vst.msk [vmem:[#allocation2 + $0x7e] sm:$0xfc] %vm2033_vm13, %v7065_v43  ;;  %v3514_v45 = vld [vmem:[#allocation2 + $0x90] sm:$0xff]  ;;  %v3515_v31 = vld [vmem:[#allocation2 + $0x98] sm:$0xff] }
 0x242   : > { %3765 = vst.msk [vmem:[#allocation2 + $0x8e] sm:$0xfc] %vm1357_vm8, %v3717_v41  ;;  %v3537_v27 = vpack.c.bf16 %v3515_v31, %v3514_v45  ;;  %v7093_v37 = vpop.permute.xlu1 %7092 }
 0x243   : > { %4410 = vst.msk [vmem:[#allocation2 - $0x2] sm:$0xfc] %vm2033_vm13, %v7059_v56  ;;  %v7068_v28 = vpop.permute.xlu0 %7067  ;;  %v7095_v22 = vunpack.i.h.bf16 %v7093_v37  ;;  %v7094_v55 = vunpack.i.l.bf16 %v7093_v37 }
 0x244   : > { %4411 = vst.msk [vmem:[#allocation2 + $0x6] sm:$0xff] %vm841_vm6, %v7060_v39  ;;  %v7070_v46 = vunpack.i.h.bf16 %v7068_v28  ;;  %v7069_v35 = vunpack.i.l.bf16 %v7068_v28  ;;  %6234 = vmatprep.subr.msk.bf16.mxu0 %vm1164_vm10, %v3537_v27 }
 0x245   : > { %4746 = vst.msk [vmem:[#allocation2 - $0x1] sm:$0xfe] %vm2371_vm12, %v7074_v0  ;;  %6184 = vmatpush3.bf16.xpose.msra.mxu0 %v3553_v61 }
 0x246   : > { %4747 = vst.msk [vmem:[#allocation2 + $0x7] sm:$0xff] %vm1082_vm7, %v7075_v33  ;;  %v7103_v44 = vpop.permute.xlu1 %7102 }
 0x247   : > { %4435 = vst.msk [vmem:[#allocation2 + $0x86] sm:$0xff] %vm841_vm6, %v7069_v35  ;;  %v7078_v17 = vpop.permute.xlu0 %7077  ;;  %3231 = vst.msk [vmem:[#allocation2 + $0x27] sm:$0xff] %vm841_vm6, %v7095_v22  ;;  %v7105_v62 = vunpack.i.h.bf16 %v7103_v44  ;;  %v7104_v43 = vunpack.i.l.bf16 %v7103_v44  ;;  %v9702_v44 = vld [vmem:[%s7904_s3 + $0x90] sm:$0xff]  }
 0x248   : > { %4436 = vst.msk [vmem:[#allocation2 + $0x8e] sm:$0x3] %vm2036_vm14, %v7070_v46  ;;  %v7080_v34 = vunpack.i.h.bf16 %v7078_v17  ;;  %v7079_v1 = vunpack.i.l.bf16 %v7078_v17  ;;  %v4181_v17 = vunpack.c.l.bf16 %v5570_v54 }
 0x249   : > { %3766 = vst.msk [vmem:[#allocation2 + $0x96] sm:$0xff] %vm277_vm1, %v3718_v18  ;;  %3742 = vst.msk [vmem:[#allocation2 + $0x16] sm:$0xff] %vm277_vm1, %v3694_v38  ;;  %v3720_v18 = vunpack.c.l.bf16 %v5493_v21  ;;  %v2650_v38 = vunpack.c.h.bf16 %v9688_v2  ;;  %v5495_v21 = vld [vmem:[%s7904_s3 + $0x98] sm:$0x1] }
 0x24a   : > { %3767 = vst.msk [vmem:[#allocation2 + $0x9e] sm:$0x3] %vm1360_vm9, %v3719_v36  ;;  %v7113_v45 = vpop.permute.xlu1 %7112  ;;  %v7286_v14 = vpack.i.bf16 %v4203_v5, %v4181_v17  ;;  %v3722_v54 = vunpack.c.l.bf16 %v5495_v21 }
 0x24b   : > { %4771 = vst.msk [vmem:[#allocation2 + $0x87] sm:$0xff] %vm1082_vm7, %v7084_v13  ;;  %v7114_v32 = vunpack.i.l.bf16 %v7113_v45 }
 0x24c   : > { %4772 = vst.msk [vmem:[#allocation2 + $0x8f] sm:$0x1] %vm2374_vm15, %v7085_v40  ;;  %4748 = vst.msk [vmem:[#allocation2 + $0xf] sm:$0x1] %vm2374_vm15, %v7079_v1 }
 0x24d   : > { %4770 = vst.msk [vmem:[#allocation2 + $0x7f] sm:$0xfe] %vm2371_vm12, %v7080_v34  ;;  %v7088_v29 = vpop.permute.xlu0 %7087  ;;  %v4794_v11 = vld [vmem:[#allocation2] sm:$0xff] }
 0x24e   : > { %v7090_v19 = vunpack.i.h.bf16 %v7088_v29  ;;  %v7089_v6 = vunpack.i.l.bf16 %v7088_v29  ;;  %3230 = vst.msk [vmem:[#allocation2 + $0x1f] sm:$0xfe] %vm839_vm4, %v7094_v55  ;;  %v7123_v28 = vpop.permute.xlu1 %7122  ;;  %v6138_v29 = vld [vmem:[%s7904_s3 + $0x30] sm:$0xff]  }
 0x24f   : > { %v7125_v33 = vunpack.i.h.bf16 %v7123_v28  ;;  %v7124_v0 = vunpack.i.l.bf16 %v7123_v28  ;;  %2698 = vst.msk [vmem:[#allocation2 + $0xb7] sm:$0xff] %vm277_vm1, %v2650_v38 }
 0x250   : > { %2924 = vst.msk [vmem:[#allocation2 + $0xa0] sm:$0xff] %vm518_vm3, %v7089_v6  ;;  %2925 = vst.msk [vmem:[#allocation2 + $0xa8] sm:$0xff] %vm518_vm3, %v7090_v19  ;;  %v6026_v19 = vunpack.c.l.bf16 %v6138_v29  ;;  %v6027_v6 = vunpack.c.h.bf16 %v6138_v29 }
 0x251   : > { %v7098_v15 = vpop.permute.xlu0 %7097  ;;  %3256 = vst.msk [vmem:[#allocation2 + $0xaf] sm:$0x1] %vm843_vm5, %v7105_v62 }
 0x252   : > { %v7100_v58 = vunpack.i.h.bf16 %v7098_v15  ;;  %v7099_v7 = vunpack.i.l.bf16 %v7098_v15  ;;  %3255 = vst.msk [vmem:[#allocation2 + $0xa7] sm:$0xff] %vm841_vm6, %v7104_v43  ;;  %v7133_v16 = vpop.permute.xlu1 %7132 }
 0x253   : > { %v4811_v41 = vld [vmem:[#allocation2 + $0x88] sm:$0xff]  ;;  %4079 = vst.msk [vmem:[#allocation2 + $0x1f] sm:$0x1] %vm10404_vm0, %v7124_v0  ;;  %v7135_v36 = vunpack.i.h.bf16 %v7133_v16  ;;  %v7134_v8 = vunpack.i.l.bf16 %v7133_v16  ;;  %v5471_v0 = vld [vmem:[%s7904_s3 + $0x38] sm:$0x1] }
 0x254   : > { %v9615_v59 = vpop.f32.mrb[0].mxu0  ;;  %v4810_v24 = vld [vmem:[#allocation2 + $0x80] sm:$0xff]  ;;  %v4795_v57 = vld [vmem:[#allocation2 + $0x8] sm:$0xff]  ;;  %3232 = vst.msk [vmem:[#allocation2 + $0x2f] sm:$0x1] %vm843_vm5, %v7099_v7  ;;  %v7296_v7 = vpack.i.bf16 %v6027_v6, %v6026_v19  ;;  %v3698_v51 = vunpack.c.l.bf16 %v5471_v0 }
 0x255   : > { %v9617_v20 = vpop.f32.mrb[1].mxu0  ;;  %3254 = vst.msk [vmem:[#allocation2 + $0x9f] sm:$0xfe] %vm839_vm4, %v7100_v58  ;;  %v4834_v39 = vpack.c.bf16 %v4811_v41, %v4810_v24  ;;  %v4826_v56 = vpack.c.bf16 %v4795_v57, %v4794_v11  ;;  %v6043_v24 = vunpack.c.h.bf16 %v9702_v44  ;;  %v5642_v41 = vld [vmem:[%s7904_s3 + $0x98] sm:$0x1]  ;;  %v6115_v16 = vld [vmem:[%s7904_s3 + $0x48] sm:$0xff]  }
 0x256   : > { %v1257_v4 = vadd.f32 %v9617_v20, %v9615_v59  ;;  %v1254_v52 = vpop.f32.mrb[2].mxu0  ;;  %3484 = vst.msk [vmem:[#allocation2 + $0xa0] sm:$0xff] %vm1082_vm7, %v7114_v32  ;;  %v9713_v57 = vld [vmem:[%s7904_s3 + $0x34] ss:$108 sps:$4 sm:$0xff]  }
 0x257   : > { %v1255_v49 = vpop.f32.mrb[3].mxu0  ;;  %v9669_v52 = vld [vmem:[%s7904_s3 + $0x9c] sm:$0xff]   ;;  %6241 = vmatprep.subr.msk.bf16.mxu1 %vm1164_vm10, %v4834_v39  ;;  %v4848_v47 = vsel %vm1164_vm10, %v4826_v56, 0  ;;  %4101 = vst.msk [vmem:[#allocation2 + $0x8f] sm:$0xfe] %vm1695_vm11, %v7125_v33 }
 0x258   : > { %1258 = vadd.xlane.f32.xlu0 %v1257_v4  ;;  %v7108_v4 = vpop.permute.xlu0 %7107  ;;  %v7115_v49 = vunpack.i.h.bf16 %v7113_v45  ;;  %6200 = vmatpush3.bf16.xpose.msra.mxu1 %v4848_v47  ;;  %v3868_v31 = vunpack.c.h.bf16 %v9669_v52  ;;  %v4541_v45 = vunpack.c.l.bf16 %v5642_v41 }
 0x259   : > { %v7110_v3 = vunpack.i.h.bf16 %v7108_v4  ;;  %v7109_v50 = vunpack.i.l.bf16 %v7108_v4  ;;  %v3697_v4 = vunpack.c.l.bf16 %v9713_v57 }
 0x25a   : > { %3485 = vst.msk [vmem:[#allocation2 + $0xa8] sm:$0xff] %vm1082_vm7, %v7115_v49  ;;  %v7306_v47 = vpack.i.bf16 %v4541_v45, %v6043_v24 }
 0x25b   : > { %3468 = vst.msk [vmem:[#allocation2 + $0x20] sm:$0xff] %vm1082_vm7, %v7109_v50  ;;  %3469 = vst.msk [vmem:[#allocation2 + $0x28] sm:$0xff] %vm1082_vm7, %v7110_v3 }
 0x25c   : > { %v7118_v27 = vpop.permute.xlu0 %7117 }
 0x25d   : > { %v7120_v46 = vunpack.i.h.bf16 %v7118_v27  ;;  %v7119_v35 = vunpack.i.l.bf16 %v7118_v27  ;;  %v3516_v34 = vld [vmem:[#allocation2 + $0xa0] sm:$0xff] }
 0x25e   : > { %3768 = vst.msk [vmem:[#allocation2 + $0x9e] sm:$0xfc] %vm1357_vm8, %v3720_v18 }
 0x25f   : > { %4077 = vst.msk [vmem:[#allocation2 + $0xf] sm:$0xfe] %vm1695_vm11, %v7119_v35 }
 0x260   : > { %4078 = vst.msk [vmem:[#allocation2 + $0x17] sm:$0xff] %vm518_vm3, %v7120_v46  ;;  %v7128_v26 = vpop.permute.xlu0 %7127 }
 0x261   : > { %v7130_v40 = vunpack.i.h.bf16 %v7128_v26  ;;  %v7129_v13 = vunpack.i.l.bf16 %v7128_v26  ;;  %4413 = vst.msk [vmem:[#allocation2 + $0xe] sm:$0xfc] %vm2033_vm13, %v7134_v8  ;;  %v5399_v26 = vld [vmem:[%s7904_s3 + $0x50] sm:$0x1] }
 0x262   : > { %v3500_v1 = vld [vmem:[#allocation2 + $0x20] sm:$0xff]  ;;  %4414 = vst.msk [vmem:[#allocation2 + $0x16] sm:$0xff] %vm841_vm6, %v7135_v36  ;;  %v3501_v37 = vld [vmem:[#allocation2 + $0x28] sm:$0xff]  ;;  %v3001_v38 = vunpack.c.l.bf16 %v5399_v26 }
 0x263   : > { %3744 = vst.msk [vmem:[#allocation2 + $0x1e] sm:$0xfc] %vm1357_vm8, %v3696_v48  ;;  %v3530_v55 = vpack.c.bf16 %v3501_v37, %v3500_v1 }
 0x264   : > { %4102 = vst.msk [vmem:[#allocation2 + $0x97] sm:$0xff] %vm518_vm3, %v7129_v13  ;;  %v7138_v22 = vpop.permute.xlu0 %7137 }
 0x265   : > { %4103 = vst.msk [vmem:[#allocation2 + $0x9f] sm:$0x1] %vm10406_vm2, %v7130_v40  ;;  %v7140_v62 = vunpack.i.h.bf16 %v7138_v22  ;;  %v7139_v43 = vunpack.i.l.bf16 %v7138_v22  ;;  %v3556_v58 = vsel %vm1164_vm10, %v3530_v55, 0  ;;  %vm10407_vm2 = vmmov %vm10404_vm0 }
 0x266   : > { %3745 = vst.msk [vmem:[#allocation2 + $0x26] sm:$0xff] %vm277_vm1, %v3697_v4 }
 0x267   : > { %4437 = vst.msk [vmem:[#allocation2 + $0x8e] sm:$0xfc] %vm2033_vm13, %v7140_v62 }
 0x268   : > { %4415 = vst.msk [vmem:[#allocation2 + $0x1e] sm:$0x3] %vm2036_vm14, %v7139_v43  ;;  %v7148_v56 = vpop.permute.xlu0 %7147 }
 0x269   : > { %v7150_v3 = vunpack.i.h.bf16 %v7148_v56  ;;  %v7149_v50 = vunpack.i.l.bf16 %v7148_v56  ;;  %3746 = vst.msk [vmem:[#allocation2 + $0x2e] sm:$0x3] %vm1360_vm9, %v3698_v51 }
 0x26b   : > { %4749 = vst.msk [vmem:[#allocation2 + $0xf] sm:$0xfe] %vm2371_vm12, %v7149_v50 }
 0x26c   : > { %4750 = vst.msk [vmem:[#allocation2 + $0x17] sm:$0xff] %vm1082_vm7, %v7150_v3  ;;  %v7158_v28 = vpop.permute.xlu0 %7157  ;;  %v5496_v3 = vld [vmem:[%s7904_s3 + $0x9c] sm:$0xe] }
 0x26d   : > { %v7159_v18 = vunpack.i.l.bf16 %v7158_v28 }
 0x26e   : > { %7237 = vrot.lane.b32.xlu0 %v9629_v10, %s7734_s15 }
 0x270   : > { %v7168_v5 = vpop.permute.xlu0 %7167 }
 0x271   : > { %v7170_v40 = vunpack.i.h.bf16 %v7168_v5  ;;  %v7169_v13 = vunpack.i.l.bf16 %v7168_v5 }
 0x272   : > { %7247 = vrot.lane.b32.xlu0 %v7246_v63, %s7735_s17  ;;  %v5546_v63 = vld [vmem:[%s7904_s3 + $0xa4] sm:$0x1] }
 0x273   : > { %v3869_v60 = vunpack.c.l.bf16 %v5546_v63  ;;  %v5376_v63 = vld [vmem:[%s7904_s3 + $0xb4] sm:$0xff]   ;;  %3233 = vst.msk [vmem:[#allocation2 + $0x2f] sm:$0xfe] %vm839_vm4, %v7169_v13 }
 0x274   : > { %v2770_v27 = vunpack.c.l.bf16 %v5376_v63  ;;  %3234 = vst.msk [vmem:[#allocation2 + $0x37] sm:$0xff] %vm841_vm6, %v7170_v40 }
 0x275   : > { %v7276_v61 = vpack.i.bf16 %v3869_v60, %v3868_v31  ;;  %v9724_v31 = vld [vmem:[%s7904_s3 + $0x40] ss:$84 sps:$4 sm:$0xff]   ;;  %v2771_v60 = vunpack.c.h.bf16 %v5376_v63 }
 0x276   : > { %7257 = vrot.lane.b32.xlu0 %v7256_v42, %s7736_s4  ;;  %v3517_v42 = vld [vmem:[#allocation2 + $0xa8] sm:$0xff]  ;;  %v3721_v33 = vunpack.c.h.bf16 %v9724_v31 }
 0x277   : > { %v3538_v9 = vpack.c.bf16 %v3517_v42, %v3516_v34  ;;  %v7316_v48 = vpack.i.bf16 %v2771_v60, %v2770_v27  ;;  %3770 = vst.msk [vmem:[#allocation2 + $0xae] sm:$0x3] %vm1360_vm9, %v3722_v54  ;;  %v4796_v34 = vld [vmem:[#allocation2 + $0x10] sm:$0xff]  ;;  %v5934_v42 = vunpack.c.l.bf16 %v6115_v16 }
 0x278   : > { %3769 = vst.msk [vmem:[#allocation2 + $0xa6] sm:$0xff] %vm277_vm1, %v3721_v33  ;;  %v9766_v60 = vld [vmem:[%s7904_s3 + $0x94] ss:$12 sps:$4 sm:$0xff]   ;;  %v5595_v54 = vld [vmem:[%s7904_s3 + $0x9c] sm:$0xe] }
 0x279   : > { %6235 = vmatprep.subr.msk.bf16.mxu0 %vm1164_vm10, %v3538_v9  ;;  %v7326_v9 = vpack.i.bf16 %v9622_v12, %v3001_v38 }
 0x27a   : > { %7267 = vrot.lane.b32.xlu0 %v7266_v23, %s7734_s15  ;;  %v7143_v23 = vpop.permute.xlu1 %7142  ;;  %6186 = vmatpush3.bf16.xpose.msra.mxu0 %v3556_v58 }
 0x27b   : > { %v7145_v15 = vunpack.i.h.bf16 %v7143_v23  ;;  %v7144_v11 = vunpack.i.l.bf16 %v7143_v23  ;;  %v7178_v23 = vpop.permute.xlu0 %7177 }
 0x27c   : > { %v7180_v19 = vunpack.i.h.bf16 %v7178_v23  ;;  %v7179_v6 = vunpack.i.l.bf16 %v7178_v23 }
 0x27d   : > { %4438 = vst.msk [vmem:[#allocation2 + $0x96] sm:$0xff] %vm841_vm6, %v7144_v11 }
 0x27e   : > { %7277 = vrot.lane.b32.xlu0 %v7276_v61, %s7734_s15  ;;  %4439 = vst.msk [vmem:[#allocation2 + $0x9e] sm:$0x3] %vm2036_vm14, %v7145_v15  ;;  %v7153_v39 = vpop.permute.xlu1 %7152  ;;  %v7160_v61 = vunpack.i.h.bf16 %v7158_v28 }
 0x27f   : > { %v7155_v49 = vunpack.i.h.bf16 %v7153_v39  ;;  %v7154_v32 = vunpack.i.l.bf16 %v7153_v39  ;;  %4774 = vst.msk [vmem:[#allocation2 + $0x97] sm:$0xff] %vm1082_vm7, %v7159_v18  ;;  %v7188_v41 = vpop.permute.xlu0 %7187 }
 0x280   : > { %4775 = vst.msk [vmem:[#allocation2 + $0x9f] sm:$0x1] %vm2374_vm15, %v7160_v61  ;;  %v7190_v45 = vunpack.i.h.bf16 %v7188_v41  ;;  %v7189_v4 = vunpack.i.l.bf16 %v7188_v41  ;;  %v3724_v61 = vunpack.c.h.bf16 %v9766_v60 }
 0x281   : > { %4751 = vst.msk [vmem:[#allocation2 + $0x1f] sm:$0x1] %vm2374_vm15, %v7154_v32  ;;  %v5549_v32 = vld [vmem:[%s7904_s3 + $0xb0] sm:$0x1] }
 0x282   : > { %7287 = vrot.lane.b32.xlu0 %v7286_v14, %s7735_s17  ;;  %4773 = vst.msk [vmem:[#allocation2 + $0x8f] sm:$0xfe] %vm2371_vm12, %v7155_v49  ;;  %v7163_v25 = vpop.permute.xlu1 %7162  ;;  %v5935_v14 = vunpack.c.h.bf16 %v6115_v16  ;;  %v3872_v63 = vunpack.c.l.bf16 %v5549_v32 }
 0x283   : > { %v7165_v46 = vunpack.i.h.bf16 %v7163_v25  ;;  %v7164_v35 = vunpack.i.l.bf16 %v7163_v25 }
 0x284   : > { %v9746_v62 = vpack.i.bf16 %v5935_v14, %v5934_v42 }
 0x285   : > { %2926 = vst.msk [vmem:[#allocation2 + $0xb0] sm:$0xff] %vm518_vm3, %v7164_v35  ;;  %2927 = vst.msk [vmem:[#allocation2 + $0xb8] sm:$0xff] %vm518_vm3, %v7165_v46  ;;  %v7356_v46 = vpack.i.bf16 %v3872_v63, %v9624_v53  ;;  %v3723_v35 = vunpack.c.l.bf16 %v5496_v3 }
 0x286   : > { %7297 = vrot.lane.b32.xlu0 %v7296_v7, %s7736_s4  ;;  %v7173_v17 = vpop.permute.xlu1 %7172  ;;  %3258 = vst.msk [vmem:[#allocation2 + $0xb7] sm:$0xff] %vm841_vm6, %v7179_v6  ;;  %v5472_v7 = vld [vmem:[%s7904_s3 + $0x3c] sm:$0xe] }
 0x287   : > { %v7175_v36 = vunpack.i.h.bf16 %v7173_v17  ;;  %v7174_v8 = vunpack.i.l.bf16 %v7173_v17  ;;  %v4813_v11 = vld [vmem:[#allocation2 + $0x98] sm:$0xff]  ;;  %3259 = vst.msk [vmem:[#allocation2 + $0xbf] sm:$0x1] %vm843_vm5, %v7180_v19  ;;  %v3699_v49 = vunpack.c.l.bf16 %v5472_v7  ;;  %v4206_v17 = vunpack.c.l.bf16 %v5595_v54 }
 0x288   : > { %v4797_v1 = vld [vmem:[#allocation2 + $0x18] sm:$0xff]  ;;  %3487 = vst.msk [vmem:[#allocation2 + $0xb8] sm:$0xff] %vm1082_vm7, %v7190_v45 }
 0x289   : > { %3235 = vst.msk [vmem:[#allocation2 + $0x3f] sm:$0x1] %vm843_vm5, %v7174_v8  ;;  %v4827_v37 = vpack.c.bf16 %v4797_v1, %v4796_v34  ;;  %v4812_v15 = vld [vmem:[#allocation2 + $0x90] sm:$0xff] }
 0x28a   : > { %7307 = vrot.lane.b32.xlu0 %v7306_v47, %s7736_s4  ;;  %3257 = vst.msk [vmem:[#allocation2 + $0xaf] sm:$0xfe] %vm839_vm4, %v7175_v36  ;;  %v7183_v29 = vpop.permute.xlu1 %7182  ;;  %v4835_v43 = vpack.c.bf16 %v4813_v11, %v4812_v15  ;;  %v7198_v47 = vpop.permute.xlu0 %7197  ;;  %v9779_v34 = vld [vmem:[%s7904_s3 + $0x3c] sm:$0xff]   ;;  %v5645_v11 = vld [vmem:[%s7904_s3 + $0xa4] sm:$0x1] }
 0x28b   : > { %v7185_v22 = vunpack.i.h.bf16 %v7183_v29  ;;  %v7184_v55 = vunpack.i.l.bf16 %v7183_v29  ;;  %v4851_v58 = vsel %vm1164_vm10, %v4827_v37, 0  ;;  %3486 = vst.msk [vmem:[#allocation2 + $0xb0] sm:$0xff] %vm1082_vm7, %v7189_v4  ;;  %v7200_v28 = vunpack.i.h.bf16 %v7198_v47 }
 0x28c   : > { %6242 = vmatprep.subr.msk.bf16.mxu1 %vm1164_vm10, %v4835_v43  ;;  %v7199_v27 = vunpack.i.l.bf16 %v7198_v47  ;;  %v4519_v37 = vunpack.c.l.bf16 %v9724_v31  ;;  %v9797_v31 = vld [vmem:[%s7904_s3 + $0xa0] ss:$12 sps:$4 sm:$0xff]  }
 0x28d   : > { %3470 = vst.msk [vmem:[#allocation2 + $0x30] sm:$0xff] %vm1082_vm7, %v7184_v55  ;;  %3471 = vst.msk [vmem:[#allocation2 + $0x38] sm:$0xff] %vm1082_vm7, %v7185_v22  ;;  %6202 = vmatpush3.bf16.xpose.msra.mxu1 %v4851_v58  ;;  %v4543_v7 = vunpack.c.l.bf16 %v9797_v31 }
 0x28e   : > { %7317 = vrot.lane.b32.xlu0 %v7316_v48, %s7734_s15  ;;  %v7193_v24 = vpop.permute.xlu1 %7192  ;;  %4082 = vst.msk [vmem:[#allocation2 + $0x2f] sm:$0x1] %vm10407_vm2, %v7199_v27  ;;  %v5573_v48 = vld [vmem:[%s7904_s3 + $0x44] sm:$0x1]  ;;  %v7208_v16 = vpop.permute.xlu0 %7207  ;;  %vm10408_vm2 = vmmov %vm10404_vm0 }
 0x28f   : > { %v7195_v39 = vunpack.i.h.bf16 %v7193_v24  ;;  %v7194_v56 = vunpack.i.l.bf16 %v7193_v24  ;;  %4104 = vst.msk [vmem:[#allocation2 + $0x9f] sm:$0xfe] %vm1695_vm11, %v7200_v28  ;;  %v4184_v26 = vunpack.c.l.bf16 %v5573_v48  ;;  %v7210_v36 = vunpack.i.h.bf16 %v7208_v16  ;;  %v3519_v13 = vld [vmem:[#allocation2 + $0xb8] sm:$0xff] }
 0x290   : > { %v7209_v8 = vunpack.i.l.bf16 %v7208_v16  ;;  %v4544_v24 = vunpack.c.l.bf16 %v5645_v11  ;;  %v9820_v28 = vld [vmem:[%s7904_s3 + $0xb4] sm:$0xff]  }
 0x291   : > { %4080 = vst.msk [vmem:[#allocation2 + $0x1f] sm:$0xfe] %vm1695_vm11, %v7194_v56  ;;  %v7366_v1 = vpack.i.bf16 %v4206_v17, %v4184_v26 }
 0x292   : > { %7327 = vrot.lane.b32.xlu0 %v7326_v9, %s7735_s17  ;;  %4081 = vst.msk [vmem:[#allocation2 + $0x27] sm:$0xff] %vm518_vm3, %v7195_v39  ;;  %v7203_v50 = vpop.permute.xlu1 %7202  ;;  %v3518_v40 = vld [vmem:[#allocation2 + $0xb0] sm:$0xff]  ;;  %v4518_v9 = vunpack.c.l.bf16 %v9779_v34  ;;  %v7218_v23 = vpop.permute.xlu0 %7217  ;;  %v7386_v4 = vpack.i.bf16 %v4544_v24, %v4543_v7 }
 0x293   : > { %v7205_v21 = vunpack.i.h.bf16 %v7203_v50  ;;  %v7204_v25 = vunpack.i.l.bf16 %v7203_v50  ;;  %3771 = vst.msk [vmem:[#allocation2 + $0xae] sm:$0xfc] %vm1357_vm8, %v3723_v35  ;;  %v3539_v42 = vpack.c.bf16 %v3519_v13, %v3518_v40  ;;  %v7220_v19 = vunpack.i.h.bf16 %v7218_v23  ;;  %v9832_v40 = vld [vmem:[%s7904_s3 + $0xb4] sm:$0xff]  }
 0x294   : > { %v3502_v33 = vld [vmem:[#allocation2 + $0x30] sm:$0xff]  ;;  %v3503_v0 = vld [vmem:[#allocation2 + $0x38] sm:$0xff]  ;;  %3772 = vst.msk [vmem:[#allocation2 + $0xb6] sm:$0xff] %vm277_vm1, %v3724_v61  ;;  %v7219_v6 = vunpack.i.l.bf16 %v7218_v23  ;;  %v7376_v15 = vpack.i.bf16 %v4519_v37, %v4518_v9 }
 0x295   : > { %3747 = vst.msk [vmem:[#allocation2 + $0x2e] sm:$0xfc] %vm1357_vm8, %v3699_v49  ;;  %v3531_v18 = vpack.c.bf16 %v3503_v0, %v3502_v33  ;;  %6236 = vmatprep.subr.msk.bf16.mxu0 %vm1164_vm10, %v3539_v42  ;;  %v6112_v49 = vld [vmem:[%s7904_s3 + $0xc0] sm:$0xff]   ;;  %v3026_v0 = vunpack.c.l.bf16 %v9820_v28  ;;  %v3874_v42 = vunpack.c.h.bf16 %v9832_v40  ;;  %v5576_v37 = vld [vmem:[%s7904_s3 + $0x50] sm:$0x1] }
 0x296   : > { %7337 = vrot.lane.b32.xlu0 %v9746_v62, %s7736_s4  ;;  %4105 = vst.msk [vmem:[#allocation2 + $0xa7] sm:$0xff] %vm518_vm3, %v7204_v25  ;;  %v7213_v51 = vpop.permute.xlu1 %7212  ;;  %v7228_v58 = vpop.permute.xlu0 %7227  ;;  %v9808_v3 = vunpack.c.l.bf16 %v6112_v49  ;;  %v9810_v50 = vunpack.c.h.bf16 %v6112_v49  ;;  %v5402_v25 = vld [vmem:[%s7904_s3 + $0x5c] sm:$0x1]  ;;  %v4187_v23 = vunpack.c.l.bf16 %v5576_v37 }
 0x297   : > { %4106 = vst.msk [vmem:[#allocation2 + $0xaf] sm:$0x1] %vm10404_vm0, %v7205_v21  ;;  %v7215_v5 = vunpack.i.h.bf16 %v7213_v51  ;;  %v7214_v38 = vunpack.i.l.bf16 %v7213_v51  ;;  %v3559_v14 = vsel %vm1164_vm10, %v3531_v18, 0  ;;  %v7230_v56 = vunpack.i.h.bf16 %v7228_v58  ;;  %v5442_v51 = vld [vmem:[%s7904_s3 + $0x54] sm:$0xff]  }
 0x298   : > { %4416 = vst.msk [vmem:[#allocation2 + $0x1e] sm:$0xfc] %vm2033_vm13, %v7209_v8  ;;  %6188 = vmatpush3.bf16.xpose.msra.mxu0 %v3559_v14  ;;  %v7229_v45 = vunpack.i.l.bf16 %v7228_v58  ;;  %v9814_v21 = vpack.i.bf16 %v9810_v50, %v9808_v3  ;;  %v3004_v33 = vunpack.c.l.bf16 %v5402_v25  ;;  %v3316_v16 = vunpack.c.l.bf16 %v5442_v51  ;;  %v5380_v58 = vld [vmem:[%s7904_s3 + $0xcc] sm:$0xff]  }
 0x299   : > { %4418 = vst.msk [vmem:[#allocation2 + $0x2e] sm:$0x3] %vm2036_vm14, %v7214_v38  ;;  %4442 = vst.msk [vmem:[#allocation2 + $0xae] sm:$0x3] %vm2036_vm14, %v7220_v19  ;;  %v3317_v26 = vunpack.c.h.bf16 %v5442_v51  ;;  %v5526_v38 = vld [vmem:[%s7904_s3 + $0x54] sm:$0xff]   ;;  %v9842_v19 = vld [vmem:[%s7904_s3 + $0xa8] sm:$0xff]   ;;  %v2774_v7 = vunpack.c.l.bf16 %v5380_v58  ;;  %v2775_v24 = vunpack.c.h.bf16 %v5380_v58 }
 0x29a   : > { %7347 = vrot.lane.b32.xlu0 %v9746_v62, %s7734_s15  ;;  %4440 = vst.msk [vmem:[#allocation2 + $0x9e] sm:$0xfc] %vm2033_vm13, %v7215_v5  ;;  %v7223_v29 = vpop.permute.xlu1 %7222  ;;  %v7406_v18 = vpack.i.bf16 %v3026_v0, %v3004_v33  ;;  %v3850_v8 = vunpack.c.h.bf16 %v5526_v38  ;;  %v5555_v33 = vld [vmem:[%s7904_s3 + $0xc8] sm:$0x1]  ;;  %v5651_v58 = vld [vmem:[%s7904_s3 + $0xbc] sm:$0x1] }
 0x29b   : > { %4417 = vst.msk [vmem:[#allocation2 + $0x26] sm:$0xff] %vm841_vm6, %v7210_v36  ;;  %v7225_v22 = vunpack.i.h.bf16 %v7223_v29  ;;  %v7224_v55 = vunpack.i.l.bf16 %v7223_v29  ;;  %4441 = vst.msk [vmem:[#allocation2 + $0xa6] sm:$0xff] %vm841_vm6, %v7219_v6  ;;  %v7416_v5 = vpack.i.bf16 %v3317_v26, %v3316_v16  ;;  %v3849_v36 = vunpack.c.l.bf16 %v5526_v38  ;;  %v5598_v29 = vld [vmem:[%s7904_s3 + $0xa8] sm:$0xe]  ;;  %v5579_v16 = vld [vmem:[%s7904_s3 + $0x5c] sm:$0x1] }
 0x29c   : > { %4754 = vst.msk [vmem:[#allocation2 + $0x2f] sm:$0x1] %vm2374_vm15, %v7229_v45  ;;  %v6047_v6 = vunpack.c.h.bf16 %v9842_v19  ;;  %v5601_v26 = vld [vmem:[%s7904_s3 + $0xb4] sm:$0xe]  ;;  %v4190_v38 = vunpack.c.l.bf16 %v5579_v16 }
 0x29d   : > { %4752 = vst.msk [vmem:[#allocation2 + $0x1f] sm:$0xfe] %vm2371_vm12, %v7224_v55  ;;  %4776 = vst.msk [vmem:[#allocation2 + $0x9f] sm:$0xfe] %vm2371_vm12, %v7230_v56  ;;  %v7426_v13 = vpack.i.bf16 %v3850_v8, %v3849_v36  ;;  %v5405_v56 = vld [vmem:[%s7904_s3 + $0x68] sm:$0x1]  ;;  %v4212_v36 = vunpack.c.l.bf16 %v5601_v26 }
 0x29e   : > { %7357 = vrot.lane.b32.xlu0 %v7356_v46, %s7734_s15  ;;  %4753 = vst.msk [vmem:[#allocation2 + $0x27] sm:$0xff] %vm1082_vm7, %v7225_v22  ;;  %v7233_v43 = vpop.permute.xlu1 %7232  ;;  %v4209_v22 = vunpack.c.l.bf16 %v5598_v29  ;;  %v3007_v45 = vunpack.c.l.bf16 %v5405_v56  ;;  %v3727_v56 = vunpack.c.h.bf16 %v9797_v31 }
 0x29f   : > { %v7235_v41 = vunpack.i.h.bf16 %v7233_v43  ;;  %v7234_v39 = vunpack.i.l.bf16 %v7233_v43 }
 0x2a0   : > { %v7446_v55 = vpack.i.bf16 %v4209_v22, %v4187_v23  ;;  %v5499_v23 = vld [vmem:[%s7904_s3 + $0xa8] sm:$0xe] }
 0x2a1   : > { %4777 = vst.msk [vmem:[#allocation2 + $0xa7] sm:$0xff] %vm1082_vm7, %v7234_v39  ;;  %v6108_v39 = vld [vmem:[%s7904_s3 + $0x60] sm:$0xff]  }
 0x2a2   : > { %7367 = vrot.lane.b32.xlu0 %v7366_v1, %s7735_s17  ;;  %4778 = vst.msk [vmem:[#allocation2 + $0xaf] sm:$0x1] %vm2374_vm15, %v7235_v41  ;;  %v7243_v32 = vpop.permute.xlu1 %7242  ;;  %v5552_v1 = vld [vmem:[%s7904_s3 + $0xbc] sm:$0x1]  ;;  %v7476_v41 = vpack.i.bf16 %v2775_v24, %v2774_v7  ;;  %v5907_v49 = vunpack.c.h.bf16 %v6108_v39 }
 0x2a3   : > { %v7245_v47 = vunpack.i.h.bf16 %v7243_v32  ;;  %v7244_v63 = vunpack.i.l.bf16 %v7243_v32  ;;  %v3875_v14 = vunpack.c.l.bf16 %v5552_v1  ;;  %v7486_v32 = vpack.i.bf16 %v9808_v3, %v3007_v45  ;;  %v9874_v1 = vld [vmem:[%s7904_s3 + $0x4c] ss:$12 sps:$4 sm:$0xff]   ;;  %v5475_v45 = vld [vmem:[%s7904_s3 + $0x48] sm:$0xe] }
 0x2a4   : > { %v4525_v37 = vunpack.c.h.bf16 %v9874_v1 }
 0x2a5   : > { %3236 = vst.msk [vmem:[#allocation2 + $0x3f] sm:$0xfe] %vm839_vm4, %v7244_v63  ;;  %v4798_v27 = vld [vmem:[#allocation2 + $0x20] sm:$0xff]  ;;  %v4799_v61 = vld [vmem:[#allocation2 + $0x28] sm:$0xff]  ;;  %v7436_v9 = vpack.i.bf16 %v3875_v14, %v3874_v42  ;;  %v7526_v14 = vpack.i.bf16 %v4212_v36, %v4190_v38  ;;  %v5594_v38 = vld [vmem:[%s7904_s3 + $0x98] sm:$0x1] }
 0x2a6   : > { %7377 = vrot.lane.b32.xlu0 %v7376_v15, %s7736_s4  ;;  %3237 = vst.msk [vmem:[#allocation2 + $0x47] sm:$0xff] %vm841_vm6, %v7245_v47  ;;  %v4828_v54 = vpack.c.bf16 %v4799_v61, %v4798_v27  ;;  %v5648_v15 = vld [vmem:[%s7904_s3 + $0xb0] sm:$0x1]  ;;  %v7253_v47 = vpop.permute.xlu1 %7252  ;;  %v3878_v61 = vunpack.c.l.bf16 %v5555_v33  ;;  %v9877_v42 = vld [vmem:[%s7904_s3 + $0x54] sm:$0xff]   ;;  %v3702_v33 = vunpack.c.l.bf16 %v5475_v45  ;;  %v5473_v36 = vld [vmem:[%s7904_s3 + $0x40] ss:$36 sps:$4 sm:$0xff]  }
 0x2a7   : > { %v4547_v11 = vunpack.c.l.bf16 %v5648_v15  ;;  %v5498_v45 = vld [vmem:[%s7904_s3 + $0xa4] sm:$0x1] }
 0x2a8   : > { %v4814_v46 = vld [vmem:[#allocation2 + $0xa0] sm:$0xff]  ;;  %v4854_v17 = vsel %vm1164_vm10, %v4828_v54, 0  ;;  %v7516_v51 = vpack.i.bf16 %v3878_v61, %v9810_v50  ;;  %v3867_v61 = vunpack.c.l.bf16 %v9669_v52 }
 0x2a9   : > { %v4815_v35 = vld [vmem:[#allocation2 + $0xa8] sm:$0xff]  ;;  %v7466_v43 = vpack.i.bf16 %v4547_v11, %v6047_v6 }
 0x2aa   : > { %7387 = vrot.lane.b32.xlu0 %v7386_v4, %s7736_s4  ;;  %v4836_v48 = vpack.c.bf16 %v4815_v35, %v4814_v46  ;;  %v5906_v4 = vunpack.c.l.bf16 %v6108_v39  ;;  %v7263_v27 = vpop.permute.xlu1 %7262  ;;  %v7255_v46 = vunpack.i.h.bf16 %v7253_v47  ;;  %v7254_v35 = vunpack.i.l.bf16 %v7253_v47  ;;  %v9889_v11 = vld [vmem:[%s7904_s3 + $0xac] ss:$12 sps:$4 sm:$0xff]  }
 0x2ab   : > { %v7265_v54 = vunpack.i.h.bf16 %v7263_v27  ;;  %v4549_v7 = vunpack.c.h.bf16 %v9889_v11  ;;  %v3726_v39 = vunpack.c.l.bf16 %v5499_v23  ;;  %v5580_v23 = vld [vmem:[%s7904_s3 + $0x60] sm:$0xe] }
 0x2ac   : > { %6243 = vmatprep.subr.msk.bf16.mxu1 %vm1164_vm10, %v4836_v48  ;;  %v9855_v63 = vpack.i.bf16 %v5907_v49, %v5906_v4  ;;  %v4550_v4 = vunpack.c.l.bf16 %v5651_v58 }
 0x2ad   : > { %6204 = vmatpush3.bf16.xpose.msra.mxu1 %v4854_v17 }
 0x2ae   : > { %7397 = vrot.lane.b32.xlu0 %v9814_v21, %s7734_s15  ;;  %v7546_v47 = vpack.i.bf16 %v4550_v4, %v4549_v7  ;;  %v5618_v7 = vld [vmem:[%s7904_s3 + $0x38] sm:$0x1] }
 0x2b2   : > { %7407 = vrot.lane.b32.xlu0 %v7406_v18, %s7735_s17 }
 0x2b6   : > { %7417 = vrot.lane.b32.xlu0 %v7416_v5, %s7736_s4  ;;  %v7264_v5 = vunpack.i.l.bf16 %v7263_v27 }
 0x2ba   : > { %7427 = vrot.lane.b32.xlu0 %v7426_v13, %s7734_s15 }
 0x2be   : > { %7437 = vrot.lane.b32.xlu0 %v7436_v9, %s7734_s15  ;;  %v4524_v9 = vunpack.c.l.bf16 %v9877_v42 }
 0x2c0   : > { %v7536_v22 = vpack.i.bf16 %v4525_v37, %v4524_v9  ;;  %v3700_v9 = vunpack.c.l.bf16 %v5473_v36 }
 0x2c2   : > { %7447 = vrot.lane.b32.xlu0 %v7446_v55, %s7735_s17  ;;  %3748 = vst.msk [vmem:[#allocation2 + $0x36] sm:$0xff] %vm277_vm1, %v3700_v9 }
 0x2c6   : > { %7457 = vrot.lane.b32.xlu0 %v9746_v62, %s7736_s4 }
 0x2ca   : > { %7467 = vrot.lane.b32.xlu0 %v7466_v43, %s7736_s4 }
 0x2ce   : > { %7477 = vrot.lane.b32.xlu0 %v7476_v41, %s7734_s15 }
 0x2d2   : > { %7487 = vrot.lane.b32.xlu0 %v7486_v32, %s7735_s17 }
 0x2d6   : > { %7497 = vrot.lane.b32.xlu0 %v9855_v63, %s7736_s4 }
 0x2da   : > { %7507 = vrot.lane.b32.xlu0 %v9855_v63, %s7734_s15 }
 0x2de   : > { %7517 = vrot.lane.b32.xlu0 %v7516_v51, %s7734_s15 }
 0x2e2   : > { %7527 = vrot.lane.b32.xlu0 %v7526_v14, %s7735_s17  ;;  %v5474_v14 = vld [vmem:[%s7904_s3 + $0x44] sm:$0x1] }
 0x2e5   : > { %v9857_v25 = vpop.xlane.xlu0 %1258 }
 0x2e6   : > { %7537 = vrot.lane.b32.xlu0 %v7536_v22, %s7736_s4  ;;  %v4204_v22 = vunpack.c.l.bf16 %v9766_v60 }
 0x2e9   : > { %v7238_v0 = vpop.permute.xlu0 %7237 }
 0x2ea   : > { %v7240_v18 = vunpack.i.h.bf16 %v7238_v0  ;;  %v7239_v48 = vunpack.i.l.bf16 %v7238_v0  ;;  %7547 = vrot.lane.b32.xlu0 %v7546_v47, %s7736_s4  ;;  %v4517_v47 = vunpack.c.l.bf16 %v5618_v7 }
 0x2ec   : > { %2928 = vst.msk [vmem:[#allocation2 + $0xc0] sm:$0xff] %vm518_vm3, %v7239_v48  ;;  %2929 = vst.msk [vmem:[#allocation2 + $0xc8] sm:$0xff] %vm518_vm3, %v7240_v18  ;;  %v5568_v18 = vld [vmem:[%s7904_s3 + $0x30] sm:$0xe]  ;;  %v5534_v48 = vld [vmem:[%s7904_s3 + $0x74] sm:$0x1] }
 0x2ed   : > { %3262 = vst.msk [vmem:[#allocation2 + $0xcf] sm:$0x1] %vm843_vm5, %v7255_v46  ;;  %v7248_v17 = vpop.permute.xlu0 %7247  ;;  %v5522_v46 = vld [vmem:[%s7904_s3 + $0x44] sm:$0x1]  ;;  %v3857_v51 = vunpack.c.l.bf16 %v5534_v48 }
 0x2ee   : > { %3261 = vst.msk [vmem:[#allocation2 + $0xc7] sm:$0xff] %vm841_vm6, %v7254_v35  ;;  %v7250_v8 = vunpack.i.h.bf16 %v7248_v17  ;;  %v7249_v13 = vunpack.i.l.bf16 %v7248_v17  ;;  %v3845_v35 = vunpack.c.l.bf16 %v5522_v46  ;;  %v4179_v17 = vunpack.c.l.bf16 %v5568_v18  ;;  %v5360_v46 = vld [vmem:[%s7904_s3 + $0x54] sm:$0xff]   ;;  %v5630_v18 = vld [vmem:[%s7904_s3 + $0x68] sm:$0x1] }
 0x2ef   : > { %3489 = vst.msk [vmem:[#allocation2 + $0xc8] sm:$0xff] %vm1082_vm7, %v7265_v54  ;;  %v9914_v54 = vld [vmem:[%s7904_s3 + $0xcc] sm:$0xff]  }
 0x2f0   : > { %3238 = vst.msk [vmem:[#allocation2 + $0x4f] sm:$0x1] %vm843_vm5, %v7249_v13  ;;  %v3879_v16 = vunpack.c.l.bf16 %v9914_v54  ;;  %v7271_v26 = vpack.i.bf16 %v3867_v61, %v3845_v35 }
 0x2f1   : > { %3260 = vst.msk [vmem:[#allocation2 + $0xbf] sm:$0xfe] %vm839_vm4, %v7250_v8  ;;  %v7258_v29 = vpop.permute.xlu0 %7257 }
 0x2f2   : > { %3488 = vst.msk [vmem:[#allocation2 + $0xc0] sm:$0xff] %vm1082_vm7, %v7264_v5  ;;  %v7260_v55 = vunpack.i.h.bf16 %v7258_v29  ;;  %v7259_v6 = vunpack.i.l.bf16 %v7258_v29  ;;  %v4180_v5 = vunpack.c.h.bf16 %v9645_v30  ;;  %v7556_v13 = vpack.i.bf16 %v3879_v16, %v3857_v51 }
 0x2f3   : > { %v3701_v29 = vunpack.c.l.bf16 %v5474_v14  ;;  %v4192_v30 = vunpack.c.h.bf16 %v5473_v36  ;;  %v2754_v16 = vunpack.c.l.bf16 %v5360_v46 }
 0x2f4   : > { %3472 = vst.msk [vmem:[#allocation2 + $0x40] sm:$0xff] %vm1082_vm7, %v7259_v6  ;;  %3473 = vst.msk [vmem:[#allocation2 + $0x48] sm:$0xff] %vm1082_vm7, %v7260_v55  ;;  %v4205_v55 = vunpack.c.l.bf16 %v5594_v38  ;;  %7557 = vrot.lane.b32.xlu0 %v7556_v13, %s7734_s15  ;;  %v4191_v6 = vunpack.c.l.bf16 %v5580_v23  ;;  %v7281_v58 = vpack.i.bf16 %v4180_v5, %v4179_v17  ;;  %v5423_v13 = vld [vmem:[%s7904_s3 + $0xb0] sm:$0x1] }
 0x2f5   : > { %v7268_v8 = vpop.permute.xlu0 %7267  ;;  %3749 = vst.msk [vmem:[#allocation2 + $0x3e] sm:$0x3] %vm1360_vm9, %v3701_v29  ;;  %v5525_v23 = vld [vmem:[%s7904_s3 + $0x50] sm:$0x1] }
 0x2f6   : > { %v3521_v32 = vld [vmem:[#allocation2 + $0xc8] sm:$0xff]  ;;  %v7270_v52 = vunpack.i.h.bf16 %v7268_v8  ;;  %v7269_v37 = vunpack.i.l.bf16 %v7268_v8 }
 0x2f8   : > { %v9886_v15 = vpop.f32.mrb[0].mxu1  ;;  %4083 = vst.msk [vmem:[#allocation2 + $0x2f] sm:$0xfe] %vm1695_vm11, %v7269_v37 }
 0x2f9   : > { %v9891_v43 = vpop.f32.mrb[1].mxu1  ;;  %v3520_v27 = vld [vmem:[#allocation2 + $0xc0] sm:$0xff]  ;;  %4084 = vst.msk [vmem:[#allocation2 + $0x37] sm:$0xff] %vm518_vm3, %v7270_v52  ;;  %v7278_v60 = vpop.permute.xlu0 %7277 }
 0x2fa   : > { %v2563_v24 = vadd.f32 %v9891_v43, %v9886_v15  ;;  %v2560_v41 = vpop.f32.mrb[2].mxu1  ;;  %3774 = vst.msk [vmem:[#allocation2 + $0xbe] sm:$0xfc] %vm1357_vm8, %v3726_v39  ;;  %v3540_v0 = vpack.c.bf16 %v3521_v32, %v3520_v27  ;;  %v7291_v39 = vpack.i.bf16 %v4205_v55, %v4204_v22  ;;  %v7280_v4 = vunpack.i.h.bf16 %v7278_v60  ;;  %v5606_v32 = vld [vmem:[%s7904_s3 + $0xc8] sm:$0x1] }
 0x2fb   : > { %v2561_v49 = vpop.f32.mrb[3].mxu1  ;;  %3775 = vst.msk [vmem:[#allocation2 + $0xc6] sm:$0xff] %vm277_vm1, %v3727_v56  ;;  %v9906_v31 = vld [vmem:[#allocation2 + $0x40] sm:$0xff]  ;;  %v6042_v56 = vunpack.c.l.bf16 %v9702_v44  ;;  %v3725_v27 = vunpack.c.l.bf16 %v5498_v45  ;;  %v4529_v44 = vunpack.c.l.bf16 %v5630_v18  ;;  %v3505_v48 = vld [vmem:[#allocation2 + $0x48] sm:$0xff] }
 0x2fc   : > { %2564 = vadd.xlane.f32.xlu1 %v2563_v24  ;;  %6237 = vmatprep.subr.msk.bf16.mxu0 %vm1164_vm10, %v3540_v0  ;;  %3750 = vst.msk [vmem:[#allocation2 + $0x3e] sm:$0xfc] %vm1357_vm8, %v3702_v33  ;;  %v7566_v24 = vpack.i.bf16 %v4192_v30, %v4191_v6  ;;  %v5605_v41 = vld [vmem:[%s7904_s3 + $0xb8] ss:$12 sps:$4 sm:$0xff]   ;;  %v7279_v49 = vunpack.i.l.bf16 %v7278_v60  ;;  %v4217_v0 = vunpack.c.l.bf16 %v5606_v32  ;;  %v3532_v17 = vpack.c.bf16 %v3505_v48, %v9906_v31 }
 0x2fd   : > { %v4216_v33 = vunpack.c.h.bf16 %v5605_v41  ;;  %v9937_v35 = vpop.permute.xlu0 %7287  ;;  %3773 = vst.msk [vmem:[#allocation2 + $0xbe] sm:$0x3] %vm1360_vm9, %v3725_v27  ;;  %v7301_v51 = vpack.i.bf16 %v6042_v56, %v4517_v47  ;;  %v7586_v38 = vpack.i.bf16 %v9808_v3, %v4529_v44  ;;  %v3025_v31 = vunpack.c.l.bf16 %v5423_v13  ;;  %v5621_v32 = vld [vmem:[%s7904_s3 + $0x44] sm:$0x1] }
 0x2fe   : > { %7567 = vrot.lane.b32.xlu0 %v7566_v24, %s7735_s17  ;;  %4109 = vst.msk [vmem:[#allocation2 + $0xbf] sm:$0x1] %vm10404_vm0, %v7280_v4  ;;  %v3562_v36 = vsel %vm1164_vm10, %v3532_v17, 0  ;;  %v2656_v22 = vunpack.c.l.bf16 %v5605_v41  ;;  %v3848_v30 = vunpack.c.l.bf16 %v5525_v23  ;;  %v4183_v60 = vunpack.c.h.bf16 %v9779_v34  ;;  %v5597_v24 = vld [vmem:[%s7904_s3 + $0xa4] sm:$0x1] }
 0x2ff   : > { %v7576_v61 = vpack.i.bf16 %v4217_v0, %v4216_v33  ;;  %4108 = vst.msk [vmem:[#allocation2 + $0xb7] sm:$0xff] %vm518_vm3, %v7279_v49  ;;  %6190 = vmatpush3.bf16.xpose.msra.mxu0 %v3562_v36  ;;  %v7331_v52 = vpack.i.bf16 %v3025_v31, %v9624_v53  ;;  %v5571_v53 = vld [vmem:[%s7904_s3 + $0x3c] sm:$0xe]  ;;  %v4207_v56 = vunpack.c.h.bf16 %v9713_v57  ;;  %v4208_v45 = vunpack.c.l.bf16 %v5597_v24  ;;  %v9979_v4 = vld [vmem:[%s7904_s3 + $0x4c] ss:$108 sps:$4 sm:$0xff]  }
 0x300   : > { %2704 = vst.msk [vmem:[#allocation2 + $0xd7] sm:$0xff] %vm277_vm1, %v2656_v22  ;;  %v4182_v7 = vunpack.c.l.bf16 %v5571_v53  ;;  %v5477_v49 = vld [vmem:[%s7904_s3 + $0x50] sm:$0x1]  ;;  %v4520_v34 = vunpack.c.l.bf16 %v5621_v32  ;;  %v4542_v0 = vunpack.c.l.bf16 %v9688_v2  ;;  %v5400_v2 = vld [vmem:[%s7904_s3 + $0x54] sm:$0xff]   ;;  %v3027_v13 = vunpack.c.h.bf16 %v9820_v28  ;;  %v5574_v24 = vld [vmem:[%s7904_s3 + $0x48] sm:$0xe] }
 0x301   : > { %v9946_v5 = vpop.permute.xlu0 %7297  ;;  %v3704_v47 = vunpack.c.l.bf16 %v5477_v49  ;;  %v7371_v57 = vpack.i.bf16 %v4208_v45, %v4207_v56  ;;  %v3003_v17 = vunpack.c.h.bf16 %v5400_v2  ;;  %v4185_v56 = vunpack.c.l.bf16 %v5574_v24  ;;  %v5600_v49 = vld [vmem:[%s7904_s3 + $0xb0] sm:$0x1] }
 0x302   : > { %7577 = vrot.lane.b32.xlu0 %v7576_v61, %s7735_s17  ;;  %v4186_v45 = vunpack.c.l.bf16 %v9874_v1  ;;  %v5364_v1 = vld [vmem:[%s7904_s3 + $0x6c] sm:$0xff]  }
 0x303   : > { %3752 = vst.msk [vmem:[#allocation2 + $0x4e] sm:$0x3] %vm1360_vm9, %v3704_v47  ;;  %v4211_v47 = vunpack.c.l.bf16 %v5600_v49 }
 0x305   : > { %v9953_v14 = vpop.permute.xlu0 %7307 }
 0x306   : > { %7587 = vrot.lane.b32.xlu0 %v7586_v38, %s7736_s4  ;;  %v5426_v38 = vld [vmem:[%s7904_s3 + $0xbc] sm:$0x1] }
 0x307   : > { %v3028_v31 = vunpack.c.l.bf16 %v5426_v38 }
 0x309   : > { %v7318_v9 = vpop.permute.xlu0 %7317  ;;  %v7411_v23 = vpack.i.bf16 %v3028_v31, %v3027_v13  ;;  %v10048_v13 = vld [vmem:[%s7904_s3 + $0x64] ss:$108 sps:$4 sm:$0xff]   ;;  %v5531_v31 = vld [vmem:[%s7904_s3 + $0x68] sm:$0x1] }
 0x30a   : > { %v7320_v37 = vunpack.i.h.bf16 %v7318_v9  ;;  %v7319_v29 = vunpack.i.l.bf16 %v7318_v9  ;;  %v5458_v9 = vld [vmem:[%s7904_s3 + $0xb4] sm:$0xff]  }
 0x30b   : > { %v3332_v22 = vunpack.c.l.bf16 %v5458_v9 }
 0x30c   : > { %2930 = vst.msk [vmem:[#allocation2 + $0xd0] sm:$0xff] %vm518_vm3, %v7319_v29  ;;  %2931 = vst.msk [vmem:[#allocation2 + $0xd8] sm:$0xff] %vm518_vm3, %v7320_v37 }
 0x30d   : > { %7272 = vrot.lane.b32.xlu1 %v7271_v26, %s7734_s15  ;;  %v2755_v26 = vunpack.c.h.bf16 %v5360_v46  ;;  %v9960_v55 = vpop.permute.xlu0 %7327  ;;  %v5501_v46 = vld [vmem:[%s7904_s3 + $0xb0] sm:$0x1] }
 0x30e   : > { %v7330_v6 = vunpack.i.h.bf16 %v9960_v55  ;;  %v3728_v61 = vunpack.c.l.bf16 %v5501_v46 }
 0x30f   : > { %v7311_v8 = vpack.i.bf16 %v2755_v26, %v2754_v16  ;;  %v3002_v26 = vunpack.c.l.bf16 %v5400_v2 }
 0x310   : > { %3263 = vst.msk [vmem:[#allocation2 + $0xcf] sm:$0xfe] %vm839_vm4, %v7330_v6  ;;  %v3333_v6 = vunpack.c.h.bf16 %v5458_v9  ;;  %v2662_v9 = vunpack.c.h.bf16 %v10048_v13 }
 0x311   : > { %7282 = vrot.lane.b32.xlu1 %v7281_v58, %s7735_s17  ;;  %v7351_v58 = vpack.i.bf16 %v9622_v12, %v3848_v30  ;;  %3776 = vst.msk [vmem:[#allocation2 + $0xce] sm:$0x3] %vm1360_vm9, %v3728_v61  ;;  %v5528_v30 = vld [vmem:[%s7904_s3 + $0x5c] sm:$0x1]  ;;  %v2759_v61 = vunpack.c.h.bf16 %v5364_v1 }
 0x312   : > { %2710 = vst.msk [vmem:[#allocation2 + $0xf7] sm:$0xff] %vm277_vm1, %v2662_v9 }
 0x315   : > { %7292 = vrot.lane.b32.xlu1 %v7291_v39, %s7735_s17  ;;  %v7361_v39 = vpack.i.bf16 %v4183_v60, %v4182_v7  ;;  %v3851_v7 = vunpack.c.l.bf16 %v5528_v30  ;;  %v3873_v60 = vunpack.c.l.bf16 %v9832_v40  ;;  %v4210_v40 = vunpack.c.l.bf16 %v9889_v11 }
 0x316   : > { %v2758_v11 = vunpack.c.l.bf16 %v5364_v1  ;;  %v4189_v30 = vunpack.c.h.bf16 %v9877_v42 }
 0x319   : > { %7302 = vrot.lane.b32.xlu1 %v7301_v51, %s7736_s4  ;;  %v7381_v51 = vpack.i.bf16 %v4542_v0, %v4520_v34 }
 0x31d   : > { %7312 = vrot.lane.b32.xlu1 %v7311_v8, %s7734_s15  ;;  %v7401_v8 = vpack.i.bf16 %v3003_v17, %v3002_v26 }
 0x321   : > { %7322 = vrot.lane.b32.xlu1 %v9746_v62, %s7735_s17  ;;  %v9969_v62 = vpop.permute.xlu0 %7337 }
 0x325   : > { %7332 = vrot.lane.b32.xlu1 %v7331_v52, %s7735_s17  ;;  %v7348_v41 = vpop.permute.xlu0 %7347 }
 0x326   : > { %v7350_v27 = vunpack.i.h.bf16 %v7348_v41  ;;  %v7349_v33 = vunpack.i.l.bf16 %v7348_v41 }
 0x329   : > { %7342 = vrot.lane.b32.xlu1 %v9629_v10, %s7736_s4  ;;  %v3703_v10 = vunpack.c.l.bf16 %v9979_v4  ;;  %v7358_v12 = vpop.permute.xlu0 %7357 }
 0x32a   : > { %v7360_v44 = vunpack.i.h.bf16 %v7358_v12  ;;  %v7359_v48 = vunpack.i.l.bf16 %v7358_v12  ;;  %v5624_v12 = vld [vmem:[%s7904_s3 + $0x50] sm:$0x1] }
 0x32b   : > { %3751 = vst.msk [vmem:[#allocation2 + $0x46] sm:$0xff] %vm277_vm1, %v3703_v10  ;;  %v7441_v10 = vpack.i.bf16 %v4186_v45, %v4185_v56  ;;  %v4523_v34 = vunpack.c.l.bf16 %v5624_v12  ;;  %v3880_v12 = vunpack.c.h.bf16 %v9914_v54 }
 0x32c   : > { %4086 = vst.msk [vmem:[#allocation2 + $0x3f] sm:$0xfe] %vm1695_vm11, %v7349_v33  ;;  %v7451_v33 = vpack.i.bf16 %v4211_v47, %v4210_v40  ;;  %v5558_v40 = vld [vmem:[%s7904_s3 + $0xd4] sm:$0x1] }
 0x32d   : > { %7352 = vrot.lane.b32.xlu1 %v7351_v58, %s7734_s15  ;;  %4087 = vst.msk [vmem:[#allocation2 + $0x47] sm:$0xff] %vm518_vm3, %v7350_v27  ;;  %v9991_v18 = vpop.permute.xlu0 %7367  ;;  %4111 = vst.msk [vmem:[#allocation2 + $0xc7] sm:$0xff] %vm518_vm3, %v7359_v48  ;;  %v7421_v58 = vpack.i.bf16 %v3333_v6, %v3332_v22  ;;  %v7471_v48 = vpack.i.bf16 %v2759_v61, %v2758_v11  ;;  %v10078_v61 = vld [vmem:[#allocation6 + $0x8] sm:$0xf] }
 0x32e   : > { %4112 = vst.msk [vmem:[#allocation2 + $0xcf] sm:$0x1] %vm10408_vm2, %v7360_v44  ;;  %6197 = vmatprep.mubr.msk.bf16.mxu0 %vm1164_vm10, %v10078_v61  ;;  %vm10409_vm2 = vmmov %vm10404_vm0 }
 0x331   : > { %7362 = vrot.lane.b32.xlu1 %v7361_v39, %s7735_s17  ;;  %v9998_v16 = vpop.permute.xlu0 %7377  ;;  %v7431_v39 = vpack.i.bf16 %v3873_v60, %v3851_v7 }
 0x335   : > { %7372 = vrot.lane.b32.xlu1 %v7371_v57, %s7735_s17  ;;  %v10002_v36 = vpop.permute.xlu0 %7387  ;;  %v6046_v57 = vunpack.c.l.bf16 %v9842_v19 }
 0x337   : > { %v7461_v46 = vpack.i.bf16 %v6046_v57, %v4523_v34  ;;  %v5582_v57 = vld [vmem:[%s7904_s3 + $0x68] sm:$0x1]  ;;  %v5604_v34 = vld [vmem:[%s7904_s3 + $0xc0] sm:$0xe] }
 0x338   : > { %v4215_v11 = vunpack.c.l.bf16 %v5604_v34  ;;  %v5478_v34 = vld [vmem:[%s7904_s3 + $0x54] sm:$0xe] }
 0x339   : > { %7382 = vrot.lane.b32.xlu1 %v7381_v51, %s7736_s4  ;;  %v7398_v52 = vpop.permute.xlu0 %7397  ;;  %v5429_v51 = vld [vmem:[%s7904_s3 + $0xc8] sm:$0x1] }
 0x33a   : > { %v7400_v37 = vunpack.i.h.bf16 %v7398_v52  ;;  %v7399_v29 = vunpack.i.l.bf16 %v7398_v52  ;;  %v3031_v19 = vunpack.c.l.bf16 %v5429_v51  ;;  %v5654_v51 = vld [vmem:[%s7904_s3 + $0xc8] sm:$0x1] }
 0x33b   : > { %v4553_v54 = vunpack.c.l.bf16 %v5654_v51  ;;  %v3705_v51 = vunpack.c.l.bf16 %v5478_v34 }
 0x33c   : > { %2932 = vst.msk [vmem:[#allocation2 + $0xe0] sm:$0xff] %vm518_vm3, %v7399_v29  ;;  %2933 = vst.msk [vmem:[#allocation2 + $0xe8] sm:$0xff] %vm518_vm3, %v7400_v37  ;;  %v7491_v17 = vpack.i.bf16 %v3031_v19, %v9810_v50  ;;  %v3854_v29 = vunpack.c.l.bf16 %v5531_v31 }
 0x33d   : > { %7392 = vrot.lane.b32.xlu1 %v9855_v63, %s7734_s15  ;;  %v10012_v53 = vpop.permute.xlu0 %7407 }
 0x33e   : > { %v7410_v28 = vunpack.i.h.bf16 %v10012_v53  ;;  %v7511_v22 = vpack.i.bf16 %v9808_v3, %v3854_v29  ;;  %v5532_v3 = vld [vmem:[%s7904_s3 + $0x6c] sm:$0xff]  }
 0x33f   : > { %v3855_v49 = vunpack.c.l.bf16 %v5532_v3 }
 0x340   : > { %3266 = vst.msk [vmem:[#allocation2 + $0xdf] sm:$0xfe] %vm839_vm4, %v7410_v28  ;;  %v5602_v28 = vld [vmem:[%s7904_s3 + $0xb4] sm:$0xff]  }
 0x341   : > { %7402 = vrot.lane.b32.xlu1 %v7401_v8, %s7735_s17  ;;  %v10019_v41 = vpop.permute.xlu0 %7417  ;;  %v4213_v60 = vunpack.c.h.bf16 %v5602_v28  ;;  %v4548_v45 = vunpack.c.l.bf16 %v5602_v28 }
 0x345   : > { %7412 = vrot.lane.b32.xlu1 %v7411_v23, %s7735_s17  ;;  %v10024_v32 = vpop.permute.xlu0 %7427  ;;  %v5577_v23 = vld [vmem:[%s7904_s3 + $0x54] sm:$0xe] }
 0x346   : > { %v4188_v6 = vunpack.c.l.bf16 %v5577_v23 }
 0x348   : > { %v7521_v7 = vpack.i.bf16 %v4189_v30, %v4188_v6  ;;  %v7309_v6 = vunpack.i.l.bf16 %v9953_v14 }
 0x349   : > { %7422 = vrot.lane.b32.xlu1 %v7421_v58, %s7736_s4  ;;  %v10029_v27 = vpop.permute.xlu0 %7437  ;;  %v5603_v58 = vld [vmem:[%s7904_s3 + $0xbc] sm:$0x1] }
 0x34a   : > { %v4214_v24 = vunpack.c.l.bf16 %v5603_v58 }
 0x34c   : > { %v7531_v56 = vpack.i.bf16 %v4214_v24, %v4213_v60  ;;  %v10109_v60 = vld [vmem:[#allocation6 + $0xc] sm:$0xf]  ;;  %v7329_v24 = vunpack.i.l.bf16 %v9960_v55 }
 0x34d   : > { %7432 = vrot.lane.b32.xlu1 %v7431_v39, %s7734_s15  ;;  %v10034_v0 = vpop.permute.xlu0 %7447  ;;  %v5627_v39 = vld [vmem:[%s7904_s3 + $0x5c] sm:$0x1]  ;;  %6215 = vmatprep.mubr.msk.bf16.mxu1 %vm1164_vm10, %v10109_v60 }
 0x351   : > { %7442 = vrot.lane.b32.xlu1 %v7441_v10, %s7735_s17  ;;  %v10037_v44 = vpop.permute.xlu0 %7457  ;;  %v3856_v10 = vunpack.c.h.bf16 %v5532_v3  ;;  %v7339_v3 = vunpack.i.l.bf16 %v9969_v62 }
 0x353   : > { %v7551_v47 = vpack.i.bf16 %v3856_v10, %v3855_v49 }
 0x355   : > { %7452 = vrot.lane.b32.xlu1 %v7451_v33, %s7735_s17  ;;  %v10041_v2 = vpop.permute.xlu0 %7467  ;;  %v3881_v33 = vunpack.c.l.bf16 %v5558_v40 }
 0x357   : > { %v7561_v1 = vpack.i.bf16 %v3881_v33, %v3880_v12 }
 0x359   : > { %7462 = vrot.lane.b32.xlu1 %v7461_v46, %s7736_s4  ;;  %v7478_v26 = vpop.permute.xlu0 %7477  ;;  %v4193_v46 = vunpack.c.l.bf16 %v5582_v57 }
 0x35a   : > { %v7480_v38 = vunpack.i.h.bf16 %v7478_v26  ;;  %v7479_v8 = vunpack.i.l.bf16 %v7478_v26  ;;  %v7591_v26 = vpack.i.bf16 %v4553_v54, %v9810_v50  ;;  %v7300_v50 = vunpack.i.h.bf16 %v9946_v5 }
 0x35c   : > { %2934 = vst.msk [vmem:[#allocation2 + $0xf0] sm:$0xff] %vm518_vm3, %v7479_v8  ;;  %2935 = vst.msk [vmem:[#allocation2 + $0xf8] sm:$0xff] %vm518_vm3, %v7480_v38  ;;  %v7290_v38 = vunpack.i.h.bf16 %v9937_v35  ;;  %v7289_v8 = vunpack.i.l.bf16 %v9937_v35 }
 0x35d   : > { %7472 = vrot.lane.b32.xlu1 %v7471_v48, %s7734_s15  ;;  %v10052_v52 = vpop.permute.xlu0 %7487  ;;  %v7571_v48 = vpack.i.bf16 %v4215_v11, %v4193_v46  ;;  %v10129_v11 = vld [vmem:[%s7904_s3 + $0x58] ss:$108 sps:$4 sm:$0xff]  }
 0x35e   : > { %v7490_v37 = vunpack.i.h.bf16 %v10052_v52 }
 0x360   : > { %3269 = vst.msk [vmem:[#allocation2 + $0xef] sm:$0xfe] %vm839_vm4, %v7490_v37 }
 0x361   : > { %7482 = vrot.lane.b32.xlu1 %v9855_v63, %s7735_s17 }
 0x365   : > { %7492 = vrot.lane.b32.xlu1 %v7491_v17, %s7735_s17 }
 0x369   : > { %7502 = vrot.lane.b32.xlu1 %v9814_v21, %s7736_s4  ;;  %v4526_v21 = vunpack.c.l.bf16 %v5627_v39 }
 0x36b   : > { %v7541_v42 = vpack.i.bf16 %v4548_v45, %v4526_v21  ;;  %v7340_v45 = vunpack.i.h.bf16 %v9969_v62 }
 0x36d   : > { %7512 = vrot.lane.b32.xlu1 %v7511_v22, %s7734_s15  ;;  %v7310_v22 = vunpack.i.h.bf16 %v9953_v14 }
 0x371   : > { %7522 = vrot.lane.b32.xlu1 %v7521_v7, %s7735_s17 }
 0x375   : > { %7532 = vrot.lane.b32.xlu1 %v7531_v56, %s7735_s17 }
 0x379   : > { %7542 = vrot.lane.b32.xlu1 %v7541_v42, %s7736_s4 }
 0x37d   : > { %7552 = vrot.lane.b32.xlu1 %v7551_v47, %s7734_s15 }
 0x381   : > { %7562 = vrot.lane.b32.xlu1 %v7561_v1, %s7734_s15 }
 0x385   : > { %7572 = vrot.lane.b32.xlu1 %v7571_v48, %s7735_s17  ;;  %v5480_v48 = vld [vmem:[%s7904_s3 + $0x5c] sm:$0x1] }
 0x389   : > { %v10085_v19 = vpop.xlane.xlu1 %2564  ;;  %7582 = vrot.lane.b32.xlu1 %v9855_v63, %s7736_s4  ;;  %v7299_v63 = vunpack.i.l.bf16 %v9946_v5 }
 0x38d   : > { %v7273_v17 = vpop.permute.xlu1 %7272  ;;  %7592 = vrot.lane.b32.xlu1 %v7591_v26, %s7736_s4  ;;  %v3706_v26 = vunpack.c.l.bf16 %v10129_v11 }
 0x38e   : > { %v7275_v31 = vunpack.i.h.bf16 %v7273_v17  ;;  %v7274_v9 = vunpack.i.l.bf16 %v7273_v17  ;;  %v3707_v17 = vunpack.c.l.bf16 %v5480_v48 }
 0x390   : > { %4107 = vst.msk [vmem:[#allocation2 + $0xaf] sm:$0xfe] %vm1695_vm11, %v7275_v31  ;;  %v7430_v31 = vunpack.i.h.bf16 %v10024_v32 }
 0x391   : > { %4085 = vst.msk [vmem:[#allocation2 + $0x3f] sm:$0x1] %vm10404_vm0, %v7274_v9  ;;  %v7283_v37 = vpop.permute.xlu1 %7282  ;;  %v7429_v9 = vunpack.i.l.bf16 %v10024_v32 }
 0x392   : > { %4443 = vst.msk [vmem:[#allocation2 + $0xae] sm:$0xfc] %vm2033_vm13, %v7290_v38  ;;  %v7285_v29 = vunpack.i.h.bf16 %v7283_v37  ;;  %v7284_v23 = vunpack.i.l.bf16 %v7283_v37 }
 0x393   : > { %4421 = vst.msk [vmem:[#allocation2 + $0x3e] sm:$0x3] %vm2036_vm14, %v7289_v8 }
 0x394   : > { %4419 = vst.msk [vmem:[#allocation2 + $0x2e] sm:$0xfc] %vm2033_vm13, %v7284_v23  ;;  %v7370_v23 = vunpack.i.h.bf16 %v9991_v18 }
 0x395   : > { %4420 = vst.msk [vmem:[#allocation2 + $0x36] sm:$0xff] %vm841_vm6, %v7285_v29  ;;  %v7293_v35 = vpop.permute.xlu1 %7292 }
 0x396   : > { %4755 = vst.msk [vmem:[#allocation2 + $0x2f] sm:$0xfe] %vm2371_vm12, %v7299_v63  ;;  %v7295_v30 = vunpack.i.h.bf16 %v7293_v35  ;;  %v7294_v28 = vunpack.i.l.bf16 %v7293_v35  ;;  %v5502_v63 = vld [vmem:[%s7904_s3 + $0xb4] sm:$0xe]  ;;  %v7369_v35 = vunpack.i.l.bf16 %v9991_v18 }
 0x397   : > { %4756 = vst.msk [vmem:[#allocation2 + $0x37] sm:$0xff] %vm1082_vm7, %v7300_v50 }
 0x398   : > { %4444 = vst.msk [vmem:[#allocation2 + $0xb6] sm:$0xff] %vm841_vm6, %v7294_v28  ;;  %v3730_v28 = vunpack.c.h.bf16 %v9979_v4 }
 0x399   : > { %4445 = vst.msk [vmem:[#allocation2 + $0xbe] sm:$0x3] %vm2036_vm14, %v7295_v30  ;;  %v7303_v5 = vpop.permute.xlu1 %7302  ;;  %v3729_v30 = vunpack.c.l.bf16 %v5502_v63 }
 0x39a   : > { %4780 = vst.msk [vmem:[#allocation2 + $0xb7] sm:$0xff] %vm1082_vm7, %v7309_v6  ;;  %v7305_v58 = vunpack.i.h.bf16 %v7303_v5  ;;  %v7304_v7 = vunpack.i.l.bf16 %v7303_v5 }
 0x39b   : > { %4781 = vst.msk [vmem:[#allocation2 + $0xbf] sm:$0x1] %vm2374_vm15, %v7310_v22  ;;  %v5504_v22 = vld [vmem:[%s7904_s3 + $0xbc] sm:$0x1] }
 0x39c   : > { %4757 = vst.msk [vmem:[#allocation2 + $0x3f] sm:$0x1] %vm2374_vm15, %v7304_v7  ;;  %v3731_v18 = vunpack.c.l.bf16 %v5504_v22  ;;  %v7380_v7 = vunpack.i.h.bf16 %v9998_v16  ;;  %v3709_v22 = vunpack.c.l.bf16 %v10048_v13  ;;  %v7449_v13 = vunpack.i.l.bf16 %v10034_v0 }
 0x39d   : > { %4779 = vst.msk [vmem:[#allocation2 + $0xaf] sm:$0xfe] %vm2371_vm12, %v7305_v58  ;;  %v7313_v14 = vpop.permute.xlu1 %7312 }
 0x39e   : > { %v7315_v39 = vunpack.i.h.bf16 %v7313_v14  ;;  %v7314_v56 = vunpack.i.l.bf16 %v7313_v14  ;;  %v4800_v49 = vld [vmem:[#allocation2 + $0x30] sm:$0xff]  ;;  %v7379_v14 = vunpack.i.l.bf16 %v9998_v16 }
 0x3a0   : > { %2914 = vst.msk [vmem:[#allocation2 + $0x50] sm:$0xff] %vm518_vm3, %v7314_v56  ;;  %2915 = vst.msk [vmem:[#allocation2 + $0x58] sm:$0xff] %vm518_vm3, %v7315_v39  ;;  %v7439_v39 = vunpack.i.l.bf16 %v10029_v27 }
 0x3a1   : > { %v7323_v21 = vpop.permute.xlu1 %7322  ;;  %3241 = vst.msk [vmem:[#allocation2 + $0x5f] sm:$0x1] %vm843_vm5, %v7329_v24  ;;  %v7440_v24 = vunpack.i.h.bf16 %v10029_v27  ;;  %v7390_v27 = vunpack.i.h.bf16 %v10002_v36 }
 0x3a2   : > { %v4817_v42 = vld [vmem:[#allocation2 + $0xb8] sm:$0xff]  ;;  %v7325_v10 = vunpack.i.h.bf16 %v7323_v21  ;;  %v7324_v40 = vunpack.i.l.bf16 %v7323_v21 }
 0x3a3   : > { %v4801_v47 = vld [vmem:[#allocation2 + $0x38] sm:$0xff] }
 0x3a4   : > { %v4816_v55 = vld [vmem:[#allocation2 + $0xb0] sm:$0xff]  ;;  %3239 = vst.msk [vmem:[#allocation2 + $0x4f] sm:$0xfe] %vm839_vm4, %v7324_v40  ;;  %v4829_v33 = vpack.c.bf16 %v4801_v47, %v4800_v49  ;;  %v7389_v49 = vunpack.i.l.bf16 %v10002_v36 }
 0x3a5   : > { %3240 = vst.msk [vmem:[#allocation2 + $0x57] sm:$0xff] %vm841_vm6, %v7325_v10  ;;  %v4837_v12 = vpack.c.bf16 %v4817_v42, %v4816_v55  ;;  %v7333_v57 = vpop.permute.xlu1 %7332 }
 0x3a6   : > { %3474 = vst.msk [vmem:[#allocation2 + $0x50] sm:$0xff] %vm1082_vm7, %v7339_v3  ;;  %3475 = vst.msk [vmem:[#allocation2 + $0x58] sm:$0xff] %vm1082_vm7, %v7340_v45  ;;  %v7335_v62 = vunpack.i.h.bf16 %v7333_v57  ;;  %v7334_v1 = vunpack.i.l.bf16 %v7333_v57  ;;  %v4857_v46 = vsel %vm1164_vm10, %v4829_v33, 0  ;;  %v7409_v33 = vunpack.i.l.bf16 %v10012_v53 }
 0x3a7   : > { %6244 = vmatprep.subr.msk.bf16.mxu1 %vm1164_vm10, %v4837_v12 }
 0x3a8   : > { %6206 = vmatpush3.bf16.xpose.msra.mxu1 %v4857_v46  ;;  %3264 = vst.msk [vmem:[#allocation2 + $0xd7] sm:$0xff] %vm841_vm6, %v7334_v1  ;;  %v7420_v1 = vunpack.i.h.bf16 %v10019_v41  ;;  %v7419_v46 = vunpack.i.l.bf16 %v10019_v41 }
 0x3a9   : > { %3265 = vst.msk [vmem:[#allocation2 + $0xdf] sm:$0x1] %vm843_vm5, %v7335_v62  ;;  %v7343_v54 = vpop.permute.xlu1 %7342 }
 0x3aa   : > { %v7345_v38 = vunpack.i.h.bf16 %v7343_v54  ;;  %v7344_v8 = vunpack.i.l.bf16 %v7343_v54 }
 0x3ac   : > { %3490 = vst.msk [vmem:[#allocation2 + $0xd0] sm:$0xff] %vm1082_vm7, %v7344_v8  ;;  %3491 = vst.msk [vmem:[#allocation2 + $0xd8] sm:$0xff] %vm1082_vm7, %v7345_v38  ;;  %v10182_v38 = vpop.permute.xlu0 %7497 }
 0x3ad   : > { %v3506_v37 = vld [vmem:[#allocation2 + $0x50] sm:$0xff]  ;;  %v3507_v50 = vld [vmem:[#allocation2 + $0x58] sm:$0xff]  ;;  %v7353_v29 = vpop.permute.xlu1 %7352 }
 0x3ae   : > { %3753 = vst.msk [vmem:[#allocation2 + $0x4e] sm:$0xfc] %vm1357_vm8, %v3705_v51  ;;  %v7355_v32 = vunpack.i.h.bf16 %v7353_v29  ;;  %v7354_v6 = vunpack.i.l.bf16 %v7353_v29  ;;  %v3533_v5 = vpack.c.bf16 %v3507_v50, %v3506_v37  ;;  %v5481_v50 = vld [vmem:[%s7904_s3 + $0x60] sm:$0xe]  ;;  %v5483_v29 = vld [vmem:[%s7904_s3 + $0x68] sm:$0x1] }
 0x3af   : > { %3754 = vst.msk [vmem:[#allocation2 + $0x56] sm:$0xff] %vm277_vm1, %v3706_v26 }
 0x3b0   : > { %3755 = vst.msk [vmem:[#allocation2 + $0x5e] sm:$0x3] %vm1360_vm9, %v3707_v17  ;;  %v3565_v42 = vsel %vm1164_vm10, %v3533_v5, 0 }
 0x3b1   : > { %4089 = vst.msk [vmem:[#allocation2 + $0x4f] sm:$0xfe] %vm1695_vm11, %v7429_v9  ;;  %4110 = vst.msk [vmem:[#allocation2 + $0xbf] sm:$0xfe] %vm1695_vm11, %v7355_v32  ;;  %v7363_v58 = vpop.permute.xlu1 %7362  ;;  %v7508_v32 = vpop.permute.xlu0 %7507 }
 0x3b2   : > { %4090 = vst.msk [vmem:[#allocation2 + $0x57] sm:$0xff] %vm518_vm3, %v7430_v31  ;;  %v7365_v4 = vunpack.i.h.bf16 %v7363_v58  ;;  %v7364_v56 = vunpack.i.l.bf16 %v7363_v58  ;;  %v7510_v5 = vunpack.i.h.bf16 %v7508_v32 }
 0x3b3   : > { %4088 = vst.msk [vmem:[#allocation2 + $0x4f] sm:$0x1] %vm10409_vm2, %v7354_v6  ;;  %v3522_v21 = vld [vmem:[#allocation2 + $0xd0] sm:$0xff]  ;;  %v3523_v45 = vld [vmem:[#allocation2 + $0xd8] sm:$0xff]  ;;  %v3710_v6 = vunpack.c.l.bf16 %v5483_v29  ;;  %vm10410_vm2 = vmmov %vm10404_vm0 }
 0x3b4   : > { %4424 = vst.msk [vmem:[#allocation2 + $0x4e] sm:$0x3] %vm2036_vm14, %v7369_v35  ;;  %v3541_v3 = vpack.c.bf16 %v3523_v45, %v3522_v21 }
 0x3b5   : > { %4446 = vst.msk [vmem:[#allocation2 + $0xbe] sm:$0xfc] %vm2033_vm13, %v7370_v23  ;;  %4422 = vst.msk [vmem:[#allocation2 + $0x3e] sm:$0xfc] %vm2033_vm13, %v7364_v56  ;;  %v7373_v16 = vpop.permute.xlu1 %7372  ;;  %v3708_v23 = vunpack.c.l.bf16 %v5481_v50 }
 0x3b6   : > { %3777 = vst.msk [vmem:[#allocation2 + $0xce] sm:$0xfc] %vm1357_vm8, %v3729_v30  ;;  %v7375_v10 = vunpack.i.h.bf16 %v7373_v16  ;;  %v7374_v40 = vunpack.i.l.bf16 %v7373_v16  ;;  %6238 = vmatprep.subr.msk.bf16.mxu0 %vm1164_vm10, %v3541_v3  ;;  %v3733_v3 = vunpack.c.h.bf16 %v10129_v11  ;;  %v7518_v16 = vpop.permute.xlu0 %7517 }
 0x3b7   : > { %3778 = vst.msk [vmem:[#allocation2 + $0xd6] sm:$0xff] %vm277_vm1, %v3730_v28  ;;  %6192 = vmatpush3.bf16.xpose.msra.mxu0 %v3565_v42 }
 0x3b8   : > { %4423 = vst.msk [vmem:[#allocation2 + $0x46] sm:$0xff] %vm841_vm6, %v7365_v4  ;;  %4447 = vst.msk [vmem:[#allocation2 + $0xc6] sm:$0xff] %vm841_vm6, %v7374_v40  ;;  %v5507_v4 = vld [vmem:[%s7904_s3 + $0xc8] sm:$0x1]  ;;  %v7520_v40 = vunpack.i.h.bf16 %v7518_v16 }
 0x3b9   : > { %3779 = vst.msk [vmem:[#allocation2 + $0xde] sm:$0x3] %vm1360_vm9, %v3731_v18  ;;  %v7383_v55 = vpop.permute.xlu1 %7382  ;;  %v7509_v18 = vunpack.i.l.bf16 %v7508_v32 }
 0x3ba   : > { %4758 = vst.msk [vmem:[#allocation2 + $0x3f] sm:$0xfe] %vm2371_vm12, %v7379_v14  ;;  %v7385_v47 = vunpack.i.h.bf16 %v7383_v55  ;;  %v7384_v36 = vunpack.i.l.bf16 %v7383_v55  ;;  %v5505_v14 = vld [vmem:[%s7904_s3 + $0xc0] sm:$0xe]  ;;  %v7519_v55 = vunpack.i.l.bf16 %v7518_v16  ;;  %v5509_v16 = vld [vmem:[%s7904_s3 + $0xd0] sm:$0xf] }
 0x3bb   : > { %4759 = vst.msk [vmem:[#allocation2 + $0x47] sm:$0xff] %vm1082_vm7, %v7380_v7  ;;  %v3732_v45 = vunpack.c.l.bf16 %v5505_v14 }
 0x3bc   : > { %4114 = vst.msk [vmem:[#allocation2 + $0xd7] sm:$0xff] %vm518_vm3, %v7439_v39  ;;  %v7450_v39 = vunpack.i.h.bf16 %v10034_v0  ;;  %v3734_v0 = vunpack.c.l.bf16 %v5507_v4 }
 0x3bd   : > { %4115 = vst.msk [vmem:[#allocation2 + $0xdf] sm:$0x1] %vm10404_vm0, %v7440_v24  ;;  %v7393_v12 = vpop.permute.xlu1 %7392 }
 0x3be   : > { %4448 = vst.msk [vmem:[#allocation2 + $0xce] sm:$0x3] %vm2036_vm14, %v7375_v10  ;;  %v7395_v57 = vunpack.i.h.bf16 %v7393_v12  ;;  %v7394_v34 = vunpack.i.l.bf16 %v7393_v12  ;;  %v7459_v10 = vunpack.i.l.bf16 %v10037_v44 }
 0x3bf   : > { %4783 = vst.msk [vmem:[#allocation2 + $0xc7] sm:$0xff] %vm1082_vm7, %v7389_v49  ;;  %v7460_v49 = vunpack.i.h.bf16 %v10037_v44 }
 0x3c0   : > { %4784 = vst.msk [vmem:[#allocation2 + $0xcf] sm:$0x1] %vm2374_vm15, %v7390_v27  ;;  %4760 = vst.msk [vmem:[#allocation2 + $0x4f] sm:$0x1] %vm2374_vm15, %v7384_v36 }
 0x3c1   : > { %4782 = vst.msk [vmem:[#allocation2 + $0xbf] sm:$0xfe] %vm2371_vm12, %v7385_v47  ;;  %v7403_v62 = vpop.permute.xlu1 %7402 }
 0x3c2   : > { %2916 = vst.msk [vmem:[#allocation2 + $0x60] sm:$0xff] %vm518_vm3, %v7394_v34  ;;  %2917 = vst.msk [vmem:[#allocation2 + $0x68] sm:$0xff] %vm518_vm3, %v7395_v57  ;;  %v4802_v51 = vld [vmem:[#allocation2 + $0x40] sm:$0xff]  ;;  %v7405_v54 = vunpack.i.h.bf16 %v7403_v62  ;;  %v7404_v26 = vunpack.i.l.bf16 %v7403_v62  ;;  %v7470_v34 = vunpack.i.h.bf16 %v10041_v2  ;;  %v7469_v62 = vunpack.i.l.bf16 %v10041_v2 }
 0x3c3   : > { %3244 = vst.msk [vmem:[#allocation2 + $0x6f] sm:$0x1] %vm843_vm5, %v7409_v33 }
 0x3c4   : > { %3242 = vst.msk [vmem:[#allocation2 + $0x5f] sm:$0xfe] %vm839_vm4, %v7404_v26 }
 0x3c5   : > { %3243 = vst.msk [vmem:[#allocation2 + $0x67] sm:$0xff] %vm841_vm6, %v7405_v54  ;;  %v7413_v9 = vpop.permute.xlu1 %7412 }
 0x3c6   : > { %3476 = vst.msk [vmem:[#allocation2 + $0x60] sm:$0xff] %vm1082_vm7, %v7419_v46  ;;  %3477 = vst.msk [vmem:[#allocation2 + $0x68] sm:$0xff] %vm1082_vm7, %v7420_v1  ;;  %v7415_v41 = vunpack.i.h.bf16 %v7413_v9  ;;  %v7414_v37 = vunpack.i.l.bf16 %v7413_v9 }
 0x3c7   : > { %v4819_v48 = vld [vmem:[#allocation2 + $0xc8] sm:$0xff] }
 0x3c8   : > { %v4818_v53 = vld [vmem:[#allocation2 + $0xc0] sm:$0xff]  ;;  %v4803_v17 = vld [vmem:[#allocation2 + $0x48] sm:$0xff]  ;;  %3267 = vst.msk [vmem:[#allocation2 + $0xe7] sm:$0xff] %vm841_vm6, %v7414_v37  ;;  %v7499_v37 = vunpack.i.l.bf16 %v10182_v38 }
 0x3c9   : > { %v4838_v8 = vpack.c.bf16 %v4819_v48, %v4818_v53  ;;  %v4830_v31 = vpack.c.bf16 %v4803_v17, %v4802_v51  ;;  %3268 = vst.msk [vmem:[#allocation2 + $0xef] sm:$0x1] %vm843_vm5, %v7415_v41  ;;  %v7423_v35 = vpop.permute.xlu1 %7422  ;;  %v10226_v48 = vpop.permute.xlu0 %7527  ;;  %v7489_v53 = vunpack.i.l.bf16 %v10052_v52  ;;  %v7500_v41 = vunpack.i.h.bf16 %v10182_v38 }
 0x3ca   : > { %v7425_v30 = vunpack.i.h.bf16 %v7423_v35  ;;  %v7424_v28 = vunpack.i.l.bf16 %v7423_v35 }
 0x3cb   : > { %6245 = vmatprep.subr.msk.bf16.mxu1 %vm1164_vm10, %v4838_v8  ;;  %v4860_v63 = vsel %vm1164_vm10, %v4830_v31, 0 }
 0x3cc   : > { %6208 = vmatpush3.bf16.xpose.msra.mxu1 %v4860_v63  ;;  %3492 = vst.msk [vmem:[#allocation2 + $0xe0] sm:$0xff] %vm1082_vm7, %v7424_v28  ;;  %3493 = vst.msk [vmem:[#allocation2 + $0xe8] sm:$0xff] %vm1082_vm7, %v7425_v30  ;;  %v5484_v28 = vld [vmem:[%s7904_s3 + $0x6c] sm:$0xe] }
 0x3cd   : > { %v3508_v58 = vld [vmem:[#allocation2 + $0x60] sm:$0xff]  ;;  %v3509_v7 = vld [vmem:[#allocation2 + $0x68] sm:$0xff]  ;;  %v7433_v24 = vpop.permute.xlu1 %7432  ;;  %v10235_v17 = vpop.permute.xlu0 %7537  ;;  %v3711_v14 = vunpack.c.l.bf16 %v5484_v28 }
 0x3ce   : > { %3756 = vst.msk [vmem:[#allocation2 + $0x5e] sm:$0xfc] %vm1357_vm8, %v3708_v23  ;;  %v7435_v56 = vunpack.i.h.bf16 %v7433_v24  ;;  %v7434_v21 = vunpack.i.l.bf16 %v7433_v24  ;;  %v3534_v42 = vpack.c.bf16 %v3509_v7, %v3508_v58  ;;  %v5485_v58 = vld [vmem:[%s7904_s3 + $0x70] sm:$0xf]  ;;  %v5486_v7 = vld [vmem:[%s7904_s3 + $0x74] sm:$0x1] }
 0x3cf   : > { %3757 = vst.msk [vmem:[#allocation2 + $0x66] sm:$0xff] %vm277_vm1, %v3709_v22 }
 0x3d0   : > { %3758 = vst.msk [vmem:[#allocation2 + $0x6e] sm:$0x3] %vm1360_vm9, %v3710_v6  ;;  %v3568_v57 = vsel %vm1164_vm10, %v3534_v42, 0 }
 0x3d1   : > { %4092 = vst.msk [vmem:[#allocation2 + $0x5f] sm:$0xfe] %vm1695_vm11, %v7509_v18  ;;  %4113 = vst.msk [vmem:[#allocation2 + $0xcf] sm:$0xfe] %vm1695_vm11, %v7435_v56  ;;  %v7443_v27 = vpop.permute.xlu1 %7442  ;;  %v10242_v22 = vpop.permute.xlu0 %7547 }
 0x3d2   : > { %4093 = vst.msk [vmem:[#allocation2 + $0x67] sm:$0xff] %vm518_vm3, %v7510_v5  ;;  %v7445_v47 = vunpack.i.h.bf16 %v7443_v27  ;;  %v7444_v11 = vunpack.i.l.bf16 %v7443_v27 }
 0x3d3   : > { %4091 = vst.msk [vmem:[#allocation2 + $0x5f] sm:$0x1] %vm10410_vm2, %v7434_v21  ;;  %v3524_v36 = vld [vmem:[#allocation2 + $0xe0] sm:$0xff]  ;;  %v3525_v12 = vld [vmem:[#allocation2 + $0xe8] sm:$0xff] }
 0x3d4   : > { %4427 = vst.msk [vmem:[#allocation2 + $0x5e] sm:$0x3] %vm2036_vm14, %v7449_v13  ;;  %v3542_v33 = vpack.c.bf16 %v3525_v12, %v3524_v36  ;;  %v3713_v13 = vunpack.c.l.bf16 %v5486_v7  ;;  %v3736_v36 = vunpack.c.l.bf16 %v5509_v16 }
 0x3d5   : > { %4449 = vst.msk [vmem:[#allocation2 + $0xce] sm:$0xfc] %vm2033_vm13, %v7450_v39  ;;  %4425 = vst.msk [vmem:[#allocation2 + $0x4e] sm:$0xfc] %vm2033_vm13, %v7444_v11  ;;  %v7453_v44 = vpop.permute.xlu1 %7452  ;;  %v3712_v39 = vunpack.c.l.bf16 %v5485_v58  ;;  %v7558_v4 = vpop.permute.xlu0 %7557 }
 0x3d6   : > { %3780 = vst.msk [vmem:[#allocation2 + $0xde] sm:$0xfc] %vm1357_vm8, %v3732_v45  ;;  %v7455_v1 = vunpack.i.h.bf16 %v7453_v44  ;;  %v7454_v46 = vunpack.i.l.bf16 %v7453_v44  ;;  %6239 = vmatprep.subr.msk.bf16.mxu0 %vm1164_vm10, %v3542_v33  ;;  %v7559_v45 = vunpack.i.l.bf16 %v7558_v4  ;;  %v7540_v44 = vunpack.i.h.bf16 %v10235_v17 }
 0x3d7   : > { %3781 = vst.msk [vmem:[#allocation2 + $0xe6] sm:$0xff] %vm277_vm1, %v3733_v3  ;;  %6194 = vmatpush3.bf16.xpose.msra.mxu0 %v3568_v57 }
 0x3d8   : > { %4426 = vst.msk [vmem:[#allocation2 + $0x56] sm:$0xff] %vm841_vm6, %v7445_v47  ;;  %4450 = vst.msk [vmem:[#allocation2 + $0xd6] sm:$0xff] %vm841_vm6, %v7454_v46 }
 0x3d9   : > { %3782 = vst.msk [vmem:[#allocation2 + $0xee] sm:$0x3] %vm1360_vm9, %v3734_v0  ;;  %v7463_v51 = vpop.permute.xlu1 %7462  ;;  %v5508_v0 = vld [vmem:[%s7904_s3 + $0xcc] sm:$0xe] }
 0x3da   : > { %4761 = vst.msk [vmem:[#allocation2 + $0x4f] sm:$0xfe] %vm2371_vm12, %v7459_v10  ;;  %v7465_v2 = vunpack.i.h.bf16 %v7463_v51  ;;  %v7464_v54 = vunpack.i.l.bf16 %v7463_v51  ;;  %v7529_v10 = vunpack.i.l.bf16 %v10226_v48  ;;  %v3735_v11 = vunpack.c.l.bf16 %v5508_v0 }
 0x3db   : > { %4762 = vst.msk [vmem:[#allocation2 + $0x57] sm:$0xff] %vm1082_vm7, %v7460_v49  ;;  %v7530_v49 = vunpack.i.h.bf16 %v10226_v48 }
 0x3dc   : > { %4117 = vst.msk [vmem:[#allocation2 + $0xe7] sm:$0xff] %vm518_vm3, %v7519_v55 }
 0x3dd   : > { %4118 = vst.msk [vmem:[#allocation2 + $0xef] sm:$0x1] %vm10404_vm0, %v7520_v40  ;;  %v7473_v26 = vpop.permute.xlu1 %7472  ;;  %v5510_v40 = vld [vmem:[%s7904_s3 + $0xd4] sm:$0x1] }
 0x3de   : > { %4451 = vst.msk [vmem:[#allocation2 + $0xde] sm:$0x3] %vm2036_vm14, %v7455_v1  ;;  %v7475_v8 = vunpack.i.h.bf16 %v7473_v26  ;;  %v7474_v31 = vunpack.i.l.bf16 %v7473_v26  ;;  %v3737_v33 = vunpack.c.l.bf16 %v5510_v40 }
 0x3df   : > { %4786 = vst.msk [vmem:[#allocation2 + $0xd7] sm:$0xff] %vm1082_vm7, %v7469_v62  ;;  %v7560_v62 = vunpack.i.h.bf16 %v7558_v4 }
 0x3e0   : > { %4787 = vst.msk [vmem:[#allocation2 + $0xdf] sm:$0x1] %vm2374_vm15, %v7470_v34  ;;  %4763 = vst.msk [vmem:[#allocation2 + $0x5f] sm:$0x1] %vm2374_vm15, %v7464_v54  ;;  %v7539_v34 = vunpack.i.l.bf16 %v10235_v17  ;;  %v7549_v17 = vunpack.i.l.bf16 %v10242_v22 }
 0x3e1   : > { %4785 = vst.msk [vmem:[#allocation2 + $0xcf] sm:$0xfe] %vm2371_vm12, %v7465_v2  ;;  %v7483_v9 = vpop.permute.xlu1 %7482 }
 0x3e2   : > { %2918 = vst.msk [vmem:[#allocation2 + $0x70] sm:$0xff] %vm518_vm3, %v7474_v31  ;;  %2919 = vst.msk [vmem:[#allocation2 + $0x78] sm:$0xff] %vm518_vm3, %v7475_v8  ;;  %v4804_v63 = vld [vmem:[#allocation2 + $0x50] sm:$0xff]  ;;  %v7485_v29 = vunpack.i.h.bf16 %v7483_v9  ;;  %v7484_v52 = vunpack.i.l.bf16 %v7483_v9  ;;  %v7568_v9 = vpop.permute.xlu0 %7567 }
 0x3e3   : > { %3247 = vst.msk [vmem:[#allocation2 + $0x7f] sm:$0x1] %vm843_vm5, %v7489_v53  ;;  %v7550_v53 = vunpack.i.h.bf16 %v10242_v22 }
 0x3e4   : > { %3245 = vst.msk [vmem:[#allocation2 + $0x6f] sm:$0xfe] %vm839_vm4, %v7484_v52  ;;  %vm10411_vm4 = vmmov %vm10404_vm0  ;;  %v7570_v52 = vunpack.i.h.bf16 %v7568_v9 }
 0x3e5   : > { %3246 = vst.msk [vmem:[#allocation2 + $0x77] sm:$0xff] %vm841_vm6, %v7485_v29  ;;  %v7493_v30 = vpop.permute.xlu1 %7492 }
 0x3e6   : > { %3478 = vst.msk [vmem:[#allocation2 + $0x70] sm:$0xff] %vm1082_vm7, %v7499_v37  ;;  %3479 = vst.msk [vmem:[#allocation2 + $0x78] sm:$0xff] %vm1082_vm7, %v7500_v41  ;;  %v7495_v38 = vunpack.i.h.bf16 %v7493_v30  ;;  %v7494_v5 = vunpack.i.l.bf16 %v7493_v30 }
 0x3e7   : > { %v4821_v50 = vld [vmem:[#allocation2 + $0xd8] sm:$0xff] }
 0x3e8   : > { %v4820_v23 = vld [vmem:[#allocation2 + $0xd0] sm:$0xff]  ;;  %v4805_v35 = vld [vmem:[#allocation2 + $0x58] sm:$0xff]  ;;  %3270 = vst.msk [vmem:[#allocation2 + $0xf7] sm:$0xff] %vm841_vm6, %v7494_v5 }
 0x3e9   : > { %v4839_v32 = vpack.c.bf16 %v4821_v50, %v4820_v23  ;;  %v4831_v6 = vpack.c.bf16 %v4805_v35, %v4804_v63  ;;  %3271 = vst.msk [vmem:[#allocation2 + $0xff] sm:$0x1] %vm843_vm5, %v7495_v38  ;;  %v7503_v24 = vpop.permute.xlu1 %7502  ;;  %vm10412_vm5 = vmmov %vm10404_vm0  ;;  %v7578_v63 = vpop.permute.xlu0 %7577  ;;  %v7569_v23 = vunpack.i.l.bf16 %v7568_v9 }
 0x3ea   : > { %v7505_v56 = vunpack.i.h.bf16 %v7503_v24  ;;  %v7504_v21 = vunpack.i.l.bf16 %v7503_v24  ;;  %v7579_v30 = vunpack.i.l.bf16 %v7578_v63 }
 0x3eb   : > { %6246 = vmatprep.subr.msk.bf16.mxu1 %vm1164_vm10, %v4839_v32  ;;  %v4863_v18 = vsel %vm1164_vm10, %v4831_v6, 0  ;;  %v7580_v6 = vunpack.i.h.bf16 %v7578_v63 }
 0x3ec   : > { %6210 = vmatpush3.bf16.xpose.msra.mxu1 %v4863_v18  ;;  %3494 = vst.msk [vmem:[#allocation2 + $0xf0] sm:$0xff] %vm1082_vm7, %v7504_v21  ;;  %3495 = vst.msk [vmem:[#allocation2 + $0xf8] sm:$0xff] %vm1082_vm7, %v7505_v56 }
 0x3ed   : > { %v3510_v3 = vld [vmem:[#allocation2 + $0x70] sm:$0xff]  ;;  %v3511_v42 = vld [vmem:[#allocation2 + $0x78] sm:$0xff]  ;;  %v7513_v27 = vpop.permute.xlu1 %7512  ;;  %v7588_v58 = vpop.permute.xlu0 %7587 }
 0x3ee   : > { %3759 = vst.msk [vmem:[#allocation2 + $0x6e] sm:$0xfc] %vm1357_vm8, %v3711_v14  ;;  %v7515_v55 = vunpack.i.h.bf16 %v7513_v27  ;;  %v7514_v47 = vunpack.i.l.bf16 %v7513_v27  ;;  %v3535_v12 = vpack.c.bf16 %v3511_v42, %v3510_v3  ;;  %v7589_v4 = vunpack.i.l.bf16 %v7588_v58 }
 0x3ef   : > { %3760 = vst.msk [vmem:[#allocation2 + $0x76] sm:$0xff] %vm277_vm1, %v3712_v39 }
 0x3f0   : > { %3761 = vst.msk [vmem:[#allocation2 + $0x7e] sm:$0x3] %vm1360_vm9, %v3713_v13  ;;  %v3571_v54 = vsel %vm1164_vm10, %v3535_v12, 0  ;;  %v7590_v13 = vunpack.i.h.bf16 %v7588_v58 }
 0x3f1   : > { %4097 = vst.msk [vmem:[#allocation2 + $0x7f] sm:$0x1] %vm10411_vm4, %v7559_v45  ;;  %v7523_v57 = vpop.permute.xlu1 %7522 }
 0x3f2   : > { %4094 = vst.msk [vmem:[#allocation2 + $0x6f] sm:$0x1] %vm10412_vm5, %v7514_v47  ;;  %v7525_v1 = vunpack.i.h.bf16 %v7523_v57  ;;  %v7524_v46 = vunpack.i.l.bf16 %v7523_v57 }
 0x3f3   : > { %4116 = vst.msk [vmem:[#allocation2 + $0xdf] sm:$0xfe] %vm1695_vm11, %v7515_v55  ;;  %v3526_v48 = vld [vmem:[#allocation2 + $0xf0] sm:$0xff]  ;;  %v3527_v51 = vld [vmem:[#allocation2 + $0xf8] sm:$0xff] }
 0x3f4   : > { %4430 = vst.msk [vmem:[#allocation2 + $0x6e] sm:$0x3] %vm2036_vm14, %v7529_v10  ;;  %v3543_v2 = vpack.c.bf16 %v3527_v51, %v3526_v48 }
 0x3f5   : > { %4452 = vst.msk [vmem:[#allocation2 + $0xde] sm:$0xfc] %vm2033_vm13, %v7530_v49  ;;  %4428 = vst.msk [vmem:[#allocation2 + $0x5e] sm:$0xfc] %vm2033_vm13, %v7524_v46  ;;  %v7533_v26 = vpop.permute.xlu1 %7532 }
 0x3f6   : > { %3783 = vst.msk [vmem:[#allocation2 + $0xee] sm:$0xfc] %vm1357_vm8, %v3735_v11  ;;  %v7535_v8 = vunpack.i.h.bf16 %v7533_v26  ;;  %v7534_v31 = vunpack.i.l.bf16 %v7533_v26  ;;  %6240 = vmatprep.subr.msk.bf16.mxu0 %vm1164_vm10, %v3543_v2  ;;  %v2566_v26 = vadd.f32 %v10085_v19, %v9857_v25 }
 0x3f7   : > { %3784 = vst.msk [vmem:[#allocation2 + $0xf6] sm:$0xff] %vm277_vm1, %v3736_v36  ;;  %6196 = vmatpush3.bf16.xpose.msra.mxu0 %v3571_v54  ;;  %vm10413_vm1 = vmmov %vm10404_vm0 }
 0x3f8   : > { %4429 = vst.msk [vmem:[#allocation2 + $0x66] sm:$0xff] %vm841_vm6, %v7525_v1  ;;  %4453 = vst.msk [vmem:[#allocation2 + $0xe6] sm:$0xff] %vm841_vm6, %v7534_v31 }
 0x3f9   : > { %3785 = vst.msk [vmem:[#allocation2 + $0xfe] sm:$0x3] %vm1360_vm9, %v3737_v33  ;;  %v7543_v41 = vpop.permute.xlu1 %7542 }
 0x3fa   : > { %4764 = vst.msk [vmem:[#allocation2 + $0x5f] sm:$0xfe] %vm2371_vm12, %v7539_v34  ;;  %v7545_v37 = vunpack.i.h.bf16 %v7543_v41  ;;  %v7544_v50 = vunpack.i.l.bf16 %v7543_v41 }
 0x3fb   : > { %4765 = vst.msk [vmem:[#allocation2 + $0x67] sm:$0xff] %vm1082_vm7, %v7540_v44 }
 0x3fc   : > { %4119 = vst.msk [vmem:[#allocation2 + $0xef] sm:$0xfe] %vm1695_vm11, %v7560_v62 }
 0x3fd   : > { %4454 = vst.msk [vmem:[#allocation2 + $0xee] sm:$0x3] %vm2036_vm14, %v7535_v8  ;;  %v7553_v29 = vpop.permute.xlu1 %7552 }
 0x3fe   : > { %4789 = vst.msk [vmem:[#allocation2 + $0xe7] sm:$0xff] %vm1082_vm7, %v7549_v17  ;;  %v7555_v35 = vunpack.i.h.bf16 %v7553_v29  ;;  %v7554_v22 = vunpack.i.l.bf16 %v7553_v29  ;;  %6198 = vmatmul.mubr.msk.bf16.vlgmr.msra.gmra.mrb[4].mxu0 %vm1164_vm10, %v10078_v61 }
 0x3ff   : > { %4790 = vst.msk [vmem:[#allocation2 + $0xef] sm:$0x1] %vm2374_vm15, %v7550_v53  ;;  %4766 = vst.msk [vmem:[#allocation2 + $0x6f] sm:$0x1] %vm2374_vm15, %v7544_v50 }
 0x400   : > { %4788 = vst.msk [vmem:[#allocation2 + $0xdf] sm:$0xfe] %vm2371_vm12, %v7545_v37 }
 0x401   : > { %4095 = vst.msk [vmem:[#allocation2 + $0x6f] sm:$0xfe] %vm1695_vm11, %v7554_v22  ;;  %v7563_v32 = vpop.permute.xlu1 %7562 }
 0x402   : > { %4096 = vst.msk [vmem:[#allocation2 + $0x77] sm:$0xff] %vm518_vm3, %v7555_v35  ;;  %v4806_v38 = vld [vmem:[#allocation2 + $0x60] sm:$0xff]  ;;  %v7565_v5 = vunpack.i.h.bf16 %v7563_v32  ;;  %v7564_v18 = vunpack.i.l.bf16 %v7563_v32 }
 0x403   : > { %4431 = vst.msk [vmem:[#allocation2 + $0x6e] sm:$0xfc] %vm2033_vm13, %v7569_v23 }
 0x404   : > { %4432 = vst.msk [vmem:[#allocation2 + $0x76] sm:$0xff] %vm841_vm6, %v7570_v52 }
 0x405   : > { %4120 = vst.msk [vmem:[#allocation2 + $0xf7] sm:$0xff] %vm518_vm3, %v7564_v18  ;;  %v7573_v39 = vpop.permute.xlu1 %7572 }
 0x406   : > { %v4823_v28 = vld [vmem:[#allocation2 + $0xe8] sm:$0xff]  ;;  %4121 = vst.msk [vmem:[#allocation2 + $0xff] sm:$0x1] %vm10413_vm1, %v7565_v5  ;;  %v7575_v56 = vunpack.i.h.bf16 %v7573_v39  ;;  %v7574_v21 = vunpack.i.l.bf16 %v7573_v39 }
 0x407   : > { %v4822_v7 = vld [vmem:[#allocation2 + $0xe0] sm:$0xff]  ;;  %v4807_v14 = vld [vmem:[#allocation2 + $0x68] sm:$0xff]  ;;  %4456 = vst.msk [vmem:[#allocation2 + $0xf6] sm:$0xff] %vm841_vm6, %v7579_v30 }
 0x408   : > { %v4840_v61 = vpack.c.bf16 %v4823_v28, %v4822_v7  ;;  %v4832_v24 = vpack.c.bf16 %v4807_v14, %v4806_v38  ;;  %4457 = vst.msk [vmem:[#allocation2 + $0xfe] sm:$0x3] %vm2036_vm14, %v7580_v6  ;;  %4433 = vst.msk [vmem:[#allocation2 + $0x7e] sm:$0x3] %vm2036_vm14, %v7574_v21 }
 0x409   : > { %4455 = vst.msk [vmem:[#allocation2 + $0xee] sm:$0xfc] %vm2033_vm13, %v7575_v56  ;;  %v7583_v3 = vpop.permute.xlu1 %7582 }
 0x40a   : > { %6247 = vmatprep.subr.msk.bf16.mxu1 %vm1164_vm10, %v4840_v61  ;;  %v4866_v45 = vsel %vm1164_vm10, %v4832_v24, 0  ;;  %4769 = vst.msk [vmem:[#allocation2 + $0x7f] sm:$0x1] %vm2374_vm15, %v7589_v4  ;;  %v7585_v42 = vunpack.i.h.bf16 %v7583_v3  ;;  %v7584_v0 = vunpack.i.l.bf16 %v7583_v3 }
 0x40b   : > { %6212 = vmatpush3.bf16.xpose.msra.mxu1 %v4866_v45  ;;  %4791 = vst.msk [vmem:[#allocation2 + $0xef] sm:$0xfe] %vm2371_vm12, %v7590_v13 }
 0x40c   : > { %4767 = vst.msk [vmem:[#allocation2 + $0x6f] sm:$0xfe] %vm2371_vm12, %v7584_v0 }
 0x40d   : > { %4768 = vst.msk [vmem:[#allocation2 + $0x77] sm:$0xff] %vm1082_vm7, %v7585_v42  ;;  %v7593_v16 = vpop.permute.xlu1 %7592 }
 0x40e   : > { %v7595_v27 = vunpack.i.h.bf16 %v7593_v16  ;;  %v7594_v49 = vunpack.i.l.bf16 %v7593_v16 }
 0x410   : > { %4792 = vst.msk [vmem:[#allocation2 + $0xf7] sm:$0xff] %vm1082_vm7, %v7594_v49 }
 0x411   : > { %4793 = vst.msk [vmem:[#allocation2 + $0xff] sm:$0x1] %vm2374_vm15, %v7595_v27 }
 0x414   : > { %v4808_v10 = vld [vmem:[#allocation2 + $0x70] sm:$0xff]  ;;  %v4809_v40 = vld [vmem:[#allocation2 + $0x78] sm:$0xff] }
 0x415   : > { %v4833_v55 = vpack.c.bf16 %v4809_v40, %v4808_v10 }
 0x417   : > { %v4824_v47 = vld [vmem:[#allocation2 + $0xf0] sm:$0xff]  ;;  %v4869_v12 = vsel %vm1164_vm10, %v4833_v55, 0 }
 0x418   : > { %v4825_v11 = vld [vmem:[#allocation2 + $0xf8] sm:$0xff] }
 0x419   : > { %v4841_v36 = vpack.c.bf16 %v4825_v11, %v4824_v47 }
 0x41b   : > { %6248 = vmatprep.subr.msk.bf16.mxu1 %vm1164_vm10, %v4841_v36 }
 0x41c   : > { %6214 = vmatpush3.bf16.xpose.msra.mxu1 %v4869_v12 }
 0x423   : > { %6216 = vmatmul.mubr.msk.bf16.vlgmr.msra.gmra.mrb[4].mxu1 %vm1164_vm10, %v10109_v60 }
 0x4d1   : > { %v3631_v33 = vpop.f32.mrb[4].mxu0 }
 0x4d2   : > { %v3633_v57 = vpop.f32.mrb[5].mxu0 }
 0x4d3   : > { %v3638_v44 = vadd.f32 %v3633_v57, %v3631_v33  ;;  %v3635_v34 = vpop.f32.mrb[6].mxu0 }
 0x4d4   : > { %v3636_v62 = vpop.f32.mrb[7].mxu0 }
 0x4d5   : > { %3639 = vadd.xlane.f32.xlu0 %v3638_v44 }
 0x4f6   : > { %v4929_v1 = vpop.f32.mrb[4].mxu1 }
 0x4f7   : > { %v4931_v46 = vpop.f32.mrb[5].mxu1 }
 0x4f8   : > { %v4936_v48 = vadd.f32 %v4931_v46, %v4929_v1  ;;  %v4933_v51 = vpop.f32.mrb[6].mxu1 }
 0x4f9   : > { %v4934_v2 = vpop.f32.mrb[7].mxu1 }
 0x4fa   : > { %4937 = vadd.xlane.f32.xlu1 %v4936_v48 }
 0x562   : > { %v3640_v54 = vpop.xlane.xlu0 %3639 }
 0x563   : > { %v3641_v53 = vadd.f32 %v3640_v54, %v2566_v26 }
 0x587   : > { %v4938_v17 = vpop.xlane.xlu1 %4937 }
 0x588   : > { %v4939_v8 = vadd.f32 %v4938_v17, %v3641_v53 }
 0x58a   : > { %v4940_v60 = vmul.f32 0.0009765625, %v4939_v8 }
 0x58c   : > { %v4945_v31 = vsub.f32 %v3631_v33, %v4940_v60  ;;  %v4946_v9 = vsub.f32 %v3633_v57, %v4940_v60  ;;  %v4941_v41 = vsub.f32 %v9615_v59, %v4940_v60  ;;  %v4942_v37 = vsub.f32 %v9617_v20, %v4940_v60 }
 0x58d   : > { %v4943_v50 = vsub.f32 %v9886_v15, %v4940_v60  ;;  %v4944_v63 = vsub.f32 %v9891_v43, %v4940_v60  ;;  %v4947_v29 = vsub.f32 %v4929_v1, %v4940_v60  ;;  %v4948_v52 = vsub.f32 %v4931_v46, %v4940_v60 }
 0x58e   : > { %v4961_v23 = vmul.f32 %v4945_v31, %v4945_v31  ;;  %v4962_v35 = vmul.f32 %v4946_v9, %v4946_v9  ;;  %v4949_v22 = vmul.f32 %v4941_v41, %v4941_v41  ;;  %v4950_v25 = vmul.f32 %v4942_v37, %v4942_v37 }
 0x58f   : > { %v4955_v6 = vmul.f32 %v4943_v50, %v4943_v50  ;;  %v4956_v30 = vmul.f32 %v4944_v63, %v4944_v63  ;;  %v4967_v59 = vmul.f32 %v4947_v29, %v4947_v29  ;;  %v4968_v20 = vmul.f32 %v4948_v52, %v4948_v52 }
 0x590   : > { %v4963_v19 = vadd.f32 %v4962_v35, %v4961_v23  ;;  %v4951_v32 = vadd.f32 %v4950_v25, %v4949_v22 }
 0x591   : > { %v4957_v28 = vadd.f32 %v4956_v30, %v4955_v6  ;;  %v4969_v15 = vadd.f32 %v4968_v20, %v4967_v59 }
 0x592   : > { %4964 = vadd.xlane.f32.xlu1 %v4963_v19  ;;  %4952 = vadd.xlane.f32.xlu0 %v4951_v32 }
 0x596   : > { %4958 = vadd.xlane.f32.xlu0 %v4957_v28 }
 0x59a   : > { %4970 = vadd.xlane.f32.xlu0 %v4969_v15 }
 0x61f   : > { %v4953_v43 = vpop.xlane.xlu0 %4952  ;;  %v4965_v18 = vpop.xlane.xlu1 %4964 }
 0x623   : > { %v4959_v38 = vpop.xlane.xlu0 %4958 }
 0x624   : > { %v4960_v5 = vadd.f32 %v4959_v38, %v4953_v43 }
 0x626   : > { %v4966_v58 = vadd.f32 %v4965_v18, %v4960_v5 }
 0x627   : > { %v4971_v7 = vpop.xlane.xlu0 %4970 }
 0x628   : > { %v4972_v14 = vadd.f32 %v4971_v7, %v4966_v58 }
 0x62a   : > { %v4973_v61 = vmul.f32 0.0009765625, %v4972_v14 }
 0x62c   : > { %v4974_v24 = vadd.f32 1e-05, %v4973_v61 }
 0x62e   : > { %7596 = vrsqrt.f32 %v4974_v24 }
 0x638   : > { %v7597_v39 = vpop.eup %7596 }
 0x639   : > { %v4976_v13 = vmul.f32 %v7597_v39, %v4941_v41  ;;  %v4977_v4 = vmul.f32 %v7597_v39, %v4942_v37  ;;  %v4986_v56 = vmul.f32 %v7597_v39, %v4943_v50  ;;  %v4987_v21 = vmul.f32 %v7597_v39, %v4944_v63 }
 0x63a   : > { %v4997_v45 = vmul.f32 %v7597_v39, %v4945_v31  ;;  %v4998_v3 = vmul.f32 %v7597_v39, %v4946_v9  ;;  %v5008_v42 = vmul.f32 %v7597_v39, %v4947_v29  ;;  %v5009_v0 = vmul.f32 %v7597_v39, %v4948_v52 }
 0x63b   : > { %vm4978_vm3 = vcmp.ge.f32.partialorder %v4976_v13, 0.0  ;;  %vm4979_vm6 = vcmp.ge.f32.partialorder %v4977_v4, 0.0  ;;  %v4980_v16 = vmul.f32 0.01, %v4976_v13  ;;  %v4981_v27 = vmul.f32 0.01, %v4977_v4 }
 0x63c   : > { %vm4988_vm7 = vcmp.ge.f32.partialorder %v4986_v56, 0.0  ;;  %vm4989_vm8 = vcmp.ge.f32.partialorder %v4987_v21, 0.0  ;;  %v4990_v49 = vmul.f32 0.01, %v4986_v56  ;;  %v4991_v10 = vmul.f32 0.01, %v4987_v21 }
 0x63d   : > { %v4982_v40 = vsel %vm4978_vm3, %v4976_v13, %v4980_v16  ;;  %v4983_v55 = vsel %vm4979_vm6, %v4977_v4, %v4981_v27  ;;  %vm4999_vm9 = vcmp.ge.f32.partialorder %v4997_v45, 0.0  ;;  %vm5000_vm10 = vcmp.ge.f32.partialorder %v4998_v3, 0.0 }
 0x63e   : > { %4984 = vst [vmem:[%s10322_s22] sm:$0xff] %v4982_v40  ;;  %4985 = vst [vmem:[%s10322_s22 + $0x8] sm:$0xff] %v4983_v55  ;;  %v4992_v47 = vsel %vm4988_vm7, %v4986_v56, %v4990_v49  ;;  %v4993_v11 = vsel %vm4989_vm8, %v4987_v21, %v4991_v10  ;;  %v5001_v36 = vmul.f32 0.01, %v4997_v45  ;;  %v5002_v12 = vmul.f32 0.01, %v4998_v3 }
 0x63f   : > { %5656 = vst [vmem:[%s10322_s22 + $0x10] sm:$0xff] %v4992_v47  ;;  %5657 = vst [vmem:[%s10322_s22 + $0x18] sm:$0xff] %v4993_v11  ;;  %vm5010_vm11 = vcmp.ge.f32.partialorder %v5008_v42, 0.0  ;;  %vm5011_vm12 = vcmp.ge.f32.partialorder %v5009_v0, 0.0  ;;  %v5012_v33 = vmul.f32 0.01, %v5008_v42 }
 0x640   : > { %v5013_v57 = vmul.f32 0.01, %v5009_v0  ;;  %v5003_v44 = vsel %vm4999_vm9, %v4997_v45, %v5001_v36  ;;  %v5004_v34 = vsel %vm5000_vm10, %v4998_v3, %v5002_v12 }
 0x641   : > { %5658 = vst [vmem:[%s10322_s22 + $0x20] sm:$0xff] %v5003_v44  ;;  %5659 = vst [vmem:[%s10322_s22 + $0x28] sm:$0xff] %v5004_v34  ;;  %v5014_v62 = vsel %vm5010_vm11, %v5008_v42, %v5012_v33 }
 0x642   : > { %v5015_v1 = vsel %vm5011_vm12, %v5009_v0, %v5013_v57  ;;  %5660 = vst [vmem:[%s10322_s22 + $0x30] sm:$0xff] %v5014_v62 }
 0x643   : > { %5661 = vst [vmem:[%s10322_s22 + $0x38] sm:$0xff] %v5015_v1 }
 0x644   : > { %7671 = shalt.err (!%p7668_p7)
}
 0x645   : > { %s7672_s23 = scalar_lea.hbm %s10332_s6, 1024  ;;  %s7676_s3 = scalar_lea.hbm %s10386_s2, 2048 }
 0x646   : > { %p7673_p9 = scmp.ne.s32.totalorder %s10332_s6, %s7672_s23  ;;  %p7677_p5 = scmp.lt.u32.totalorder %s10332_s6, %s10386_s2 }
 0x647   : > { %p7678_p13 = scmp.lt.u32.totalorder %s7676_s3, %s7672_s23  ;;  %p7680_p4 = scmp.lt.u32.totalorder %s7672_s23, %s10332_s6 }
 0x648   : > { %p7674_p1 = pnand %p7673_p9, %p7849_p12 }
 0x649   : > { %p7679_p2 = por %p7678_p13, %p7677_p5 }
 0x64a   : > { %p7675_p0 = pneg %p7674_p1 }
 0x64b   : > { %p7681_p6 = por %p7680_p4, %p7679_p2 }
 0x64d   : > { %p7682_p8 = pnand %p7681_p6, %p7675_p0 }
 0x64f   : > { %7685 = shalt.err (!%p7682_p8)
}
 0x650   : > { %s7738_s4 = smov 256   ;;  %s7739_s5 = smov 16  }
 0x651   : > { %6258 = dma.vmem_to_hbm [thread:$0]  (%p7849_p12), %s10334_s27, 1024, %s10332_s6, %s5020_s7, %s7738_s4, %s7738_s4, %s7739_s5  }
 0x652 PF: > { %s5048_s25 = sand.u32 1, %s7716_s9   ;;  %p10414_p10 = scmp.ne.s32.totalorder %s10393_s16, 0 }
 0x653   : > { %p10415_p11 = scmp.ge.s32.totalorder %s7728_s12, 2  ;;  %s5049_s22 = scalar_lea.sflag [#allocation5], %s5048_s25 }
 0x655   : > { %p6269_p3 = pnand %p10415_p11, %p10414_p10 }
 0x657   : > { %7711 = dma.done.wait (!%p6269_p3), %s5049_s22, 1024  }
 0x658   : > { %7713 = vsyncadd (!%p6269_p3), %s5049_s22, 4294966272  ;;  %p16_p7 = scmp.ge.s32.totalorder %s7811_s21, 4   ;;  %s10416_s9 = smov %s7720_s10 }
 0x659   : > { %s10417_s10 = smov %s7724_s11  ;;  %s10418_s11 = smov %s7845_s8 }
 0x65a   : > { %s10419_s12 = smov %s7811_s21  ;;  %18 = sbr.rel (!%p16_p7) target bundleno = 6 (0x6), region = 85 }
 0x661   :  { %5054 = vsyncpa [#allocation4], 1 }
 0x662   :  { %5056 = vsyncpa [#allocation4 + $0x1], 1 }
 0x663   :  { %5057 = vsyncpa [#allocation7], 1 }
 0x664   :  { %5058 = vsyncpa [#allocation5], 1 }
 0x665   :  { %5060 = vsyncpa [#allocation5 + $0x1], 1 }

</bundles_post_ra>
